<compile_context>
chip_gen: v7x
topology: tpu7x:2x2x1
jax: 0.10.0
libtpu: 0.0.40
codegen_flags: <defaults>
</compile_context>

<pallas_src>
import functools

import jax
import jax.numpy as jnp
from jax.experimental import pallas as pl
from jax.experimental.pallas import tpu as pltpu

F32 = jnp.float32


# ------------------------------ fused kernel --------------------------------

def _fused_resnet_kernel(*refs, has_down, width, exp_out, stem_k, conv_hw, pool_hw):
    """Whole ResNet forward for one batch element, fully VMEM-resident.

    refs = [x_pad, stem_w, stem_scale, stem_bias, *per_block_params, out]
      x_pad     : (1, H+2p, W+2p, Cin)  spatially pre-padded NHWC input tile
      stem_w    : (k*k, Cin, C1)        7x7 conv weights, tap-major
      per block : has_down -> [w1cat, s1, b1, sd, bd, w2, s2, b2, w3, s3, b3]
                  else     -> [w1,    s1, b1,         w2, s2, b2, w3, s3, b3]
      out       : (1, Ho, Wo, exp_out)
    """
    o_ref = refs[-1]
    it = iter(refs[:-1])
    x_ref = next(it)
    stem_w, stem_s, stem_b = next(it), next(it), next(it)

    H, W = conv_hw            # spatial size of the stride-1 7x7 conv output
    Ho, Wo = pool_hw          # spatial size after the 3x3/s2/p1 maxpool
    cin = x_ref.shape[-1]
    c1 = stem_w.shape[-1]

    # ---- stem: 7x7 conv (stride 1, pad 3) as 49 shifted-tap matmuls --------
    xi = x_ref[0]                                           # (H+2p, W+2p, cin)
    acc = jnp.zeros((H * W, c1), F32)
    for t in range(stem_k * stem_k):
        ki, kj = divmod(t, stem_k)
        patch = xi[ki:ki + H, kj:kj + W, :]                 # (H, W, cin)
        acc = acc + jnp.dot(patch.reshape(H * W, cin), stem_w[t],
                            preferred_element_type=F32)
    y = jnp.maximum(acc * stem_s[...] + stem_b[...], 0.0)   # folded BN + ReLU
    y = y.reshape(H, W, c1)

    # ---- maxpool 3x3, stride 2, pad 1 ---------------------------------------
    # y >= 0 after ReLU, so clamping windows to valid indices == -inf padding.
    rows = []
    for oh in range(Ho):
        lo = max(2 * oh - 1, 0)
        hi = min(2 * oh + 1, H - 1)
        r = y[lo:lo + 1]
        for rr in range(lo + 1, hi + 1):
            r = jnp.maximum(r, y[rr:rr + 1])
        rows.append(r)                                      # (1, W, c1)
    yh = jnp.concatenate(rows, axis=0)                      # (Ho, W, c1)
    cols = []
    for ow in range(Wo):
        lo = max(2 * ow - 1, 0)
        hi = min(2 * ow + 1, W - 1)
        c = yh[:, lo:lo + 1, :]
        for cc in range(lo + 1, hi + 1):
            c = jnp.maximum(c, yh[:, cc:cc + 1, :])
        cols.append(c)                                      # (Ho, 1, c1)
    xk = jnp.concatenate(cols, axis=1)                      # (Ho, Wo, c1)

    # ---- Bottleneck blocks: 1x1 -> 3x3 -> 1x1 -> (+identity) -> ReLU --------
    M = Ho * Wo
    x2d = xk.reshape(M, c1)
    for down in has_down:
        if down:
            # conv1(1x1) and downsample(1x1) share the block input: one fused
            # matmul with concatenated output channels, different epilogues.
            w1cat, s1, b1 = next(it), next(it), next(it)
            sd, bd = next(it), next(it)
            both = jnp.dot(x2d, w1cat[...], preferred_element_type=F32)
            o1 = jnp.maximum(both[:, :width] * s1[...] + b1[...], 0.0)
            ident = both[:, width:] * sd[...] + bd[...]
        else:
            w1, s1, b1 = next(it), next(it), next(it)
            o1 = jnp.maximum(
                jnp.dot(x2d, w1[...], preferred_element_type=F32)
                * s1[...] + b1[...], 0.0)
            ident = x2d
        w2, s2, b2 = next(it), next(it), next(it)
        w3, s3, b3 = next(it), next(it), next(it)

        # 3x3 conv, pad 1: zero-pad spatially in VMEM, accumulate 9 taps.
        o1_3d = o1.reshape(Ho, Wo, width)
        zrow = jnp.zeros((1, Wo, width), F32)
        p = jnp.concatenate([zrow, o1_3d, zrow], axis=0)    # (Ho+2, Wo, width)
        zcol = jnp.zeros((Ho + 2, 1, width), F32)
        p = jnp.concatenate([zcol, p, zcol], axis=1)        # (Ho+2, Wo+2, width)
        acc2 = jnp.zeros((M, width), F32)
        for t in range(9):
            dh, dw = divmod(t, 3)
            patch = p[dh:dh + Ho, dw:dw + Wo, :]            # (Ho, Wo, width)
            acc2 = acc2 + jnp.dot(patch.reshape(M, width), w2[t],
                                  preferred_element_type=F32)
        o2 = jnp.maximum(acc2 * s2[...] + b2[...], 0.0)

        # conv3 (1x1) + BN, residual add, ReLU — all in the same epilogue.
        o3 = jnp.dot(o2, w3[...], preferred_element_type=F32) * s3[...] + b3[...]
        x2d = jnp.maximum(o3 + ident, 0.0)                  # (M, exp_out)

    o_ref[0] = x2d.reshape(Ho, Wo, exp_out)


def _const_spec(a):
    zeros = (0,) * a.ndim
    return pl.BlockSpec(a.shape, lambda n, _z=zeros: _z)


def resnet_forward(packed, x_nchw):
    """NCHW in -> NCHW out; a single fused pallas_call, grid over the batch."""
    stem_w, stem_s, stem_b = packed["stem"]
    has_down = packed["has_down"]
    width = packed["width"]
    exp_out = packed["exp_out"]
    stem_k = packed["stem_k"]

    x = jnp.transpose(x_nchw, (0, 2, 3, 1)).astype(F32)     # NCHW -> NHWC
    N, H, W, Cin = x.shape
    pad = stem_k // 2
    xp = jnp.pad(x, ((0, 0), (pad, pad), (pad, pad), (0, 0)))
    Hp, Wp = H + 2 * pad, W + 2 * pad
    Ho = (H - 1) // 2 + 1                                   # maxpool 3x3 s2 p1
    Wo = (W - 1) // 2 + 1

    block_arrays = [a for blk in packed["blocks"] for a in blk]
    inputs = [xp, stem_w, stem_s, stem_b] + block_arrays

    in_specs = [pl.BlockSpec((1, Hp, Wp, Cin), lambda n: (n, 0, 0, 0))]
    in_specs += [_const_spec(a) for a in inputs[1:]]
    out_spec = pl.BlockSpec((1, Ho, Wo, exp_out), lambda n: (n, 0, 0, 0))

    kernel = functools.partial(
        _fused_resnet_kernel,
        has_down=has_down, width=width, exp_out=exp_out,
        stem_k=stem_k, conv_hw=(H, W), pool_hw=(Ho, Wo))

    out_nhwc = pl.pallas_call(
        kernel,
        out_shape=jax.ShapeDtypeStruct((N, Ho, Wo, exp_out), F32),
        grid=(N,),
        in_specs=in_specs,
        out_specs=out_spec,
        compiler_params=pltpu.CompilerParams(
            dimension_semantics=("parallel",)),   # one image per TC on v7x
    )(*inputs)
    return jnp.transpose(out_nhwc, (0, 3, 1, 2))            # NHWC -> NCHW


# --------------------------- parameter construction -------------------------

def _kaiming_conv(key, out_c, in_c, kh, kw):
    # nn.init.kaiming_normal_(mode='fan_out', nonlinearity='relu')
    fan_out = out_c * kh * kw
    std = (2.0 / fan_out) ** 0.5
    return jax.random.normal(key, (out_c, in_c, kh, kw), jnp.float32) * std


def _bn_params(c, eps=1e-5):
    gamma = jnp.ones((c,), jnp.float32)
    beta = jnp.zeros((c,), jnp.float32)
    mean = jnp.zeros((c,), jnp.float32)
    var = jnp.ones((c,), jnp.float32)
    scale = gamma / jnp.sqrt(var + eps)
    bias = beta - mean * scale
    return scale, bias


def init_params(key, num_blocks=2):
    # ResNet(Bottleneck, layers=[num_blocks]): conv1(3->16, 7x7), bn1, maxpool, layer1
    keys = iter(jax.random.split(key, 4 + 4 * num_blocks))
    params = {
        "conv1": _kaiming_conv(next(keys), 16, 3, 7, 7),
        "bn1": _bn_params(16),
        "blocks": [],
    }
    inplanes, planes, expansion = 16, 16, 4
    width = planes  # base_width=64, groups=1 -> width = planes
    for _ in range(num_blocks):
        blk = {
            "conv1": _kaiming_conv(next(keys), width, inplanes, 1, 1),
            "bn1": _bn_params(width),
            "conv2": _kaiming_conv(next(keys), width, width, 3, 3),
            "bn2": _bn_params(width),
            "conv3": _kaiming_conv(next(keys), planes * expansion, width, 1, 1),
            "bn3": _bn_params(planes * expansion),
        }
        if inplanes != planes * expansion:  # first block needs a downsample
            blk["down_conv"] = _kaiming_conv(next(keys), planes * expansion, inplanes, 1, 1)
            blk["down_bn"] = _bn_params(planes * expansion)
        params["blocks"].append(blk)
        inplanes = planes * expansion
    return params


def prepack_params(params):
    """One-time weight repack + BN folding into the layouts the kernel eats."""
    def fold_bn(bn):
        scale, bias = bn
        return scale.reshape(1, -1).astype(F32), bias.reshape(1, -1).astype(F32)

    def pack_1x1(w):                       # (O, I, 1, 1) -> (I, O)
        return jnp.transpose(w[:, :, 0, 0], (1, 0))

    def pack_kxk(w):                       # (O, I, kh, kw) -> (kh*kw, I, O)
        o, i, kh, kw = w.shape
        return jnp.transpose(w, (2, 3, 1, 0)).reshape(kh * kw, i, o)

    stem_w = pack_kxk(params["conv1"])
    stem_s, stem_b = fold_bn(params["bn1"])

    blocks, has_down = [], []
    width = exp_out = None
    for blk in params["blocks"]:
        s1, b1 = fold_bn(blk["bn1"])
        s2, b2 = fold_bn(blk["bn2"])
        s3, b3 = fold_bn(blk["bn3"])
        w1 = pack_1x1(blk["conv1"])
        w2 = pack_kxk(blk["conv2"])
        w3 = pack_1x1(blk["conv3"])
        width = int(w2.shape[-1])
        exp_out = int(w3.shape[-1])
        if "down_conv" in blk:
            wd = pack_1x1(blk["down_conv"])
            sd, bd = fold_bn(blk["down_bn"])
            arrs = [jnp.concatenate([w1, wd], axis=1), s1, b1, sd, bd,
                    w2, s2, b2, w3, s3, b3]
            has_down.append(True)
        else:
            arrs = [w1, s1, b1, w2, s2, b2, w3, s3, b3]
            has_down.append(False)
        blocks.append(arrs)

    return {"stem": [stem_w, stem_s, stem_b], "blocks": blocks,
            "has_down": tuple(has_down), "width": width, "exp_out": exp_out,
            "stem_k": int(params["conv1"].shape[-1])}


# ---------------------------- pure-JAX reference ------------------------------

def ref_forward(params, x_nchw):
    def conv(x, w, stride, pad):
        return jax.lax.conv_general_dilated(
            x, w, (stride, stride), [(pad, pad), (pad, pad)],
            dimension_numbers=("NCHW", "OIHW", "NCHW"))

    def bn(x, p):
        scale, bias = p
        return x * scale[None, :, None, None] + bias[None, :, None, None]

    x = jax.nn.relu(bn(conv(x_nchw, params["conv1"], 1, 3), params["bn1"]))
    x = jax.lax.reduce_window(x, -jnp.inf, jax.lax.max,
                              (1, 1, 3, 3), (1, 1, 2, 2),
                              [(0, 0), (0, 0), (1, 1), (1, 1)])
    for blk in params["blocks"]:
        identity = x
        out = jax.nn.relu(bn(conv(x, blk["conv1"], 1, 0), blk["bn1"]))
        out = jax.nn.relu(bn(conv(out, blk["conv2"], 1, 1), blk["bn2"]))
        out = bn(conv(out, blk["conv3"], 1, 0), blk["bn3"])
        if "down_conv" in blk:
            identity = bn(conv(x, blk["down_conv"], 1, 0), blk["down_bn"])
        x = jax.nn.relu(out + identity)
    return x


# ---------------------------------- main --------------------------------------

if __name__ == "__main__":
    key = jax.random.PRNGKey(0)
    k_params, k_x = jax.random.split(key)
    params = init_params(k_params, num_blocks=2)
    packed = prepack_params(params)

    # PyTorch input is NCHW with 3 input channels (conv1: 3 -> 16).
    x = jax.random.normal(k_x, (2, 3, 16, 16), jnp.float32)

    fwd = jax.jit(lambda xx: resnet_forward(packed, xx))
    out = jax.block_until_ready(fwd(x))
    assert out.shape == (2, 64, 8, 8), out.shape

    ref = jax.block_until_ready(ref_forward(params, x))
    assert jnp.allclose(out, ref, rtol=1e-3, atol=1e-3), float(jnp.abs(out - ref).max())

    print("KERNEL_OK")
</pallas_src>

<mosaic_0001>
module attributes {stable_mosaic.version = 11 : i64} {
  func.func @_fused_resnet_kernel(%arg0: i32, %arg1: memref<1x22x22x3xf32, #tpu.memory_space<vmem>>, %arg2: memref<49x3x16xf32, #tpu.memory_space<vmem>>, %arg3: memref<1x16xf32, #tpu.memory_space<vmem>>, %arg4: memref<1x16xf32, #tpu.memory_space<vmem>>, %arg5: memref<16x80xf32, #tpu.memory_space<vmem>>, %arg6: memref<1x16xf32, #tpu.memory_space<vmem>>, %arg7: memref<1x16xf32, #tpu.memory_space<vmem>>, %arg8: memref<1x64xf32, #tpu.memory_space<vmem>>, %arg9: memref<1x64xf32, #tpu.memory_space<vmem>>, %arg10: memref<9x16x16xf32, #tpu.memory_space<vmem>>, %arg11: memref<1x16xf32, #tpu.memory_space<vmem>>, %arg12: memref<1x16xf32, #tpu.memory_space<vmem>>, %arg13: memref<16x64xf32, #tpu.memory_space<vmem>>, %arg14: memref<1x64xf32, #tpu.memory_space<vmem>>, %arg15: memref<1x64xf32, #tpu.memory_space<vmem>>, %arg16: memref<64x16xf32, #tpu.memory_space<vmem>>, %arg17: memref<1x16xf32, #tpu.memory_space<vmem>>, %arg18: memref<1x16xf32, #tpu.memory_space<vmem>>, %arg19: memref<9x16x16xf32, #tpu.memory_space<vmem>>, %arg20: memref<1x16xf32, #tpu.memory_space<vmem>>, %arg21: memref<1x16xf32, #tpu.memory_space<vmem>>, %arg22: memref<16x64xf32, #tpu.memory_space<vmem>>, %arg23: memref<1x64xf32, #tpu.memory_space<vmem>>, %arg24: memref<1x64xf32, #tpu.memory_space<vmem>>, %arg25: memref<1x8x8x64xf32, #tpu.memory_space<vmem>>) attributes {dimension_semantics = [#tpu.dimension_semantics<parallel>], iteration_bounds = array<i64: 2>, scalar_prefetch = 0 : i64, scratch_operands = 0 : i64, tpu.core_type = #tpu.core_type<tc>, window_params = [{transform_indices = @transform_0, window_bounds = array<i64: 1, 22, 22, 3>}, {pipeline_mode = #tpu.pipeline_mode<synchronous>, transform_indices = @transform_1, window_bounds = array<i64: 49, 3, 16>}, {pipeline_mode = #tpu.pipeline_mode<synchronous>, transform_indices = @transform_2, window_bounds = array<i64: 1, 16>}, {pipeline_mode = #tpu.pipeline_mode<synchronous>, transform_indices = @transform_3, window_bounds = array<i64: 1, 16>}, {pipeline_mode = #tpu.pipeline_mode<synchronous>, transform_indices = @transform_4, window_bounds = array<i64: 16, 80>}, {pipeline_mode = #tpu.pipeline_mode<synchronous>, transform_indices = @transform_5, window_bounds = array<i64: 1, 16>}, {pipeline_mode = #tpu.pipeline_mode<synchronous>, transform_indices = @transform_6, window_bounds = array<i64: 1, 16>}, {pipeline_mode = #tpu.pipeline_mode<synchronous>, transform_indices = @transform_7, window_bounds = array<i64: 1, 64>}, {pipeline_mode = #tpu.pipeline_mode<synchronous>, transform_indices = @transform_8, window_bounds = array<i64: 1, 64>}, {pipeline_mode = #tpu.pipeline_mode<synchronous>, transform_indices = @transform_9, window_bounds = array<i64: 9, 16, 16>}, {pipeline_mode = #tpu.pipeline_mode<synchronous>, transform_indices = @transform_10, window_bounds = array<i64: 1, 16>}, {pipeline_mode = #tpu.pipeline_mode<synchronous>, transform_indices = @transform_11, window_bounds = array<i64: 1, 16>}, {pipeline_mode = #tpu.pipeline_mode<synchronous>, transform_indices = @transform_12, window_bounds = array<i64: 16, 64>}, {pipeline_mode = #tpu.pipeline_mode<synchronous>, transform_indices = @transform_13, window_bounds = array<i64: 1, 64>}, {pipeline_mode = #tpu.pipeline_mode<synchronous>, transform_indices = @transform_14, window_bounds = array<i64: 1, 64>}, {pipeline_mode = #tpu.pipeline_mode<synchronous>, transform_indices = @transform_15, window_bounds = array<i64: 64, 16>}, {pipeline_mode = #tpu.pipeline_mode<synchronous>, transform_indices = @transform_16, window_bounds = array<i64: 1, 16>}, {pipeline_mode = #tpu.pipeline_mode<synchronous>, transform_indices = @transform_17, window_bounds = array<i64: 1, 16>}, {pipeline_mode = #tpu.pipeline_mode<synchronous>, transform_indices = @transform_18, window_bounds = array<i64: 9, 16, 16>}, {pipeline_mode = #tpu.pipeline_mode<synchronous>, transform_indices = @transform_19, window_bounds = array<i64: 1, 16>}, {pipeline_mode = #tpu.pipeline_mode<synchronous>, transform_indices = @transform_20, window_bounds = array<i64: 1, 16>}, {pipeline_mode = #tpu.pipeline_mode<synchronous>, transform_indices = @transform_21, window_bounds = array<i64: 16, 64>}, {pipeline_mode = #tpu.pipeline_mode<synchronous>, transform_indices = @transform_22, window_bounds = array<i64: 1, 64>}, {pipeline_mode = #tpu.pipeline_mode<synchronous>, transform_indices = @transform_23, window_bounds = array<i64: 1, 64>}, {transform_indices = @transform_24, window_bounds = array<i64: 1, 8, 8, 64>}]} {
    %c0 = arith.constant 0 : index
    %c0_0 = arith.constant 0 : index
    %c0_1 = arith.constant 0 : index
    %c0_2 = arith.constant 0 : index
    %0 = vector.load %arg1[%c0, %c0_0, %c0_1, %c0_2] : memref<1x22x22x3xf32, #tpu.memory_space<vmem>>, vector<1x22x22x3xf32>
    %1 = vector.shape_cast %0 : vector<1x22x22x3xf32> to vector<22x22x3xf32>
    %cst = arith.constant 0.000000e+00 : f32
    %2 = vector.broadcast %cst : f32 to vector<256x16xf32>
    %3 = vector.extract_strided_slice %1 {offsets = [0, 0, 0], sizes = [16, 16, 3], strides = [1, 1, 1]} : vector<22x22x3xf32> to vector<16x16x3xf32>
    %4 = vector.shape_cast %3 : vector<16x16x3xf32> to vector<256x3xf32>
    %c0_3 = arith.constant 0 : index
    %c0_4 = arith.constant 0 : index
    %c0_5 = arith.constant 0 : index
    %5 = vector.load %arg2[%c0_3, %c0_4, %c0_5] : memref<49x3x16xf32, #tpu.memory_space<vmem>>, vector<1x3x16xf32>
    %6 = vector.shape_cast %5 : vector<1x3x16xf32> to vector<3x16xf32>
    %cst_6 = arith.constant dense<0.000000e+00> : vector<256x16xf32>
    %7 = tpu.matmul %4, %6, %cst_6 {dimension_numbers = #tpu.dot_dimension_numbers<[1], [0], [0], [1], [0, 0, 1, 1], [], []>} : vector<256x3xf32>, vector<3x16xf32>, vector<256x16xf32> -> vector<256x16xf32>
    %8 = arith.addf %2, %7 : vector<256x16xf32>
    %9 = vector.extract_strided_slice %1 {offsets = [0, 1, 0], sizes = [16, 16, 3], strides = [1, 1, 1]} : vector<22x22x3xf32> to vector<16x16x3xf32>
    %10 = vector.shape_cast %9 : vector<16x16x3xf32> to vector<256x3xf32>
    %c1 = arith.constant 1 : index
    %c0_7 = arith.constant 0 : index
    %c0_8 = arith.constant 0 : index
    %11 = vector.load %arg2[%c1, %c0_7, %c0_8] : memref<49x3x16xf32, #tpu.memory_space<vmem>>, vector<1x3x16xf32>
    %12 = vector.shape_cast %11 : vector<1x3x16xf32> to vector<3x16xf32>
    %cst_9 = arith.constant dense<0.000000e+00> : vector<256x16xf32>
    %13 = tpu.matmul %10, %12, %cst_9 {dimension_numbers = #tpu.dot_dimension_numbers<[1], [0], [0], [1], [0, 0, 1, 1], [], []>} : vector<256x3xf32>, vector<3x16xf32>, vector<256x16xf32> -> vector<256x16xf32>
    %14 = arith.addf %8, %13 : vector<256x16xf32>
    %15 = vector.extract_strided_slice %1 {offsets = [0, 2, 0], sizes = [16, 16, 3], strides = [1, 1, 1]} : vector<22x22x3xf32> to vector<16x16x3xf32>
    %16 = vector.shape_cast %15 : vector<16x16x3xf32> to vector<256x3xf32>
    %c2 = arith.constant 2 : index
    %c0_10 = arith.constant 0 : index
    %c0_11 = arith.constant 0 : index
    %17 = vector.load %arg2[%c2, %c0_10, %c0_11] : memref<49x3x16xf32, #tpu.memory_space<vmem>>, vector<1x3x16xf32>
    %18 = vector.shape_cast %17 : vector<1x3x16xf32> to vector<3x16xf32>
    %cst_12 = arith.constant dense<0.000000e+00> : vector<256x16xf32>
    %19 = tpu.matmul %16, %18, %cst_12 {dimension_numbers = #tpu.dot_dimension_numbers<[1], [0], [0], [1], [0, 0, 1, 1], [], []>} : vector<256x3xf32>, vector<3x16xf32>, vector<256x16xf32> -> vector<256x16xf32>
    %20 = arith.addf %14, %19 : vector<256x16xf32>
    %21 = vector.extract_strided_slice %1 {offsets = [0, 3, 0], sizes = [16, 16, 3], strides = [1, 1, 1]} : vector<22x22x3xf32> to vector<16x16x3xf32>
    %22 = vector.shape_cast %21 : vector<16x16x3xf32> to vector<256x3xf32>
    %c3 = arith.constant 3 : index
    %c0_13 = arith.constant 0 : index
    %c0_14 = arith.constant 0 : index
    %23 = vector.load %arg2[%c3, %c0_13, %c0_14] : memref<49x3x16xf32, #tpu.memory_space<vmem>>, vector<1x3x16xf32>
    %24 = vector.shape_cast %23 : vector<1x3x16xf32> to vector<3x16xf32>
    %cst_15 = arith.constant dense<0.000000e+00> : vector<256x16xf32>
    %25 = tpu.matmul %22, %24, %cst_15 {dimension_numbers = #tpu.dot_dimension_numbers<[1], [0], [0], [1], [0, 0, 1, 1], [], []>} : vector<256x3xf32>, vector<3x16xf32>, vector<256x16xf32> -> vector<256x16xf32>
    %26 = arith.addf %20, %25 : vector<256x16xf32>
    %27 = vector.extract_strided_slice %1 {offsets = [0, 4, 0], sizes = [16, 16, 3], strides = [1, 1, 1]} : vector<22x22x3xf32> to vector<16x16x3xf32>
    %28 = vector.shape_cast %27 : vector<16x16x3xf32> to vector<256x3xf32>
    %c4 = arith.constant 4 : index
    %c0_16 = arith.constant 0 : index
    %c0_17 = arith.constant 0 : index
    %29 = vector.load %arg2[%c4, %c0_16, %c0_17] : memref<49x3x16xf32, #tpu.memory_space<vmem>>, vector<1x3x16xf32>
    %30 = vector.shape_cast %29 : vector<1x3x16xf32> to vector<3x16xf32>
    %cst_18 = arith.constant dense<0.000000e+00> : vector<256x16xf32>
    %31 = tpu.matmul %28, %30, %cst_18 {dimension_numbers = #tpu.dot_dimension_numbers<[1], [0], [0], [1], [0, 0, 1, 1], [], []>} : vector<256x3xf32>, vector<3x16xf32>, vector<256x16xf32> -> vector<256x16xf32>
    %32 = arith.addf %26, %31 : vector<256x16xf32>
    %33 = vector.extract_strided_slice %1 {offsets = [0, 5, 0], sizes = [16, 16, 3], strides = [1, 1, 1]} : vector<22x22x3xf32> to vector<16x16x3xf32>
    %34 = vector.shape_cast %33 : vector<16x16x3xf32> to vector<256x3xf32>
    %c5 = arith.constant 5 : index
    %c0_19 = arith.constant 0 : index
    %c0_20 = arith.constant 0 : index
    %35 = vector.load %arg2[%c5, %c0_19, %c0_20] : memref<49x3x16xf32, #tpu.memory_space<vmem>>, vector<1x3x16xf32>
    %36 = vector.shape_cast %35 : vector<1x3x16xf32> to vector<3x16xf32>
    %cst_21 = arith.constant dense<0.000000e+00> : vector<256x16xf32>
    %37 = tpu.matmul %34, %36, %cst_21 {dimension_numbers = #tpu.dot_dimension_numbers<[1], [0], [0], [1], [0, 0, 1, 1], [], []>} : vector<256x3xf32>, vector<3x16xf32>, vector<256x16xf32> -> vector<256x16xf32>
    %38 = arith.addf %32, %37 : vector<256x16xf32>
    %39 = vector.extract_strided_slice %1 {offsets = [0, 6, 0], sizes = [16, 16, 3], strides = [1, 1, 1]} : vector<22x22x3xf32> to vector<16x16x3xf32>
    %40 = vector.shape_cast %39 : vector<16x16x3xf32> to vector<256x3xf32>
    %c6 = arith.constant 6 : index
    %c0_22 = arith.constant 0 : index
    %c0_23 = arith.constant 0 : index
    %41 = vector.load %arg2[%c6, %c0_22, %c0_23] : memref<49x3x16xf32, #tpu.memory_space<vmem>>, vector<1x3x16xf32>
    %42 = vector.shape_cast %41 : vector<1x3x16xf32> to vector<3x16xf32>
    %cst_24 = arith.constant dense<0.000000e+00> : vector<256x16xf32>
    %43 = tpu.matmul %40, %42, %cst_24 {dimension_numbers = #tpu.dot_dimension_numbers<[1], [0], [0], [1], [0, 0, 1, 1], [], []>} : vector<256x3xf32>, vector<3x16xf32>, vector<256x16xf32> -> vector<256x16xf32>
    %44 = arith.addf %38, %43 : vector<256x16xf32>
    %45 = vector.extract_strided_slice %1 {offsets = [1, 0, 0], sizes = [16, 16, 3], strides = [1, 1, 1]} : vector<22x22x3xf32> to vector<16x16x3xf32>
    %46 = vector.shape_cast %45 : vector<16x16x3xf32> to vector<256x3xf32>
    %c7 = arith.constant 7 : index
    %c0_25 = arith.constant 0 : index
    %c0_26 = arith.constant 0 : index
    %47 = vector.load %arg2[%c7, %c0_25, %c0_26] : memref<49x3x16xf32, #tpu.memory_space<vmem>>, vector<1x3x16xf32>
    %48 = vector.shape_cast %47 : vector<1x3x16xf32> to vector<3x16xf32>
    %cst_27 = arith.constant dense<0.000000e+00> : vector<256x16xf32>
    %49 = tpu.matmul %46, %48, %cst_27 {dimension_numbers = #tpu.dot_dimension_numbers<[1], [0], [0], [1], [0, 0, 1, 1], [], []>} : vector<256x3xf32>, vector<3x16xf32>, vector<256x16xf32> -> vector<256x16xf32>
    %50 = arith.addf %44, %49 : vector<256x16xf32>
    %51 = vector.extract_strided_slice %1 {offsets = [1, 1, 0], sizes = [16, 16, 3], strides = [1, 1, 1]} : vector<22x22x3xf32> to vector<16x16x3xf32>
    %52 = vector.shape_cast %51 : vector<16x16x3xf32> to vector<256x3xf32>
    %c8 = arith.constant 8 : index
    %c0_28 = arith.constant 0 : index
    %c0_29 = arith.constant 0 : index
    %53 = vector.load %arg2[%c8, %c0_28, %c0_29] : memref<49x3x16xf32, #tpu.memory_space<vmem>>, vector<1x3x16xf32>
    %54 = vector.shape_cast %53 : vector<1x3x16xf32> to vector<3x16xf32>
    %cst_30 = arith.constant dense<0.000000e+00> : vector<256x16xf32>
    %55 = tpu.matmul %52, %54, %cst_30 {dimension_numbers = #tpu.dot_dimension_numbers<[1], [0], [0], [1], [0, 0, 1, 1], [], []>} : vector<256x3xf32>, vector<3x16xf32>, vector<256x16xf32> -> vector<256x16xf32>
    %56 = arith.addf %50, %55 : vector<256x16xf32>
    %57 = vector.extract_strided_slice %1 {offsets = [1, 2, 0], sizes = [16, 16, 3], strides = [1, 1, 1]} : vector<22x22x3xf32> to vector<16x16x3xf32>
    %58 = vector.shape_cast %57 : vector<16x16x3xf32> to vector<256x3xf32>
    %c9 = arith.constant 9 : index
    %c0_31 = arith.constant 0 : index
    %c0_32 = arith.constant 0 : index
    %59 = vector.load %arg2[%c9, %c0_31, %c0_32] : memref<49x3x16xf32, #tpu.memory_space<vmem>>, vector<1x3x16xf32>
    %60 = vector.shape_cast %59 : vector<1x3x16xf32> to vector<3x16xf32>
    %cst_33 = arith.constant dense<0.000000e+00> : vector<256x16xf32>
    %61 = tpu.matmul %58, %60, %cst_33 {dimension_numbers = #tpu.dot_dimension_numbers<[1], [0], [0], [1], [0, 0, 1, 1], [], []>} : vector<256x3xf32>, vector<3x16xf32>, vector<256x16xf32> -> vector<256x16xf32>
    %62 = arith.addf %56, %61 : vector<256x16xf32>
    %63 = vector.extract_strided_slice %1 {offsets = [1, 3, 0], sizes = [16, 16, 3], strides = [1, 1, 1]} : vector<22x22x3xf32> to vector<16x16x3xf32>
    %64 = vector.shape_cast %63 : vector<16x16x3xf32> to vector<256x3xf32>
    %c10 = arith.constant 10 : index
    %c0_34 = arith.constant 0 : index
    %c0_35 = arith.constant 0 : index
    %65 = vector.load %arg2[%c10, %c0_34, %c0_35] : memref<49x3x16xf32, #tpu.memory_space<vmem>>, vector<1x3x16xf32>
    %66 = vector.shape_cast %65 : vector<1x3x16xf32> to vector<3x16xf32>
    %cst_36 = arith.constant dense<0.000000e+00> : vector<256x16xf32>
    %67 = tpu.matmul %64, %66, %cst_36 {dimension_numbers = #tpu.dot_dimension_numbers<[1], [0], [0], [1], [0, 0, 1, 1], [], []>} : vector<256x3xf32>, vector<3x16xf32>, vector<256x16xf32> -> vector<256x16xf32>
    %68 = arith.addf %62, %67 : vector<256x16xf32>
    %69 = vector.extract_strided_slice %1 {offsets = [1, 4, 0], sizes = [16, 16, 3], strides = [1, 1, 1]} : vector<22x22x3xf32> to vector<16x16x3xf32>
    %70 = vector.shape_cast %69 : vector<16x16x3xf32> to vector<256x3xf32>
    %c11 = arith.constant 11 : index
    %c0_37 = arith.constant 0 : index
    %c0_38 = arith.constant 0 : index
    %71 = vector.load %arg2[%c11, %c0_37, %c0_38] : memref<49x3x16xf32, #tpu.memory_space<vmem>>, vector<1x3x16xf32>
    %72 = vector.shape_cast %71 : vector<1x3x16xf32> to vector<3x16xf32>
    %cst_39 = arith.constant dense<0.000000e+00> : vector<256x16xf32>
    %73 = tpu.matmul %70, %72, %cst_39 {dimension_numbers = #tpu.dot_dimension_numbers<[1], [0], [0], [1], [0, 0, 1, 1], [], []>} : vector<256x3xf32>, vector<3x16xf32>, vector<256x16xf32> -> vector<256x16xf32>
    %74 = arith.addf %68, %73 : vector<256x16xf32>
    %75 = vector.extract_strided_slice %1 {offsets = [1, 5, 0], sizes = [16, 16, 3], strides = [1, 1, 1]} : vector<22x22x3xf32> to vector<16x16x3xf32>
    %76 = vector.shape_cast %75 : vector<16x16x3xf32> to vector<256x3xf32>
    %c12 = arith.constant 12 : index
    %c0_40 = arith.constant 0 : index
    %c0_41 = arith.constant 0 : index
    %77 = vector.load %arg2[%c12, %c0_40, %c0_41] : memref<49x3x16xf32, #tpu.memory_space<vmem>>, vector<1x3x16xf32>
    %78 = vector.shape_cast %77 : vector<1x3x16xf32> to vector<3x16xf32>
    %cst_42 = arith.constant dense<0.000000e+00> : vector<256x16xf32>
    %79 = tpu.matmul %76, %78, %cst_42 {dimension_numbers = #tpu.dot_dimension_numbers<[1], [0], [0], [1], [0, 0, 1, 1], [], []>} : vector<256x3xf32>, vector<3x16xf32>, vector<256x16xf32> -> vector<256x16xf32>
    %80 = arith.addf %74, %79 : vector<256x16xf32>
    %81 = vector.extract_strided_slice %1 {offsets = [1, 6, 0], sizes = [16, 16, 3], strides = [1, 1, 1]} : vector<22x22x3xf32> to vector<16x16x3xf32>
    %82 = vector.shape_cast %81 : vector<16x16x3xf32> to vector<256x3xf32>
    %c13 = arith.constant 13 : index
    %c0_43 = arith.constant 0 : index
    %c0_44 = arith.constant 0 : index
    %83 = vector.load %arg2[%c13, %c0_43, %c0_44] : memref<49x3x16xf32, #tpu.memory_space<vmem>>, vector<1x3x16xf32>
    %84 = vector.shape_cast %83 : vector<1x3x16xf32> to vector<3x16xf32>
    %cst_45 = arith.constant dense<0.000000e+00> : vector<256x16xf32>
    %85 = tpu.matmul %82, %84, %cst_45 {dimension_numbers = #tpu.dot_dimension_numbers<[1], [0], [0], [1], [0, 0, 1, 1], [], []>} : vector<256x3xf32>, vector<3x16xf32>, vector<256x16xf32> -> vector<256x16xf32>
    %86 = arith.addf %80, %85 : vector<256x16xf32>
    %87 = vector.extract_strided_slice %1 {offsets = [2, 0, 0], sizes = [16, 16, 3], strides = [1, 1, 1]} : vector<22x22x3xf32> to vector<16x16x3xf32>
    %88 = vector.shape_cast %87 : vector<16x16x3xf32> to vector<256x3xf32>
    %c14 = arith.constant 14 : index
    %c0_46 = arith.constant 0 : index
    %c0_47 = arith.constant 0 : index
    %89 = vector.load %arg2[%c14, %c0_46, %c0_47] : memref<49x3x16xf32, #tpu.memory_space<vmem>>, vector<1x3x16xf32>
    %90 = vector.shape_cast %89 : vector<1x3x16xf32> to vector<3x16xf32>
    %cst_48 = arith.constant dense<0.000000e+00> : vector<256x16xf32>
    %91 = tpu.matmul %88, %90, %cst_48 {dimension_numbers = #tpu.dot_dimension_numbers<[1], [0], [0], [1], [0, 0, 1, 1], [], []>} : vector<256x3xf32>, vector<3x16xf32>, vector<256x16xf32> -> vector<256x16xf32>
    %92 = arith.addf %86, %91 : vector<256x16xf32>
    %93 = vector.extract_strided_slice %1 {offsets = [2, 1, 0], sizes = [16, 16, 3], strides = [1, 1, 1]} : vector<22x22x3xf32> to vector<16x16x3xf32>
    %94 = vector.shape_cast %93 : vector<16x16x3xf32> to vector<256x3xf32>
    %c15 = arith.constant 15 : index
    %c0_49 = arith.constant 0 : index
    %c0_50 = arith.constant 0 : index
    %95 = vector.load %arg2[%c15, %c0_49, %c0_50] : memref<49x3x16xf32, #tpu.memory_space<vmem>>, vector<1x3x16xf32>
    %96 = vector.shape_cast %95 : vector<1x3x16xf32> to vector<3x16xf32>
    %cst_51 = arith.constant dense<0.000000e+00> : vector<256x16xf32>
    %97 = tpu.matmul %94, %96, %cst_51 {dimension_numbers = #tpu.dot_dimension_numbers<[1], [0], [0], [1], [0, 0, 1, 1], [], []>} : vector<256x3xf32>, vector<3x16xf32>, vector<256x16xf32> -> vector<256x16xf32>
    %98 = arith.addf %92, %97 : vector<256x16xf32>
    %99 = vector.extract_strided_slice %1 {offsets = [2, 2, 0], sizes = [16, 16, 3], strides = [1, 1, 1]} : vector<22x22x3xf32> to vector<16x16x3xf32>
    %100 = vector.shape_cast %99 : vector<16x16x3xf32> to vector<256x3xf32>
    %c16 = arith.constant 16 : index
    %c0_52 = arith.constant 0 : index
    %c0_53 = arith.constant 0 : index
    %101 = vector.load %arg2[%c16, %c0_52, %c0_53] : memref<49x3x16xf32, #tpu.memory_space<vmem>>, vector<1x3x16xf32>
    %102 = vector.shape_cast %101 : vector<1x3x16xf32> to vector<3x16xf32>
    %cst_54 = arith.constant dense<0.000000e+00> : vector<256x16xf32>
    %103 = tpu.matmul %100, %102, %cst_54 {dimension_numbers = #tpu.dot_dimension_numbers<[1], [0], [0], [1], [0, 0, 1, 1], [], []>} : vector<256x3xf32>, vector<3x16xf32>, vector<256x16xf32> -> vector<256x16xf32>
    %104 = arith.addf %98, %103 : vector<256x16xf32>
    %105 = vector.extract_strided_slice %1 {offsets = [2, 3, 0], sizes = [16, 16, 3], strides = [1, 1, 1]} : vector<22x22x3xf32> to vector<16x16x3xf32>
    %106 = vector.shape_cast %105 : vector<16x16x3xf32> to vector<256x3xf32>
    %c17 = arith.constant 17 : index
    %c0_55 = arith.constant 0 : index
    %c0_56 = arith.constant 0 : index
    %107 = vector.load %arg2[%c17, %c0_55, %c0_56] : memref<49x3x16xf32, #tpu.memory_space<vmem>>, vector<1x3x16xf32>
    %108 = vector.shape_cast %107 : vector<1x3x16xf32> to vector<3x16xf32>
    %cst_57 = arith.constant dense<0.000000e+00> : vector<256x16xf32>
    %109 = tpu.matmul %106, %108, %cst_57 {dimension_numbers = #tpu.dot_dimension_numbers<[1], [0], [0], [1], [0, 0, 1, 1], [], []>} : vector<256x3xf32>, vector<3x16xf32>, vector<256x16xf32> -> vector<256x16xf32>
    %110 = arith.addf %104, %109 : vector<256x16xf32>
    %111 = vector.extract_strided_slice %1 {offsets = [2, 4, 0], sizes = [16, 16, 3], strides = [1, 1, 1]} : vector<22x22x3xf32> to vector<16x16x3xf32>
    %112 = vector.shape_cast %111 : vector<16x16x3xf32> to vector<256x3xf32>
    %c18 = arith.constant 18 : index
    %c0_58 = arith.constant 0 : index
    %c0_59 = arith.constant 0 : index
    %113 = vector.load %arg2[%c18, %c0_58, %c0_59] : memref<49x3x16xf32, #tpu.memory_space<vmem>>, vector<1x3x16xf32>
    %114 = vector.shape_cast %113 : vector<1x3x16xf32> to vector<3x16xf32>
    %cst_60 = arith.constant dense<0.000000e+00> : vector<256x16xf32>
    %115 = tpu.matmul %112, %114, %cst_60 {dimension_numbers = #tpu.dot_dimension_numbers<[1], [0], [0], [1], [0, 0, 1, 1], [], []>} : vector<256x3xf32>, vector<3x16xf32>, vector<256x16xf32> -> vector<256x16xf32>
    %116 = arith.addf %110, %115 : vector<256x16xf32>
    %117 = vector.extract_strided_slice %1 {offsets = [2, 5, 0], sizes = [16, 16, 3], strides = [1, 1, 1]} : vector<22x22x3xf32> to vector<16x16x3xf32>
    %118 = vector.shape_cast %117 : vector<16x16x3xf32> to vector<256x3xf32>
    %c19 = arith.constant 19 : index
    %c0_61 = arith.constant 0 : index
    %c0_62 = arith.constant 0 : index
    %119 = vector.load %arg2[%c19, %c0_61, %c0_62] : memref<49x3x16xf32, #tpu.memory_space<vmem>>, vector<1x3x16xf32>
    %120 = vector.shape_cast %119 : vector<1x3x16xf32> to vector<3x16xf32>
    %cst_63 = arith.constant dense<0.000000e+00> : vector<256x16xf32>
    %121 = tpu.matmul %118, %120, %cst_63 {dimension_numbers = #tpu.dot_dimension_numbers<[1], [0], [0], [1], [0, 0, 1, 1], [], []>} : vector<256x3xf32>, vector<3x16xf32>, vector<256x16xf32> -> vector<256x16xf32>
    %122 = arith.addf %116, %121 : vector<256x16xf32>
    %123 = vector.extract_strided_slice %1 {offsets = [2, 6, 0], sizes = [16, 16, 3], strides = [1, 1, 1]} : vector<22x22x3xf32> to vector<16x16x3xf32>
    %124 = vector.shape_cast %123 : vector<16x16x3xf32> to vector<256x3xf32>
    %c20 = arith.constant 20 : index
    %c0_64 = arith.constant 0 : index
    %c0_65 = arith.constant 0 : index
    %125 = vector.load %arg2[%c20, %c0_64, %c0_65] : memref<49x3x16xf32, #tpu.memory_space<vmem>>, vector<1x3x16xf32>
    %126 = vector.shape_cast %125 : vector<1x3x16xf32> to vector<3x16xf32>
    %cst_66 = arith.constant dense<0.000000e+00> : vector<256x16xf32>
    %127 = tpu.matmul %124, %126, %cst_66 {dimension_numbers = #tpu.dot_dimension_numbers<[1], [0], [0], [1], [0, 0, 1, 1], [], []>} : vector<256x3xf32>, vector<3x16xf32>, vector<256x16xf32> -> vector<256x16xf32>
    %128 = arith.addf %122, %127 : vector<256x16xf32>
    %129 = vector.extract_strided_slice %1 {offsets = [3, 0, 0], sizes = [16, 16, 3], strides = [1, 1, 1]} : vector<22x22x3xf32> to vector<16x16x3xf32>
    %130 = vector.shape_cast %129 : vector<16x16x3xf32> to vector<256x3xf32>
    %c21 = arith.constant 21 : index
    %c0_67 = arith.constant 0 : index
    %c0_68 = arith.constant 0 : index
    %131 = vector.load %arg2[%c21, %c0_67, %c0_68] : memref<49x3x16xf32, #tpu.memory_space<vmem>>, vector<1x3x16xf32>
    %132 = vector.shape_cast %131 : vector<1x3x16xf32> to vector<3x16xf32>
    %cst_69 = arith.constant dense<0.000000e+00> : vector<256x16xf32>
    %133 = tpu.matmul %130, %132, %cst_69 {dimension_numbers = #tpu.dot_dimension_numbers<[1], [0], [0], [1], [0, 0, 1, 1], [], []>} : vector<256x3xf32>, vector<3x16xf32>, vector<256x16xf32> -> vector<256x16xf32>
    %134 = arith.addf %128, %133 : vector<256x16xf32>
    %135 = vector.extract_strided_slice %1 {offsets = [3, 1, 0], sizes = [16, 16, 3], strides = [1, 1, 1]} : vector<22x22x3xf32> to vector<16x16x3xf32>
    %136 = vector.shape_cast %135 : vector<16x16x3xf32> to vector<256x3xf32>
    %c22 = arith.constant 22 : index
    %c0_70 = arith.constant 0 : index
    %c0_71 = arith.constant 0 : index
    %137 = vector.load %arg2[%c22, %c0_70, %c0_71] : memref<49x3x16xf32, #tpu.memory_space<vmem>>, vector<1x3x16xf32>
    %138 = vector.shape_cast %137 : vector<1x3x16xf32> to vector<3x16xf32>
    %cst_72 = arith.constant dense<0.000000e+00> : vector<256x16xf32>
    %139 = tpu.matmul %136, %138, %cst_72 {dimension_numbers = #tpu.dot_dimension_numbers<[1], [0], [0], [1], [0, 0, 1, 1], [], []>} : vector<256x3xf32>, vector<3x16xf32>, vector<256x16xf32> -> vector<256x16xf32>
    %140 = arith.addf %134, %139 : vector<256x16xf32>
    %141 = vector.extract_strided_slice %1 {offsets = [3, 2, 0], sizes = [16, 16, 3], strides = [1, 1, 1]} : vector<22x22x3xf32> to vector<16x16x3xf32>
    %142 = vector.shape_cast %141 : vector<16x16x3xf32> to vector<256x3xf32>
    %c23 = arith.constant 23 : index
    %c0_73 = arith.constant 0 : index
    %c0_74 = arith.constant 0 : index
    %143 = vector.load %arg2[%c23, %c0_73, %c0_74] : memref<49x3x16xf32, #tpu.memory_space<vmem>>, vector<1x3x16xf32>
    %144 = vector.shape_cast %143 : vector<1x3x16xf32> to vector<3x16xf32>
    %cst_75 = arith.constant dense<0.000000e+00> : vector<256x16xf32>
    %145 = tpu.matmul %142, %144, %cst_75 {dimension_numbers = #tpu.dot_dimension_numbers<[1], [0], [0], [1], [0, 0, 1, 1], [], []>} : vector<256x3xf32>, vector<3x16xf32>, vector<256x16xf32> -> vector<256x16xf32>
    %146 = arith.addf %140, %145 : vector<256x16xf32>
    %147 = vector.extract_strided_slice %1 {offsets = [3, 3, 0], sizes = [16, 16, 3], strides = [1, 1, 1]} : vector<22x22x3xf32> to vector<16x16x3xf32>
    %148 = vector.shape_cast %147 : vector<16x16x3xf32> to vector<256x3xf32>
    %c24 = arith.constant 24 : index
    %c0_76 = arith.constant 0 : index
    %c0_77 = arith.constant 0 : index
    %149 = vector.load %arg2[%c24, %c0_76, %c0_77] : memref<49x3x16xf32, #tpu.memory_space<vmem>>, vector<1x3x16xf32>
    %150 = vector.shape_cast %149 : vector<1x3x16xf32> to vector<3x16xf32>
    %cst_78 = arith.constant dense<0.000000e+00> : vector<256x16xf32>
    %151 = tpu.matmul %148, %150, %cst_78 {dimension_numbers = #tpu.dot_dimension_numbers<[1], [0], [0], [1], [0, 0, 1, 1], [], []>} : vector<256x3xf32>, vector<3x16xf32>, vector<256x16xf32> -> vector<256x16xf32>
    %152 = arith.addf %146, %151 : vector<256x16xf32>
    %153 = vector.extract_strided_slice %1 {offsets = [3, 4, 0], sizes = [16, 16, 3], strides = [1, 1, 1]} : vector<22x22x3xf32> to vector<16x16x3xf32>
    %154 = vector.shape_cast %153 : vector<16x16x3xf32> to vector<256x3xf32>
    %c25 = arith.constant 25 : index
    %c0_79 = arith.constant 0 : index
    %c0_80 = arith.constant 0 : index
    %155 = vector.load %arg2[%c25, %c0_79, %c0_80] : memref<49x3x16xf32, #tpu.memory_space<vmem>>, vector<1x3x16xf32>
    %156 = vector.shape_cast %155 : vector<1x3x16xf32> to vector<3x16xf32>
    %cst_81 = arith.constant dense<0.000000e+00> : vector<256x16xf32>
    %157 = tpu.matmul %154, %156, %cst_81 {dimension_numbers = #tpu.dot_dimension_numbers<[1], [0], [0], [1], [0, 0, 1, 1], [], []>} : vector<256x3xf32>, vector<3x16xf32>, vector<256x16xf32> -> vector<256x16xf32>
    %158 = arith.addf %152, %157 : vector<256x16xf32>
    %159 = vector.extract_strided_slice %1 {offsets = [3, 5, 0], sizes = [16, 16, 3], strides = [1, 1, 1]} : vector<22x22x3xf32> to vector<16x16x3xf32>
    %160 = vector.shape_cast %159 : vector<16x16x3xf32> to vector<256x3xf32>
    %c26 = arith.constant 26 : index
    %c0_82 = arith.constant 0 : index
    %c0_83 = arith.constant 0 : index
    %161 = vector.load %arg2[%c26, %c0_82, %c0_83] : memref<49x3x16xf32, #tpu.memory_space<vmem>>, vector<1x3x16xf32>
    %162 = vector.shape_cast %161 : vector<1x3x16xf32> to vector<3x16xf32>
    %cst_84 = arith.constant dense<0.000000e+00> : vector<256x16xf32>
    %163 = tpu.matmul %160, %162, %cst_84 {dimension_numbers = #tpu.dot_dimension_numbers<[1], [0], [0], [1], [0, 0, 1, 1], [], []>} : vector<256x3xf32>, vector<3x16xf32>, vector<256x16xf32> -> vector<256x16xf32>
    %164 = arith.addf %158, %163 : vector<256x16xf32>
    %165 = vector.extract_strided_slice %1 {offsets = [3, 6, 0], sizes = [16, 16, 3], strides = [1, 1, 1]} : vector<22x22x3xf32> to vector<16x16x3xf32>
    %166 = vector.shape_cast %165 : vector<16x16x3xf32> to vector<256x3xf32>
    %c27 = arith.constant 27 : index
    %c0_85 = arith.constant 0 : index
    %c0_86 = arith.constant 0 : index
    %167 = vector.load %arg2[%c27, %c0_85, %c0_86] : memref<49x3x16xf32, #tpu.memory_space<vmem>>, vector<1x3x16xf32>
    %168 = vector.shape_cast %167 : vector<1x3x16xf32> to vector<3x16xf32>
    %cst_87 = arith.constant dense<0.000000e+00> : vector<256x16xf32>
    %169 = tpu.matmul %166, %168, %cst_87 {dimension_numbers = #tpu.dot_dimension_numbers<[1], [0], [0], [1], [0, 0, 1, 1], [], []>} : vector<256x3xf32>, vector<3x16xf32>, vector<256x16xf32> -> vector<256x16xf32>
    %170 = arith.addf %164, %169 : vector<256x16xf32>
    %171 = vector.extract_strided_slice %1 {offsets = [4, 0, 0], sizes = [16, 16, 3], strides = [1, 1, 1]} : vector<22x22x3xf32> to vector<16x16x3xf32>
    %172 = vector.shape_cast %171 : vector<16x16x3xf32> to vector<256x3xf32>
    %c28 = arith.constant 28 : index
    %c0_88 = arith.constant 0 : index
    %c0_89 = arith.constant 0 : index
    %173 = vector.load %arg2[%c28, %c0_88, %c0_89] : memref<49x3x16xf32, #tpu.memory_space<vmem>>, vector<1x3x16xf32>
    %174 = vector.shape_cast %173 : vector<1x3x16xf32> to vector<3x16xf32>
    %cst_90 = arith.constant dense<0.000000e+00> : vector<256x16xf32>
    %175 = tpu.matmul %172, %174, %cst_90 {dimension_numbers = #tpu.dot_dimension_numbers<[1], [0], [0], [1], [0, 0, 1, 1], [], []>} : vector<256x3xf32>, vector<3x16xf32>, vector<256x16xf32> -> vector<256x16xf32>
    %176 = arith.addf %170, %175 : vector<256x16xf32>
    %177 = vector.extract_strided_slice %1 {offsets = [4, 1, 0], sizes = [16, 16, 3], strides = [1, 1, 1]} : vector<22x22x3xf32> to vector<16x16x3xf32>
    %178 = vector.shape_cast %177 : vector<16x16x3xf32> to vector<256x3xf32>
    %c29 = arith.constant 29 : index
    %c0_91 = arith.constant 0 : index
    %c0_92 = arith.constant 0 : index
    %179 = vector.load %arg2[%c29, %c0_91, %c0_92] : memref<49x3x16xf32, #tpu.memory_space<vmem>>, vector<1x3x16xf32>
    %180 = vector.shape_cast %179 : vector<1x3x16xf32> to vector<3x16xf32>
    %cst_93 = arith.constant dense<0.000000e+00> : vector<256x16xf32>
    %181 = tpu.matmul %178, %180, %cst_93 {dimension_numbers = #tpu.dot_dimension_numbers<[1], [0], [0], [1], [0, 0, 1, 1], [], []>} : vector<256x3xf32>, vector<3x16xf32>, vector<256x16xf32> -> vector<256x16xf32>
    %182 = arith.addf %176, %181 : vector<256x16xf32>
    %183 = vector.extract_strided_slice %1 {offsets = [4, 2, 0], sizes = [16, 16, 3], strides = [1, 1, 1]} : vector<22x22x3xf32> to vector<16x16x3xf32>
    %184 = vector.shape_cast %183 : vector<16x16x3xf32> to vector<256x3xf32>
    %c30 = arith.constant 30 : index
    %c0_94 = arith.constant 0 : index
    %c0_95 = arith.constant 0 : index
    %185 = vector.load %arg2[%c30, %c0_94, %c0_95] : memref<49x3x16xf32, #tpu.memory_space<vmem>>, vector<1x3x16xf32>
    %186 = vector.shape_cast %185 : vector<1x3x16xf32> to vector<3x16xf32>
    %cst_96 = arith.constant dense<0.000000e+00> : vector<256x16xf32>
    %187 = tpu.matmul %184, %186, %cst_96 {dimension_numbers = #tpu.dot_dimension_numbers<[1], [0], [0], [1], [0, 0, 1, 1], [], []>} : vector<256x3xf32>, vector<3x16xf32>, vector<256x16xf32> -> vector<256x16xf32>
    %188 = arith.addf %182, %187 : vector<256x16xf32>
    %189 = vector.extract_strided_slice %1 {offsets = [4, 3, 0], sizes = [16, 16, 3], strides = [1, 1, 1]} : vector<22x22x3xf32> to vector<16x16x3xf32>
    %190 = vector.shape_cast %189 : vector<16x16x3xf32> to vector<256x3xf32>
    %c31 = arith.constant 31 : index
    %c0_97 = arith.constant 0 : index
    %c0_98 = arith.constant 0 : index
    %191 = vector.load %arg2[%c31, %c0_97, %c0_98] : memref<49x3x16xf32, #tpu.memory_space<vmem>>, vector<1x3x16xf32>
    %192 = vector.shape_cast %191 : vector<1x3x16xf32> to vector<3x16xf32>
    %cst_99 = arith.constant dense<0.000000e+00> : vector<256x16xf32>
    %193 = tpu.matmul %190, %192, %cst_99 {dimension_numbers = #tpu.dot_dimension_numbers<[1], [0], [0], [1], [0, 0, 1, 1], [], []>} : vector<256x3xf32>, vector<3x16xf32>, vector<256x16xf32> -> vector<256x16xf32>
    %194 = arith.addf %188, %193 : vector<256x16xf32>
    %195 = vector.extract_strided_slice %1 {offsets = [4, 4, 0], sizes = [16, 16, 3], strides = [1, 1, 1]} : vector<22x22x3xf32> to vector<16x16x3xf32>
    %196 = vector.shape_cast %195 : vector<16x16x3xf32> to vector<256x3xf32>
    %c32 = arith.constant 32 : index
    %c0_100 = arith.constant 0 : index
    %c0_101 = arith.constant 0 : index
    %197 = vector.load %arg2[%c32, %c0_100, %c0_101] : memref<49x3x16xf32, #tpu.memory_space<vmem>>, vector<1x3x16xf32>
    %198 = vector.shape_cast %197 : vector<1x3x16xf32> to vector<3x16xf32>
    %cst_102 = arith.constant dense<0.000000e+00> : vector<256x16xf32>
    %199 = tpu.matmul %196, %198, %cst_102 {dimension_numbers = #tpu.dot_dimension_numbers<[1], [0], [0], [1], [0, 0, 1, 1], [], []>} : vector<256x3xf32>, vector<3x16xf32>, vector<256x16xf32> -> vector<256x16xf32>
    %200 = arith.addf %194, %199 : vector<256x16xf32>
    %201 = vector.extract_strided_slice %1 {offsets = [4, 5, 0], sizes = [16, 16, 3], strides = [1, 1, 1]} : vector<22x22x3xf32> to vector<16x16x3xf32>
    %202 = vector.shape_cast %201 : vector<16x16x3xf32> to vector<256x3xf32>
    %c33 = arith.constant 33 : index
    %c0_103 = arith.constant 0 : index
    %c0_104 = arith.constant 0 : index
    %203 = vector.load %arg2[%c33, %c0_103, %c0_104] : memref<49x3x16xf32, #tpu.memory_space<vmem>>, vector<1x3x16xf32>
    %204 = vector.shape_cast %203 : vector<1x3x16xf32> to vector<3x16xf32>
    %cst_105 = arith.constant dense<0.000000e+00> : vector<256x16xf32>
    %205 = tpu.matmul %202, %204, %cst_105 {dimension_numbers = #tpu.dot_dimension_numbers<[1], [0], [0], [1], [0, 0, 1, 1], [], []>} : vector<256x3xf32>, vector<3x16xf32>, vector<256x16xf32> -> vector<256x16xf32>
    %206 = arith.addf %200, %205 : vector<256x16xf32>
    %207 = vector.extract_strided_slice %1 {offsets = [4, 6, 0], sizes = [16, 16, 3], strides = [1, 1, 1]} : vector<22x22x3xf32> to vector<16x16x3xf32>
    %208 = vector.shape_cast %207 : vector<16x16x3xf32> to vector<256x3xf32>
    %c34 = arith.constant 34 : index
    %c0_106 = arith.constant 0 : index
    %c0_107 = arith.constant 0 : index
    %209 = vector.load %arg2[%c34, %c0_106, %c0_107] : memref<49x3x16xf32, #tpu.memory_space<vmem>>, vector<1x3x16xf32>
    %210 = vector.shape_cast %209 : vector<1x3x16xf32> to vector<3x16xf32>
    %cst_108 = arith.constant dense<0.000000e+00> : vector<256x16xf32>
    %211 = tpu.matmul %208, %210, %cst_108 {dimension_numbers = #tpu.dot_dimension_numbers<[1], [0], [0], [1], [0, 0, 1, 1], [], []>} : vector<256x3xf32>, vector<3x16xf32>, vector<256x16xf32> -> vector<256x16xf32>
    %212 = arith.addf %206, %211 : vector<256x16xf32>
    %213 = vector.extract_strided_slice %1 {offsets = [5, 0, 0], sizes = [16, 16, 3], strides = [1, 1, 1]} : vector<22x22x3xf32> to vector<16x16x3xf32>
    %214 = vector.shape_cast %213 : vector<16x16x3xf32> to vector<256x3xf32>
    %c35 = arith.constant 35 : index
    %c0_109 = arith.constant 0 : index
    %c0_110 = arith.constant 0 : index
    %215 = vector.load %arg2[%c35, %c0_109, %c0_110] : memref<49x3x16xf32, #tpu.memory_space<vmem>>, vector<1x3x16xf32>
    %216 = vector.shape_cast %215 : vector<1x3x16xf32> to vector<3x16xf32>
    %cst_111 = arith.constant dense<0.000000e+00> : vector<256x16xf32>
    %217 = tpu.matmul %214, %216, %cst_111 {dimension_numbers = #tpu.dot_dimension_numbers<[1], [0], [0], [1], [0, 0, 1, 1], [], []>} : vector<256x3xf32>, vector<3x16xf32>, vector<256x16xf32> -> vector<256x16xf32>
    %218 = arith.addf %212, %217 : vector<256x16xf32>
    %219 = vector.extract_strided_slice %1 {offsets = [5, 1, 0], sizes = [16, 16, 3], strides = [1, 1, 1]} : vector<22x22x3xf32> to vector<16x16x3xf32>
    %220 = vector.shape_cast %219 : vector<16x16x3xf32> to vector<256x3xf32>
    %c36 = arith.constant 36 : index
    %c0_112 = arith.constant 0 : index
    %c0_113 = arith.constant 0 : index
    %221 = vector.load %arg2[%c36, %c0_112, %c0_113] : memref<49x3x16xf32, #tpu.memory_space<vmem>>, vector<1x3x16xf32>
    %222 = vector.shape_cast %221 : vector<1x3x16xf32> to vector<3x16xf32>
    %cst_114 = arith.constant dense<0.000000e+00> : vector<256x16xf32>
    %223 = tpu.matmul %220, %222, %cst_114 {dimension_numbers = #tpu.dot_dimension_numbers<[1], [0], [0], [1], [0, 0, 1, 1], [], []>} : vector<256x3xf32>, vector<3x16xf32>, vector<256x16xf32> -> vector<256x16xf32>
    %224 = arith.addf %218, %223 : vector<256x16xf32>
    %225 = vector.extract_strided_slice %1 {offsets = [5, 2, 0], sizes = [16, 16, 3], strides = [1, 1, 1]} : vector<22x22x3xf32> to vector<16x16x3xf32>
    %226 = vector.shape_cast %225 : vector<16x16x3xf32> to vector<256x3xf32>
    %c37 = arith.constant 37 : index
    %c0_115 = arith.constant 0 : index
    %c0_116 = arith.constant 0 : index
    %227 = vector.load %arg2[%c37, %c0_115, %c0_116] : memref<49x3x16xf32, #tpu.memory_space<vmem>>, vector<1x3x16xf32>
    %228 = vector.shape_cast %227 : vector<1x3x16xf32> to vector<3x16xf32>
    %cst_117 = arith.constant dense<0.000000e+00> : vector<256x16xf32>
    %229 = tpu.matmul %226, %228, %cst_117 {dimension_numbers = #tpu.dot_dimension_numbers<[1], [0], [0], [1], [0, 0, 1, 1], [], []>} : vector<256x3xf32>, vector<3x16xf32>, vector<256x16xf32> -> vector<256x16xf32>
    %230 = arith.addf %224, %229 : vector<256x16xf32>
    %231 = vector.extract_strided_slice %1 {offsets = [5, 3, 0], sizes = [16, 16, 3], strides = [1, 1, 1]} : vector<22x22x3xf32> to vector<16x16x3xf32>
    %232 = vector.shape_cast %231 : vector<16x16x3xf32> to vector<256x3xf32>
    %c38 = arith.constant 38 : index
    %c0_118 = arith.constant 0 : index
    %c0_119 = arith.constant 0 : index
    %233 = vector.load %arg2[%c38, %c0_118, %c0_119] : memref<49x3x16xf32, #tpu.memory_space<vmem>>, vector<1x3x16xf32>
    %234 = vector.shape_cast %233 : vector<1x3x16xf32> to vector<3x16xf32>
    %cst_120 = arith.constant dense<0.000000e+00> : vector<256x16xf32>
    %235 = tpu.matmul %232, %234, %cst_120 {dimension_numbers = #tpu.dot_dimension_numbers<[1], [0], [0], [1], [0, 0, 1, 1], [], []>} : vector<256x3xf32>, vector<3x16xf32>, vector<256x16xf32> -> vector<256x16xf32>
    %236 = arith.addf %230, %235 : vector<256x16xf32>
    %237 = vector.extract_strided_slice %1 {offsets = [5, 4, 0], sizes = [16, 16, 3], strides = [1, 1, 1]} : vector<22x22x3xf32> to vector<16x16x3xf32>
    %238 = vector.shape_cast %237 : vector<16x16x3xf32> to vector<256x3xf32>
    %c39 = arith.constant 39 : index
    %c0_121 = arith.constant 0 : index
    %c0_122 = arith.constant 0 : index
    %239 = vector.load %arg2[%c39, %c0_121, %c0_122] : memref<49x3x16xf32, #tpu.memory_space<vmem>>, vector<1x3x16xf32>
    %240 = vector.shape_cast %239 : vector<1x3x16xf32> to vector<3x16xf32>
    %cst_123 = arith.constant dense<0.000000e+00> : vector<256x16xf32>
    %241 = tpu.matmul %238, %240, %cst_123 {dimension_numbers = #tpu.dot_dimension_numbers<[1], [0], [0], [1], [0, 0, 1, 1], [], []>} : vector<256x3xf32>, vector<3x16xf32>, vector<256x16xf32> -> vector<256x16xf32>
    %242 = arith.addf %236, %241 : vector<256x16xf32>
    %243 = vector.extract_strided_slice %1 {offsets = [5, 5, 0], sizes = [16, 16, 3], strides = [1, 1, 1]} : vector<22x22x3xf32> to vector<16x16x3xf32>
    %244 = vector.shape_cast %243 : vector<16x16x3xf32> to vector<256x3xf32>
    %c40 = arith.constant 40 : index
    %c0_124 = arith.constant 0 : index
    %c0_125 = arith.constant 0 : index
    %245 = vector.load %arg2[%c40, %c0_124, %c0_125] : memref<49x3x16xf32, #tpu.memory_space<vmem>>, vector<1x3x16xf32>
    %246 = vector.shape_cast %245 : vector<1x3x16xf32> to vector<3x16xf32>
    %cst_126 = arith.constant dense<0.000000e+00> : vector<256x16xf32>
    %247 = tpu.matmul %244, %246, %cst_126 {dimension_numbers = #tpu.dot_dimension_numbers<[1], [0], [0], [1], [0, 0, 1, 1], [], []>} : vector<256x3xf32>, vector<3x16xf32>, vector<256x16xf32> -> vector<256x16xf32>
    %248 = arith.addf %242, %247 : vector<256x16xf32>
    %249 = vector.extract_strided_slice %1 {offsets = [5, 6, 0], sizes = [16, 16, 3], strides = [1, 1, 1]} : vector<22x22x3xf32> to vector<16x16x3xf32>
    %250 = vector.shape_cast %249 : vector<16x16x3xf32> to vector<256x3xf32>
    %c41 = arith.constant 41 : index
    %c0_127 = arith.constant 0 : index
    %c0_128 = arith.constant 0 : index
    %251 = vector.load %arg2[%c41, %c0_127, %c0_128] : memref<49x3x16xf32, #tpu.memory_space<vmem>>, vector<1x3x16xf32>
    %252 = vector.shape_cast %251 : vector<1x3x16xf32> to vector<3x16xf32>
    %cst_129 = arith.constant dense<0.000000e+00> : vector<256x16xf32>
    %253 = tpu.matmul %250, %252, %cst_129 {dimension_numbers = #tpu.dot_dimension_numbers<[1], [0], [0], [1], [0, 0, 1, 1], [], []>} : vector<256x3xf32>, vector<3x16xf32>, vector<256x16xf32> -> vector<256x16xf32>
    %254 = arith.addf %248, %253 : vector<256x16xf32>
    %255 = vector.extract_strided_slice %1 {offsets = [6, 0, 0], sizes = [16, 16, 3], strides = [1, 1, 1]} : vector<22x22x3xf32> to vector<16x16x3xf32>
    %256 = vector.shape_cast %255 : vector<16x16x3xf32> to vector<256x3xf32>
    %c42 = arith.constant 42 : index
    %c0_130 = arith.constant 0 : index
    %c0_131 = arith.constant 0 : index
    %257 = vector.load %arg2[%c42, %c0_130, %c0_131] : memref<49x3x16xf32, #tpu.memory_space<vmem>>, vector<1x3x16xf32>
    %258 = vector.shape_cast %257 : vector<1x3x16xf32> to vector<3x16xf32>
    %cst_132 = arith.constant dense<0.000000e+00> : vector<256x16xf32>
    %259 = tpu.matmul %256, %258, %cst_132 {dimension_numbers = #tpu.dot_dimension_numbers<[1], [0], [0], [1], [0, 0, 1, 1], [], []>} : vector<256x3xf32>, vector<3x16xf32>, vector<256x16xf32> -> vector<256x16xf32>
    %260 = arith.addf %254, %259 : vector<256x16xf32>
    %261 = vector.extract_strided_slice %1 {offsets = [6, 1, 0], sizes = [16, 16, 3], strides = [1, 1, 1]} : vector<22x22x3xf32> to vector<16x16x3xf32>
    %262 = vector.shape_cast %261 : vector<16x16x3xf32> to vector<256x3xf32>
    %c43 = arith.constant 43 : index
    %c0_133 = arith.constant 0 : index
    %c0_134 = arith.constant 0 : index
    %263 = vector.load %arg2[%c43, %c0_133, %c0_134] : memref<49x3x16xf32, #tpu.memory_space<vmem>>, vector<1x3x16xf32>
    %264 = vector.shape_cast %263 : vector<1x3x16xf32> to vector<3x16xf32>
    %cst_135 = arith.constant dense<0.000000e+00> : vector<256x16xf32>
    %265 = tpu.matmul %262, %264, %cst_135 {dimension_numbers = #tpu.dot_dimension_numbers<[1], [0], [0], [1], [0, 0, 1, 1], [], []>} : vector<256x3xf32>, vector<3x16xf32>, vector<256x16xf32> -> vector<256x16xf32>
    %266 = arith.addf %260, %265 : vector<256x16xf32>
    %267 = vector.extract_strided_slice %1 {offsets = [6, 2, 0], sizes = [16, 16, 3], strides = [1, 1, 1]} : vector<22x22x3xf32> to vector<16x16x3xf32>
    %268 = vector.shape_cast %267 : vector<16x16x3xf32> to vector<256x3xf32>
    %c44 = arith.constant 44 : index
    %c0_136 = arith.constant 0 : index
    %c0_137 = arith.constant 0 : index
    %269 = vector.load %arg2[%c44, %c0_136, %c0_137] : memref<49x3x16xf32, #tpu.memory_space<vmem>>, vector<1x3x16xf32>
    %270 = vector.shape_cast %269 : vector<1x3x16xf32> to vector<3x16xf32>
    %cst_138 = arith.constant dense<0.000000e+00> : vector<256x16xf32>
    %271 = tpu.matmul %268, %270, %cst_138 {dimension_numbers = #tpu.dot_dimension_numbers<[1], [0], [0], [1], [0, 0, 1, 1], [], []>} : vector<256x3xf32>, vector<3x16xf32>, vector<256x16xf32> -> vector<256x16xf32>
    %272 = arith.addf %266, %271 : vector<256x16xf32>
    %273 = vector.extract_strided_slice %1 {offsets = [6, 3, 0], sizes = [16, 16, 3], strides = [1, 1, 1]} : vector<22x22x3xf32> to vector<16x16x3xf32>
    %274 = vector.shape_cast %273 : vector<16x16x3xf32> to vector<256x3xf32>
    %c45 = arith.constant 45 : index
    %c0_139 = arith.constant 0 : index
    %c0_140 = arith.constant 0 : index
    %275 = vector.load %arg2[%c45, %c0_139, %c0_140] : memref<49x3x16xf32, #tpu.memory_space<vmem>>, vector<1x3x16xf32>
    %276 = vector.shape_cast %275 : vector<1x3x16xf32> to vector<3x16xf32>
    %cst_141 = arith.constant dense<0.000000e+00> : vector<256x16xf32>
    %277 = tpu.matmul %274, %276, %cst_141 {dimension_numbers = #tpu.dot_dimension_numbers<[1], [0], [0], [1], [0, 0, 1, 1], [], []>} : vector<256x3xf32>, vector<3x16xf32>, vector<256x16xf32> -> vector<256x16xf32>
    %278 = arith.addf %272, %277 : vector<256x16xf32>
    %279 = vector.extract_strided_slice %1 {offsets = [6, 4, 0], sizes = [16, 16, 3], strides = [1, 1, 1]} : vector<22x22x3xf32> to vector<16x16x3xf32>
    %280 = vector.shape_cast %279 : vector<16x16x3xf32> to vector<256x3xf32>
    %c46 = arith.constant 46 : index
    %c0_142 = arith.constant 0 : index
    %c0_143 = arith.constant 0 : index
    %281 = vector.load %arg2[%c46, %c0_142, %c0_143] : memref<49x3x16xf32, #tpu.memory_space<vmem>>, vector<1x3x16xf32>
    %282 = vector.shape_cast %281 : vector<1x3x16xf32> to vector<3x16xf32>
    %cst_144 = arith.constant dense<0.000000e+00> : vector<256x16xf32>
    %283 = tpu.matmul %280, %282, %cst_144 {dimension_numbers = #tpu.dot_dimension_numbers<[1], [0], [0], [1], [0, 0, 1, 1], [], []>} : vector<256x3xf32>, vector<3x16xf32>, vector<256x16xf32> -> vector<256x16xf32>
    %284 = arith.addf %278, %283 : vector<256x16xf32>
    %285 = vector.extract_strided_slice %1 {offsets = [6, 5, 0], sizes = [16, 16, 3], strides = [1, 1, 1]} : vector<22x22x3xf32> to vector<16x16x3xf32>
    %286 = vector.shape_cast %285 : vector<16x16x3xf32> to vector<256x3xf32>
    %c47 = arith.constant 47 : index
    %c0_145 = arith.constant 0 : index
    %c0_146 = arith.constant 0 : index
    %287 = vector.load %arg2[%c47, %c0_145, %c0_146] : memref<49x3x16xf32, #tpu.memory_space<vmem>>, vector<1x3x16xf32>
    %288 = vector.shape_cast %287 : vector<1x3x16xf32> to vector<3x16xf32>
    %cst_147 = arith.constant dense<0.000000e+00> : vector<256x16xf32>
    %289 = tpu.matmul %286, %288, %cst_147 {dimension_numbers = #tpu.dot_dimension_numbers<[1], [0], [0], [1], [0, 0, 1, 1], [], []>} : vector<256x3xf32>, vector<3x16xf32>, vector<256x16xf32> -> vector<256x16xf32>
    %290 = arith.addf %284, %289 : vector<256x16xf32>
    %291 = vector.extract_strided_slice %1 {offsets = [6, 6, 0], sizes = [16, 16, 3], strides = [1, 1, 1]} : vector<22x22x3xf32> to vector<16x16x3xf32>
    %292 = vector.shape_cast %291 : vector<16x16x3xf32> to vector<256x3xf32>
    %c48 = arith.constant 48 : index
    %c0_148 = arith.constant 0 : index
    %c0_149 = arith.constant 0 : index
    %293 = vector.load %arg2[%c48, %c0_148, %c0_149] : memref<49x3x16xf32, #tpu.memory_space<vmem>>, vector<1x3x16xf32>
    %294 = vector.shape_cast %293 : vector<1x3x16xf32> to vector<3x16xf32>
    %cst_150 = arith.constant dense<0.000000e+00> : vector<256x16xf32>
    %295 = tpu.matmul %292, %294, %cst_150 {dimension_numbers = #tpu.dot_dimension_numbers<[1], [0], [0], [1], [0, 0, 1, 1], [], []>} : vector<256x3xf32>, vector<3x16xf32>, vector<256x16xf32> -> vector<256x16xf32>
    %296 = arith.addf %290, %295 : vector<256x16xf32>
    %c0_151 = arith.constant 0 : index
    %c0_152 = arith.constant 0 : index
    %297 = vector.load %arg3[%c0_151, %c0_152] : memref<1x16xf32, #tpu.memory_space<vmem>>, vector<1x16xf32>
    %298 = vector.broadcast %297 : vector<1x16xf32> to vector<256x16xf32>
    %299 = arith.mulf %296, %298 : vector<256x16xf32>
    %c0_153 = arith.constant 0 : index
    %c0_154 = arith.constant 0 : index
    %300 = vector.load %arg4[%c0_153, %c0_154] : memref<1x16xf32, #tpu.memory_space<vmem>>, vector<1x16xf32>
    %301 = vector.broadcast %300 : vector<1x16xf32> to vector<256x16xf32>
    %302 = arith.addf %299, %301 : vector<256x16xf32>
    %cst_155 = arith.constant 0.000000e+00 : f32
    %303 = vector.broadcast %cst_155 : f32 to vector<256x16xf32>
    %304 = arith.maximumf %302, %303 : vector<256x16xf32>
    %305 = vector.shape_cast %304 : vector<256x16xf32> to vector<16x16x16xf32>
    %306 = vector.extract_strided_slice %305 {offsets = [0, 0, 0], sizes = [1, 16, 16], strides = [1, 1, 1]} : vector<16x16x16xf32> to vector<1x16x16xf32>
    %307 = vector.extract_strided_slice %305 {offsets = [1, 0, 0], sizes = [1, 16, 16], strides = [1, 1, 1]} : vector<16x16x16xf32> to vector<1x16x16xf32>
    %308 = arith.maximumf %306, %307 : vector<1x16x16xf32>
    %309 = vector.extract_strided_slice %305 {offsets = [1, 0, 0], sizes = [1, 16, 16], strides = [1, 1, 1]} : vector<16x16x16xf32> to vector<1x16x16xf32>
    %310 = vector.extract_strided_slice %305 {offsets = [2, 0, 0], sizes = [1, 16, 16], strides = [1, 1, 1]} : vector<16x16x16xf32> to vector<1x16x16xf32>
    %311 = arith.maximumf %309, %310 : vector<1x16x16xf32>
    %312 = vector.extract_strided_slice %305 {offsets = [3, 0, 0], sizes = [1, 16, 16], strides = [1, 1, 1]} : vector<16x16x16xf32> to vector<1x16x16xf32>
    %313 = arith.maximumf %311, %312 : vector<1x16x16xf32>
    %314 = vector.extract_strided_slice %305 {offsets = [3, 0, 0], sizes = [1, 16, 16], strides = [1, 1, 1]} : vector<16x16x16xf32> to vector<1x16x16xf32>
    %315 = vector.extract_strided_slice %305 {offsets = [4, 0, 0], sizes = [1, 16, 16], strides = [1, 1, 1]} : vector<16x16x16xf32> to vector<1x16x16xf32>
    %316 = arith.maximumf %314, %315 : vector<1x16x16xf32>
    %317 = vector.extract_strided_slice %305 {offsets = [5, 0, 0], sizes = [1, 16, 16], strides = [1, 1, 1]} : vector<16x16x16xf32> to vector<1x16x16xf32>
    %318 = arith.maximumf %316, %317 : vector<1x16x16xf32>
    %319 = vector.extract_strided_slice %305 {offsets = [5, 0, 0], sizes = [1, 16, 16], strides = [1, 1, 1]} : vector<16x16x16xf32> to vector<1x16x16xf32>
    %320 = vector.extract_strided_slice %305 {offsets = [6, 0, 0], sizes = [1, 16, 16], strides = [1, 1, 1]} : vector<16x16x16xf32> to vector<1x16x16xf32>
    %321 = arith.maximumf %319, %320 : vector<1x16x16xf32>
    %322 = vector.extract_strided_slice %305 {offsets = [7, 0, 0], sizes = [1, 16, 16], strides = [1, 1, 1]} : vector<16x16x16xf32> to vector<1x16x16xf32>
    %323 = arith.maximumf %321, %322 : vector<1x16x16xf32>
    %324 = vector.extract_strided_slice %305 {offsets = [7, 0, 0], sizes = [1, 16, 16], strides = [1, 1, 1]} : vector<16x16x16xf32> to vector<1x16x16xf32>
    %325 = vector.extract_strided_slice %305 {offsets = [8, 0, 0], sizes = [1, 16, 16], strides = [1, 1, 1]} : vector<16x16x16xf32> to vector<1x16x16xf32>
    %326 = arith.maximumf %324, %325 : vector<1x16x16xf32>
    %327 = vector.extract_strided_slice %305 {offsets = [9, 0, 0], sizes = [1, 16, 16], strides = [1, 1, 1]} : vector<16x16x16xf32> to vector<1x16x16xf32>
    %328 = arith.maximumf %326, %327 : vector<1x16x16xf32>
    %329 = vector.extract_strided_slice %305 {offsets = [9, 0, 0], sizes = [1, 16, 16], strides = [1, 1, 1]} : vector<16x16x16xf32> to vector<1x16x16xf32>
    %330 = vector.extract_strided_slice %305 {offsets = [10, 0, 0], sizes = [1, 16, 16], strides = [1, 1, 1]} : vector<16x16x16xf32> to vector<1x16x16xf32>
    %331 = arith.maximumf %329, %330 : vector<1x16x16xf32>
    %332 = vector.extract_strided_slice %305 {offsets = [11, 0, 0], sizes = [1, 16, 16], strides = [1, 1, 1]} : vector<16x16x16xf32> to vector<1x16x16xf32>
    %333 = arith.maximumf %331, %332 : vector<1x16x16xf32>
    %334 = vector.extract_strided_slice %305 {offsets = [11, 0, 0], sizes = [1, 16, 16], strides = [1, 1, 1]} : vector<16x16x16xf32> to vector<1x16x16xf32>
    %335 = vector.extract_strided_slice %305 {offsets = [12, 0, 0], sizes = [1, 16, 16], strides = [1, 1, 1]} : vector<16x16x16xf32> to vector<1x16x16xf32>
    %336 = arith.maximumf %334, %335 : vector<1x16x16xf32>
    %337 = vector.extract_strided_slice %305 {offsets = [13, 0, 0], sizes = [1, 16, 16], strides = [1, 1, 1]} : vector<16x16x16xf32> to vector<1x16x16xf32>
    %338 = arith.maximumf %336, %337 : vector<1x16x16xf32>
    %339 = vector.extract_strided_slice %305 {offsets = [13, 0, 0], sizes = [1, 16, 16], strides = [1, 1, 1]} : vector<16x16x16xf32> to vector<1x16x16xf32>
    %340 = vector.extract_strided_slice %305 {offsets = [14, 0, 0], sizes = [1, 16, 16], strides = [1, 1, 1]} : vector<16x16x16xf32> to vector<1x16x16xf32>
    %341 = arith.maximumf %339, %340 : vector<1x16x16xf32>
    %342 = vector.extract_strided_slice %305 {offsets = [15, 0, 0], sizes = [1, 16, 16], strides = [1, 1, 1]} : vector<16x16x16xf32> to vector<1x16x16xf32>
    %343 = arith.maximumf %341, %342 : vector<1x16x16xf32>
    %344 = tpu.concatenate %308, %313, %318, %323, %328, %333, %338, %343 in 0 : vector<1x16x16xf32>, vector<1x16x16xf32>, vector<1x16x16xf32>, vector<1x16x16xf32>, vector<1x16x16xf32>, vector<1x16x16xf32>, vector<1x16x16xf32>, vector<1x16x16xf32> -> vector<8x16x16xf32>
    %345 = vector.extract_strided_slice %344 {offsets = [0, 0, 0], sizes = [8, 1, 16], strides = [1, 1, 1]} : vector<8x16x16xf32> to vector<8x1x16xf32>
    %346 = vector.extract_strided_slice %344 {offsets = [0, 1, 0], sizes = [8, 1, 16], strides = [1, 1, 1]} : vector<8x16x16xf32> to vector<8x1x16xf32>
    %347 = arith.maximumf %345, %346 : vector<8x1x16xf32>
    %348 = vector.extract_strided_slice %344 {offsets = [0, 1, 0], sizes = [8, 1, 16], strides = [1, 1, 1]} : vector<8x16x16xf32> to vector<8x1x16xf32>
    %349 = vector.extract_strided_slice %344 {offsets = [0, 2, 0], sizes = [8, 1, 16], strides = [1, 1, 1]} : vector<8x16x16xf32> to vector<8x1x16xf32>
    %350 = arith.maximumf %348, %349 : vector<8x1x16xf32>
    %351 = vector.extract_strided_slice %344 {offsets = [0, 3, 0], sizes = [8, 1, 16], strides = [1, 1, 1]} : vector<8x16x16xf32> to vector<8x1x16xf32>
    %352 = arith.maximumf %350, %351 : vector<8x1x16xf32>
    %353 = vector.extract_strided_slice %344 {offsets = [0, 3, 0], sizes = [8, 1, 16], strides = [1, 1, 1]} : vector<8x16x16xf32> to vector<8x1x16xf32>
    %354 = vector.extract_strided_slice %344 {offsets = [0, 4, 0], sizes = [8, 1, 16], strides = [1, 1, 1]} : vector<8x16x16xf32> to vector<8x1x16xf32>
    %355 = arith.maximumf %353, %354 : vector<8x1x16xf32>
    %356 = vector.extract_strided_slice %344 {offsets = [0, 5, 0], sizes = [8, 1, 16], strides = [1, 1, 1]} : vector<8x16x16xf32> to vector<8x1x16xf32>
    %357 = arith.maximumf %355, %356 : vector<8x1x16xf32>
    %358 = vector.extract_strided_slice %344 {offsets = [0, 5, 0], sizes = [8, 1, 16], strides = [1, 1, 1]} : vector<8x16x16xf32> to vector<8x1x16xf32>
    %359 = vector.extract_strided_slice %344 {offsets = [0, 6, 0], sizes = [8, 1, 16], strides = [1, 1, 1]} : vector<8x16x16xf32> to vector<8x1x16xf32>
    %360 = arith.maximumf %358, %359 : vector<8x1x16xf32>
    %361 = vector.extract_strided_slice %344 {offsets = [0, 7, 0], sizes = [8, 1, 16], strides = [1, 1, 1]} : vector<8x16x16xf32> to vector<8x1x16xf32>
    %362 = arith.maximumf %360, %361 : vector<8x1x16xf32>
    %363 = vector.extract_strided_slice %344 {offsets = [0, 7, 0], sizes = [8, 1, 16], strides = [1, 1, 1]} : vector<8x16x16xf32> to vector<8x1x16xf32>
    %364 = vector.extract_strided_slice %344 {offsets = [0, 8, 0], sizes = [8, 1, 16], strides = [1, 1, 1]} : vector<8x16x16xf32> to vector<8x1x16xf32>
    %365 = arith.maximumf %363, %364 : vector<8x1x16xf32>
    %366 = vector.extract_strided_slice %344 {offsets = [0, 9, 0], sizes = [8, 1, 16], strides = [1, 1, 1]} : vector<8x16x16xf32> to vector<8x1x16xf32>
    %367 = arith.maximumf %365, %366 : vector<8x1x16xf32>
    %368 = vector.extract_strided_slice %344 {offsets = [0, 9, 0], sizes = [8, 1, 16], strides = [1, 1, 1]} : vector<8x16x16xf32> to vector<8x1x16xf32>
    %369 = vector.extract_strided_slice %344 {offsets = [0, 10, 0], sizes = [8, 1, 16], strides = [1, 1, 1]} : vector<8x16x16xf32> to vector<8x1x16xf32>
    %370 = arith.maximumf %368, %369 : vector<8x1x16xf32>
    %371 = vector.extract_strided_slice %344 {offsets = [0, 11, 0], sizes = [8, 1, 16], strides = [1, 1, 1]} : vector<8x16x16xf32> to vector<8x1x16xf32>
    %372 = arith.maximumf %370, %371 : vector<8x1x16xf32>
    %373 = vector.extract_strided_slice %344 {offsets = [0, 11, 0], sizes = [8, 1, 16], strides = [1, 1, 1]} : vector<8x16x16xf32> to vector<8x1x16xf32>
    %374 = vector.extract_strided_slice %344 {offsets = [0, 12, 0], sizes = [8, 1, 16], strides = [1, 1, 1]} : vector<8x16x16xf32> to vector<8x1x16xf32>
    %375 = arith.maximumf %373, %374 : vector<8x1x16xf32>
    %376 = vector.extract_strided_slice %344 {offsets = [0, 13, 0], sizes = [8, 1, 16], strides = [1, 1, 1]} : vector<8x16x16xf32> to vector<8x1x16xf32>
    %377 = arith.maximumf %375, %376 : vector<8x1x16xf32>
    %378 = vector.extract_strided_slice %344 {offsets = [0, 13, 0], sizes = [8, 1, 16], strides = [1, 1, 1]} : vector<8x16x16xf32> to vector<8x1x16xf32>
    %379 = vector.extract_strided_slice %344 {offsets = [0, 14, 0], sizes = [8, 1, 16], strides = [1, 1, 1]} : vector<8x16x16xf32> to vector<8x1x16xf32>
    %380 = arith.maximumf %378, %379 : vector<8x1x16xf32>
    %381 = vector.extract_strided_slice %344 {offsets = [0, 15, 0], sizes = [8, 1, 16], strides = [1, 1, 1]} : vector<8x16x16xf32> to vector<8x1x16xf32>
    %382 = arith.maximumf %380, %381 : vector<8x1x16xf32>
    %383 = tpu.concatenate %347, %352, %357, %362, %367, %372, %377, %382 in 1 : vector<8x1x16xf32>, vector<8x1x16xf32>, vector<8x1x16xf32>, vector<8x1x16xf32>, vector<8x1x16xf32>, vector<8x1x16xf32>, vector<8x1x16xf32>, vector<8x1x16xf32> -> vector<8x8x16xf32>
    %384 = vector.shape_cast %383 : vector<8x8x16xf32> to vector<64x16xf32>
    %c0_156 = arith.constant 0 : index
    %c0_157 = arith.constant 0 : index
    %385 = vector.load %arg5[%c0_156, %c0_157] : memref<16x80xf32, #tpu.memory_space<vmem>>, vector<16x80xf32>
    %cst_158 = arith.constant dense<0.000000e+00> : vector<64x80xf32>
    %386 = tpu.matmul %384, %385, %cst_158 {dimension_numbers = #tpu.dot_dimension_numbers<[1], [0], [0], [1], [0, 0, 1, 1], [], []>} : vector<64x16xf32>, vector<16x80xf32>, vector<64x80xf32> -> vector<64x80xf32>
    %387 = vector.extract_strided_slice %386 {offsets = [0, 0], sizes = [64, 16], strides = [1, 1]} : vector<64x80xf32> to vector<64x16xf32>
    %c0_159 = arith.constant 0 : index
    %c0_160 = arith.constant 0 : index
    %388 = vector.load %arg6[%c0_159, %c0_160] : memref<1x16xf32, #tpu.memory_space<vmem>>, vector<1x16xf32>
    %389 = vector.broadcast %388 : vector<1x16xf32> to vector<64x16xf32>
    %390 = arith.mulf %387, %389 : vector<64x16xf32>
    %c0_161 = arith.constant 0 : index
    %c0_162 = arith.constant 0 : index
    %391 = vector.load %arg7[%c0_161, %c0_162] : memref<1x16xf32, #tpu.memory_space<vmem>>, vector<1x16xf32>
    %392 = vector.broadcast %391 : vector<1x16xf32> to vector<64x16xf32>
    %393 = arith.addf %390, %392 : vector<64x16xf32>
    %cst_163 = arith.constant 0.000000e+00 : f32
    %394 = vector.broadcast %cst_163 : f32 to vector<64x16xf32>
    %395 = arith.maximumf %393, %394 : vector<64x16xf32>
    %396 = vector.extract_strided_slice %386 {offsets = [0, 16], sizes = [64, 64], strides = [1, 1]} : vector<64x80xf32> to vector<64x64xf32>
    %c0_164 = arith.constant 0 : index
    %c0_165 = arith.constant 0 : index
    %397 = vector.load %arg8[%c0_164, %c0_165] : memref<1x64xf32, #tpu.memory_space<vmem>>, vector<1x64xf32>
    %398 = vector.broadcast %397 : vector<1x64xf32> to vector<64x64xf32>
    %399 = arith.mulf %396, %398 : vector<64x64xf32>
    %c0_166 = arith.constant 0 : index
    %c0_167 = arith.constant 0 : index
    %400 = vector.load %arg9[%c0_166, %c0_167] : memref<1x64xf32, #tpu.memory_space<vmem>>, vector<1x64xf32>
    %401 = vector.broadcast %400 : vector<1x64xf32> to vector<64x64xf32>
    %402 = arith.addf %399, %401 : vector<64x64xf32>
    %403 = vector.shape_cast %395 : vector<64x16xf32> to vector<8x8x16xf32>
    %cst_168 = arith.constant 0.000000e+00 : f32
    %404 = vector.broadcast %cst_168 : f32 to vector<1x8x16xf32>
    %405 = tpu.concatenate %404, %403, %404 in 0 : vector<1x8x16xf32>, vector<8x8x16xf32>, vector<1x8x16xf32> -> vector<10x8x16xf32>
    %cst_169 = arith.constant 0.000000e+00 : f32
    %406 = vector.broadcast %cst_169 : f32 to vector<10x1x16xf32>
    %407 = tpu.concatenate %406, %405, %406 in 1 : vector<10x1x16xf32>, vector<10x8x16xf32>, vector<10x1x16xf32> -> vector<10x10x16xf32>
    %cst_170 = arith.constant 0.000000e+00 : f32
    %408 = vector.broadcast %cst_170 : f32 to vector<64x16xf32>
    %409 = vector.extract_strided_slice %407 {offsets = [0, 0, 0], sizes = [8, 8, 16], strides = [1, 1, 1]} : vector<10x10x16xf32> to vector<8x8x16xf32>
    %410 = vector.shape_cast %409 : vector<8x8x16xf32> to vector<64x16xf32>
    %c0_171 = arith.constant 0 : index
    %c0_172 = arith.constant 0 : index
    %c0_173 = arith.constant 0 : index
    %411 = vector.load %arg10[%c0_171, %c0_172, %c0_173] : memref<9x16x16xf32, #tpu.memory_space<vmem>>, vector<1x16x16xf32>
    %412 = vector.shape_cast %411 : vector<1x16x16xf32> to vector<16x16xf32>
    %cst_174 = arith.constant dense<0.000000e+00> : vector<64x16xf32>
    %413 = tpu.matmul %410, %412, %cst_174 {dimension_numbers = #tpu.dot_dimension_numbers<[1], [0], [0], [1], [0, 0, 1, 1], [], []>} : vector<64x16xf32>, vector<16x16xf32>, vector<64x16xf32> -> vector<64x16xf32>
    %414 = arith.addf %408, %413 : vector<64x16xf32>
    %415 = vector.extract_strided_slice %407 {offsets = [0, 1, 0], sizes = [8, 8, 16], strides = [1, 1, 1]} : vector<10x10x16xf32> to vector<8x8x16xf32>
    %416 = vector.shape_cast %415 : vector<8x8x16xf32> to vector<64x16xf32>
    %c1_175 = arith.constant 1 : index
    %c0_176 = arith.constant 0 : index
    %c0_177 = arith.constant 0 : index
    %417 = vector.load %arg10[%c1_175, %c0_176, %c0_177] : memref<9x16x16xf32, #tpu.memory_space<vmem>>, vector<1x16x16xf32>
    %418 = vector.shape_cast %417 : vector<1x16x16xf32> to vector<16x16xf32>
    %cst_178 = arith.constant dense<0.000000e+00> : vector<64x16xf32>
    %419 = tpu.matmul %416, %418, %cst_178 {dimension_numbers = #tpu.dot_dimension_numbers<[1], [0], [0], [1], [0, 0, 1, 1], [], []>} : vector<64x16xf32>, vector<16x16xf32>, vector<64x16xf32> -> vector<64x16xf32>
    %420 = arith.addf %414, %419 : vector<64x16xf32>
    %421 = vector.extract_strided_slice %407 {offsets = [0, 2, 0], sizes = [8, 8, 16], strides = [1, 1, 1]} : vector<10x10x16xf32> to vector<8x8x16xf32>
    %422 = vector.shape_cast %421 : vector<8x8x16xf32> to vector<64x16xf32>
    %c2_179 = arith.constant 2 : index
    %c0_180 = arith.constant 0 : index
    %c0_181 = arith.constant 0 : index
    %423 = vector.load %arg10[%c2_179, %c0_180, %c0_181] : memref<9x16x16xf32, #tpu.memory_space<vmem>>, vector<1x16x16xf32>
    %424 = vector.shape_cast %423 : vector<1x16x16xf32> to vector<16x16xf32>
    %cst_182 = arith.constant dense<0.000000e+00> : vector<64x16xf32>
    %425 = tpu.matmul %422, %424, %cst_182 {dimension_numbers = #tpu.dot_dimension_numbers<[1], [0], [0], [1], [0, 0, 1, 1], [], []>} : vector<64x16xf32>, vector<16x16xf32>, vector<64x16xf32> -> vector<64x16xf32>
    %426 = arith.addf %420, %425 : vector<64x16xf32>
    %427 = vector.extract_strided_slice %407 {offsets = [1, 0, 0], sizes = [8, 8, 16], strides = [1, 1, 1]} : vector<10x10x16xf32> to vector<8x8x16xf32>
    %428 = vector.shape_cast %427 : vector<8x8x16xf32> to vector<64x16xf32>
    %c3_183 = arith.constant 3 : index
    %c0_184 = arith.constant 0 : index
    %c0_185 = arith.constant 0 : index
    %429 = vector.load %arg10[%c3_183, %c0_184, %c0_185] : memref<9x16x16xf32, #tpu.memory_space<vmem>>, vector<1x16x16xf32>
    %430 = vector.shape_cast %429 : vector<1x16x16xf32> to vector<16x16xf32>
    %cst_186 = arith.constant dense<0.000000e+00> : vector<64x16xf32>
    %431 = tpu.matmul %428, %430, %cst_186 {dimension_numbers = #tpu.dot_dimension_numbers<[1], [0], [0], [1], [0, 0, 1, 1], [], []>} : vector<64x16xf32>, vector<16x16xf32>, vector<64x16xf32> -> vector<64x16xf32>
    %432 = arith.addf %426, %431 : vector<64x16xf32>
    %433 = vector.extract_strided_slice %407 {offsets = [1, 1, 0], sizes = [8, 8, 16], strides = [1, 1, 1]} : vector<10x10x16xf32> to vector<8x8x16xf32>
    %434 = vector.shape_cast %433 : vector<8x8x16xf32> to vector<64x16xf32>
    %c4_187 = arith.constant 4 : index
    %c0_188 = arith.constant 0 : index
    %c0_189 = arith.constant 0 : index
    %435 = vector.load %arg10[%c4_187, %c0_188, %c0_189] : memref<9x16x16xf32, #tpu.memory_space<vmem>>, vector<1x16x16xf32>
    %436 = vector.shape_cast %435 : vector<1x16x16xf32> to vector<16x16xf32>
    %cst_190 = arith.constant dense<0.000000e+00> : vector<64x16xf32>
    %437 = tpu.matmul %434, %436, %cst_190 {dimension_numbers = #tpu.dot_dimension_numbers<[1], [0], [0], [1], [0, 0, 1, 1], [], []>} : vector<64x16xf32>, vector<16x16xf32>, vector<64x16xf32> -> vector<64x16xf32>
    %438 = arith.addf %432, %437 : vector<64x16xf32>
    %439 = vector.extract_strided_slice %407 {offsets = [1, 2, 0], sizes = [8, 8, 16], strides = [1, 1, 1]} : vector<10x10x16xf32> to vector<8x8x16xf32>
    %440 = vector.shape_cast %439 : vector<8x8x16xf32> to vector<64x16xf32>
    %c5_191 = arith.constant 5 : index
    %c0_192 = arith.constant 0 : index
    %c0_193 = arith.constant 0 : index
    %441 = vector.load %arg10[%c5_191, %c0_192, %c0_193] : memref<9x16x16xf32, #tpu.memory_space<vmem>>, vector<1x16x16xf32>
    %442 = vector.shape_cast %441 : vector<1x16x16xf32> to vector<16x16xf32>
    %cst_194 = arith.constant dense<0.000000e+00> : vector<64x16xf32>
    %443 = tpu.matmul %440, %442, %cst_194 {dimension_numbers = #tpu.dot_dimension_numbers<[1], [0], [0], [1], [0, 0, 1, 1], [], []>} : vector<64x16xf32>, vector<16x16xf32>, vector<64x16xf32> -> vector<64x16xf32>
    %444 = arith.addf %438, %443 : vector<64x16xf32>
    %445 = vector.extract_strided_slice %407 {offsets = [2, 0, 0], sizes = [8, 8, 16], strides = [1, 1, 1]} : vector<10x10x16xf32> to vector<8x8x16xf32>
    %446 = vector.shape_cast %445 : vector<8x8x16xf32> to vector<64x16xf32>
    %c6_195 = arith.constant 6 : index
    %c0_196 = arith.constant 0 : index
    %c0_197 = arith.constant 0 : index
    %447 = vector.load %arg10[%c6_195, %c0_196, %c0_197] : memref<9x16x16xf32, #tpu.memory_space<vmem>>, vector<1x16x16xf32>
    %448 = vector.shape_cast %447 : vector<1x16x16xf32> to vector<16x16xf32>
    %cst_198 = arith.constant dense<0.000000e+00> : vector<64x16xf32>
    %449 = tpu.matmul %446, %448, %cst_198 {dimension_numbers = #tpu.dot_dimension_numbers<[1], [0], [0], [1], [0, 0, 1, 1], [], []>} : vector<64x16xf32>, vector<16x16xf32>, vector<64x16xf32> -> vector<64x16xf32>
    %450 = arith.addf %444, %449 : vector<64x16xf32>
    %451 = vector.extract_strided_slice %407 {offsets = [2, 1, 0], sizes = [8, 8, 16], strides = [1, 1, 1]} : vector<10x10x16xf32> to vector<8x8x16xf32>
    %452 = vector.shape_cast %451 : vector<8x8x16xf32> to vector<64x16xf32>
    %c7_199 = arith.constant 7 : index
    %c0_200 = arith.constant 0 : index
    %c0_201 = arith.constant 0 : index
    %453 = vector.load %arg10[%c7_199, %c0_200, %c0_201] : memref<9x16x16xf32, #tpu.memory_space<vmem>>, vector<1x16x16xf32>
    %454 = vector.shape_cast %453 : vector<1x16x16xf32> to vector<16x16xf32>
    %cst_202 = arith.constant dense<0.000000e+00> : vector<64x16xf32>
    %455 = tpu.matmul %452, %454, %cst_202 {dimension_numbers = #tpu.dot_dimension_numbers<[1], [0], [0], [1], [0, 0, 1, 1], [], []>} : vector<64x16xf32>, vector<16x16xf32>, vector<64x16xf32> -> vector<64x16xf32>
    %456 = arith.addf %450, %455 : vector<64x16xf32>
    %457 = vector.extract_strided_slice %407 {offsets = [2, 2, 0], sizes = [8, 8, 16], strides = [1, 1, 1]} : vector<10x10x16xf32> to vector<8x8x16xf32>
    %458 = vector.shape_cast %457 : vector<8x8x16xf32> to vector<64x16xf32>
    %c8_203 = arith.constant 8 : index
    %c0_204 = arith.constant 0 : index
    %c0_205 = arith.constant 0 : index
    %459 = vector.load %arg10[%c8_203, %c0_204, %c0_205] : memref<9x16x16xf32, #tpu.memory_space<vmem>>, vector<1x16x16xf32>
    %460 = vector.shape_cast %459 : vector<1x16x16xf32> to vector<16x16xf32>
    %cst_206 = arith.constant dense<0.000000e+00> : vector<64x16xf32>
    %461 = tpu.matmul %458, %460, %cst_206 {dimension_numbers = #tpu.dot_dimension_numbers<[1], [0], [0], [1], [0, 0, 1, 1], [], []>} : vector<64x16xf32>, vector<16x16xf32>, vector<64x16xf32> -> vector<64x16xf32>
    %462 = arith.addf %456, %461 : vector<64x16xf32>
    %c0_207 = arith.constant 0 : index
    %c0_208 = arith.constant 0 : index
    %463 = vector.load %arg11[%c0_207, %c0_208] : memref<1x16xf32, #tpu.memory_space<vmem>>, vector<1x16xf32>
    %464 = vector.broadcast %463 : vector<1x16xf32> to vector<64x16xf32>
    %465 = arith.mulf %462, %464 : vector<64x16xf32>
    %c0_209 = arith.constant 0 : index
    %c0_210 = arith.constant 0 : index
    %466 = vector.load %arg12[%c0_209, %c0_210] : memref<1x16xf32, #tpu.memory_space<vmem>>, vector<1x16xf32>
    %467 = vector.broadcast %466 : vector<1x16xf32> to vector<64x16xf32>
    %468 = arith.addf %465, %467 : vector<64x16xf32>
    %cst_211 = arith.constant 0.000000e+00 : f32
    %469 = vector.broadcast %cst_211 : f32 to vector<64x16xf32>
    %470 = arith.maximumf %468, %469 : vector<64x16xf32>
    %c0_212 = arith.constant 0 : index
    %c0_213 = arith.constant 0 : index
    %471 = vector.load %arg13[%c0_212, %c0_213] : memref<16x64xf32, #tpu.memory_space<vmem>>, vector<16x64xf32>
    %cst_214 = arith.constant dense<0.000000e+00> : vector<64x64xf32>
    %472 = tpu.matmul %470, %471, %cst_214 {dimension_numbers = #tpu.dot_dimension_numbers<[1], [0], [0], [1], [0, 0, 1, 1], [], []>} : vector<64x16xf32>, vector<16x64xf32>, vector<64x64xf32> -> vector<64x64xf32>
    %c0_215 = arith.constant 0 : index
    %c0_216 = arith.constant 0 : index
    %473 = vector.load %arg14[%c0_215, %c0_216] : memref<1x64xf32, #tpu.memory_space<vmem>>, vector<1x64xf32>
    %474 = vector.broadcast %473 : vector<1x64xf32> to vector<64x64xf32>
    %475 = arith.mulf %472, %474 : vector<64x64xf32>
    %c0_217 = arith.constant 0 : index
    %c0_218 = arith.constant 0 : index
    %476 = vector.load %arg15[%c0_217, %c0_218] : memref<1x64xf32, #tpu.memory_space<vmem>>, vector<1x64xf32>
    %477 = vector.broadcast %476 : vector<1x64xf32> to vector<64x64xf32>
    %478 = arith.addf %475, %477 : vector<64x64xf32>
    %479 = arith.addf %478, %402 : vector<64x64xf32>
    %cst_219 = arith.constant 0.000000e+00 : f32
    %480 = vector.broadcast %cst_219 : f32 to vector<64x64xf32>
    %481 = arith.maximumf %479, %480 : vector<64x64xf32>
    %c0_220 = arith.constant 0 : index
    %c0_221 = arith.constant 0 : index
    %482 = vector.load %arg16[%c0_220, %c0_221] : memref<64x16xf32, #tpu.memory_space<vmem>>, vector<64x16xf32>
    %cst_222 = arith.constant dense<0.000000e+00> : vector<64x16xf32>
    %483 = tpu.matmul %481, %482, %cst_222 {dimension_numbers = #tpu.dot_dimension_numbers<[1], [0], [0], [1], [0, 0, 1, 1], [], []>} : vector<64x64xf32>, vector<64x16xf32>, vector<64x16xf32> -> vector<64x16xf32>
    %c0_223 = arith.constant 0 : index
    %c0_224 = arith.constant 0 : index
    %484 = vector.load %arg17[%c0_223, %c0_224] : memref<1x16xf32, #tpu.memory_space<vmem>>, vector<1x16xf32>
    %485 = vector.broadcast %484 : vector<1x16xf32> to vector<64x16xf32>
    %486 = arith.mulf %483, %485 : vector<64x16xf32>
    %c0_225 = arith.constant 0 : index
    %c0_226 = arith.constant 0 : index
    %487 = vector.load %arg18[%c0_225, %c0_226] : memref<1x16xf32, #tpu.memory_space<vmem>>, vector<1x16xf32>
    %488 = vector.broadcast %487 : vector<1x16xf32> to vector<64x16xf32>
    %489 = arith.addf %486, %488 : vector<64x16xf32>
    %cst_227 = arith.constant 0.000000e+00 : f32
    %490 = vector.broadcast %cst_227 : f32 to vector<64x16xf32>
    %491 = arith.maximumf %489, %490 : vector<64x16xf32>
    %492 = vector.shape_cast %491 : vector<64x16xf32> to vector<8x8x16xf32>
    %cst_228 = arith.constant 0.000000e+00 : f32
    %493 = vector.broadcast %cst_228 : f32 to vector<1x8x16xf32>
    %494 = tpu.concatenate %493, %492, %493 in 0 : vector<1x8x16xf32>, vector<8x8x16xf32>, vector<1x8x16xf32> -> vector<10x8x16xf32>
    %cst_229 = arith.constant 0.000000e+00 : f32
    %495 = vector.broadcast %cst_229 : f32 to vector<10x1x16xf32>
    %496 = tpu.concatenate %495, %494, %495 in 1 : vector<10x1x16xf32>, vector<10x8x16xf32>, vector<10x1x16xf32> -> vector<10x10x16xf32>
    %cst_230 = arith.constant 0.000000e+00 : f32
    %497 = vector.broadcast %cst_230 : f32 to vector<64x16xf32>
    %498 = vector.extract_strided_slice %496 {offsets = [0, 0, 0], sizes = [8, 8, 16], strides = [1, 1, 1]} : vector<10x10x16xf32> to vector<8x8x16xf32>
    %499 = vector.shape_cast %498 : vector<8x8x16xf32> to vector<64x16xf32>
    %c0_231 = arith.constant 0 : index
    %c0_232 = arith.constant 0 : index
    %c0_233 = arith.constant 0 : index
    %500 = vector.load %arg19[%c0_231, %c0_232, %c0_233] : memref<9x16x16xf32, #tpu.memory_space<vmem>>, vector<1x16x16xf32>
    %501 = vector.shape_cast %500 : vector<1x16x16xf32> to vector<16x16xf32>
    %cst_234 = arith.constant dense<0.000000e+00> : vector<64x16xf32>
    %502 = tpu.matmul %499, %501, %cst_234 {dimension_numbers = #tpu.dot_dimension_numbers<[1], [0], [0], [1], [0, 0, 1, 1], [], []>} : vector<64x16xf32>, vector<16x16xf32>, vector<64x16xf32> -> vector<64x16xf32>
    %503 = arith.addf %497, %502 : vector<64x16xf32>
    %504 = vector.extract_strided_slice %496 {offsets = [0, 1, 0], sizes = [8, 8, 16], strides = [1, 1, 1]} : vector<10x10x16xf32> to vector<8x8x16xf32>
    %505 = vector.shape_cast %504 : vector<8x8x16xf32> to vector<64x16xf32>
    %c1_235 = arith.constant 1 : index
    %c0_236 = arith.constant 0 : index
    %c0_237 = arith.constant 0 : index
    %506 = vector.load %arg19[%c1_235, %c0_236, %c0_237] : memref<9x16x16xf32, #tpu.memory_space<vmem>>, vector<1x16x16xf32>
    %507 = vector.shape_cast %506 : vector<1x16x16xf32> to vector<16x16xf32>
    %cst_238 = arith.constant dense<0.000000e+00> : vector<64x16xf32>
    %508 = tpu.matmul %505, %507, %cst_238 {dimension_numbers = #tpu.dot_dimension_numbers<[1], [0], [0], [1], [0, 0, 1, 1], [], []>} : vector<64x16xf32>, vector<16x16xf32>, vector<64x16xf32> -> vector<64x16xf32>
    %509 = arith.addf %503, %508 : vector<64x16xf32>
    %510 = vector.extract_strided_slice %496 {offsets = [0, 2, 0], sizes = [8, 8, 16], strides = [1, 1, 1]} : vector<10x10x16xf32> to vector<8x8x16xf32>
    %511 = vector.shape_cast %510 : vector<8x8x16xf32> to vector<64x16xf32>
    %c2_239 = arith.constant 2 : index
    %c0_240 = arith.constant 0 : index
    %c0_241 = arith.constant 0 : index
    %512 = vector.load %arg19[%c2_239, %c0_240, %c0_241] : memref<9x16x16xf32, #tpu.memory_space<vmem>>, vector<1x16x16xf32>
    %513 = vector.shape_cast %512 : vector<1x16x16xf32> to vector<16x16xf32>
    %cst_242 = arith.constant dense<0.000000e+00> : vector<64x16xf32>
    %514 = tpu.matmul %511, %513, %cst_242 {dimension_numbers = #tpu.dot_dimension_numbers<[1], [0], [0], [1], [0, 0, 1, 1], [], []>} : vector<64x16xf32>, vector<16x16xf32>, vector<64x16xf32> -> vector<64x16xf32>
    %515 = arith.addf %509, %514 : vector<64x16xf32>
    %516 = vector.extract_strided_slice %496 {offsets = [1, 0, 0], sizes = [8, 8, 16], strides = [1, 1, 1]} : vector<10x10x16xf32> to vector<8x8x16xf32>
    %517 = vector.shape_cast %516 : vector<8x8x16xf32> to vector<64x16xf32>
    %c3_243 = arith.constant 3 : index
    %c0_244 = arith.constant 0 : index
    %c0_245 = arith.constant 0 : index
    %518 = vector.load %arg19[%c3_243, %c0_244, %c0_245] : memref<9x16x16xf32, #tpu.memory_space<vmem>>, vector<1x16x16xf32>
    %519 = vector.shape_cast %518 : vector<1x16x16xf32> to vector<16x16xf32>
    %cst_246 = arith.constant dense<0.000000e+00> : vector<64x16xf32>
    %520 = tpu.matmul %517, %519, %cst_246 {dimension_numbers = #tpu.dot_dimension_numbers<[1], [0], [0], [1], [0, 0, 1, 1], [], []>} : vector<64x16xf32>, vector<16x16xf32>, vector<64x16xf32> -> vector<64x16xf32>
    %521 = arith.addf %515, %520 : vector<64x16xf32>
    %522 = vector.extract_strided_slice %496 {offsets = [1, 1, 0], sizes = [8, 8, 16], strides = [1, 1, 1]} : vector<10x10x16xf32> to vector<8x8x16xf32>
    %523 = vector.shape_cast %522 : vector<8x8x16xf32> to vector<64x16xf32>
    %c4_247 = arith.constant 4 : index
    %c0_248 = arith.constant 0 : index
    %c0_249 = arith.constant 0 : index
    %524 = vector.load %arg19[%c4_247, %c0_248, %c0_249] : memref<9x16x16xf32, #tpu.memory_space<vmem>>, vector<1x16x16xf32>
    %525 = vector.shape_cast %524 : vector<1x16x16xf32> to vector<16x16xf32>
    %cst_250 = arith.constant dense<0.000000e+00> : vector<64x16xf32>
    %526 = tpu.matmul %523, %525, %cst_250 {dimension_numbers = #tpu.dot_dimension_numbers<[1], [0], [0], [1], [0, 0, 1, 1], [], []>} : vector<64x16xf32>, vector<16x16xf32>, vector<64x16xf32> -> vector<64x16xf32>
    %527 = arith.addf %521, %526 : vector<64x16xf32>
    %528 = vector.extract_strided_slice %496 {offsets = [1, 2, 0], sizes = [8, 8, 16], strides = [1, 1, 1]} : vector<10x10x16xf32> to vector<8x8x16xf32>
    %529 = vector.shape_cast %528 : vector<8x8x16xf32> to vector<64x16xf32>
    %c5_251 = arith.constant 5 : index
    %c0_252 = arith.constant 0 : index
    %c0_253 = arith.constant 0 : index
    %530 = vector.load %arg19[%c5_251, %c0_252, %c0_253] : memref<9x16x16xf32, #tpu.memory_space<vmem>>, vector<1x16x16xf32>
    %531 = vector.shape_cast %530 : vector<1x16x16xf32> to vector<16x16xf32>
    %cst_254 = arith.constant dense<0.000000e+00> : vector<64x16xf32>
    %532 = tpu.matmul %529, %531, %cst_254 {dimension_numbers = #tpu.dot_dimension_numbers<[1], [0], [0], [1], [0, 0, 1, 1], [], []>} : vector<64x16xf32>, vector<16x16xf32>, vector<64x16xf32> -> vector<64x16xf32>
    %533 = arith.addf %527, %532 : vector<64x16xf32>
    %534 = vector.extract_strided_slice %496 {offsets = [2, 0, 0], sizes = [8, 8, 16], strides = [1, 1, 1]} : vector<10x10x16xf32> to vector<8x8x16xf32>
    %535 = vector.shape_cast %534 : vector<8x8x16xf32> to vector<64x16xf32>
    %c6_255 = arith.constant 6 : index
    %c0_256 = arith.constant 0 : index
    %c0_257 = arith.constant 0 : index
    %536 = vector.load %arg19[%c6_255, %c0_256, %c0_257] : memref<9x16x16xf32, #tpu.memory_space<vmem>>, vector<1x16x16xf32>
    %537 = vector.shape_cast %536 : vector<1x16x16xf32> to vector<16x16xf32>
    %cst_258 = arith.constant dense<0.000000e+00> : vector<64x16xf32>
    %538 = tpu.matmul %535, %537, %cst_258 {dimension_numbers = #tpu.dot_dimension_numbers<[1], [0], [0], [1], [0, 0, 1, 1], [], []>} : vector<64x16xf32>, vector<16x16xf32>, vector<64x16xf32> -> vector<64x16xf32>
    %539 = arith.addf %533, %538 : vector<64x16xf32>
    %540 = vector.extract_strided_slice %496 {offsets = [2, 1, 0], sizes = [8, 8, 16], strides = [1, 1, 1]} : vector<10x10x16xf32> to vector<8x8x16xf32>
    %541 = vector.shape_cast %540 : vector<8x8x16xf32> to vector<64x16xf32>
    %c7_259 = arith.constant 7 : index
    %c0_260 = arith.constant 0 : index
    %c0_261 = arith.constant 0 : index
    %542 = vector.load %arg19[%c7_259, %c0_260, %c0_261] : memref<9x16x16xf32, #tpu.memory_space<vmem>>, vector<1x16x16xf32>
    %543 = vector.shape_cast %542 : vector<1x16x16xf32> to vector<16x16xf32>
    %cst_262 = arith.constant dense<0.000000e+00> : vector<64x16xf32>
    %544 = tpu.matmul %541, %543, %cst_262 {dimension_numbers = #tpu.dot_dimension_numbers<[1], [0], [0], [1], [0, 0, 1, 1], [], []>} : vector<64x16xf32>, vector<16x16xf32>, vector<64x16xf32> -> vector<64x16xf32>
    %545 = arith.addf %539, %544 : vector<64x16xf32>
    %546 = vector.extract_strided_slice %496 {offsets = [2, 2, 0], sizes = [8, 8, 16], strides = [1, 1, 1]} : vector<10x10x16xf32> to vector<8x8x16xf32>
    %547 = vector.shape_cast %546 : vector<8x8x16xf32> to vector<64x16xf32>
    %c8_263 = arith.constant 8 : index
    %c0_264 = arith.constant 0 : index
    %c0_265 = arith.constant 0 : index
    %548 = vector.load %arg19[%c8_263, %c0_264, %c0_265] : memref<9x16x16xf32, #tpu.memory_space<vmem>>, vector<1x16x16xf32>
    %549 = vector.shape_cast %548 : vector<1x16x16xf32> to vector<16x16xf32>
    %cst_266 = arith.constant dense<0.000000e+00> : vector<64x16xf32>
    %550 = tpu.matmul %547, %549, %cst_266 {dimension_numbers = #tpu.dot_dimension_numbers<[1], [0], [0], [1], [0, 0, 1, 1], [], []>} : vector<64x16xf32>, vector<16x16xf32>, vector<64x16xf32> -> vector<64x16xf32>
    %551 = arith.addf %545, %550 : vector<64x16xf32>
    %c0_267 = arith.constant 0 : index
    %c0_268 = arith.constant 0 : index
    %552 = vector.load %arg20[%c0_267, %c0_268] : memref<1x16xf32, #tpu.memory_space<vmem>>, vector<1x16xf32>
    %553 = vector.broadcast %552 : vector<1x16xf32> to vector<64x16xf32>
    %554 = arith.mulf %551, %553 : vector<64x16xf32>
    %c0_269 = arith.constant 0 : index
    %c0_270 = arith.constant 0 : index
    %555 = vector.load %arg21[%c0_269, %c0_270] : memref<1x16xf32, #tpu.memory_space<vmem>>, vector<1x16xf32>
    %556 = vector.broadcast %555 : vector<1x16xf32> to vector<64x16xf32>
    %557 = arith.addf %554, %556 : vector<64x16xf32>
    %cst_271 = arith.constant 0.000000e+00 : f32
    %558 = vector.broadcast %cst_271 : f32 to vector<64x16xf32>
    %559 = arith.maximumf %557, %558 : vector<64x16xf32>
    %c0_272 = arith.constant 0 : index
    %c0_273 = arith.constant 0 : index
    %560 = vector.load %arg22[%c0_272, %c0_273] : memref<16x64xf32, #tpu.memory_space<vmem>>, vector<16x64xf32>
    %cst_274 = arith.constant dense<0.000000e+00> : vector<64x64xf32>
    %561 = tpu.matmul %559, %560, %cst_274 {dimension_numbers = #tpu.dot_dimension_numbers<[1], [0], [0], [1], [0, 0, 1, 1], [], []>} : vector<64x16xf32>, vector<16x64xf32>, vector<64x64xf32> -> vector<64x64xf32>
    %c0_275 = arith.constant 0 : index
    %c0_276 = arith.constant 0 : index
    %562 = vector.load %arg23[%c0_275, %c0_276] : memref<1x64xf32, #tpu.memory_space<vmem>>, vector<1x64xf32>
    %563 = vector.broadcast %562 : vector<1x64xf32> to vector<64x64xf32>
    %564 = arith.mulf %561, %563 : vector<64x64xf32>
    %c0_277 = arith.constant 0 : index
    %c0_278 = arith.constant 0 : index
    %565 = vector.load %arg24[%c0_277, %c0_278] : memref<1x64xf32, #tpu.memory_space<vmem>>, vector<1x64xf32>
    %566 = vector.broadcast %565 : vector<1x64xf32> to vector<64x64xf32>
    %567 = arith.addf %564, %566 : vector<64x64xf32>
    %568 = arith.addf %567, %481 : vector<64x64xf32>
    %cst_279 = arith.constant 0.000000e+00 : f32
    %569 = vector.broadcast %cst_279 : f32 to vector<64x64xf32>
    %570 = arith.maximumf %568, %569 : vector<64x64xf32>
    %571 = vector.shape_cast %570 : vector<64x64xf32> to vector<8x8x64xf32>
    %c0_280 = arith.constant 0 : index
    %c0_281 = arith.constant 0 : index
    %c0_282 = arith.constant 0 : index
    %c0_283 = arith.constant 0 : index
    %572 = vector.load %arg25[%c0_280, %c0_281, %c0_282, %c0_283] : memref<1x8x8x64xf32, #tpu.memory_space<vmem>>, vector<1x8x8x64xf32>
    %573 = vector.shape_cast %572 : vector<1x8x8x64xf32> to vector<8x8x64xf32>
    %574 = vector.shape_cast %571 : vector<8x8x64xf32> to vector<1x8x8x64xf32>
    tpu.vector_store %arg25[%c0_280, %c0_281, %c0_282, %c0_283], %574 {strides = array<i32>} : memref<1x8x8x64xf32, #tpu.memory_space<vmem>>, vector<1x8x8x64xf32>,
    return
  }
  func.func @transform_0(%arg0: i32) -> (i32, i32, i32, i32) {
    %c0_i32 = arith.constant 0 : i32
    %c0_i32_0 = arith.constant 0 : i32
    %c0_i32_1 = arith.constant 0 : i32
    %c0_i32_2 = arith.constant 0 : i32
    return %arg0, %c0_i32, %c0_i32_0, %c0_i32_1 : i32, i32, i32, i32
  }
  func.func @transform_1(%arg0: i32) -> (i32, i32, i32) {
    %c0_i32 = arith.constant 0 : i32
    %c0_i32_0 = arith.constant 0 : i32
    %c0_i32_1 = arith.constant 0 : i32
    %c0_i32_2 = arith.constant 0 : i32
    return %c0_i32, %c0_i32_0, %c0_i32_1 : i32, i32, i32
  }
  func.func @transform_2(%arg0: i32) -> (i32, i32) {
    %c0_i32 = arith.constant 0 : i32
    %c0_i32_0 = arith.constant 0 : i32
    %c0_i32_1 = arith.constant 0 : i32
    return %c0_i32, %c0_i32_0 : i32, i32
  }
  func.func @transform_3(%arg0: i32) -> (i32, i32) {
    %c0_i32 = arith.constant 0 : i32
    %c0_i32_0 = arith.constant 0 : i32
    %c0_i32_1 = arith.constant 0 : i32
    return %c0_i32, %c0_i32_0 : i32, i32
  }
  func.func @transform_4(%arg0: i32) -> (i32, i32) {
    %c0_i32 = arith.constant 0 : i32
    %c0_i32_0 = arith.constant 0 : i32
    %c0_i32_1 = arith.constant 0 : i32
    return %c0_i32, %c0_i32_0 : i32, i32
  }
  func.func @transform_5(%arg0: i32) -> (i32, i32) {
    %c0_i32 = arith.constant 0 : i32
    %c0_i32_0 = arith.constant 0 : i32
    %c0_i32_1 = arith.constant 0 : i32
    return %c0_i32, %c0_i32_0 : i32, i32
  }
  func.func @transform_6(%arg0: i32) -> (i32, i32) {
    %c0_i32 = arith.constant 0 : i32
    %c0_i32_0 = arith.constant 0 : i32
    %c0_i32_1 = arith.constant 0 : i32
    return %c0_i32, %c0_i32_0 : i32, i32
  }
  func.func @transform_7(%arg0: i32) -> (i32, i32) {
    %c0_i32 = arith.constant 0 : i32
    %c0_i32_0 = arith.constant 0 : i32
    %c0_i32_1 = arith.constant 0 : i32
    return %c0_i32, %c0_i32_0 : i32, i32
  }
  func.func @transform_8(%arg0: i32) -> (i32, i32) {
    %c0_i32 = arith.constant 0 : i32
    %c0_i32_0 = arith.constant 0 : i32
    %c0_i32_1 = arith.constant 0 : i32
    return %c0_i32, %c0_i32_0 : i32, i32
  }
  func.func @transform_9(%arg0: i32) -> (i32, i32, i32) {
    %c0_i32 = arith.constant 0 : i32
    %c0_i32_0 = arith.constant 0 : i32
    %c0_i32_1 = arith.constant 0 : i32
    %c0_i32_2 = arith.constant 0 : i32
    return %c0_i32, %c0_i32_0, %c0_i32_1 : i32, i32, i32
  }
  func.func @transform_10(%arg0: i32) -> (i32, i32) {
    %c0_i32 = arith.constant 0 : i32
    %c0_i32_0 = arith.constant 0 : i32
    %c0_i32_1 = arith.constant 0 : i32
    return %c0_i32, %c0_i32_0 : i32, i32
  }
  func.func @transform_11(%arg0: i32) -> (i32, i32) {
    %c0_i32 = arith.constant 0 : i32
    %c0_i32_0 = arith.constant 0 : i32
    %c0_i32_1 = arith.constant 0 : i32
    return %c0_i32, %c0_i32_0 : i32, i32
  }
  func.func @transform_12(%arg0: i32) -> (i32, i32) {
    %c0_i32 = arith.constant 0 : i32
    %c0_i32_0 = arith.constant 0 : i32
    %c0_i32_1 = arith.constant 0 : i32
    return %c0_i32, %c0_i32_0 : i32, i32
  }
  func.func @transform_13(%arg0: i32) -> (i32, i32) {
    %c0_i32 = arith.constant 0 : i32
    %c0_i32_0 = arith.constant 0 : i32
    %c0_i32_1 = arith.constant 0 : i32
    return %c0_i32, %c0_i32_0 : i32, i32
  }
  func.func @transform_14(%arg0: i32) -> (i32, i32) {
    %c0_i32 = arith.constant 0 : i32
    %c0_i32_0 = arith.constant 0 : i32
    %c0_i32_1 = arith.constant 0 : i32
    return %c0_i32, %c0_i32_0 : i32, i32
  }
  func.func @transform_15(%arg0: i32) -> (i32, i32) {
    %c0_i32 = arith.constant 0 : i32
    %c0_i32_0 = arith.constant 0 : i32
    %c0_i32_1 = arith.constant 0 : i32
    return %c0_i32, %c0_i32_0 : i32, i32
  }
  func.func @transform_16(%arg0: i32) -> (i32, i32) {
    %c0_i32 = arith.constant 0 : i32
    %c0_i32_0 = arith.constant 0 : i32
    %c0_i32_1 = arith.constant 0 : i32
    return %c0_i32, %c0_i32_0 : i32, i32
  }
  func.func @transform_17(%arg0: i32) -> (i32, i32) {
    %c0_i32 = arith.constant 0 : i32
    %c0_i32_0 = arith.constant 0 : i32
    %c0_i32_1 = arith.constant 0 : i32
    return %c0_i32, %c0_i32_0 : i32, i32
  }
  func.func @transform_18(%arg0: i32) -> (i32, i32, i32) {
    %c0_i32 = arith.constant 0 : i32
    %c0_i32_0 = arith.constant 0 : i32
    %c0_i32_1 = arith.constant 0 : i32
    %c0_i32_2 = arith.constant 0 : i32
    return %c0_i32, %c0_i32_0, %c0_i32_1 : i32, i32, i32
  }
  func.func @transform_19(%arg0: i32) -> (i32, i32) {
    %c0_i32 = arith.constant 0 : i32
    %c0_i32_0 = arith.constant 0 : i32
    %c0_i32_1 = arith.constant 0 : i32
    return %c0_i32, %c0_i32_0 : i32, i32
  }
  func.func @transform_20(%arg0: i32) -> (i32, i32) {
    %c0_i32 = arith.constant 0 : i32
    %c0_i32_0 = arith.constant 0 : i32
    %c0_i32_1 = arith.constant 0 : i32
    return %c0_i32, %c0_i32_0 : i32, i32
  }
  func.func @transform_21(%arg0: i32) -> (i32, i32) {
    %c0_i32 = arith.constant 0 : i32
    %c0_i32_0 = arith.constant 0 : i32
    %c0_i32_1 = arith.constant 0 : i32
    return %c0_i32, %c0_i32_0 : i32, i32
  }
  func.func @transform_22(%arg0: i32) -> (i32, i32) {
    %c0_i32 = arith.constant 0 : i32
    %c0_i32_0 = arith.constant 0 : i32
    %c0_i32_1 = arith.constant 0 : i32
    return %c0_i32, %c0_i32_0 : i32, i32
  }
  func.func @transform_23(%arg0: i32) -> (i32, i32) {
    %c0_i32 = arith.constant 0 : i32
    %c0_i32_0 = arith.constant 0 : i32
    %c0_i32_1 = arith.constant 0 : i32
    return %c0_i32, %c0_i32_0 : i32, i32
  }
  func.func @transform_24(%arg0: i32) -> (i32, i32, i32, i32) {
    %c0_i32 = arith.constant 0 : i32
    %c0_i32_0 = arith.constant 0 : i32
    %c0_i32_1 = arith.constant 0 : i32
    %c0_i32_2 = arith.constant 0 : i32
    return %arg0, %c0_i32, %c0_i32_0, %c0_i32_1 : i32, i32, i32, i32
  }
}

</mosaic_0001>

<bundles_post_ra>
// kernel: _lambda_.1
= control target key start
LH: loop header
LB: loop body
LE: loop exit
PB: predicated region body
PF: predicated region fallthrough
CT: control target
= control target key end

     0   :  { %s33887_s0 = inlined_call_operand.vmem [shape: f32[2,22,22,3], index: 0, kind: input, shape index: {}]   ;;  %s33888_s1 = inlined_call_operand.vmem [shape: f32[49,3,16], index: 1, kind: input, shape index: {}]   ;;  %s33889_s2 = inlined_call_operand.vmem [shape: f32[1,16], index: 2, kind: input, shape index: {}, may-alias: {2,5,10,16,19}]   ;;  %s33890_s3 = inlined_call_operand.vmem [shape: f32[1,16], index: 3, kind: input, shape index: {}, may-alias: {3,6,11,17,20}]   ;;  %s33891_s4 = inlined_call_operand.vmem [shape: f32[16,80], index: 4, kind: input, shape index: {}]   ;;  %s33892_s5 = inlined_call_operand.vmem [shape: f32[1,16], index: 5, kind: input, shape index: {}, may-alias: {2,5,10,16,19}]   ;;  %s33893_s6 = inlined_call_operand.vmem [shape: f32[1,16], index: 6, kind: input, shape index: {}, may-alias: {3,6,11,17,20}]   ;;  %s33894_s7 = inlined_call_operand.vmem [shape: f32[1,64], index: 7, kind: input, shape index: {}, may-alias: {7,13,22}]   ;;  %s33895_s8 = inlined_call_operand.vmem [shape: f32[1,64], index: 8, kind: input, shape index: {}, may-alias: {8,14,23}]   ;;  %s33896_s9 = inlined_call_operand.vmem [shape: f32[9,16,16], index: 9, kind: input, shape index: {}]   ;;  %s33897_s10 = inlined_call_operand.vmem [shape: f32[1,16], index: 10, kind: input, shape index: {}, may-alias: {2,5,10,16,19}]   ;;  %s33898_s11 = inlined_call_operand.vmem [shape: f32[1,16], index: 11, kind: input, shape index: {}, may-alias: {3,6,11,17,20}]   ;;  %s33899_s12 = inlined_call_operand.vmem [shape: f32[16,64], index: 12, kind: input, shape index: {}]   ;;  %s33900_s13 = inlined_call_operand.vmem [shape: f32[1,64], index: 13, kind: input, shape index: {}, may-alias: {7,13,22}]   ;;  %s33901_s14 = inlined_call_operand.vmem [shape: f32[1,64], index: 14, kind: input, shape index: {}, may-alias: {8,14,23}]   ;;  %s33902_s15 = inlined_call_operand.vmem [shape: f32[64,16], index: 15, kind: input, shape index: {}]   ;;  %s33903_s16 = inlined_call_operand.vmem [shape: f32[1,16], index: 16, kind: input, shape index: {}, may-alias: {2,5,10,16,19}]   ;;  %s33904_s17 = inlined_call_operand.vmem [shape: f32[1,16], index: 17, kind: input, shape index: {}, may-alias: {3,6,11,17,20}]   ;;  %s33905_s18 = inlined_call_operand.vmem [shape: f32[9,16,16], index: 18, kind: input, shape index: {}]   ;;  %s33906_s19 = inlined_call_operand.vmem [shape: f32[1,16], index: 19, kind: input, shape index: {}, may-alias: {2,5,10,16,19}]   ;;  %s33907_s20 = inlined_call_operand.vmem [shape: f32[1,16], index: 20, kind: input, shape index: {}, may-alias: {3,6,11,17,20}]   ;;  %s33908_s21 = inlined_call_operand.vmem [shape: f32[16,64], index: 21, kind: input, shape index: {}]   ;;  %s33909_s22 = inlined_call_operand.vmem [shape: f32[1,64], index: 22, kind: input, shape index: {}, may-alias: {7,13,22}]   ;;  %s33910_s23 = inlined_call_operand.vmem [shape: f32[1,64], index: 23, kind: input, shape index: {}, may-alias: {8,14,23}]   ;;  %s33911_s24 = inlined_call_operand.hbm [shape: f32[2,8,8,64], index: 24, kind: output, shape index: {}]  }
   0x1   :  { %34737 = sst [smem:[#allocation241_spill]] %s33887_s0 }
   0x2   :  { %34738 = sst [smem:[#allocation242_spill]] %s33888_s1 }
   0x3   :  { %34739 = sst [smem:[#allocation243_spill]] %s33889_s2 }
   0x4   :  { %34740 = sst [smem:[#allocation244_spill]] %s33890_s3 }
   0x5   :  { %34741 = sst [smem:[#allocation245_spill]] %s33891_s4 }
   0x6   :  { %34742 = sst [smem:[#allocation246_spill]] %s33892_s5 }
   0x7   :  { %34743 = sst [smem:[#allocation247_spill]] %s33893_s6 }
   0x8   :  { %34744 = sst [smem:[#allocation248_spill]] %s33894_s7 }
   0x9   :  { %34745 = sst [smem:[#allocation249_spill]] %s33895_s8 }
   0xa   :  { %34746 = sst [smem:[#allocation250_spill]] %s33911_s24 }
   0xb   :  { %29 = vsyncpa [#allocation3], 0 }
   0xc   :  { %31 = vsyncpa [#allocation3 + $0x1], 0  ;;  %s27370_s5 = smov 0   ;;  %s27372_s26 = smov 0  }
   0xd   :  { %s27374_s27 = smov 0   ;;  %s27376_s28 = smov 0  }
   0xe LB: > { %34747 = sst [smem:[#allocation5_spill]] %s27225_s5  ;;  %s27391_s6 = sadd.s32 4294967295, %s27237_s28   ;;  %s27237_s28 = sphi %s27376_s28, %s35768_s28   ;;  %s27233_s27 = sphi %s27374_s27, %s35773_s27   ;;  %s27229_s26 = sphi %s27372_s26, %s35772_s26   ;;  %s27225_s5 = sphi %s27370_s5, %s35771_s5  }
   0xf   : > { %34748 = sst [smem:[#allocation6_spill]] %s27233_s27  ;;  %s18672_s2 = sadd.s32 4294967294, %s27237_s28  }
  0x10   : > { %34749 = sst [smem:[#allocation7_spill]] %s27237_s28  ;;  %s27395_s29 = sadd.s32 1, %s27237_s28  }
  0x11   : > { %34750 = sst [smem:[#allocation8_spill]] %s27395_s29  ;;  %s553_s0 = sadd.s32 1, %s27233_s27 }
  0x12   : > { %s550_s7 = ssub.s32 %s27237_s28, %s27395_s29  ;;  %p563_p0 = scmp.ne.s32.totalorder %s27233_s27, %s27229_s26 }
  0x13   : > { %p551_p1 = scmp.eq.s32.totalorder %s550_s7, 0  ;;  %p564_p2 = scmp.eq.s32.totalorder %s27391_s6, 1 }
  0x14   : > { %p569_p3 = scmp.ne.s32.totalorder %s27229_s26, %s27225_s5  ;;  %p570_p4 = scmp.eq.s32.totalorder %s18672_s2, 1 }
  0x15   : > { %s27406_s30 = scalar_select %p551_p1, %s27233_s27, %s553_s0  }
  0x16   : > { %p27408_p5 = por %p564_p2, %p563_p0  ;;  %p27412_p6 = por %p570_p4, %p569_p3 }
  0x17   : > { %34751 = sst [smem:[#allocation9_spill]] %s27406_s30  ;;  %p18675_p7 = scmp.ge.s32.totalorder %s27237_s28, 1 }
  0x18   : > { %s34753_s25 = scalar_select %p27412_p6, 1, 0 }
  0x19   : > { %p665_p8 = scmp.lt.s32.totalorder %s27237_s28, 3 }
  0x1a   : > { %34754 = sst [smem:[#allocation10_spill]] %s34753_s25 }
  0x1b   : > { %p666_p9 = pnand %p18675_p7, %p665_p8 }
  0x1d   : > { %669 = sbr.rel (%p666_p9) target bundleno = 3641 (0xe39), region = 116 }
  0x24   : > { %vm999_vm0 = vcmask 1042432   ;;  %s34755_s1 = sld [smem:[#allocation242_spill]]  ;;  %p731_p10 = scmp.lt.s32.totalorder %s27391_s6, 1  ;;  %vm934_vm1 = vcmask 23552   ;;  %vm851_vm2 = vcmask 1046528   ;;  %vm1520_vm3 = vcmask 1045504  }
  0x25   : > { %s34756_s0 = sld [smem:[#allocation241_spill]]  ;;  %vm1927_vm4 = vcmask 1044480   ;;  %vm2334_vm5 = vcmask 1043456   ;;  %vm3147_vm6 = vcmask 1041408   ;;  %s35758_s2 = sld [smem:[#allocation248_spill]]  ;;  %vm15312_vm7 = vcmask 1040384  }
  0x26   : > { %s732_s27 = scalar_select %p731_p10, %s27391_s6, 1  ;;  %vm15371_vm8 = vcmask 130048   ;;  %vm17026_vm9 = vcmask 523264  }
  0x27   : > { %s27239_s30 = smov 16   ;;  %s35759_s24 = sld [smem:[#allocation249_spill]] }
  0x28   : > { %s26996_s29 = smul.u32 528, %s732_s27  ;;  %s35756_s27 = sld [smem:[#allocation245_spill]] }
  0x29   : > { %s35761_s8 = sld [smem:[#allocation244_spill]]  ;;  %s35762_s25 = sld [smem:[#allocation246_spill]] }
  0x2a   : > { %v19391_v0 = vld [vmem:[%s34755_s1 + $0x54] sm:$0x7]  ;;  %v19425_v1 = vld [vmem:[%s34755_s1 + $0x58] sm:$0x7]  ;;  %v18678_v2 = vld [vmem:[%s34755_s1 + $0x4] sm:$0x7] }
  0x2b   : > { %23466 = vmatprep.subr.msk.mxu0 %vm999_vm0, %v19391_v0  ;;  %22416 = vmatprep.subr.msk.mxu1 %vm999_vm0, %v18678_v2  ;;  %v802_v3 = vld [vmem:[%s34755_s1] sm:$0x7]  ;;  %s27441_s7 = scalar_lea.vmem %s34756_s0, %s26996_s29  ;;  %v27446_v4 = vld [vmem:[%s34755_s1 + $0x5c] sm:$0x7]  ;;  %v27620_v60 = vld [vmem:[%s34755_s1 + $0x8] sm:$0x7] }
  0x2c   : > { %23467 = vmatpush3.msk.msra.mxu0 %vm999_vm0, %v19391_v0  ;;  %22417 = vmatpush3.msk.msra.mxu1 %vm999_vm0, %v18678_v2  ;;  %v27449_v5 = vld [vmem:[%s27441_s7 + $0x48] sm:$0xff]  ;;  %v27452_v6 = vld [vmem:[%s27441_s7 + $0x50] sm:$0xff]  ;;  %v27455_v7 = vld [vmem:[%s27441_s7] sm:$0xff]  ;;  %s35763_s28 = sld [smem:[#allocation247_spill]]  ;;  %s20572_s0 = sshll.u32 %s27391_s6, 10 }
  0x2d   : > { %23516 = vmatprep.subr.msk.mxu0 %vm999_vm0, %v19425_v1  ;;  %22466 = vmatprep.subr.msk.mxu1 %vm999_vm0, %v802_v3  ;;  %v27460_v8 = vld [vmem:[%s27441_s7 + $0x8] sm:$0xff]  ;;  %v852_v9 = vrot.slane %v27455_v7, 1  ;;  %v27464_v10 = vld [vmem:[%s27441_s7 + $0x10] sm:$0x3f]  ;;  %v27467_v11 = vld [vmem:[%s27441_s7 + $0x60] sm:$0xff]  ;;  %v867_v35 = vrot.slane %v27449_v5, 1 }
  0x2e   : > { %23468 = vmatprep.mubr.msk.f32.mxu0 %vm934_vm1, %v27449_v5  ;;  %34757 = vst [vmem:[#allocation11_spill] sm:$0xff] %v27464_v10  ;;  %v853_v12 = vrot.slane %v27460_v8, 1  ;;  %v855_v13 = vrot.slane %v27464_v10, 1  ;;  %v27474_v14 = vld [vmem:[%s27441_s7 + $0x18] sm:$0xff]  ;;  %v27477_v15 = vld [vmem:[%s27441_s7 + $0x20] sm:$0xff]  ;;  %v27483_v16 = vld [vmem:[%s27441_s7 + $0x68] sm:$0xff]  ;;  %s35757_s29 = smov %s35756_s27 }
  0x2f   : > { %23469 = vmatmul.mubr.msk.f32.vlgmr.msra.gmra.mrb[0].mxu0 %vm934_vm1, %v27452_v6  ;;  %v857_v17 = vrot.slane %v27474_v14, 1  ;;  %v858_v18 = vrot.slane %v27477_v15, 1  ;;  %v27488_v19 = vld [vmem:[%s27441_s7 + $0x28] sm:$0x3f]  ;;  %v27491_v20 = vld [vmem:[%s27441_s7 + $0x78] sm:$0xff]  ;;  %v27497_v24 = vld [vmem:[%s27441_s7 + $0x30] sm:$0xff] }
  0x30   : > { %23517 = vmatpush3.msk.msra.mxu0 %vm999_vm0, %v19425_v1  ;;  %23471 = vmatprep.mubr.msk.f32.mxu0 %vm934_vm1, %v27467_v11  ;;  %34758 = vst [vmem:[#allocation12_spill] sm:$0xff] %v27488_v19  ;;  %v854_v21 = vsel %vm851_vm2, %v852_v9, %v853_v12  ;;  %v856_v22 = vsel %vm851_vm2, %v853_v12, %v855_v13  ;;  %v860_v23 = vrot.slane %v27488_v19, 1  ;;  %v27500_v25 = vld [vmem:[%s27441_s7 + $0x38] sm:$0xff]  ;;  %v27503_v26 = vld [vmem:[%s27441_s7 + $0x40] sm:$0x3f]  ;;  %v862_v28 = vrot.slane %v27497_v24, 1 }
  0x31   : > { %34759 = vst [vmem:[#allocation13_spill] sm:$0xff] %v27503_v26  ;;  %23566 = vmatprep.subr.msk.mxu0 %vm999_vm0, %v27446_v4  ;;  %22418 = vmatprep.mubr.msk.f32.mxu1 %vm934_vm1, %v854_v21  ;;  %v27509_v27 = vsel %vm851_vm2, %v857_v17, %v858_v18  ;;  %v863_v29 = vrot.slane %v27500_v25, 1  ;;  %v27524_v31 = vld [vmem:[%s27441_s7 + $0x80] sm:$0xff]  ;;  %v865_v32 = vrot.slane %v27503_v26, 1  ;;  %v27531_v34 = vld [vmem:[%s27441_s7 + $0x90] sm:$0xff]  ;;  %v868_v36 = vrot.slane %v27452_v6, 1 }
  0x32   : > { %34760 = vst [vmem:[#allocation14_spill] sm:$0xff] %v27509_v27  ;;  %22419 = vmatmul.mubr.msk.f32.vlgmr.msra.gmra.mrb[0].mxu1 %vm934_vm1, %v856_v22  ;;  %v27519_v30 = vsel %vm851_vm2, %v858_v18, %v860_v23  ;;  %v27536_v37 = vld [vmem:[%s27441_s7 + $0x58] sm:$0x3f]  ;;  %v872_v42 = vrot.slane %v27467_v11, 1  ;;  %v873_v43 = vrot.slane %v27483_v16, 1  ;;  %v877_v48 = vrot.slane %v27491_v20, 1 }
  0x33   : > { %23472 = vmatmul.mubr.msk.f32.gmra.mrb[2].mxu0 %vm934_vm1, %v27483_v16  ;;  %22421 = vmatprep.mubr.msk.f32.mxu1 %vm934_vm1, %v27509_v27  ;;  %34761 = vst [vmem:[#allocation15_spill] sm:$0xff] %v27519_v30  ;;  %v27528_v33 = vsel %vm851_vm2, %v862_v28, %v863_v29  ;;  %v27546_v38 = vsel %vm851_vm2, %v863_v29, %v865_v32  ;;  %v27551_v39 = vld [vmem:[%s27441_s7 + $0x98] sm:$0xff]  ;;  %v870_v40 = vrot.slane %v27536_v37, 1  ;;  %v27560_v44 = vld [vmem:[%s27441_s7 + $0x70] sm:$0x3f]  ;;  %v878_v49 = vrot.slane %v27524_v31, 1 }
  0x34   : > { %23474 = vmatprep.mubr.msk.f32.mxu0 %vm934_vm1, %v27491_v20  ;;  %34762 = vst [vmem:[#allocation16_spill] sm:$0xff] %v27528_v33  ;;  %22467 = vmatpush3.msk.msra.mxu1 %vm999_vm0, %v802_v3  ;;  %34763 = vst [vmem:[#allocation17_spill] sm:$0xff] %v27546_v38  ;;  %v27555_v41 = vsel %vm851_vm2, %v867_v35, %v868_v36  ;;  %v875_v46 = vrot.slane %v27560_v44, 1  ;;  %v27575_v47 = vsel %vm851_vm2, %v872_v42, %v873_v43  ;;  %v27580_v50 = vld [vmem:[%s27441_s7 + $0x88] sm:$0x3f]  ;;  %v27615_v59 = vld [vmem:[%s27441_s7 + $0xb0] sm:$0xff] }
  0x35   : > { %34764 = vst [vmem:[#allocation18_spill] sm:$0xff] %v27555_v41  ;;  %34765 = vst [vmem:[#allocation19_spill] sm:$0xff] %v27560_v44  ;;  %v27569_v45 = vsel %vm851_vm2, %v868_v36, %v870_v40  ;;  %v27585_v51 = vld [vmem:[%s34755_s1 + $0x60] sm:$0x7]  ;;  %v880_v53 = vrot.slane %v27580_v50, 1  ;;  %v27602_v54 = vsel %vm851_vm2, %v877_v48, %v878_v49  ;;  %v882_v55 = vrot.slane %v27531_v34, 1  ;;  %22516 = vmatprep.subr.msk.mxu1 %vm999_vm0, %v27620_v60 }
  0x36   : > { %22422 = vmatmul.mubr.msk.f32.gmra.mrb[2].mxu1 %vm934_vm1, %v27519_v30  ;;  %34766 = vst [vmem:[#allocation20_spill] sm:$0xff] %v27569_v45  ;;  %34767 = vst [vmem:[#allocation21_spill] sm:$0xff] %v27575_v47  ;;  %v27596_v52 = vsel %vm851_vm2, %v873_v43, %v875_v46  ;;  %v883_v56 = vrot.slane %v27551_v39, 1  ;;  %v27607_v57 = vld [vmem:[%s27441_s7 + $0xa0] sm:$0x3f]  ;;  %v27612_v58 = vld [vmem:[%s27441_s7 + $0xa8] sm:$0xff] }
  0x37   : > { %23475 = vmatmul.mubr.msk.f32.gmra.mrb[4].mxu0 %vm934_vm1, %v27524_v31  ;;  %22424 = vmatprep.mubr.msk.f32.mxu1 %vm934_vm1, %v27528_v33  ;;  %34768 = vst [vmem:[#allocation22_spill] sm:$0xff] %v27580_v50  ;;  %34769 = vst [vmem:[#allocation23_spill] sm:$0xff] %v27596_v52  ;;  %v27629_v61 = vsel %vm851_vm2, %v878_v49, %v880_v53  ;;  %v885_v62 = vrot.slane %v27607_v57, 1  ;;  %v887_v0 = vrot.slane %v27612_v58, 1  ;;  %v888_v1 = vrot.slane %v27615_v59, 1  ;;  %v27645_v3 = vld [vmem:[%s27441_s7 + $0xc0] sm:$0xff] }
  0x38   : > { %23477 = vmatprep.mubr.msk.f32.mxu0 %vm934_vm1, %v27531_v34  ;;  %34770 = vst [vmem:[#allocation24_spill] sm:$0xff] %v27602_v54  ;;  %34771 = vst [vmem:[#allocation25_spill] sm:$0xff] %v27607_v57  ;;  %v27635_v63 = vsel %vm851_vm2, %v882_v55, %v883_v56  ;;  %v27640_v2 = vld [vmem:[%s27441_s7 + $0xb8] sm:$0x3f]  ;;  %v892_v17 = vrot.slane %v27645_v3, 1  ;;  %v27674_v23 = vld [vmem:[%s27441_s7 + $0xe0] sm:$0xff] }
  0x39   : > { %34772 = vst [vmem:[#allocation26_spill] sm:$0xff] %v27629_v61  ;;  %34773 = vst [vmem:[#allocation27_spill] sm:$0xff] %v27635_v63  ;;  %v27657_v9 = vsel %vm851_vm2, %v883_v56, %v885_v62  ;;  %v890_v12 = vrot.slane %v27640_v2, 1  ;;  %v27663_v13 = vsel %vm851_vm2, %v887_v0, %v888_v1  ;;  %v27668_v21 = vld [vmem:[%s27441_s7 + $0xd0] sm:$0x3f]  ;;  %v27671_v22 = vld [vmem:[%s27441_s7 + $0xd8] sm:$0xff] }
  0x3a   : > { %22425 = vmatmul.mubr.msk.f32.gmra.mrb[4].mxu1 %vm934_vm1, %v27546_v38  ;;  %34774 = vst [vmem:[#allocation28_spill] sm:$0xff] %v27640_v2  ;;  %34775 = vst [vmem:[#allocation29_spill] sm:$0xff] %v27657_v9  ;;  %v895_v29 = vrot.slane %v27668_v21, 1  ;;  %v897_v35 = vrot.slane %v27671_v22, 1  ;;  %v898_v36 = vrot.slane %v27674_v23, 1  ;;  %v27697_v42 = vld [vmem:[%s27441_s7 + $0xf0] sm:$0xff] }
  0x3b   : > { %23478 = vmatmul.mubr.msk.f32.gmra.mrb[6].mxu0 %vm934_vm1, %v27551_v39  ;;  %22427 = vmatprep.mubr.msk.f32.mxu1 %vm934_vm1, %v27555_v41  ;;  %34776 = vst [vmem:[#allocation30_spill] sm:$0xff] %v27663_v13  ;;  %34777 = vst [vmem:[#allocation31_spill] sm:$0xff] %v27668_v21  ;;  %v27683_v28 = vsel %vm851_vm2, %v888_v1, %v890_v12  ;;  %v27694_v40 = vld [vmem:[%s27441_s7 + $0xe8] sm:$0x3f]  ;;  %v27700_v43 = vld [vmem:[%s27441_s7 + $0xf8] sm:$0xff]  ;;  %v902_v53 = vrot.slane %v27697_v42, 1 }
  0x3c   : > { %23518 = vmatprep.mubr.msk.f32.mxu0 %vm934_vm1, %v27555_v41  ;;  %34778 = vst [vmem:[#allocation32_spill] sm:$0xff] %v27683_v28  ;;  %34780 = vst [vmem:[#allocation34_spill] sm:$0xff] %v27694_v40  ;;  %v900_v48 = vrot.slane %v27694_v40, 1  ;;  %v27715_v49 = vsel %vm851_vm2, %v897_v35, %v898_v36  ;;  %v903_v55 = vrot.slane %v27700_v43, 1  ;;  %v27720_v56 = vld [vmem:[%s27441_s7 + $0x100] sm:$0x3f] }
  0x3d   : > { %34782 = vst [vmem:[#allocation36_spill] sm:$0xff] %v27715_v49  ;;  %34783 = vst [vmem:[#allocation37_spill] sm:$0xff] %v27720_v56  ;;  %v27723_v62 = vld [vmem:[%s27441_s7 + $0x108] sm:$0xff]  ;;  %v27726_v0 = vld [vmem:[%s27441_s7 + $0x110] sm:$0xff]  ;;  %v905_v12 = vrot.slane %v27720_v56, 1 }
  0x3e   : > { %22428 = vmatmul.mubr.msk.f32.gmra.mrb[6].mxu1 %vm934_vm1, %v27569_v45  ;;  %v27735_v1 = vsel %vm851_vm2, %v898_v36, %v900_v48  ;;  %v27746_v35 = vld [vmem:[%s27441_s7 + $0x118] sm:$0x3f]  ;;  %v27752_v36 = vld [vmem:[%s27441_s7 + $0x128] sm:$0xff]  ;;  %v27772_v30 = vld [vmem:[%s27441_s7 + $0x130] sm:$0x3f] }
  0x3f   : > { %23519 = vmatmul.mubr.msk.f32.vlgmr.msra.gmra.mrb[0].mxu0 %vm934_vm1, %v27569_v45  ;;  %22430 = vmatprep.mubr.msk.f32.mxu1 %vm934_vm1, %v27575_v47  ;;  %34784 = vst [vmem:[#allocation38_spill] sm:$0xff] %v27735_v1  ;;  %34786 = vst [vmem:[#allocation40_spill] sm:$0xff] %v27746_v35  ;;  %v27749_v45 = vld [vmem:[%s27441_s7 + $0x120] sm:$0xff]  ;;  %v27761_v48 = vsel %vm851_vm2, %v903_v55, %v905_v12  ;;  %v913_v33 = vrot.slane %v27752_v36, 1  ;;  %v27775_v27 = vld [vmem:[%s27441_s7 + $0x138] sm:$0xff] }
  0x40   : > { %23567 = vmatpush3.msk.msra.mxu0 %vm999_vm0, %v27446_v4  ;;  %23521 = vmatprep.mubr.msk.f32.mxu0 %vm934_vm1, %v27575_v47  ;;  %v27648_v4 = vld [vmem:[%s27441_s7 + $0xc8] sm:$0xff]  ;;  %34787 = vst [vmem:[#allocation41_spill] sm:$0xff] %v27761_v48  ;;  %v912_v38 = vrot.slane %v27749_v45, 1  ;;  %34789 = vst [vmem:[#allocation43_spill] sm:$0xff] %v27772_v30  ;;  %v27879_v47 = vld [vmem:[%s27441_s7 + $0x198] sm:$0xff] }
  0x41   : > { %23616 = vmatprep.subr.msk.mxu0 %vm999_vm0, %v27585_v51  ;;  %v893_v18 = vrot.slane %v27648_v4, 1  ;;  %34804 = vst [vmem:[#allocation58_spill] sm:$0xff] %v27879_v47  ;;  %v5718_v26 = vrot.slane %v27879_v47, 1  ;;  %v27905_v10 = vld [vmem:[%s27441_s7 + $0x1b0] sm:$0xff]  ;;  %v27928_v47 = vld [vmem:[%s27441_s7 + $0x1c0] sm:$0x3f] }
  0x42   : > { %22431 = vmatmul.mubr.msk.f32.gmra.mrb[8].mxu1 %vm934_vm1, %v27596_v52  ;;  %34808 = vst [vmem:[#allocation62_spill] sm:$0xff] %v27905_v10 }
  0x43   : > { %23522 = vmatmul.mubr.msk.f32.gmra.mrb[2].mxu0 %vm934_vm1, %v27596_v52  ;;  %22433 = vmatprep.mubr.msk.f32.mxu1 %vm934_vm1, %v27602_v54  ;;  %v27689_v32 = vsel %vm851_vm2, %v892_v17, %v893_v18  ;;  %v27709_v46 = vsel %vm851_vm2, %v893_v18, %v895_v29  ;;  %v27741_v17 = vsel %vm851_vm2, %v902_v53, %v903_v55  ;;  %v907_v18 = vrot.slane %v27723_v62, 1  ;;  %v27778_v55 = vld [vmem:[%s27441_s7 + $0x140] sm:$0xff]  ;;  %v27876_v52 = vld [vmem:[%s27441_s7 + $0x190] sm:$0x3f] }
  0x44   : > { %23524 = vmatprep.mubr.msk.f32.mxu0 %vm934_vm1, %v27602_v54  ;;  %34779 = vst [vmem:[#allocation33_spill] sm:$0xff] %v27689_v32  ;;  %34781 = vst [vmem:[#allocation35_spill] sm:$0xff] %v27709_v46  ;;  %v908_v29 = vrot.slane %v27726_v0, 1  ;;  %v910_v53 = vrot.slane %v27746_v35, 1 }
  0x45   : > { %34785 = vst [vmem:[#allocation39_spill] sm:$0xff] %v27741_v17  ;;  %34803 = vst [vmem:[#allocation57_spill] sm:$0xff] %v27876_v52 }
  0x46   : > { %22434 = vmatmul.mubr.msk.f32.gmra.mrb[10].mxu1 %vm934_vm1, %v27629_v61  ;;  %v27767_v41 = vsel %vm851_vm2, %v907_v18, %v908_v29  ;;  %v27787_v12 = vsel %vm851_vm2, %v908_v29, %v910_v53  ;;  %v915_v18 = vrot.slane %v27772_v30, 1  ;;  %v27804_v29 = vld [vmem:[%s27441_s7 + $0x158] sm:$0xff] }
  0x47   : > { %23525 = vmatmul.mubr.msk.f32.gmra.mrb[4].mxu0 %vm934_vm1, %v27629_v61  ;;  %22436 = vmatprep.mubr.msk.f32.mxu1 %vm934_vm1, %v27635_v63  ;;  %34788 = vst [vmem:[#allocation42_spill] sm:$0xff] %v27767_v41  ;;  %34790 = vst [vmem:[#allocation44_spill] sm:$0xff] %v27787_v12  ;;  %v27853_v61 = vld [vmem:[%s27441_s7 + $0x180] sm:$0xff] }
  0x48   : > { %23527 = vmatprep.mubr.msk.f32.mxu0 %vm934_vm1, %v27635_v63  ;;  %v27850_v63 = vld [vmem:[%s27441_s7 + $0x178] sm:$0x3f]  ;;  %34799 = vst [vmem:[#allocation53_spill] sm:$0xff] %v27853_v61  ;;  %v3823_v54 = vrot.slane %v27853_v61, 1 }
  0x49   : > { %34798 = vst [vmem:[#allocation52_spill] sm:$0xff] %v27850_v63 }
  0x4a   : > { %22437 = vmatmul.mubr.msk.f32.gmra.mrb[12].mxu1 %vm934_vm1, %v27657_v9 }
  0x4b   : > { %23528 = vmatmul.mubr.msk.f32.gmra.mrb[6].mxu0 %vm934_vm1, %v27657_v9  ;;  %22439 = vmatprep.mubr.msk.f32.mxu1 %vm934_vm1, %v27663_v13 }
  0x4c   : > { %23530 = vmatprep.mubr.msk.f32.mxu0 %vm934_vm1, %v27663_v13  ;;  %v27827_v13 = vld [vmem:[%s27441_s7 + $0x168] sm:$0xff] }
  0x4d   : > { %v927_v9 = vrot.slane %v27827_v13, 1 }
  0x4e   : > { %22440 = vmatmul.mubr.msk.f32.gmra.mrb[14].mxu1 %vm934_vm1, %v27683_v28 }
  0x4f   : > { %23531 = vmatmul.mubr.msk.f32.gmra.mrb[8].mxu0 %vm934_vm1, %v27683_v28  ;;  %22442 = vmatprep.mubr.msk.f32.mxu1 %vm934_vm1, %v27689_v32  ;;  %v27824_v28 = vld [vmem:[%s27441_s7 + $0x160] sm:$0x3f] }
  0x50   : > { %23533 = vmatprep.mubr.msk.f32.mxu0 %vm934_vm1, %v27689_v32  ;;  %34795 = vst [vmem:[#allocation49_spill] sm:$0xff] %v27824_v28 }
  0x52   : > { %22443 = vmatmul.mubr.msk.f32.gmra.mrb[16].mxu1 %vm934_vm1, %v27709_v46 }
  0x53   : > { %23534 = vmatmul.mubr.msk.f32.gmra.mrb[10].mxu0 %vm934_vm1, %v27709_v46  ;;  %22445 = vmatprep.mubr.msk.f32.mxu1 %vm934_vm1, %v27715_v49  ;;  %v27801_v46 = vld [vmem:[%s27441_s7 + $0x150] sm:$0xff] }
  0x54   : > { %23536 = vmatprep.mubr.msk.f32.mxu0 %vm934_vm1, %v27715_v49  ;;  %v27798_v49 = vld [vmem:[%s27441_s7 + $0x148] sm:$0x3f]  ;;  %v922_v32 = vrot.slane %v27801_v46, 1 }
  0x55   : > { %34792 = vst [vmem:[#allocation46_spill] sm:$0xff] %v27798_v49  ;;  %v920_v53 = vrot.slane %v27798_v49, 1 }
  0x56   : > { %22446 = vmatmul.mubr.msk.f32.gmra.mrb[18].mxu1 %vm934_vm1, %v27735_v1 }
  0x57   : > { %23537 = vmatmul.mubr.msk.f32.gmra.mrb[12].mxu0 %vm934_vm1, %v27735_v1  ;;  %22448 = vmatprep.mubr.msk.f32.mxu1 %vm934_vm1, %v27741_v17  ;;  %v917_v1 = vrot.slane %v27775_v27, 1 }
  0x58   : > { %23539 = vmatprep.mubr.msk.f32.mxu0 %vm934_vm1, %v27741_v17  ;;  %v27793_v17 = vsel %vm851_vm2, %v912_v38, %v913_v33  ;;  %v27813_v38 = vsel %vm851_vm2, %v913_v33, %v915_v18  ;;  %v27830_v33 = vld [vmem:[%s27441_s7 + $0x170] sm:$0xff]  ;;  %v925_v18 = vrot.slane %v27824_v28, 1 }
  0x59   : > { %34791 = vst [vmem:[#allocation45_spill] sm:$0xff] %v27793_v17  ;;  %34793 = vst [vmem:[#allocation47_spill] sm:$0xff] %v27813_v38 }
  0x5a   : > { %22449 = vmatmul.mubr.msk.f32.gmra.mrb[20].mxu1 %vm934_vm1, %v27761_v48 }
  0x5b   : > { %23540 = vmatmul.mubr.msk.f32.gmra.mrb[14].mxu0 %vm934_vm1, %v27761_v48  ;;  %22451 = vmatprep.mubr.msk.f32.mxu1 %vm934_vm1, %v27767_v41  ;;  %v918_v48 = vrot.slane %v27778_v55, 1 }
  0x5c   : > { %23542 = vmatprep.mubr.msk.f32.mxu0 %vm934_vm1, %v27767_v41 }
  0x5d   : > { %v27819_v41 = vsel %vm851_vm2, %v917_v1, %v918_v48  ;;  %v27839_v1 = vsel %vm851_vm2, %v918_v48, %v920_v53  ;;  %v27856_v48 = vld [vmem:[%s27441_s7 + $0x188] sm:$0xff]  ;;  %v930_v53 = vrot.slane %v27850_v63, 1 }
  0x5e   : > { %22452 = vmatmul.mubr.msk.f32.gmra.mrb[22].mxu1 %vm934_vm1, %v27787_v12  ;;  %34794 = vst [vmem:[#allocation48_spill] sm:$0xff] %v27819_v41  ;;  %34796 = vst [vmem:[#allocation50_spill] sm:$0xff] %v27839_v1 }
  0x5f   : > { %23543 = vmatmul.mubr.msk.f32.gmra.mrb[16].mxu0 %vm934_vm1, %v27787_v12  ;;  %22454 = vmatprep.mubr.msk.f32.mxu1 %vm934_vm1, %v27793_v17  ;;  %v923_v12 = vrot.slane %v27804_v29, 1  ;;  %34800 = vst [vmem:[#allocation54_spill] sm:$0xff] %v27856_v48 }
  0x60   : > { %23545 = vmatprep.mubr.msk.f32.mxu0 %vm934_vm1, %v27793_v17 }
  0x61   : > { %v27845_v17 = vsel %vm851_vm2, %v922_v32, %v923_v12  ;;  %v27865_v32 = vsel %vm851_vm2, %v923_v12, %v925_v18  ;;  %v27882_v12 = vld [vmem:[%s27441_s7 + $0x1a0] sm:$0xff]  ;;  %v3826_v18 = vrot.slane %v27876_v52, 1 }
  0x62   : > { %22455 = vmatmul.mubr.msk.f32.gmra.mrb[24].mxu1 %vm934_vm1, %v27813_v38  ;;  %34797 = vst [vmem:[#allocation51_spill] sm:$0xff] %v27845_v17  ;;  %34801 = vst [vmem:[#allocation55_spill] sm:$0xff] %v27865_v32  ;;  %v5719_v19 = vrot.slane %v27882_v12, 1 }
  0x63   : > { %23546 = vmatmul.mubr.msk.f32.gmra.mrb[18].mxu0 %vm934_vm1, %v27813_v38  ;;  %22457 = vmatprep.mubr.msk.f32.mxu1 %vm934_vm1, %v27819_v41  ;;  %v928_v38 = vrot.slane %v27830_v33, 1  ;;  %34805 = vst [vmem:[#allocation59_spill] sm:$0xff] %v27882_v12 }
  0x64   : > { %23548 = vmatprep.mubr.msk.f32.mxu0 %vm934_vm1, %v27819_v41 }
  0x65   : > { %v27871_v41 = vsel %vm851_vm2, %v927_v9, %v928_v38  ;;  %v27891_v9 = vsel %vm851_vm2, %v928_v38, %v930_v53  ;;  %v27923_v53 = vsel %vm851_vm2, %v5718_v26, %v5719_v19 }
  0x66   : > { %22458 = vmatmul.mubr.msk.f32.gmra.mrb[26].mxu1 %vm934_vm1, %v27839_v1  ;;  %34802 = vst [vmem:[#allocation56_spill] sm:$0xff] %v27871_v41  ;;  %34806 = vst [vmem:[#allocation60_spill] sm:$0xff] %v27891_v9 }
  0x67   : > { %23549 = vmatmul.mubr.msk.f32.gmra.mrb[20].mxu0 %vm934_vm1, %v27839_v1  ;;  %22460 = vmatprep.mubr.msk.f32.mxu1 %vm934_vm1, %v27845_v17  ;;  %v3824_v1 = vrot.slane %v27856_v48, 1  ;;  %v27908_v48 = vld [vmem:[%s27441_s7 + $0x1b8] sm:$0xff]  ;;  %34811 = vst [vmem:[#allocation65_spill] sm:$0xff] %v27923_v53 }
  0x68   : > { %23551 = vmatprep.mubr.msk.f32.mxu0 %vm934_vm1, %v27845_v17  ;;  %34809 = vst [vmem:[#allocation63_spill] sm:$0xff] %v27908_v48  ;;  %v7614_v12 = vrot.slane %v27908_v48, 1 }
  0x69   : > { %v27897_v17 = vsel %vm851_vm2, %v3823_v54, %v3824_v1  ;;  %v27919_v54 = vsel %vm851_vm2, %v3824_v1, %v3826_v18  ;;  %v27937_v1 = vld [vmem:[%s34755_s1 + $0xc] sm:$0x7]  ;;  %v7616_v18 = vrot.slane %v27928_v47, 1 }
  0x6a   : > { %22461 = vmatmul.mubr.msk.f32.gmra.mrb[28].mxu1 %vm934_vm1, %v27865_v32  ;;  %34807 = vst [vmem:[#allocation61_spill] sm:$0xff] %v27897_v17  ;;  %34810 = vst [vmem:[#allocation64_spill] sm:$0xff] %v27919_v54 }
  0x6b   : > { %23552 = vmatmul.mubr.msk.f32.gmra.mrb[22].mxu0 %vm934_vm1, %v27865_v32  ;;  %22463 = vmatprep.mubr.msk.f32.mxu1 %vm934_vm1, %v27871_v41  ;;  %v27902_v32 = vld [vmem:[%s27441_s7 + $0x1a8] sm:$0x3f] }
  0x6c   : > { %23554 = vmatprep.mubr.msk.f32.mxu0 %vm934_vm1, %v27871_v41  ;;  %v5721_v38 = vrot.slane %v27902_v32, 1  ;;  %v7613_v41 = vrot.slane %v27905_v10, 1 }
  0x6e   : > { %22464 = vmatmul.mubr.msk.f32.gmra.mrb[30].mxu1 %vm934_vm1, %v27891_v9  ;;  %v27944_v26 = vsel %vm851_vm2, %v5719_v19, %v5721_v38  ;;  %v27965_v19 = vsel %vm851_vm2, %v7614_v12, %v7616_v18  ;;  %v1541_v38 = vrot.slane %v27467_v11, 2  ;;  %v1546_v18 = vrot.slane %v27491_v20, 2 }
  0x6f   : > { %23555 = vmatmul.mubr.msk.f32.gmra.mrb[24].mxu0 %vm934_vm1, %v27891_v9  ;;  %22468 = vmatprep.mubr.msk.f32.mxu1 %vm934_vm1, %v27455_v7  ;;  %34812 = vst [vmem:[#allocation66_spill] sm:$0xff] %v27944_v26  ;;  %v1537_v9 = vrot.slane %v27452_v6, 2  ;;  %34814 = vst [vmem:[#allocation68_spill] sm:$0xff] %v27965_v19 }
  0x70   : > { %23557 = vmatprep.mubr.msk.f32.mxu0 %vm934_vm1, %v27897_v17  ;;  %v27948_v17 = vsel %vm851_vm2, %v7613_v41, %v7614_v12  ;;  %v1539_v41 = vrot.slane %v27536_v37, 2 }
  0x71   : > { %34813 = vst [vmem:[#allocation67_spill] sm:$0xff] %v27948_v17 }
  0x72   : > { %22469 = vmatmul.mubr.msk.f32.vlgmr.msra.gmra.mrb[0].mxu1 %vm934_vm1, %v27460_v8  ;;  %v27982_v12 = vsel %vm1520_vm3, %v1537_v9, %v1539_v41  ;;  %v1549_v41 = vrot.slane %v27580_v50, 2  ;;  %v1557_v50 = vrot.slane %v27615_v59, 2 }
  0x73   : > { %23558 = vmatmul.mubr.msk.f32.gmra.mrb[26].mxu0 %vm934_vm1, %v27919_v54  ;;  %22471 = vmatprep.mubr.msk.f32.mxu1 %vm934_vm1, %v27474_v14  ;;  %v1536_v54 = vrot.slane %v27449_v5, 2  ;;  %34816 = vst [vmem:[#allocation70_spill] sm:$0xff] %v27982_v12 }
  0x74   : > { %23560 = vmatprep.mubr.msk.f32.mxu0 %vm934_vm1, %v27923_v53  ;;  %22517 = vmatpush3.msk.msra.mxu1 %vm999_vm0, %v27620_v60  ;;  %v1542_v53 = vrot.slane %v27483_v16, 2 }
  0x75   : > { %22566 = vmatprep.subr.msk.mxu1 %vm999_vm0, %v27937_v1  ;;  %v27969_v60 = vsel %vm1520_vm3, %v1536_v54, %v1537_v9  ;;  %v1544_v54 = vrot.slane %v27560_v44, 2  ;;  %v1551_v44 = vrot.slane %v27531_v34, 2 }
  0x76   : > { %22472 = vmatmul.mubr.msk.f32.gmra.mrb[2].mxu1 %vm934_vm1, %v27477_v15  ;;  %34815 = vst [vmem:[#allocation69_spill] sm:$0xff] %v27969_v60 }
  0x77   : > { %23561 = vmatmul.mubr.msk.f32.gmra.mrb[28].mxu0 %vm934_vm1, %v27944_v26  ;;  %22474 = vmatprep.mubr.msk.f32.mxu1 %vm934_vm1, %v27497_v24  ;;  %v27988_v26 = vsel %vm1520_vm3, %v1541_v38, %v1542_v53  ;;  %v28004_v9 = vsel %vm1520_vm3, %v1542_v53, %v1544_v54  ;;  %v1554_v53 = vrot.slane %v27607_v57, 2  ;;  %v1561_v57 = vrot.slane %v27645_v3, 2 }
  0x78   : > { %23563 = vmatprep.mubr.msk.f32.mxu0 %vm934_vm1, %v27948_v17  ;;  %v1547_v17 = vrot.slane %v27524_v31, 2  ;;  %34817 = vst [vmem:[#allocation71_spill] sm:$0xff] %v27988_v26  ;;  %34818 = vst [vmem:[#allocation72_spill] sm:$0xff] %v28004_v9 }
  0x7a   : > { %22475 = vmatmul.mubr.msk.f32.gmra.mrb[4].mxu1 %vm934_vm1, %v27500_v25  ;;  %v28010_v38 = vsel %vm1520_vm3, %v1546_v18, %v1547_v17  ;;  %v1556_v18 = vrot.slane %v27612_v58, 2 }
  0x7b   : > { %23564 = vmatmul.mubr.msk.f32.gmra.mrb[30].mxu0 %vm934_vm1, %v27965_v19  ;;  %22477 = vmatprep.mubr.msk.f32.mxu1 %vm934_vm1, %v27449_v5  ;;  %v27993_v19 = vld [vmem:[%s34755_s1 + $0x64] sm:$0x7]  ;;  %34819 = vst [vmem:[#allocation73_spill] sm:$0xff] %v28010_v38 }
  0x7c   : > { %23568 = vmatprep.mubr.msk.f32.mxu0 %vm934_vm1, %v27969_v60 }
  0x7e   : > { %22478 = vmatmul.mubr.msk.f32.gmra.mrb[6].mxu1 %vm934_vm1, %v27452_v6 }
  0x7f   : > { %23569 = vmatmul.mubr.msk.f32.vlgmr.msra.gmra.mrb[0].mxu0 %vm934_vm1, %v27982_v12  ;;  %22480 = vmatprep.mubr.msk.f32.mxu1 %vm934_vm1, %v27467_v11  ;;  %v1552_v12 = vrot.slane %v27551_v39, 2 }
  0x80   : > { %23617 = vmatpush3.msk.msra.mxu0 %vm999_vm0, %v27585_v51  ;;  %23571 = vmatprep.mubr.msk.f32.mxu0 %vm934_vm1, %v27988_v26  ;;  %v28025_v51 = vsel %vm1520_vm3, %v1547_v17, %v1549_v41  ;;  %v28046_v41 = vsel %vm1520_vm3, %v1556_v18, %v1557_v50 }
  0x81   : > { %23666 = vmatprep.subr.msk.mxu0 %vm999_vm0, %v27993_v19  ;;  %34820 = vst [vmem:[#allocation74_spill] sm:$0xff] %v28025_v51  ;;  %v28029_v54 = vsel %vm1520_vm3, %v1551_v44, %v1552_v12  ;;  %v28042_v17 = vsel %vm1520_vm3, %v1552_v12, %v1554_v53  ;;  %v1559_v44 = vrot.slane %v27640_v2, 2  ;;  %34823 = vst [vmem:[#allocation77_spill] sm:$0xff] %v28046_v41  ;;  %v1564_v53 = vrot.slane %v27668_v21, 2 }
  0x82   : > { %22481 = vmatmul.mubr.msk.f32.gmra.mrb[8].mxu1 %vm934_vm1, %v27483_v16  ;;  %34821 = vst [vmem:[#allocation75_spill] sm:$0xff] %v28029_v54  ;;  %34822 = vst [vmem:[#allocation76_spill] sm:$0xff] %v28042_v17  ;;  %v1566_v2 = vrot.slane %v27671_v22, 2  ;;  %v1571_v21 = vrot.slane %v27697_v42, 2 }
  0x83   : > { %23572 = vmatmul.mubr.msk.f32.gmra.mrb[2].mxu0 %vm934_vm1, %v28004_v9  ;;  %22483 = vmatprep.mubr.msk.f32.mxu1 %vm934_vm1, %v27491_v20  ;;  %v28059_v12 = vsel %vm1520_vm3, %v1557_v50, %v1559_v44 }
  0x84   : > { %23574 = vmatprep.mubr.msk.f32.mxu0 %vm934_vm1, %v28010_v38  ;;  %v1562_v38 = vrot.slane %v27648_v4, 2  ;;  %34824 = vst [vmem:[#allocation78_spill] sm:$0xff] %v28059_v12 }
  0x86   : > { %22484 = vmatmul.mubr.msk.f32.gmra.mrb[10].mxu1 %vm934_vm1, %v27524_v31  ;;  %v28063_v18 = vsel %vm1520_vm3, %v1561_v57, %v1562_v38  ;;  %v28076_v50 = vsel %vm1520_vm3, %v1562_v38, %v1564_v53  ;;  %v1569_v57 = vrot.slane %v27694_v40, 2  ;;  %v1576_v40 = vrot.slane %v27723_v62, 2 }
  0x87   : > { %23575 = vmatmul.mubr.msk.f32.gmra.mrb[4].mxu0 %vm934_vm1, %v28025_v51  ;;  %22486 = vmatprep.mubr.msk.f32.mxu1 %vm934_vm1, %v27531_v34  ;;  %34825 = vst [vmem:[#allocation79_spill] sm:$0xff] %v28063_v18  ;;  %34826 = vst [vmem:[#allocation80_spill] sm:$0xff] %v28076_v50 }
  0x88   : > { %23577 = vmatprep.mubr.msk.f32.mxu0 %vm934_vm1, %v28029_v54  ;;  %v1567_v54 = vrot.slane %v27674_v23, 2 }
  0x8a   : > { %22487 = vmatmul.mubr.msk.f32.gmra.mrb[12].mxu1 %vm934_vm1, %v27551_v39  ;;  %v28080_v44 = vsel %vm1520_vm3, %v1566_v2, %v1567_v54  ;;  %v28093_v38 = vsel %vm1520_vm3, %v1567_v54, %v1569_v57  ;;  %v1574_v2 = vrot.slane %v27720_v56, 2  ;;  %v1581_v56 = vrot.slane %v27749_v45, 2 }
  0x8b   : > { %23578 = vmatmul.mubr.msk.f32.gmra.mrb[6].mxu0 %vm934_vm1, %v28042_v17  ;;  %22489 = vmatprep.mubr.msk.f32.mxu1 %vm934_vm1, %v27612_v58  ;;  %34827 = vst [vmem:[#allocation81_spill] sm:$0xff] %v28080_v44  ;;  %34828 = vst [vmem:[#allocation82_spill] sm:$0xff] %v28093_v38 }
  0x8c   : > { %23580 = vmatprep.mubr.msk.f32.mxu0 %vm934_vm1, %v28046_v41  ;;  %v1572_v41 = vrot.slane %v27700_v43, 2 }
  0x8e   : > { %22490 = vmatmul.mubr.msk.f32.gmra.mrb[14].mxu1 %vm934_vm1, %v27615_v59  ;;  %v28097_v53 = vsel %vm1520_vm3, %v1571_v21, %v1572_v41  ;;  %v28110_v54 = vsel %vm1520_vm3, %v1572_v41, %v1574_v2  ;;  %v1579_v21 = vrot.slane %v27746_v35, 2  ;;  %v1586_v35 = vrot.slane %v27775_v27, 2 }
  0x8f   : > { %23581 = vmatmul.mubr.msk.f32.gmra.mrb[8].mxu0 %vm934_vm1, %v28059_v12  ;;  %22492 = vmatprep.mubr.msk.f32.mxu1 %vm934_vm1, %v27645_v3  ;;  %34829 = vst [vmem:[#allocation83_spill] sm:$0xff] %v28097_v53  ;;  %34830 = vst [vmem:[#allocation84_spill] sm:$0xff] %v28110_v54 }
  0x90   : > { %23583 = vmatprep.mubr.msk.f32.mxu0 %vm934_vm1, %v28063_v18  ;;  %v1577_v18 = vrot.slane %v27726_v0, 2 }
  0x92   : > { %22493 = vmatmul.mubr.msk.f32.gmra.mrb[16].mxu1 %vm934_vm1, %v27648_v4  ;;  %v28114_v57 = vsel %vm1520_vm3, %v1576_v40, %v1577_v18  ;;  %v28127_v41 = vsel %vm1520_vm3, %v1577_v18, %v1579_v21  ;;  %v1584_v40 = vrot.slane %v27772_v30, 2  ;;  %v1591_v30 = vrot.slane %v27801_v46, 2 }
  0x93   : > { %23584 = vmatmul.mubr.msk.f32.gmra.mrb[10].mxu0 %vm934_vm1, %v28076_v50  ;;  %22495 = vmatprep.mubr.msk.f32.mxu1 %vm934_vm1, %v27671_v22  ;;  %34831 = vst [vmem:[#allocation85_spill] sm:$0xff] %v28114_v57  ;;  %34832 = vst [vmem:[#allocation86_spill] sm:$0xff] %v28127_v41 }
  0x94   : > { %23586 = vmatprep.mubr.msk.f32.mxu0 %vm934_vm1, %v28080_v44  ;;  %v1582_v44 = vrot.slane %v27752_v36, 2 }
  0x96   : > { %22496 = vmatmul.mubr.msk.f32.gmra.mrb[18].mxu1 %vm934_vm1, %v27674_v23  ;;  %v28131_v2 = vsel %vm1520_vm3, %v1581_v56, %v1582_v44  ;;  %v28144_v18 = vsel %vm1520_vm3, %v1582_v44, %v1584_v40  ;;  %v1589_v56 = vrot.slane %v27798_v49, 2  ;;  %v1596_v49 = vrot.slane %v27827_v13, 2 }
  0x97   : > { %23587 = vmatmul.mubr.msk.f32.gmra.mrb[12].mxu0 %vm934_vm1, %v28093_v38  ;;  %22498 = vmatprep.mubr.msk.f32.mxu1 %vm934_vm1, %v27697_v42  ;;  %34833 = vst [vmem:[#allocation87_spill] sm:$0xff] %v28131_v2  ;;  %34834 = vst [vmem:[#allocation88_spill] sm:$0xff] %v28144_v18 }
  0x98   : > { %23589 = vmatprep.mubr.msk.f32.mxu0 %vm934_vm1, %v28097_v53  ;;  %v1587_v53 = vrot.slane %v27778_v55, 2 }
  0x9a   : > { %22499 = vmatmul.mubr.msk.f32.gmra.mrb[20].mxu1 %vm934_vm1, %v27700_v43  ;;  %v28148_v21 = vsel %vm1520_vm3, %v1586_v35, %v1587_v53  ;;  %v28161_v44 = vsel %vm1520_vm3, %v1587_v53, %v1589_v56  ;;  %v1594_v35 = vrot.slane %v27824_v28, 2  ;;  %v1521_v56 = vrot.slane %v27455_v7, 2 }
  0x9b   : > { %23590 = vmatmul.mubr.msk.f32.gmra.mrb[14].mxu0 %vm934_vm1, %v28110_v54  ;;  %22501 = vmatprep.mubr.msk.f32.mxu1 %vm934_vm1, %v27723_v62  ;;  %34835 = vst [vmem:[#allocation89_spill] sm:$0xff] %v28148_v21  ;;  %34836 = vst [vmem:[#allocation90_spill] sm:$0xff] %v28161_v44 }
  0x9c   : > { %23592 = vmatprep.mubr.msk.f32.mxu0 %vm934_vm1, %v28114_v57  ;;  %v1592_v57 = vrot.slane %v27804_v29, 2 }
  0x9e   : > { %22502 = vmatmul.mubr.msk.f32.gmra.mrb[22].mxu1 %vm934_vm1, %v27726_v0  ;;  %v28165_v40 = vsel %vm1520_vm3, %v1591_v30, %v1592_v57  ;;  %v28178_v53 = vsel %vm1520_vm3, %v1592_v57, %v1594_v35  ;;  %v1599_v30 = vrot.slane %v27850_v63, 2  ;;  %v34841_v57 = vld [vmem:[#allocation11_spill] sm:$0xff] }
  0x9f   : > { %23593 = vmatmul.mubr.msk.f32.gmra.mrb[16].mxu0 %vm934_vm1, %v28127_v41  ;;  %22504 = vmatprep.mubr.msk.f32.mxu1 %vm934_vm1, %v27749_v45  ;;  %34837 = vst [vmem:[#allocation91_spill] sm:$0xff] %v28165_v40  ;;  %34838 = vst [vmem:[#allocation92_spill] sm:$0xff] %v28178_v53  ;;  %v1524_v35 = vrot.slane %v34841_v57, 2  ;;  %v34844_v57 = vld [vmem:[#allocation58_spill] sm:$0xff] }
  0xa0   : > { %23595 = vmatprep.mubr.msk.f32.mxu0 %vm934_vm1, %v28131_v2  ;;  %v1597_v2 = vrot.slane %v27830_v33, 2 }
  0xa2   : > { %22505 = vmatmul.mubr.msk.f32.gmra.mrb[24].mxu1 %vm934_vm1, %v27752_v36  ;;  %v28183_v28 = vsel %vm1520_vm3, %v1596_v49, %v1597_v2  ;;  %v28199_v7 = vsel %vm1520_vm3, %v1597_v2, %v1599_v30  ;;  %v1527_v49 = vrot.slane %v27477_v15, 2 }
  0xa3   : > { %23596 = vmatmul.mubr.msk.f32.gmra.mrb[18].mxu0 %vm934_vm1, %v28144_v18  ;;  %22507 = vmatprep.mubr.msk.f32.mxu1 %vm934_vm1, %v27775_v27  ;;  %34839 = vst [vmem:[#allocation93_spill] sm:$0xff] %v28183_v28  ;;  %v34840_v18 = vld [vmem:[#allocation54_spill] sm:$0xff]  ;;  %34842 = vst [vmem:[#allocation11_spill] sm:$0xff] %v28199_v7 }
  0xa4   : > { %23598 = vmatprep.mubr.msk.f32.mxu0 %vm934_vm1, %v28148_v21  ;;  %v1522_v21 = vrot.slane %v27460_v8, 2  ;;  %v4095_v41 = vrot.slane %v34840_v18, 2  ;;  %v1526_v8 = vrot.slane %v27474_v14, 2 }
  0xa6   : > { %22508 = vmatmul.mubr.msk.f32.gmra.mrb[26].mxu1 %vm934_vm1, %v27778_v55  ;;  %v1523_v18 = vsel %vm1520_vm3, %v1521_v56, %v1522_v21  ;;  %v1525_v2 = vsel %vm1520_vm3, %v1522_v21, %v1524_v35  ;;  %v28221_v15 = vsel %vm1520_vm3, %v1526_v8, %v1527_v49  ;;  %v5992_v56 = vrot.slane %v27902_v32, 2 }
  0xa7   : > { %23599 = vmatmul.mubr.msk.f32.gmra.mrb[20].mxu0 %vm934_vm1, %v28161_v44  ;;  %22510 = vmatprep.mubr.msk.f32.mxu1 %vm934_vm1, %v27801_v46  ;;  %v4094_v44 = vrot.slane %v27853_v61, 2  ;;  %v34845_v61 = vld [vmem:[#allocation59_spill] sm:$0xff]  ;;  %34847 = vst [vmem:[#allocation95_spill] sm:$0xff] %v28221_v15  ;;  %v7884_v21 = vrot.slane %v27905_v10, 2  ;;  %v7887_v8 = vrot.slane %v27928_v47, 2 }
  0xa8   : > { %23601 = vmatprep.mubr.msk.f32.mxu0 %vm934_vm1, %v28165_v40  ;;  %v4097_v40 = vrot.slane %v27876_v52, 2  ;;  %v5989_v52 = vrot.slane %v34844_v57, 2  ;;  %v5990_v63 = vrot.slane %v34845_v61, 2  ;;  %v1531_v61 = vrot.slane %v27497_v24, 2 }
  0xaa   : > { %22511 = vmatmul.mubr.msk.f32.gmra.mrb[28].mxu1 %vm934_vm1, %v27804_v29  ;;  %v28215_v14 = vsel %vm1520_vm3, %v4095_v41, %v4097_v40  ;;  %v28238_v40 = vld [vmem:[%s34755_s1 + $0x10] sm:$0x7] }
  0xab   : > { %23602 = vmatmul.mubr.msk.f32.gmra.mrb[22].mxu0 %vm934_vm1, %v28178_v53  ;;  %22513 = vmatprep.mubr.msk.f32.mxu1 %vm934_vm1, %v27827_v13  ;;  %v28205_v53 = vsel %vm1520_vm3, %v4094_v44, %v4095_v41  ;;  %34846 = vst [vmem:[#allocation58_spill] sm:$0xff] %v28215_v14  ;;  %v34848_v44 = vld [vmem:[#allocation12_spill] sm:$0xff]  ;;  %v1532_v41 = vrot.slane %v27500_v25, 2  ;;  %v28248_v25 = vsel %vm1520_vm3, %v5990_v63, %v5992_v56 }
  0xac   : > { %23604 = vmatprep.mubr.msk.f32.mxu0 %vm934_vm1, %v28183_v28  ;;  %34843 = vst [vmem:[#allocation94_spill] sm:$0xff] %v28205_v53  ;;  %v1529_v30 = vrot.slane %v34848_v44, 2  ;;  %34851 = vst [vmem:[#allocation97_spill] sm:$0xff] %v28248_v25 }
  0xae   : > { %22514 = vmatmul.mubr.msk.f32.gmra.mrb[30].mxu1 %vm934_vm1, %v27830_v33  ;;  %v28243_v24 = vsel %vm1520_vm3, %v1527_v49, %v1529_v30  ;;  %v1944_v49 = vrot.slane %v27452_v6, 3  ;;  %v1949_v30 = vrot.slane %v27483_v16, 3  ;;  %v1954_v16 = vrot.slane %v27524_v31, 3  ;;  %v34863_v31 = vld [vmem:[#allocation22_spill] sm:$0xff] }
  0xaf   : > { %23605 = vmatmul.mubr.msk.f32.gmra.mrb[24].mxu0 %vm934_vm1, %v28199_v7  ;;  %22518 = vmatprep.mubr.msk.f32.mxu1 %vm934_vm1, %v1523_v18  ;;  %v28227_v7 = vsel %vm1520_vm3, %v5989_v52, %v5990_v63  ;;  %v7885_v18 = vrot.slane %v27908_v48, 2  ;;  %34850 = vst [vmem:[#allocation96_spill] sm:$0xff] %v28243_v24  ;;  %v34852_v52 = vld [vmem:[#allocation13_spill] sm:$0xff] }
  0xb0   : > { %23607 = vmatprep.mubr.msk.f32.mxu0 %vm934_vm1, %v28205_v53  ;;  %34849 = vst [vmem:[#allocation12_spill] sm:$0xff] %v28227_v7  ;;  %v1534_v35 = vrot.slane %v34852_v52, 2  ;;  %v1956_v52 = vrot.slane %v34863_v31, 3  ;;  %v1999_v53 = vrot.slane %v27804_v29, 3 }
  0xb1   : > { %v28256_v44 = vsel %vm1520_vm3, %v7884_v21, %v7885_v18  ;;  %v28276_v6 = vsel %vm1520_vm3, %v7885_v18, %v7887_v8  ;;  %v28304_v21 = vld [vmem:[%s34755_s1 + $0x68] sm:$0x7]  ;;  %v34861_v18 = vld [vmem:[#allocation70_spill] sm:$0xff]  ;;  %v1958_v8 = vrot.slane %v27531_v34, 3  ;;  %v34867_v34 = vld [vmem:[#allocation25_spill] sm:$0xff] }
  0xb2   : > { %22519 = vmatmul.mubr.msk.f32.vlgmr.msra.gmra.mrb[0].mxu1 %vm934_vm1, %v1525_v2  ;;  %v28253_v2 = vsel %vm1520_vm3, %v1531_v61, %v1532_v41  ;;  %34854 = vst [vmem:[#allocation98_spill] sm:$0xff] %v28256_v44  ;;  %34856 = vst [vmem:[#allocation100_spill] sm:$0xff] %v28276_v6  ;;  %v1946_v61 = vrot.slane %v27536_v37, 3 }
  0xb3   : > { %23608 = vmatmul.mubr.msk.f32.gmra.mrb[26].mxu0 %vm934_vm1, %v28215_v14  ;;  %22521 = vmatprep.mubr.msk.f32.mxu1 %vm934_vm1, %v28221_v15  ;;  %34853 = vst [vmem:[#allocation13_spill] sm:$0xff] %v28253_v2  ;;  %v1943_v15 = vrot.slane %v27449_v5, 3  ;;  %v28271_v5 = vsel %vm1520_vm3, %v1532_v41, %v1534_v35  ;;  %v1998_v14 = vrot.slane %v27801_v46, 3 }
  0xb4   : > { %23610 = vmatprep.mubr.msk.f32.mxu0 %vm934_vm1, %v28227_v7  ;;  %22567 = vmatpush3.msk.msra.mxu1 %vm999_vm0, %v27937_v1  ;;  %34855 = vst [vmem:[#allocation99_spill] sm:$0xff] %v28271_v5  ;;  %v1948_v1 = vrot.slane %v27467_v11, 3  ;;  %v28293_v37 = vsel %vm1927_vm4, %v1944_v49, %v1946_v61  ;;  %v1953_v11 = vrot.slane %v27491_v20, 3  ;;  %v28336_v61 = vsel %vm1927_vm4, %v1954_v16, %v1956_v52 }
  0xb5   : > { %22616 = vmatprep.subr.msk.mxu1 %vm999_vm0, %v28238_v40  ;;  %v28280_v63 = vsel %vm1927_vm4, %v1943_v15, %v1944_v49  ;;  %34858 = vst [vmem:[#allocation102_spill] sm:$0xff] %v28293_v37  ;;  %v34859_v15 = vld [vmem:[#allocation19_spill] sm:$0xff]  ;;  %v1959_v49 = vrot.slane %v27551_v39, 3  ;;  %34866 = vst [vmem:[#allocation104_spill] sm:$0xff] %v28336_v61  ;;  %v1961_v39 = vrot.slane %v34867_v34, 3  ;;  %v1969_v52 = vrot.slane %v27648_v4, 3 }
  0xb6   : > { %22522 = vmatmul.mubr.msk.f32.gmra.mrb[2].mxu1 %vm934_vm1, %v28243_v24  ;;  %34857 = vst [vmem:[#allocation101_spill] sm:$0xff] %v28280_v63  ;;  %v1951_v56 = vrot.slane %v34859_v15, 3  ;;  %v28299_v41 = vsel %vm1927_vm4, %v1948_v1, %v1949_v30  ;;  %v28321_v35 = vsel %vm1927_vm4, %v1953_v11, %v1954_v16  ;;  %v1964_v15 = vrot.slane %v27615_v59, 3  ;;  %v34871_v16 = vld [vmem:[#allocation28_spill] sm:$0xff]  ;;  %v34875_v34 = vld [vmem:[#allocation31_spill] sm:$0xff] }
  0xb7   : > { %23611 = vmatmul.mubr.msk.f32.gmra.mrb[28].mxu0 %vm934_vm1, %v28248_v25  ;;  %22524 = vmatprep.mubr.msk.f32.mxu1 %vm934_vm1, %v28253_v2  ;;  %34860 = vst [vmem:[#allocation19_spill] sm:$0xff] %v28299_v41  ;;  %34864 = vst [vmem:[#allocation22_spill] sm:$0xff] %v28321_v35  ;;  %v28340_v1 = vsel %vm1927_vm4, %v1958_v8, %v1959_v49  ;;  %v28353_v11 = vsel %vm1927_vm4, %v1959_v49, %v1961_v39  ;;  %v1966_v31 = vrot.slane %v34871_v16, 3  ;;  %v34873_v8 = vld [vmem:[#allocation77_spill] sm:$0xff]  ;;  %v34877_v16 = vld [vmem:[#allocation79_spill] sm:$0xff] }
  0xb8   : > { %23613 = vmatprep.mubr.msk.f32.mxu0 %vm934_vm1, %v28256_v44  ;;  %v28315_v20 = vsel %vm1927_vm4, %v1949_v30, %v1951_v56  ;;  %34868 = vst [vmem:[#allocation25_spill] sm:$0xff] %v28340_v1  ;;  %v1963_v30 = vrot.slane %v27612_v58, 3  ;;  %v34869_v56 = vld [vmem:[#allocation75_spill] sm:$0xff]  ;;  %34870 = vst [vmem:[#allocation105_spill] sm:$0xff] %v28353_v11  ;;  %v1968_v59 = vrot.slane %v27645_v3, 3  ;;  %v1971_v39 = vrot.slane %v34875_v34, 3 }
  0xb9   : > { %34862 = vst [vmem:[#allocation103_spill] sm:$0xff] %v28315_v20  ;;  %v28370_v49 = vsel %vm1927_vm4, %v1964_v15, %v1966_v31  ;;  %v1973_v4 = vrot.slane %v27671_v22, 3  ;;  %v34879_v31 = vld [vmem:[#allocation34_spill] sm:$0xff]  ;;  %v1979_v34 = vrot.slane %v27700_v43, 3  ;;  %v1983_v43 = vrot.slane %v27723_v62, 3  ;;  %v34894_v24 = vld [vmem:[#allocation87_spill] sm:$0xff] }
  0xba   : > { %22525 = vmatmul.mubr.msk.f32.gmra.mrb[4].mxu1 %vm934_vm1, %v28271_v5  ;;  %v28357_v58 = vsel %vm1927_vm4, %v1963_v30, %v1964_v15  ;;  %34874 = vst [vmem:[#allocation106_spill] sm:$0xff] %v28370_v49  ;;  %v28374_v3 = vsel %vm1927_vm4, %v1968_v59, %v1969_v52  ;;  %v1974_v30 = vrot.slane %v27674_v23, 3  ;;  %v28387_v15 = vsel %vm1927_vm4, %v1969_v52, %v1971_v39  ;;  %v34883_v39 = vld [vmem:[#allocation37_spill] sm:$0xff]  ;;  %v34893_v25 = vld [vmem:[#allocation86_spill] sm:$0xff] }
  0xbb   : > { %23614 = vmatmul.mubr.msk.f32.gmra.mrb[30].mxu0 %vm934_vm1, %v28276_v6  ;;  %22527 = vmatprep.mubr.msk.f32.mxu1 %vm934_vm1, %v27969_v60  ;;  %34872 = vst [vmem:[#allocation28_spill] sm:$0xff] %v28357_v58  ;;  %34876 = vst [vmem:[#allocation31_spill] sm:$0xff] %v28374_v3  ;;  %v1976_v59 = vrot.slane %v34879_v31, 3  ;;  %v1978_v23 = vrot.slane %v27697_v42, 3  ;;  %v1984_v31 = vrot.slane %v27726_v0, 3  ;;  %v34885_v60 = vld [vmem:[#allocation83_spill] sm:$0xff] }
  0xbc   : > { %23618 = vmatprep.mubr.msk.f32.mxu0 %vm934_vm1, %v28280_v63  ;;  %34878 = vst [vmem:[#allocation107_spill] sm:$0xff] %v28387_v15  ;;  %v28391_v22 = vsel %vm1927_vm4, %v1973_v4, %v1974_v30  ;;  %v1981_v4 = vrot.slane %v34883_v39, 3  ;;  %v1988_v0 = vrot.slane %v27749_v45, 3  ;;  %v1989_v39 = vrot.slane %v27752_v36, 3  ;;  %v34889_v6 = vld [vmem:[#allocation85_spill] sm:$0xff] }
  0xbd   : > { %34880 = vst [vmem:[#allocation34_spill] sm:$0xff] %v28391_v22  ;;  %v28404_v52 = vsel %vm1927_vm4, %v1974_v30, %v1976_v59  ;;  %v28408_v42 = vsel %vm1927_vm4, %v1978_v23, %v1979_v34  ;;  %v34887_v59 = vld [vmem:[#allocation40_spill] sm:$0xff]  ;;  %v28425_v62 = vsel %vm1927_vm4, %v1983_v43, %v1984_v31  ;;  %v1993_v44 = vrot.slane %v27775_v27, 3 }
  0xbe   : > { %22528 = vmatmul.mubr.msk.f32.gmra.mrb[6].mxu1 %vm934_vm1, %v34861_v18  ;;  %v34881_v18 = vld [vmem:[#allocation81_spill] sm:$0xff]  ;;  %34882 = vst [vmem:[#allocation108_spill] sm:$0xff] %v28404_v52  ;;  %34884 = vst [vmem:[#allocation37_spill] sm:$0xff] %v28408_v42  ;;  %v28421_v30 = vsel %vm1927_vm4, %v1979_v34, %v1981_v4  ;;  %v1986_v23 = vrot.slane %v34887_v59, 3  ;;  %v34891_v4 = vld [vmem:[#allocation43_spill] sm:$0xff]  ;;  %v28442_v5 = vsel %vm1927_vm4, %v1988_v0, %v1989_v39  ;;  %v1994_v2 = vrot.slane %v27778_v55, 3 }
  0xbf   : > { %23619 = vmatmul.mubr.msk.f32.vlgmr.msra.gmra.mrb[0].mxu0 %vm934_vm1, %v28293_v37  ;;  %22530 = vmatprep.mubr.msk.f32.mxu1 %vm934_vm1, %v27988_v26  ;;  %34886 = vst [vmem:[#allocation109_spill] sm:$0xff] %v28421_v30  ;;  %34888 = vst [vmem:[#allocation40_spill] sm:$0xff] %v28425_v62  ;;  %v1991_v43 = vrot.slane %v34891_v4, 3  ;;  %v28526_v26 = vld [vmem:[%s27441_s7 + $0x20] sm:$0xff] }
  0xc0   : > { %23667 = vmatpush3.msk.msra.mxu0 %vm999_vm0, %v27993_v19  ;;  %23621 = vmatprep.mubr.msk.f32.mxu0 %vm934_vm1, %v28299_v41  ;;  %v34865_v19 = vld [vmem:[#allocation73_spill] sm:$0xff]  ;;  %v28438_v34 = vsel %vm1927_vm4, %v1984_v31, %v1986_v23  ;;  %34892 = vst [vmem:[#allocation43_spill] sm:$0xff] %v28442_v5  ;;  %v34896_v23 = vld [vmem:[#allocation46_spill] sm:$0xff]  ;;  %v28459_v7 = vsel %vm1927_vm4, %v1993_v44, %v1994_v2  ;;  %34916 = vst [vmem:[#allocation116_spill] sm:$0xff] %v28526_v26 }
  0xc1   : > { %23716 = vmatprep.subr.msk.mxu0 %vm999_vm0, %v28304_v21  ;;  %34890 = vst [vmem:[#allocation110_spill] sm:$0xff] %v28438_v34  ;;  %v28455_v31 = vsel %vm1927_vm4, %v1989_v39, %v1991_v43  ;;  %v1996_v0 = vrot.slane %v34896_v23, 3  ;;  %34897 = vst [vmem:[#allocation46_spill] sm:$0xff] %v28459_v7  ;;  %v34901_v39 = vld [vmem:[#allocation49_spill] sm:$0xff] }
  0xc2   : > { %22531 = vmatmul.mubr.msk.f32.gmra.mrb[8].mxu1 %vm934_vm1, %v28004_v9  ;;  %34895 = vst [vmem:[#allocation111_spill] sm:$0xff] %v28455_v31  ;;  %v2001_v43 = vrot.slane %v34901_v39, 3 }
  0xc3   : > { %23622 = vmatmul.mubr.msk.f32.gmra.mrb[2].mxu0 %vm934_vm1, %v28315_v20  ;;  %22533 = vmatprep.mubr.msk.f32.mxu1 %vm934_vm1, %v34865_v19  ;;  %v28472_v44 = vsel %vm1927_vm4, %v1994_v2, %v1996_v0  ;;  %v34905_v2 = vld [vmem:[#allocation91_spill] sm:$0xff]  ;;  %v28493_v0 = vld [vmem:[%s27441_s7] sm:$0xff] }
  0xc4   : > { %23624 = vmatprep.mubr.msk.f32.mxu0 %vm934_vm1, %v28321_v35  ;;  %34900 = vst [vmem:[#allocation112_spill] sm:$0xff] %v28472_v44 }
  0xc6   : > { %22534 = vmatmul.mubr.msk.f32.gmra.mrb[10].mxu1 %vm934_vm1, %v28025_v51  ;;  %v34914_v51 = vld [vmem:[#allocation57_spill] sm:$0xff] }
  0xc7   : > { %23625 = vmatmul.mubr.msk.f32.gmra.mrb[4].mxu0 %vm934_vm1, %v28336_v61  ;;  %22536 = vmatprep.mubr.msk.f32.mxu1 %vm934_vm1, %v34869_v56  ;;  %v34911_v56 = vld [vmem:[#allocation92_spill] sm:$0xff]  ;;  %v4368_v19 = vrot.slane %v34914_v51, 3 }
  0xc8   : > { %23627 = vmatprep.mubr.msk.f32.mxu0 %vm934_vm1, %v28340_v1 }
  0xca   : > { %22537 = vmatmul.mubr.msk.f32.gmra.mrb[12].mxu1 %vm934_vm1, %v28042_v17 }
  0xcb   : > { %23628 = vmatmul.mubr.msk.f32.gmra.mrb[6].mxu0 %vm934_vm1, %v28353_v11  ;;  %22539 = vmatprep.mubr.msk.f32.mxu1 %vm934_vm1, %v34873_v8  ;;  %v34910_v8 = vld [vmem:[#allocation54_spill] sm:$0xff] }
  0xcc   : > { %23630 = vmatprep.mubr.msk.f32.mxu0 %vm934_vm1, %v28357_v58  ;;  %v4366_v17 = vrot.slane %v34910_v8, 3 }
  0xce   : > { %22540 = vmatmul.mubr.msk.f32.gmra.mrb[14].mxu1 %vm934_vm1, %v28059_v12 }
  0xcf   : > { %23631 = vmatmul.mubr.msk.f32.gmra.mrb[8].mxu0 %vm934_vm1, %v28370_v49  ;;  %22542 = vmatprep.mubr.msk.f32.mxu1 %vm934_vm1, %v34877_v16 }
  0xd0   : > { %23633 = vmatprep.mubr.msk.f32.mxu0 %vm934_vm1, %v28374_v3 }
  0xd2   : > { %22543 = vmatmul.mubr.msk.f32.gmra.mrb[16].mxu1 %vm934_vm1, %v28076_v50  ;;  %v28500_v50 = vld [vmem:[%s27441_s7 + $0x8] sm:$0xff] }
  0xd3   : > { %23634 = vmatmul.mubr.msk.f32.gmra.mrb[10].mxu0 %vm934_vm1, %v28387_v15  ;;  %22545 = vmatprep.mubr.msk.f32.mxu1 %vm934_vm1, %v34881_v18  ;;  %34908 = vst [vmem:[#allocation114_spill] sm:$0xff] %v28500_v50  ;;  %v1929_v16 = vrot.slane %v28500_v50, 3 }
  0xd4   : > { %23636 = vmatprep.mubr.msk.f32.mxu0 %vm934_vm1, %v28391_v22 }
  0xd6   : > { %22546 = vmatmul.mubr.msk.f32.gmra.mrb[18].mxu1 %vm934_vm1, %v28093_v38 }
  0xd7   : > { %23637 = vmatmul.mubr.msk.f32.gmra.mrb[12].mxu0 %vm934_vm1, %v28404_v52  ;;  %22548 = vmatprep.mubr.msk.f32.mxu1 %vm934_vm1, %v34885_v60  ;;  %v34903_v60 = vld [vmem:[#allocation90_spill] sm:$0xff] }
  0xd8   : > { %23639 = vmatprep.mubr.msk.f32.mxu0 %vm934_vm1, %v28408_v42 }
  0xda   : > { %22549 = vmatmul.mubr.msk.f32.gmra.mrb[20].mxu1 %vm934_vm1, %v28110_v54  ;;  %v2004_v54 = vrot.slane %v27830_v33, 3 }
  0xdb   : > { %23640 = vmatmul.mubr.msk.f32.gmra.mrb[14].mxu0 %vm934_vm1, %v28421_v30  ;;  %22551 = vmatprep.mubr.msk.f32.mxu1 %vm934_vm1, %v34889_v6  ;;  %v28476_v6 = vsel %vm1927_vm4, %v1998_v14, %v1999_v53  ;;  %v28490_v14 = vsel %vm1927_vm4, %v1999_v53, %v2001_v43  ;;  %v28513_v43 = vld [vmem:[%s27441_s7 + $0x10] sm:$0x3f] }
  0xdc   : > { %23642 = vmatprep.mubr.msk.f32.mxu0 %vm934_vm1, %v28425_v62  ;;  %34902 = vst [vmem:[#allocation49_spill] sm:$0xff] %v28476_v6  ;;  %34913 = vst [vmem:[#allocation54_spill] sm:$0xff] %v28513_v43 }
  0xde   : > { %22552 = vmatmul.mubr.msk.f32.gmra.mrb[22].mxu1 %vm934_vm1, %v34893_v25  ;;  %v34898_v25 = vld [vmem:[#allocation88_spill] sm:$0xff] }
  0xdf   : > { %23643 = vmatmul.mubr.msk.f32.gmra.mrb[16].mxu0 %vm934_vm1, %v28438_v34  ;;  %22554 = vmatprep.mubr.msk.f32.mxu1 %vm934_vm1, %v34894_v24  ;;  %v34899_v24 = vld [vmem:[#allocation89_spill] sm:$0xff] }
  0xe0   : > { %23645 = vmatprep.mubr.msk.f32.mxu0 %vm934_vm1, %v28442_v5 }
  0xe2   : > { %22555 = vmatmul.mubr.msk.f32.gmra.mrb[24].mxu1 %vm934_vm1, %v34898_v25  ;;  %v2003_v25 = vrot.slane %v27827_v13, 3 }
  0xe3   : > { %23646 = vmatmul.mubr.msk.f32.gmra.mrb[18].mxu0 %vm934_vm1, %v28455_v31  ;;  %22557 = vmatprep.mubr.msk.f32.mxu1 %vm934_vm1, %v34899_v24  ;;  %v34904_v24 = vld [vmem:[#allocation52_spill] sm:$0xff] }
  0xe4   : > { %23648 = vmatprep.mubr.msk.f32.mxu0 %vm934_vm1, %v28459_v7  ;;  %v2006_v38 = vrot.slane %v34904_v24, 3  ;;  %34906 = vst [vmem:[#allocation52_spill] sm:$0xff] %v28490_v14  ;;  %v28497_v18 = vsel %vm1927_vm4, %v2003_v25, %v2004_v54  ;;  %v1931_v25 = vrot.slane %v28513_v43, 3  ;;  %v34917_v43 = vld [vmem:[#allocation59_spill] sm:$0xff] }
  0xe5   : > { %34907 = vst [vmem:[#allocation113_spill] sm:$0xff] %v28497_v18  ;;  %v6261_v51 = vrot.slane %v34917_v43, 3 }
  0xe6   : > { %22558 = vmatmul.mubr.msk.f32.gmra.mrb[26].mxu1 %vm934_vm1, %v34903_v60  ;;  %v1928_v60 = vrot.slane %v28493_v0, 3  ;;  %v28510_v53 = vsel %vm1927_vm4, %v2004_v54, %v2006_v38  ;;  %v1934_v38 = vrot.slane %v28526_v26, 3  ;;  %v6260_v54 = vrot.slane %v34844_v57, 3 }
  0xe7   : > { %23649 = vmatmul.mubr.msk.f32.gmra.mrb[20].mxu0 %vm934_vm1, %v28472_v44  ;;  %22560 = vmatprep.mubr.msk.f32.mxu1 %vm934_vm1, %v34905_v2  ;;  %v34909_v2 = vld [vmem:[#allocation53_spill] sm:$0xff]  ;;  %v28541_v26 = vsel %vm1927_vm4, %v4366_v17, %v4368_v19 }
  0xe8   : > { %23651 = vmatprep.mubr.msk.f32.mxu0 %vm934_vm1, %v28476_v6  ;;  %v4365_v12 = vrot.slane %v34909_v2, 3  ;;  %34912 = vst [vmem:[#allocation53_spill] sm:$0xff] %v28510_v53  ;;  %34920 = vst [vmem:[#allocation117_spill] sm:$0xff] %v28541_v26  ;;  %v28562_v19 = vld [vmem:[%s27441_s7 + $0x38] sm:$0xff] }
  0xe9   : > { %34924 = vst [vmem:[#allocation121_spill] sm:$0xff] %v28562_v19 }
  0xea   : > { %22561 = vmatmul.mubr.msk.f32.gmra.mrb[28].mxu1 %vm934_vm1, %v34911_v56  ;;  %v28522_v56 = vld [vmem:[%s27441_s7 + $0x18] sm:$0xff] }
  0xeb   : > { %23652 = vmatmul.mubr.msk.f32.gmra.mrb[22].mxu0 %vm934_vm1, %v28490_v14  ;;  %22563 = vmatprep.mubr.msk.f32.mxu1 %vm934_vm1, %v28183_v28  ;;  %34915 = vst [vmem:[#allocation115_spill] sm:$0xff] %v28522_v56  ;;  %v1933_v9 = vrot.slane %v28522_v56, 3  ;;  %v1930_v28 = vsel %vm1927_vm4, %v1928_v60, %v1929_v16  ;;  %v28533_v14 = vsel %vm1927_vm4, %v4365_v12, %v4366_v17  ;;  %v28550_v12 = vld [vmem:[%s27441_s7 + $0x28] sm:$0x3f]  ;;  %v28558_v17 = vld [vmem:[%s27441_s7 + $0x30] sm:$0xff] }
  0xec   : > { %23654 = vmatprep.mubr.msk.f32.mxu0 %vm934_vm1, %v28497_v18  ;;  %34918 = vst [vmem:[#allocation59_spill] sm:$0xff] %v28533_v14  ;;  %v34919_v18 = vld [vmem:[#allocation11_spill] sm:$0xff]  ;;  %v1932_v56 = vsel %vm1927_vm4, %v1929_v16, %v1931_v25  ;;  %v6263_v16 = vrot.slane %v27902_v32, 3  ;;  %34923 = vst [vmem:[#allocation120_spill] sm:$0xff] %v28558_v17  ;;  %v8155_v25 = vrot.slane %v27905_v10, 3  ;;  %v8158_v10 = vrot.slane %v27928_v47, 3 }
  0xed   : > { %v28547_v60 = vsel %vm1927_vm4, %v1933_v9, %v1934_v38  ;;  %v1939_v9 = vrot.slane %v28562_v19, 3 }
  0xee   : > { %22564 = vmatmul.mubr.msk.f32.gmra.mrb[30].mxu1 %vm934_vm1, %v34919_v18  ;;  %34921 = vst [vmem:[#allocation118_spill] sm:$0xff] %v28547_v60  ;;  %v1936_v18 = vrot.slane %v28550_v12, 3 }
  0xef   : > { %23655 = vmatmul.mubr.msk.f32.gmra.mrb[24].mxu0 %vm934_vm1, %v28510_v53  ;;  %22568 = vmatprep.mubr.msk.f32.mxu1 %vm934_vm1, %v1930_v28  ;;  %v28554_v53 = vsel %vm1927_vm4, %v6260_v54, %v6261_v51  ;;  %v1938_v28 = vrot.slane %v28558_v17, 3  ;;  %v28573_v54 = vld [vmem:[%s34755_s1 + $0x14] sm:$0x7] }
  0xf0   : > { %23657 = vmatprep.mubr.msk.f32.mxu0 %vm934_vm1, %v28533_v14  ;;  %34922 = vst [vmem:[#allocation119_spill] sm:$0xff] %v28554_v53  ;;  %v8156_v14 = vrot.slane %v27908_v48, 3  ;;  %v28578_v19 = vsel %vm1927_vm4, %v1934_v38, %v1936_v18  ;;  %v28583_v48 = vsel %vm1927_vm4, %v6261_v51, %v6263_v16  ;;  %v28597_v18 = vld [vmem:[%s27441_s7 + $0x48] sm:$0xff]  ;;  %v28601_v51 = vld [vmem:[%s27441_s7 + $0x50] sm:$0xff] }
  0xf1   : > { %34925 = vst [vmem:[#allocation122_spill] sm:$0xff] %v28578_v19  ;;  %34926 = vst [vmem:[#allocation123_spill] sm:$0xff] %v28583_v48  ;;  %v28591_v17 = vsel %vm1927_vm4, %v1938_v28, %v1939_v9  ;;  %v2350_v38 = vrot.slane %v28597_v18, 4  ;;  %v2351_v16 = vrot.slane %v28601_v51, 4 }
  0xf2   : > { %22569 = vmatmul.mubr.msk.f32.vlgmr.msra.gmra.mrb[0].mxu1 %vm934_vm1, %v1932_v56  ;;  %v28586_v56 = vld [vmem:[%s27441_s7 + $0x40] sm:$0x3f]  ;;  %34927 = vst [vmem:[#allocation124_spill] sm:$0xff] %v28591_v17 }
  0xf3   : > { %23658 = vmatmul.mubr.msk.f32.gmra.mrb[26].mxu0 %vm934_vm1, %v28541_v26  ;;  %22571 = vmatprep.mubr.msk.f32.mxu1 %vm934_vm1, %v28547_v60  ;;  %v1941_v26 = vrot.slane %v28586_v56, 3  ;;  %v28594_v60 = vsel %vm1927_vm4, %v8155_v25, %v8156_v14  ;;  %v28623_v25 = vld [vmem:[%s27441_s7 + $0x58] sm:$0x3f] }
  0xf4   : > { %23660 = vmatprep.mubr.msk.f32.mxu0 %vm934_vm1, %v28554_v53  ;;  %34928 = vst [vmem:[#allocation125_spill] sm:$0xff] %v28594_v60  ;;  %22617 = vmatpush3.msk.msra.mxu1 %vm999_vm0, %v28238_v40  ;;  %v28620_v40 = vsel %vm1927_vm4, %v8156_v14, %v8158_v10  ;;  %v28649_v14 = vld [vmem:[%s27441_s7 + $0x70] sm:$0x3f]  ;;  %v28653_v53 = vld [vmem:[%s27441_s7 + $0x78] sm:$0xff] }
  0xf5   : > { %22666 = vmatprep.subr.msk.mxu1 %vm999_vm0, %v28573_v54  ;;  %v28615_v28 = vsel %vm1927_vm4, %v1939_v9, %v1941_v26  ;;  %34930 = vst [vmem:[#allocation127_spill] sm:$0xff] %v28620_v40  ;;  %v28634_v9 = vld [vmem:[%s27441_s7 + $0x68] sm:$0xff] }
  0xf6   : > { %22572 = vmatmul.mubr.msk.f32.gmra.mrb[2].mxu1 %vm934_vm1, %v28578_v19  ;;  %34929 = vst [vmem:[#allocation126_spill] sm:$0xff] %v28615_v28  ;;  %v2353_v19 = vrot.slane %v28623_v25, 4  ;;  %34932 = vst [vmem:[#allocation129_spill] sm:$0xff] %v28634_v9 }
  0xf7   : > { %23661 = vmatmul.mubr.msk.f32.gmra.mrb[28].mxu0 %vm934_vm1, %v28583_v48  ;;  %22574 = vmatprep.mubr.msk.f32.mxu1 %vm934_vm1, %v28591_v17  ;;  %v28627_v48 = vsel %vm2334_vm5, %v2350_v38, %v2351_v16  ;;  %v28630_v17 = vld [vmem:[%s27441_s7 + $0x60] sm:$0xff]  ;;  %v2358_v38 = vrot.slane %v28649_v14, 4 }
  0xf8   : > { %23663 = vmatprep.mubr.msk.f32.mxu0 %vm934_vm1, %v28594_v60  ;;  %34931 = vst [vmem:[#allocation128_spill] sm:$0xff] %v28627_v48  ;;  %v2355_v26 = vrot.slane %v28630_v17, 4  ;;  %v2356_v60 = vrot.slane %v28634_v9, 4  ;;  %v28646_v10 = vsel %vm2334_vm5, %v2351_v16, %v2353_v19  ;;  %v28666_v19 = vld [vmem:[%s34755_s1 + $0x6c] sm:$0x7] }
  0xf9   : > { %34933 = vst [vmem:[#allocation130_spill] sm:$0xff] %v28646_v10 }
  0xfa   : > { %22575 = vmatmul.mubr.msk.f32.gmra.mrb[4].mxu1 %vm934_vm1, %v28615_v28  ;;  %v2360_v28 = vrot.slane %v28653_v53, 4  ;;  %v28661_v9 = vsel %vm2334_vm5, %v2355_v26, %v2356_v60  ;;  %v28677_v16 = vsel %vm2334_vm5, %v2356_v60, %v2358_v38  ;;  %v28680_v26 = vld [vmem:[%s27441_s7 + $0x88] sm:$0x3f]  ;;  %v28710_v38 = vld [vmem:[%s27441_s7 + $0xa0] sm:$0x3f] }
  0xfb   : > { %23664 = vmatmul.mubr.msk.f32.gmra.mrb[30].mxu0 %vm934_vm1, %v28620_v40  ;;  %22577 = vmatprep.mubr.msk.f32.mxu1 %vm934_vm1, %v28280_v63  ;;  %v28657_v40 = vld [vmem:[%s27441_s7 + $0x80] sm:$0xff]  ;;  %34935 = vst [vmem:[#allocation132_spill] sm:$0xff] %v28661_v9  ;;  %34936 = vst [vmem:[#allocation133_spill] sm:$0xff] %v28677_v16 }
  0xfc   : > { %23668 = vmatprep.mubr.msk.f32.mxu0 %vm934_vm1, %v28627_v48  ;;  %34934 = vst [vmem:[#allocation131_spill] sm:$0xff] %v28657_v40  ;;  %v2361_v63 = vrot.slane %v28657_v40, 4  ;;  %v2363_v40 = vrot.slane %v28680_v26, 4 }
  0xfe   : > { %22578 = vmatmul.mubr.msk.f32.gmra.mrb[6].mxu1 %vm934_vm1, %v28293_v37  ;;  %v28686_v37 = vsel %vm2334_vm5, %v2360_v28, %v2361_v63  ;;  %v28707_v28 = vsel %vm2334_vm5, %v2361_v63, %v2363_v40 }
  0xff   : > { %23669 = vmatmul.mubr.msk.f32.vlgmr.msra.gmra.mrb[0].mxu0 %vm934_vm1, %v28646_v10  ;;  %22580 = vmatprep.mubr.msk.f32.mxu1 %vm934_vm1, %v28299_v41  ;;  %34937 = vst [vmem:[#allocation134_spill] sm:$0xff] %v28686_v37  ;;  %v28693_v10 = vld [vmem:[%s27441_s7 + $0x98] sm:$0xff]  ;;  %34940 = vst [vmem:[#allocation137_spill] sm:$0xff] %v28707_v28 }
 0x100   : > { %23717 = vmatpush3.msk.msra.mxu0 %vm999_vm0, %v28304_v21  ;;  %23671 = vmatprep.mubr.msk.f32.mxu0 %vm934_vm1, %v28661_v9  ;;  %v28689_v21 = vld [vmem:[%s27441_s7 + $0x90] sm:$0xff]  ;;  %34939 = vst [vmem:[#allocation136_spill] sm:$0xff] %v28693_v10  ;;  %v2366_v60 = vrot.slane %v28693_v10, 4  ;;  %v2368_v10 = vrot.slane %v28710_v38, 4 }
 0x101   : > { %34938 = vst [vmem:[#allocation135_spill] sm:$0xff] %v28689_v21  ;;  %v2365_v41 = vrot.slane %v28689_v21, 4  ;;  %23766 = vmatprep.subr.msk.mxu0 %vm999_vm0, %v28666_v19 }
 0x102   : > { %22581 = vmatmul.mubr.msk.f32.gmra.mrb[8].mxu1 %vm934_vm1, %v28315_v20  ;;  %v28733_v63 = vsel %vm2334_vm5, %v2366_v60, %v2368_v10 }
 0x103   : > { %23672 = vmatmul.mubr.msk.f32.gmra.mrb[2].mxu0 %vm934_vm1, %v28677_v16  ;;  %22583 = vmatprep.mubr.msk.f32.mxu1 %vm934_vm1, %v28321_v35  ;;  %v28714_v20 = vsel %vm2334_vm5, %v2365_v41, %v2366_v60  ;;  %v28717_v16 = vld [vmem:[%s27441_s7 + $0xa8] sm:$0xff]  ;;  %v28721_v35 = vld [vmem:[%s27441_s7 + $0xb0] sm:$0xff]  ;;  %34943 = vst [vmem:[#allocation140_spill] sm:$0xff] %v28733_v63  ;;  %v28736_v41 = vld [vmem:[%s27441_s7 + $0xb8] sm:$0x3f] }
 0x104   : > { %23674 = vmatprep.mubr.msk.f32.mxu0 %vm934_vm1, %v28686_v37  ;;  %34941 = vst [vmem:[#allocation138_spill] sm:$0xff] %v28714_v20  ;;  %v2370_v21 = vrot.slane %v28717_v16, 4  ;;  %34942 = vst [vmem:[#allocation139_spill] sm:$0xff] %v28721_v35  ;;  %v2371_v37 = vrot.slane %v28721_v35, 4  ;;  %v2373_v40 = vrot.slane %v28736_v41, 4 }
 0x105   : > { %34944 = vst [vmem:[#allocation141_spill] sm:$0xff] %v28736_v41 }
 0x106   : > { %22584 = vmatmul.mubr.msk.f32.gmra.mrb[10].mxu1 %vm934_vm1, %v28336_v61  ;;  %v28740_v61 = vsel %vm2334_vm5, %v2370_v21, %v2371_v37  ;;  %v28759_v10 = vsel %vm2334_vm5, %v2371_v37, %v2373_v40  ;;  %v28762_v21 = vld [vmem:[%s27441_s7 + $0xd0] sm:$0x3f] }
 0x107   : > { %23675 = vmatmul.mubr.msk.f32.gmra.mrb[4].mxu0 %vm934_vm1, %v28707_v28  ;;  %22586 = vmatprep.mubr.msk.f32.mxu1 %vm934_vm1, %v28340_v1  ;;  %34945 = vst [vmem:[#allocation142_spill] sm:$0xff] %v28740_v61  ;;  %v28743_v28 = vld [vmem:[%s27441_s7 + $0xc0] sm:$0xff]  ;;  %v28747_v1 = vld [vmem:[%s27441_s7 + $0xc8] sm:$0xff]  ;;  %34948 = vst [vmem:[#allocation145_spill] sm:$0xff] %v28759_v10  ;;  %v2378_v60 = vrot.slane %v28762_v21, 4 }
 0x108   : > { %23677 = vmatprep.mubr.msk.f32.mxu0 %vm934_vm1, %v28714_v20  ;;  %34946 = vst [vmem:[#allocation143_spill] sm:$0xff] %v28743_v28  ;;  %v2375_v35 = vrot.slane %v28743_v28, 4  ;;  %34947 = vst [vmem:[#allocation144_spill] sm:$0xff] %v28747_v1  ;;  %v2376_v20 = vrot.slane %v28747_v1, 4 }
 0x109   : > { %34949 = vst [vmem:[#allocation146_spill] sm:$0xff] %v28762_v21 }
 0x10a   : > { %22587 = vmatmul.mubr.msk.f32.gmra.mrb[12].mxu1 %vm934_vm1, %v28353_v11  ;;  %v28766_v11 = vsel %vm2334_vm5, %v2375_v35, %v2376_v20  ;;  %v28785_v37 = vsel %vm2334_vm5, %v2376_v20, %v2378_v60  ;;  %v28788_v35 = vld [vmem:[%s27441_s7 + $0xe8] sm:$0x3f] }
 0x10b   : > { %23678 = vmatmul.mubr.msk.f32.gmra.mrb[6].mxu0 %vm934_vm1, %v28733_v63  ;;  %22589 = vmatprep.mubr.msk.f32.mxu1 %vm934_vm1, %v28357_v58  ;;  %34950 = vst [vmem:[#allocation147_spill] sm:$0xff] %v28766_v11  ;;  %v28769_v63 = vld [vmem:[%s27441_s7 + $0xd8] sm:$0xff]  ;;  %v28773_v58 = vld [vmem:[%s27441_s7 + $0xe0] sm:$0xff]  ;;  %34953 = vst [vmem:[#allocation150_spill] sm:$0xff] %v28785_v37  ;;  %v2383_v40 = vrot.slane %v28788_v35, 4 }
 0x10c   : > { %23680 = vmatprep.mubr.msk.f32.mxu0 %vm934_vm1, %v28740_v61  ;;  %34951 = vst [vmem:[#allocation148_spill] sm:$0xff] %v28769_v63  ;;  %v2380_v1 = vrot.slane %v28769_v63, 4  ;;  %34952 = vst [vmem:[#allocation149_spill] sm:$0xff] %v28773_v58  ;;  %v2381_v61 = vrot.slane %v28773_v58, 4 }
 0x10e   : > { %22590 = vmatmul.mubr.msk.f32.gmra.mrb[14].mxu1 %vm934_vm1, %v28370_v49  ;;  %v28792_v49 = vsel %vm2334_vm5, %v2380_v1, %v2381_v61  ;;  %v28811_v20 = vsel %vm2334_vm5, %v2381_v61, %v2383_v40  ;;  %v28814_v1 = vld [vmem:[%s27441_s7 + $0x100] sm:$0x3f] }
 0x10f   : > { %23681 = vmatmul.mubr.msk.f32.gmra.mrb[8].mxu0 %vm934_vm1, %v28759_v10  ;;  %22592 = vmatprep.mubr.msk.f32.mxu1 %vm934_vm1, %v28374_v3  ;;  %34954 = vst [vmem:[#allocation151_spill] sm:$0xff] %v28792_v49  ;;  %v28795_v10 = vld [vmem:[%s27441_s7 + $0xf0] sm:$0xff]  ;;  %v28799_v3 = vld [vmem:[%s27441_s7 + $0xf8] sm:$0xff]  ;;  %34957 = vst [vmem:[#allocation154_spill] sm:$0xff] %v28811_v20  ;;  %v2388_v60 = vrot.slane %v28814_v1, 4 }
 0x110   : > { %23683 = vmatprep.mubr.msk.f32.mxu0 %vm934_vm1, %v28766_v11  ;;  %34955 = vst [vmem:[#allocation152_spill] sm:$0xff] %v28795_v10  ;;  %v2385_v58 = vrot.slane %v28795_v10, 4  ;;  %34956 = vst [vmem:[#allocation153_spill] sm:$0xff] %v28799_v3  ;;  %v2386_v11 = vrot.slane %v28799_v3, 4  ;;  %v28825_v10 = vld [vmem:[%s27441_s7 + $0x110] sm:$0xff] }
 0x111   : > { %34959 = vst [vmem:[#allocation156_spill] sm:$0xff] %v28825_v10 }
 0x112   : > { %22593 = vmatmul.mubr.msk.f32.gmra.mrb[16].mxu1 %vm934_vm1, %v28387_v15  ;;  %v28818_v3 = vsel %vm2334_vm5, %v2385_v58, %v2386_v11  ;;  %v28821_v15 = vld [vmem:[%s27441_s7 + $0x108] sm:$0xff]  ;;  %v28837_v61 = vsel %vm2334_vm5, %v2386_v11, %v2388_v60  ;;  %v2393_v58 = vrot.slane %v34887_v59, 4  ;;  %v2398_v59 = vrot.slane %v34891_v4, 4 }
 0x113   : > { %23684 = vmatmul.mubr.msk.f32.gmra.mrb[10].mxu0 %vm934_vm1, %v28785_v37  ;;  %22595 = vmatprep.mubr.msk.f32.mxu1 %vm934_vm1, %v28391_v22  ;;  %34958 = vst [vmem:[#allocation155_spill] sm:$0xff] %v28818_v3  ;;  %v2390_v37 = vrot.slane %v28821_v15, 4  ;;  %v2391_v22 = vrot.slane %v28825_v10, 4  ;;  %34960 = vst [vmem:[#allocation157_spill] sm:$0xff] %v28837_v61  ;;  %v2395_v10 = vrot.slane %v27749_v45, 4  ;;  %v2403_v4 = vrot.slane %v34896_v23, 4 }
 0x114   : > { %23686 = vmatprep.mubr.msk.f32.mxu0 %vm934_vm1, %v28792_v49  ;;  %v2408_v23 = vrot.slane %v34901_v39, 4  ;;  %v2335_v39 = vrot.slane %v28493_v0, 4 }
 0x115   : > { %v28841_v40 = vsel %vm2334_vm5, %v2390_v37, %v2391_v22  ;;  %v28854_v11 = vsel %vm2334_vm5, %v2391_v22, %v2393_v58  ;;  %v2401_v37 = vrot.slane %v27778_v55, 4  ;;  %v2405_v55 = vrot.slane %v27801_v46, 4 }
 0x116   : > { %22596 = vmatmul.mubr.msk.f32.gmra.mrb[18].mxu1 %vm934_vm1, %v28404_v52  ;;  %34961 = vst [vmem:[#allocation158_spill] sm:$0xff] %v28841_v40  ;;  %v2396_v52 = vrot.slane %v27752_v36, 4  ;;  %34962 = vst [vmem:[#allocation159_spill] sm:$0xff] %v28854_v11  ;;  %v2400_v36 = vrot.slane %v27775_v27, 4  ;;  %v2410_v46 = vrot.slane %v27827_v13, 4  ;;  %v2413_v58 = vrot.slane %v34904_v24, 4 }
 0x117   : > { %23687 = vmatmul.mubr.msk.f32.gmra.mrb[12].mxu0 %vm934_vm1, %v28811_v20  ;;  %22598 = vmatprep.mubr.msk.f32.mxu1 %vm934_vm1, %v28408_v42  ;;  %v4637_v24 = vrot.slane %v34910_v8, 4  ;;  %v34975_v8 = vld [vmem:[#allocation115_spill] sm:$0xff] }
 0x118   : > { %23689 = vmatprep.mubr.msk.f32.mxu0 %vm934_vm1, %v28818_v3  ;;  %v28858_v45 = vsel %vm2334_vm5, %v2395_v10, %v2396_v52  ;;  %v28871_v22 = vsel %vm2334_vm5, %v2396_v52, %v2398_v59  ;;  %v28875_v27 = vsel %vm2334_vm5, %v2400_v36, %v2401_v37  ;;  %v2406_v10 = vrot.slane %v27804_v29, 4 }
 0x119   : > { %34963 = vst [vmem:[#allocation160_spill] sm:$0xff] %v28858_v45  ;;  %34964 = vst [vmem:[#allocation161_spill] sm:$0xff] %v28871_v22  ;;  %v28888_v52 = vsel %vm2334_vm5, %v2401_v37, %v2403_v4  ;;  %v2411_v29 = vrot.slane %v27830_v33, 4  ;;  %v2336_v59 = vrot.slane %v28500_v50, 4  ;;  %v4636_v36 = vrot.slane %v34909_v2, 4  ;;  %v34970_v37 = vld [vmem:[#allocation52_spill] sm:$0xff] }
 0x11a   : > { %22599 = vmatmul.mubr.msk.f32.gmra.mrb[20].mxu1 %vm934_vm1, %v28421_v30  ;;  %34965 = vst [vmem:[#allocation162_spill] sm:$0xff] %v28875_v27  ;;  %34966 = vst [vmem:[#allocation163_spill] sm:$0xff] %v28888_v52  ;;  %v28894_v60 = vsel %vm2334_vm5, %v2405_v55, %v2406_v10  ;;  %v28906_v13 = vsel %vm2334_vm5, %v2406_v10, %v2408_v23  ;;  %v34972_v55 = vld [vmem:[#allocation54_spill] sm:$0xff]  ;;  %v34973_v23 = vld [vmem:[#allocation57_spill] sm:$0xff]  ;;  %v2340_v2 = vrot.slane %v34975_v8, 4  ;;  %v2781_v30 = vrot.slane %v28743_v28, 5 }
 0x11b   : > { %23690 = vmatmul.mubr.msk.f32.gmra.mrb[14].mxu0 %vm934_vm1, %v28837_v61  ;;  %22601 = vmatprep.mubr.msk.f32.mxu1 %vm934_vm1, %v28425_v62  ;;  %34967 = vst [vmem:[#allocation164_spill] sm:$0xff] %v28894_v60  ;;  %34968 = vst [vmem:[#allocation165_spill] sm:$0xff] %v28906_v13  ;;  %v28909_v33 = vsel %vm2334_vm5, %v2410_v46, %v2411_v29  ;;  %v28920_v4 = vsel %vm2334_vm5, %v2411_v29, %v2413_v58  ;;  %v2338_v10 = vrot.slane %v34972_v55, 4 }
 0x11c   : > { %23692 = vmatprep.mubr.msk.f32.mxu0 %vm934_vm1, %v28841_v40  ;;  %34969 = vst [vmem:[#allocation166_spill] sm:$0xff] %v28909_v33  ;;  %34971 = vst [vmem:[#allocation167_spill] sm:$0xff] %v28920_v4  ;;  %v4639_v46 = vrot.slane %v34973_v23, 4  ;;  %v2337_v29 = vsel %vm2334_vm5, %v2335_v39, %v2336_v59  ;;  %v28934_v58 = vsel %vm2334_vm5, %v4636_v36, %v4637_v24  ;;  %v34978_v23 = vld [vmem:[#allocation53_spill] sm:$0xff]  ;;  %v6534_v36 = vrot.slane %v27902_v32, 4 }
 0x11d   : > { %34977 = vst [vmem:[#allocation57_spill] sm:$0xff] %v28934_v58 }
 0x11e   : > { %22602 = vmatmul.mubr.msk.f32.gmra.mrb[22].mxu1 %vm934_vm1, %v28438_v34 }
 0x11f   : > { %23693 = vmatmul.mubr.msk.f32.gmra.mrb[16].mxu0 %vm934_vm1, %v28854_v11  ;;  %22604 = vmatprep.mubr.msk.f32.mxu1 %vm934_vm1, %v28442_v5  ;;  %v28942_v5 = vsel %vm2334_vm5, %v4637_v24, %v4639_v46  ;;  %v34984_v46 = vld [vmem:[#allocation62_spill] sm:$0xff] }
 0x120   : > { %23695 = vmatprep.mubr.msk.f32.mxu0 %vm934_vm1, %v28858_v45  ;;  %34979 = vst [vmem:[#allocation115_spill] sm:$0xff] %v28942_v5  ;;  %v8426_v34 = vrot.slane %v34984_v46, 4  ;;  %v8429_v46 = vrot.slane %v27928_v47, 4 }
 0x122   : > { %22605 = vmatmul.mubr.msk.f32.gmra.mrb[24].mxu1 %vm934_vm1, %v28455_v31  ;;  %v6532_v31 = vrot.slane %v34917_v43, 4  ;;  %v2343_v43 = vrot.slane %v28550_v12, 4 }
 0x123   : > { %23696 = vmatmul.mubr.msk.f32.gmra.mrb[18].mxu0 %vm934_vm1, %v28871_v22  ;;  %22607 = vmatprep.mubr.msk.f32.mxu1 %vm934_vm1, %v28459_v7  ;;  %v6531_v7 = vrot.slane %v34844_v57, 4 }
 0x124   : > { %23698 = vmatprep.mubr.msk.f32.mxu0 %vm934_vm1, %v28875_v27 }
 0x125   : > { %v28952_v39 = vsel %vm2334_vm5, %v6531_v7, %v6532_v31  ;;  %v28965_v7 = vld [vmem:[%s34755_s1 + $0x18] sm:$0x7] }
 0x126   : > { %22608 = vmatmul.mubr.msk.f32.gmra.mrb[26].mxu1 %vm934_vm1, %v28472_v44  ;;  %v34976_v44 = vld [vmem:[#allocation116_spill] sm:$0xff]  ;;  %34981 = vst [vmem:[#allocation169_spill] sm:$0xff] %v28952_v39 }
 0x127   : > { %23699 = vmatmul.mubr.msk.f32.gmra.mrb[20].mxu0 %vm934_vm1, %v28888_v52  ;;  %22610 = vmatprep.mubr.msk.f32.mxu1 %vm934_vm1, %v28476_v6  ;;  %v34974_v6 = vld [vmem:[#allocation113_spill] sm:$0xff] }
 0x128   : > { %23701 = vmatprep.mubr.msk.f32.mxu0 %vm934_vm1, %v28894_v60 }
 0x12a   : > { %22611 = vmatmul.mubr.msk.f32.gmra.mrb[28].mxu1 %vm934_vm1, %v34970_v37  ;;  %v2341_v37 = vrot.slane %v34976_v44, 4 }
 0x12b   : > { %23702 = vmatmul.mubr.msk.f32.gmra.mrb[22].mxu0 %vm934_vm1, %v28906_v13  ;;  %22613 = vmatprep.mubr.msk.f32.mxu1 %vm934_vm1, %v34974_v6  ;;  %v2339_v6 = vsel %vm2334_vm5, %v2336_v59, %v2338_v10  ;;  %v34983_v10 = vld [vmem:[#allocation121_spill] sm:$0xff] }
 0x12c   : > { %23704 = vmatprep.mubr.msk.f32.mxu0 %vm934_vm1, %v28909_v33  ;;  %v28948_v57 = vsel %vm2334_vm5, %v2340_v2, %v2341_v37  ;;  %v2346_v24 = vrot.slane %v34983_v10, 4  ;;  %v28970_v32 = vsel %vm2334_vm5, %v2341_v37, %v2343_v43  ;;  %v28975_v2 = vsel %vm2334_vm5, %v6532_v31, %v6534_v36  ;;  %v34993_v36 = vld [vmem:[#allocation129_spill] sm:$0xff] }
 0x12d   : > { %34980 = vst [vmem:[#allocation168_spill] sm:$0xff] %v28948_v57  ;;  %34986 = vst [vmem:[#allocation62_spill] sm:$0xff] %v28970_v32  ;;  %v2757_v37 = vrot.slane %v28601_v51, 5  ;;  %v2759_v31 = vrot.slane %v28623_v25, 5  ;;  %v2761_v43 = vrot.slane %v28630_v17, 5 }
 0x12e   : > { %22614 = vmatmul.mubr.msk.f32.gmra.mrb[30].mxu1 %vm934_vm1, %v34978_v23  ;;  %v34982_v23 = vld [vmem:[#allocation120_spill] sm:$0xff] }
 0x12f   : > { %23705 = vmatmul.mubr.msk.f32.gmra.mrb[24].mxu0 %vm934_vm1, %v28920_v4  ;;  %22618 = vmatprep.mubr.msk.f32.mxu1 %vm934_vm1, %v2337_v29  ;;  %v2345_v59 = vrot.slane %v34982_v23, 4  ;;  %v34985_v29 = vld [vmem:[#allocation63_spill] sm:$0xff] }
 0x130   : > { %23707 = vmatprep.mubr.msk.f32.mxu0 %vm934_vm1, %v28934_v58  ;;  %v8427_v62 = vrot.slane %v34985_v29, 4  ;;  %34987 = vst [vmem:[#allocation63_spill] sm:$0xff] %v28975_v2  ;;  %v35006_v58 = vld [vmem:[#allocation139_spill] sm:$0xff] }
 0x131   : > { %v28980_v29 = vsel %vm2334_vm5, %v2345_v59, %v2346_v24  ;;  %v2762_v59 = vrot.slane %v34993_v36, 5 }
 0x132   : > { %22619 = vmatmul.mubr.msk.f32.vlgmr.msra.gmra.mrb[0].mxu1 %vm934_vm1, %v2339_v6  ;;  %v2348_v6 = vrot.slane %v28586_v56, 4  ;;  %34988 = vst [vmem:[#allocation170_spill] sm:$0xff] %v28980_v29 }
 0x133   : > { %23708 = vmatmul.mubr.msk.f32.gmra.mrb[26].mxu0 %vm934_vm1, %v28942_v5  ;;  %22621 = vmatprep.mubr.msk.f32.mxu1 %vm934_vm1, %v28948_v57  ;;  %v28983_v5 = vsel %vm2334_vm5, %v8426_v34, %v8427_v62  ;;  %v2756_v57 = vrot.slane %v28597_v18, 5  ;;  %v29003_v34 = vsel %vm2334_vm5, %v8427_v62, %v8429_v46  ;;  %v29020_v62 = vsel %vm999_vm0, %v2757_v37, %v2759_v31 }
 0x134   : > { %23710 = vmatprep.mubr.msk.f32.mxu0 %vm934_vm1, %v28952_v39  ;;  %34989 = vst [vmem:[#allocation171_spill] sm:$0xff] %v28983_v5  ;;  %22667 = vmatpush3.msk.msra.mxu1 %vm999_vm0, %v28573_v54  ;;  %v28998_v47 = vsel %vm2334_vm5, %v2346_v24, %v2348_v6  ;;  %34991 = vst [vmem:[#allocation173_spill] sm:$0xff] %v29003_v34  ;;  %v2766_v24 = vrot.slane %v28653_v53, 5  ;;  %v34995_v6 = vld [vmem:[#allocation131_spill] sm:$0xff]  ;;  %v2769_v31 = vrot.slane %v28680_v26, 5  ;;  %v2776_v39 = vrot.slane %v28717_v16, 5 }
 0x135   : > { %22716 = vmatprep.subr.msk.mxu1 %vm999_vm0, %v28965_v7  ;;  %34990 = vst [vmem:[#allocation172_spill] sm:$0xff] %v28998_v47  ;;  %v29007_v54 = vsel %vm999_vm0, %v2756_v57, %v2757_v37  ;;  %34994 = vst [vmem:[#allocation129_spill] sm:$0xff] %v29020_v62  ;;  %v2764_v57 = vrot.slane %v28649_v14, 5  ;;  %v2767_v46 = vrot.slane %v34995_v6, 5 }
 0x136   : > { %22622 = vmatmul.mubr.msk.f32.gmra.mrb[2].mxu1 %vm934_vm1, %v28970_v32  ;;  %34992 = vst [vmem:[#allocation174_spill] sm:$0xff] %v29007_v54 }
 0x137   : > { %23711 = vmatmul.mubr.msk.f32.gmra.mrb[28].mxu0 %vm934_vm1, %v28975_v2  ;;  %22624 = vmatprep.mubr.msk.f32.mxu1 %vm934_vm1, %v28980_v29  ;;  %v29042_v37 = vsel %vm999_vm0, %v2762_v59, %v2764_v57  ;;  %v35001_v29 = vld [vmem:[#allocation136_spill] sm:$0xff]  ;;  %v29063_v57 = vsel %vm999_vm0, %v2767_v46, %v2769_v31 }
 0x138   : > { %23713 = vmatprep.mubr.msk.f32.mxu0 %vm934_vm1, %v28983_v5  ;;  %34998 = vst [vmem:[#allocation175_spill] sm:$0xff] %v29042_v37  ;;  %v2772_v2 = vrot.slane %v35001_v29, 5 }
 0x13a   : > { %22625 = vmatmul.mubr.msk.f32.gmra.mrb[4].mxu1 %vm934_vm1, %v28998_v47  ;;  %v29026_v47 = vsel %vm999_vm0, %v2761_v43, %v2762_v59  ;;  %v29048_v43 = vsel %vm999_vm0, %v2766_v24, %v2767_v46  ;;  %v35003_v59 = vld [vmem:[#allocation134_spill] sm:$0xff]  ;;  %v2774_v24 = vrot.slane %v28710_v38, 5 }
 0x13b   : > { %23714 = vmatmul.mubr.msk.f32.gmra.mrb[30].mxu0 %vm934_vm1, %v29003_v34  ;;  %22627 = vmatprep.mubr.msk.f32.mxu1 %vm934_vm1, %v28627_v48  ;;  %34996 = vst [vmem:[#allocation131_spill] sm:$0xff] %v29026_v47  ;;  %v29031_v34 = vld [vmem:[%s34755_s1 + $0x70] sm:$0x7]  ;;  %v34997_v48 = vld [vmem:[#allocation130_spill] sm:$0xff]  ;;  %34999 = vst [vmem:[#allocation176_spill] sm:$0xff] %v29048_v43 }
 0x13c   : > { %23718 = vmatprep.mubr.msk.f32.mxu0 %vm934_vm1, %v29007_v54  ;;  %v29080_v46 = vsel %vm999_vm0, %v2772_v2, %v2774_v24 }
 0x13d   : > { %35009 = vst [vmem:[#allocation177_spill] sm:$0xff] %v29080_v46 }
 0x13e   : > { %22628 = vmatmul.mubr.msk.f32.gmra.mrb[6].mxu1 %vm934_vm1, %v34997_v48  ;;  %v35000_v48 = vld [vmem:[#allocation135_spill] sm:$0xff] }
 0x13f   : > { %23719 = vmatmul.mubr.msk.f32.vlgmr.msra.gmra.mrb[0].mxu0 %vm934_vm1, %v29020_v62  ;;  %22630 = vmatprep.mubr.msk.f32.mxu1 %vm934_vm1, %v28661_v9  ;;  %v2771_v5 = vrot.slane %v35000_v48, 5  ;;  %35004 = vst [vmem:[#allocation135_spill] sm:$0xff] %v29063_v57  ;;  %v35007_v9 = vld [vmem:[#allocation137_spill] sm:$0xff] }
 0x140   : > { %23767 = vmatpush3.msk.msra.mxu0 %vm999_vm0, %v28666_v19  ;;  %23721 = vmatprep.mubr.msk.f32.mxu0 %vm934_vm1, %v29026_v47  ;;  %v35002_v19 = vld [vmem:[#allocation133_spill] sm:$0xff] }
 0x141   : > { %23816 = vmatprep.subr.msk.mxu0 %vm999_vm0, %v29031_v34  ;;  %v29067_v32 = vsel %vm999_vm0, %v2771_v5, %v2772_v2  ;;  %v2779_v5 = vrot.slane %v28736_v41, 5  ;;  %v35017_v41 = vld [vmem:[#allocation145_spill] sm:$0xff] }
 0x142   : > { %22631 = vmatmul.mubr.msk.f32.gmra.mrb[8].mxu1 %vm934_vm1, %v35002_v19  ;;  %35005 = vst [vmem:[#allocation136_spill] sm:$0xff] %v29067_v32  ;;  %v2777_v19 = vrot.slane %v35006_v58, 5  ;;  %v35012_v58 = vld [vmem:[#allocation140_spill] sm:$0xff] }
 0x143   : > { %23722 = vmatmul.mubr.msk.f32.gmra.mrb[2].mxu0 %vm934_vm1, %v29042_v37  ;;  %22633 = vmatprep.mubr.msk.f32.mxu1 %vm934_vm1, %v35003_v59  ;;  %v35008_v59 = vld [vmem:[#allocation138_spill] sm:$0xff] }
 0x144   : > { %23724 = vmatprep.mubr.msk.f32.mxu0 %vm934_vm1, %v29048_v43  ;;  %v29084_v31 = vsel %vm999_vm0, %v2776_v39, %v2777_v19  ;;  %v29097_v2 = vsel %vm999_vm0, %v2777_v19, %v2779_v5  ;;  %v2784_v39 = vrot.slane %v28762_v21, 5 }
 0x145   : > { %35010 = vst [vmem:[#allocation178_spill] sm:$0xff] %v29084_v31  ;;  %35014 = vst [vmem:[#allocation179_spill] sm:$0xff] %v29097_v2 }
 0x146   : > { %22634 = vmatmul.mubr.msk.f32.gmra.mrb[10].mxu1 %vm934_vm1, %v35007_v9  ;;  %v35011_v9 = vld [vmem:[#allocation144_spill] sm:$0xff] }
 0x147   : > { %23725 = vmatmul.mubr.msk.f32.gmra.mrb[4].mxu0 %vm934_vm1, %v29063_v57  ;;  %22636 = vmatprep.mubr.msk.f32.mxu1 %vm934_vm1, %v35008_v59  ;;  %v2782_v42 = vrot.slane %v35011_v9, 5  ;;  %v35013_v59 = vld [vmem:[#allocation142_spill] sm:$0xff]  ;;  %v2786_v9 = vrot.slane %v28769_v63, 5 }
 0x148   : > { %23727 = vmatprep.mubr.msk.f32.mxu0 %vm934_vm1, %v29067_v32 }
 0x149   : > { %v29101_v24 = vsel %vm999_vm0, %v2781_v30, %v2782_v42  ;;  %v29114_v19 = vsel %vm999_vm0, %v2782_v42, %v2784_v39  ;;  %v2789_v30 = vrot.slane %v28788_v35, 5 }
 0x14a   : > { %22637 = vmatmul.mubr.msk.f32.gmra.mrb[12].mxu1 %vm934_vm1, %v35012_v58  ;;  %35015 = vst [vmem:[#allocation180_spill] sm:$0xff] %v29101_v24  ;;  %v35016_v58 = vld [vmem:[#allocation149_spill] sm:$0xff]  ;;  %35019 = vst [vmem:[#allocation181_spill] sm:$0xff] %v29114_v19 }
 0x14b   : > { %23728 = vmatmul.mubr.msk.f32.gmra.mrb[6].mxu0 %vm934_vm1, %v29080_v46  ;;  %22639 = vmatprep.mubr.msk.f32.mxu1 %vm934_vm1, %v35013_v59  ;;  %v2787_v28 = vrot.slane %v35016_v58, 5  ;;  %v35018_v59 = vld [vmem:[#allocation147_spill] sm:$0xff]  ;;  %v35021_v58 = vld [vmem:[#allocation152_spill] sm:$0xff] }
 0x14c   : > { %23730 = vmatprep.mubr.msk.f32.mxu0 %vm934_vm1, %v29084_v31  ;;  %v2791_v63 = vrot.slane %v35021_v58, 5 }
 0x14d   : > { %v29118_v5 = vsel %vm999_vm0, %v2786_v9, %v2787_v28  ;;  %v29131_v42 = vsel %vm999_vm0, %v2787_v28, %v2789_v30  ;;  %v2794_v9 = vrot.slane %v28814_v1, 5 }
 0x14e   : > { %22640 = vmatmul.mubr.msk.f32.gmra.mrb[14].mxu1 %vm934_vm1, %v35017_v41  ;;  %35020 = vst [vmem:[#allocation182_spill] sm:$0xff] %v29118_v5  ;;  %v35022_v41 = vld [vmem:[#allocation153_spill] sm:$0xff]  ;;  %35024 = vst [vmem:[#allocation152_spill] sm:$0xff] %v29131_v42 }
 0x14f   : > { %23731 = vmatmul.mubr.msk.f32.gmra.mrb[8].mxu0 %vm934_vm1, %v29097_v2  ;;  %22642 = vmatprep.mubr.msk.f32.mxu1 %vm934_vm1, %v35018_v59  ;;  %v2792_v21 = vrot.slane %v35022_v41, 5  ;;  %v35023_v2 = vld [vmem:[#allocation150_spill] sm:$0xff]  ;;  %v35026_v59 = vld [vmem:[#allocation156_spill] sm:$0xff] }
 0x150   : > { %23733 = vmatprep.mubr.msk.f32.mxu0 %vm934_vm1, %v29101_v24 }
 0x151   : > { %v29135_v39 = vsel %vm999_vm0, %v2791_v63, %v2792_v21  ;;  %v29148_v28 = vsel %vm999_vm0, %v2792_v21, %v2794_v9  ;;  %v29151_v63 = vld [vmem:[%s27441_s7 + $0x118] sm:$0x3f] }
 0x152   : > { %22643 = vmatmul.mubr.msk.f32.gmra.mrb[16].mxu1 %vm934_vm1, %v35023_v2  ;;  %35025 = vst [vmem:[#allocation153_spill] sm:$0xff] %v29135_v39  ;;  %v2796_v2 = vrot.slane %v28821_v15, 5  ;;  %35027 = vst [vmem:[#allocation156_spill] sm:$0xff] %v29148_v28  ;;  %v2799_v30 = vrot.slane %v29151_v63, 5 }
 0x153   : > { %23734 = vmatmul.mubr.msk.f32.gmra.mrb[10].mxu0 %vm934_vm1, %v29114_v19  ;;  %22645 = vmatprep.mubr.msk.f32.mxu1 %vm934_vm1, %v28792_v49  ;;  %v2797_v19 = vrot.slane %v35026_v59, 5  ;;  %v29158_v49 = vld [vmem:[%s27441_s7 + $0x120] sm:$0xff] }
 0x154   : > { %23736 = vmatprep.mubr.msk.f32.mxu0 %vm934_vm1, %v29118_v5 }
 0x155   : > { %v29174_v21 = vsel %vm999_vm0, %v2797_v19, %v2799_v30 }
 0x156   : > { %22646 = vmatmul.mubr.msk.f32.gmra.mrb[18].mxu1 %vm934_vm1, %v28811_v20  ;;  %v29155_v20 = vsel %vm999_vm0, %v2796_v2, %v2797_v19  ;;  %35030 = vst [vmem:[#allocation185_spill] sm:$0xff] %v29174_v21  ;;  %v29177_v2 = vld [vmem:[%s27441_s7 + $0x130] sm:$0x3f] }
 0x157   : > { %23737 = vmatmul.mubr.msk.f32.gmra.mrb[12].mxu0 %vm934_vm1, %v29131_v42  ;;  %22648 = vmatprep.mubr.msk.f32.mxu1 %vm934_vm1, %v28818_v3  ;;  %35028 = vst [vmem:[#allocation183_spill] sm:$0xff] %v29155_v20  ;;  %v2801_v42 = vrot.slane %v29158_v49, 5  ;;  %v29162_v3 = vld [vmem:[%s27441_s7 + $0x128] sm:$0xff]  ;;  %v2804_v9 = vrot.slane %v29177_v2, 5 }
 0x158   : > { %23739 = vmatprep.mubr.msk.f32.mxu0 %vm934_vm1, %v29135_v39  ;;  %35029 = vst [vmem:[#allocation184_spill] sm:$0xff] %v29162_v3  ;;  %v2802_v39 = vrot.slane %v29162_v3, 5 }
 0x15a   : > { %22649 = vmatmul.mubr.msk.f32.gmra.mrb[20].mxu1 %vm934_vm1, %v28837_v61  ;;  %v29181_v61 = vsel %vm999_vm0, %v2801_v42, %v2802_v39  ;;  %v29200_v19 = vsel %vm999_vm0, %v2802_v39, %v2804_v9  ;;  %v29203_v42 = vld [vmem:[%s27441_s7 + $0x148] sm:$0x3f]  ;;  %v29229_v39 = vld [vmem:[%s27441_s7 + $0x160] sm:$0x3f] }
 0x15b   : > { %23740 = vmatmul.mubr.msk.f32.gmra.mrb[14].mxu0 %vm934_vm1, %v29148_v28  ;;  %22651 = vmatprep.mubr.msk.f32.mxu1 %vm934_vm1, %v28841_v40  ;;  %35031 = vst [vmem:[#allocation186_spill] sm:$0xff] %v29181_v61  ;;  %v29184_v28 = vld [vmem:[%s27441_s7 + $0x138] sm:$0xff]  ;;  %v29188_v40 = vld [vmem:[%s27441_s7 + $0x140] sm:$0xff]  ;;  %35034 = vst [vmem:[#allocation189_spill] sm:$0xff] %v29200_v19  ;;  %v2809_v30 = vrot.slane %v29203_v42, 5  ;;  %v2814_v9 = vrot.slane %v29229_v39, 5 }
 0x15c   : > { %23742 = vmatprep.mubr.msk.f32.mxu0 %vm934_vm1, %v29155_v20  ;;  %35032 = vst [vmem:[#allocation187_spill] sm:$0xff] %v29184_v28  ;;  %v2806_v3 = vrot.slane %v29184_v28, 5  ;;  %35033 = vst [vmem:[#allocation188_spill] sm:$0xff] %v29188_v40  ;;  %v2807_v20 = vrot.slane %v29188_v40, 5 }
 0x15e   : > { %22652 = vmatmul.mubr.msk.f32.gmra.mrb[22].mxu1 %vm934_vm1, %v28854_v11  ;;  %v29207_v11 = vsel %vm999_vm0, %v2806_v3, %v2807_v20  ;;  %v29226_v3 = vsel %vm999_vm0, %v2807_v20, %v2809_v30  ;;  %v29248_v20 = vld [vmem:[%s27441_s7 + $0x178] sm:$0x3f] }
 0x15f   : > { %23743 = vmatmul.mubr.msk.f32.gmra.mrb[16].mxu0 %vm934_vm1, %v29174_v21  ;;  %22654 = vmatprep.mubr.msk.f32.mxu1 %vm934_vm1, %v28858_v45  ;;  %35035 = vst [vmem:[#allocation190_spill] sm:$0xff] %v29207_v11  ;;  %v29210_v21 = vld [vmem:[%s27441_s7 + $0x150] sm:$0xff]  ;;  %v29214_v45 = vld [vmem:[%s27441_s7 + $0x158] sm:$0xff]  ;;  %35038 = vst [vmem:[#allocation193_spill] sm:$0xff] %v29226_v3  ;;  %v2819_v30 = vrot.slane %v29248_v20, 5 }
 0x160   : > { %23745 = vmatprep.mubr.msk.f32.mxu0 %vm934_vm1, %v29181_v61  ;;  %35036 = vst [vmem:[#allocation191_spill] sm:$0xff] %v29210_v21  ;;  %v2811_v40 = vrot.slane %v29210_v21, 5  ;;  %35037 = vst [vmem:[#allocation192_spill] sm:$0xff] %v29214_v45  ;;  %v2812_v61 = vrot.slane %v29214_v45, 5  ;;  %v29233_v45 = vld [vmem:[%s27441_s7 + $0x168] sm:$0xff] }
 0x161   : > { %35039 = vst [vmem:[#allocation194_spill] sm:$0xff] %v29233_v45  ;;  %35042 = vst [vmem:[#allocation197_spill] sm:$0xff] %v29248_v20 }
 0x162   : > { %22655 = vmatmul.mubr.msk.f32.gmra.mrb[24].mxu1 %vm934_vm1, %v28871_v22  ;;  %v2816_v22 = vrot.slane %v29233_v45, 5  ;;  %v29241_v21 = vsel %vm999_vm0, %v2811_v40, %v2812_v61  ;;  %v29256_v40 = vsel %vm999_vm0, %v2812_v61, %v2814_v9  ;;  %v29264_v45 = vld [vmem:[%s27441_s7 + $0x180] sm:$0xff]  ;;  %v29280_v9 = vld [vmem:[%s27441_s7 + $0x190] sm:$0x3f] }
 0x163   : > { %23746 = vmatmul.mubr.msk.f32.gmra.mrb[18].mxu0 %vm934_vm1, %v29200_v19  ;;  %22657 = vmatprep.mubr.msk.f32.mxu1 %vm934_vm1, %v28875_v27  ;;  %v29237_v19 = vld [vmem:[%s27441_s7 + $0x170] sm:$0xff]  ;;  %35041 = vst [vmem:[#allocation196_spill] sm:$0xff] %v29241_v21  ;;  %35043 = vst [vmem:[#allocation198_spill] sm:$0xff] %v29256_v40  ;;  %v4907_v20 = vrot.slane %v29264_v45, 5 }
 0x164   : > { %23748 = vmatprep.mubr.msk.f32.mxu0 %vm934_vm1, %v29207_v11  ;;  %35040 = vst [vmem:[#allocation195_spill] sm:$0xff] %v29237_v19  ;;  %v2817_v27 = vrot.slane %v29237_v19, 5  ;;  %35045 = vst [vmem:[#allocation200_spill] sm:$0xff] %v29264_v45 }
 0x165   : > { %35048 = vst [vmem:[#allocation203_spill] sm:$0xff] %v29280_v9 }
 0x166   : > { %22658 = vmatmul.mubr.msk.f32.gmra.mrb[26].mxu1 %vm934_vm1, %v28888_v52  ;;  %v29259_v19 = vsel %vm999_vm0, %v2816_v22, %v2817_v27  ;;  %v2741_v52 = vrot.slane %v28493_v0, 5  ;;  %v29276_v61 = vsel %vm999_vm0, %v2817_v27, %v2819_v30  ;;  %v2744_v22 = vrot.slane %v34972_v55, 5  ;;  %v29294_v30 = vld [vmem:[%s27441_s7 + $0x1a0] sm:$0xff] }
 0x167   : > { %23749 = vmatmul.mubr.msk.f32.gmra.mrb[20].mxu0 %vm934_vm1, %v29226_v3  ;;  %22660 = vmatprep.mubr.msk.f32.mxu1 %vm934_vm1, %v28894_v60  ;;  %35044 = vst [vmem:[#allocation199_spill] sm:$0xff] %v29259_v19  ;;  %v2742_v3 = vrot.slane %v28500_v50, 5  ;;  %v29268_v60 = vld [vmem:[%s27441_s7 + $0x188] sm:$0xff]  ;;  %35047 = vst [vmem:[#allocation202_spill] sm:$0xff] %v29276_v61  ;;  %v4910_v50 = vrot.slane %v29280_v9, 5  ;;  %v6803_v55 = vrot.slane %v29294_v30, 5 }
 0x168   : > { %23751 = vmatprep.mubr.msk.f32.mxu0 %vm934_vm1, %v29241_v21  ;;  %35046 = vst [vmem:[#allocation201_spill] sm:$0xff] %v29268_v60  ;;  %v4908_v21 = vrot.slane %v29268_v60, 5  ;;  %v2747_v60 = vrot.slane %v34976_v44, 5  ;;  %35050 = vst [vmem:[#allocation205_spill] sm:$0xff] %v29294_v30  ;;  %v29320_v30 = vld [vmem:[%s27441_s7 + $0x1a8] sm:$0x3f] }
 0x169   : > { %v2743_v9 = vsel %vm999_vm0, %v2741_v52, %v2742_v3  ;;  %v2745_v44 = vsel %vm999_vm0, %v2742_v3, %v2744_v22  ;;  %v6805_v3 = vrot.slane %v29320_v30, 5  ;;  %v29326_v22 = vld [vmem:[%s27441_s7 + $0x1b0] sm:$0xff] }
 0x16a   : > { %22661 = vmatmul.mubr.msk.f32.gmra.mrb[28].mxu1 %vm934_vm1, %v28906_v13  ;;  %v2746_v13 = vrot.slane %v34975_v8, 5  ;;  %35055 = vst [vmem:[#allocation210_spill] sm:$0xff] %v29326_v22 }
 0x16b   : > { %23752 = vmatmul.mubr.msk.f32.gmra.mrb[22].mxu0 %vm934_vm1, %v29256_v40  ;;  %22663 = vmatprep.mubr.msk.f32.mxu1 %vm934_vm1, %v28909_v33  ;;  %v29290_v40 = vld [vmem:[%s27441_s7 + $0x198] sm:$0xff]  ;;  %v29299_v33 = vsel %vm999_vm0, %v4907_v20, %v4908_v21  ;;  %v2749_v20 = vrot.slane %v28550_v12, 5 }
 0x16c   : > { %23754 = vmatprep.mubr.msk.f32.mxu0 %vm934_vm1, %v29259_v19  ;;  %35049 = vst [vmem:[#allocation204_spill] sm:$0xff] %v29290_v40  ;;  %v6802_v27 = vrot.slane %v29290_v40, 5  ;;  %35051 = vst [vmem:[#allocation206_spill] sm:$0xff] %v29299_v33  ;;  %v29307_v40 = vsel %vm999_vm0, %v4908_v21, %v4910_v50  ;;  %v29313_v52 = vsel %vm999_vm0, %v2746_v13, %v2747_v60  ;;  %v2751_v50 = vrot.slane %v34982_v23, 5  ;;  %v29330_v13 = vld [vmem:[%s27441_s7 + $0x1b8] sm:$0xff] }
 0x16d   : > { %35052 = vst [vmem:[#allocation207_spill] sm:$0xff] %v29307_v40  ;;  %35053 = vst [vmem:[#allocation208_spill] sm:$0xff] %v29313_v52  ;;  %v2752_v21 = vrot.slane %v34983_v10, 5  ;;  %v29344_v10 = vsel %vm999_vm0, %v2747_v60, %v2749_v20  ;;  %v3163_v60 = vrot.slane %v28597_v18, 6  ;;  %v3164_v20 = vrot.slane %v28601_v51, 6 }
 0x16e   : > { %22664 = vmatmul.mubr.msk.f32.gmra.mrb[30].mxu1 %vm934_vm1, %v28920_v4  ;;  %v29317_v4 = vsel %vm999_vm0, %v6802_v27, %v6803_v55  ;;  %35056 = vst [vmem:[#allocation211_spill] sm:$0xff] %v29330_v13  ;;  %v29339_v27 = vld [vmem:[%s34755_s1 + $0x1c] sm:$0x7]  ;;  %35057 = vst [vmem:[#allocation212_spill] sm:$0xff] %v29344_v10 }
 0x16f   : > { %23755 = vmatmul.mubr.msk.f32.gmra.mrb[24].mxu0 %vm934_vm1, %v29276_v61  ;;  %22668 = vmatprep.mubr.msk.f32.mxu1 %vm934_vm1, %v2743_v9  ;;  %35054 = vst [vmem:[#allocation209_spill] sm:$0xff] %v29317_v4  ;;  %v8697_v9 = vrot.slane %v29326_v22, 5  ;;  %v29357_v23 = vsel %vm999_vm0, %v2751_v50, %v2752_v21  ;;  %v3169_v50 = vrot.slane %v34993_v36, 6 }
 0x170   : > { %23757 = vmatprep.mubr.msk.f32.mxu0 %vm934_vm1, %v29299_v33  ;;  %v8698_v33 = vrot.slane %v29330_v13, 5  ;;  %v29349_v13 = vsel %vm999_vm0, %v6803_v55, %v6805_v3  ;;  %35059 = vst [vmem:[#allocation214_spill] sm:$0xff] %v29357_v23  ;;  %v3166_v55 = vrot.slane %v28623_v25, 6  ;;  %v3168_v3 = vrot.slane %v28630_v17, 6 }
 0x171   : > { %35058 = vst [vmem:[#allocation213_spill] sm:$0xff] %v29349_v13 }
 0x172   : > { %22669 = vmatmul.mubr.msk.f32.vlgmr.msra.gmra.mrb[0].mxu1 %vm934_vm1, %v2745_v44  ;;  %v2754_v44 = vrot.slane %v28586_v56, 5  ;;  %v29397_v25 = vsel %vm3147_vm6, %v3164_v20, %v3166_v55  ;;  %v3178_v55 = vrot.slane %v35000_v48, 6 }
 0x173   : > { %23758 = vmatmul.mubr.msk.f32.gmra.mrb[26].mxu0 %vm934_vm1, %v29307_v40  ;;  %22671 = vmatprep.mubr.msk.f32.mxu1 %vm934_vm1, %v29313_v52  ;;  %v29353_v40 = vld [vmem:[%s27441_s7 + $0x1c0] sm:$0x3f]  ;;  %v29360_v52 = vsel %vm999_vm0, %v8697_v9, %v8698_v33  ;;  %35064 = vst [vmem:[#allocation219_spill] sm:$0xff] %v29397_v25  ;;  %v29403_v9 = vsel %vm3147_vm6, %v3168_v3, %v3169_v50  ;;  %v3179_v3 = vrot.slane %v35001_v29, 6 }
 0x174   : > { %23760 = vmatprep.mubr.msk.f32.mxu0 %vm934_vm1, %v29317_v4  ;;  %v8700_v22 = vrot.slane %v29353_v40, 5  ;;  %35060 = vst [vmem:[#allocation215_spill] sm:$0xff] %v29360_v52  ;;  %22717 = vmatpush3.msk.msra.mxu1 %vm999_vm0, %v28965_v7  ;;  %v29375_v18 = vsel %vm999_vm0, %v2752_v21, %v2754_v44  ;;  %v29384_v7 = vsel %vm3147_vm6, %v3163_v60, %v3164_v20  ;;  %v3173_v21 = vrot.slane %v28653_v53, 6  ;;  %v29408_v44 = vld [vmem:[%s34755_s1 + $0x74] sm:$0x7] }
 0x175   : > { %22766 = vmatprep.subr.msk.mxu1 %vm999_vm0, %v29339_v27  ;;  %35061 = vst [vmem:[#allocation216_spill] sm:$0xff] %v29375_v18  ;;  %35063 = vst [vmem:[#allocation218_spill] sm:$0xff] %v29384_v7  ;;  %v3176_v60 = vrot.slane %v28680_v26, 6 }
 0x176   : > { %22672 = vmatmul.mubr.msk.f32.gmra.mrb[2].mxu1 %vm934_vm1, %v29344_v10  ;;  %v29380_v51 = vsel %vm999_vm0, %v8698_v33, %v8700_v22  ;;  %v3171_v33 = vrot.slane %v28649_v14, 6  ;;  %v3174_v22 = vrot.slane %v34995_v6, 6  ;;  %35065 = vst [vmem:[#allocation220_spill] sm:$0xff] %v29403_v9  ;;  %v35080_v10 = vld [vmem:[#allocation149_spill] sm:$0xff] }
 0x177   : > { %23761 = vmatmul.mubr.msk.f32.gmra.mrb[28].mxu0 %vm934_vm1, %v29349_v13  ;;  %22674 = vmatprep.mubr.msk.f32.mxu1 %vm934_vm1, %v29357_v23  ;;  %35062 = vst [vmem:[#allocation217_spill] sm:$0xff] %v29380_v51  ;;  %v35079_v23 = vld [vmem:[#allocation148_spill] sm:$0xff]  ;;  %v3194_v4 = vrot.slane %v35080_v10, 6 }
 0x178   : > { %23763 = vmatprep.mubr.msk.f32.mxu0 %vm934_vm1, %v29360_v52  ;;  %v29419_v14 = vsel %vm3147_vm6, %v3169_v50, %v3171_v33  ;;  %v29425_v20 = vsel %vm3147_vm6, %v3173_v21, %v3174_v22  ;;  %v29440_v26 = vsel %vm3147_vm6, %v3174_v22, %v3176_v60  ;;  %v29444_v50 = vsel %vm3147_vm6, %v3178_v55, %v3179_v3  ;;  %v35070_v21 = vld [vmem:[#allocation139_spill] sm:$0xff]  ;;  %v35072_v22 = vld [vmem:[#allocation141_spill] sm:$0xff] }
 0x179   : > { %35066 = vst [vmem:[#allocation221_spill] sm:$0xff] %v29419_v14  ;;  %35067 = vst [vmem:[#allocation222_spill] sm:$0xff] %v29425_v20  ;;  %v3183_v33 = vrot.slane %v28717_v16, 6  ;;  %v3186_v60 = vrot.slane %v35072_v22, 6  ;;  %v3193_v13 = vrot.slane %v35079_v23, 6 }
 0x17a   : > { %22675 = vmatmul.mubr.msk.f32.gmra.mrb[4].mxu1 %vm934_vm1, %v29375_v18  ;;  %35068 = vst [vmem:[#allocation223_spill] sm:$0xff] %v29440_v26  ;;  %35069 = vst [vmem:[#allocation224_spill] sm:$0xff] %v29444_v50  ;;  %v35075_v18 = vld [vmem:[#allocation144_spill] sm:$0xff] }
 0x17b   : > { %23764 = vmatmul.mubr.msk.f32.gmra.mrb[30].mxu0 %vm934_vm1, %v29380_v51  ;;  %22677 = vmatprep.mubr.msk.f32.mxu1 %vm934_vm1, %v29007_v54  ;;  %v35074_v54 = vld [vmem:[#allocation143_spill] sm:$0xff]  ;;  %v3189_v52 = vrot.slane %v35075_v18, 6 }
 0x17c   : > { %23768 = vmatprep.mubr.msk.f32.mxu0 %vm934_vm1, %v29384_v7  ;;  %v3188_v51 = vrot.slane %v35074_v54, 6 }
 0x17e   : > { %22678 = vmatmul.mubr.msk.f32.gmra.mrb[6].mxu1 %vm934_vm1, %v29020_v62  ;;  %v3184_v62 = vrot.slane %v35070_v21, 6  ;;  %v29478_v22 = vsel %vm3147_vm6, %v3188_v51, %v3189_v52  ;;  %v3196_v51 = vrot.slane %v28788_v35, 6 }
 0x17f   : > { %23769 = vmatmul.mubr.msk.f32.vlgmr.msra.gmra.mrb[0].mxu0 %vm934_vm1, %v29397_v25  ;;  %22680 = vmatprep.mubr.msk.f32.mxu1 %vm934_vm1, %v29026_v47  ;;  %35078 = vst [vmem:[#allocation144_spill] sm:$0xff] %v29478_v22 }
 0x180   : > { %23817 = vmatpush3.msk.msra.mxu0 %vm999_vm0, %v29031_v34  ;;  %23771 = vmatprep.mubr.msk.f32.mxu0 %vm934_vm1, %v29403_v9  ;;  %v3181_v34 = vrot.slane %v28710_v38, 6  ;;  %v29461_v55 = vsel %vm3147_vm6, %v3183_v33, %v3184_v62  ;;  %v29508_v35 = vsel %vm3147_vm6, %v3194_v4, %v3196_v51 }
 0x181   : > { %23866 = vmatprep.subr.msk.mxu0 %vm999_vm0, %v29408_v44  ;;  %35073 = vst [vmem:[#allocation141_spill] sm:$0xff] %v29461_v55  ;;  %35085 = vst [vmem:[#allocation149_spill] sm:$0xff] %v29508_v35 }
 0x182   : > { %22681 = vmatmul.mubr.msk.f32.gmra.mrb[8].mxu1 %vm934_vm1, %v29042_v37  ;;  %v29457_v38 = vsel %vm3147_vm6, %v3179_v3, %v3181_v34  ;;  %v29474_v3 = vsel %vm3147_vm6, %v3184_v62, %v3186_v60  ;;  %v35077_v34 = vld [vmem:[#allocation146_spill] sm:$0xff]  ;;  %v29495_v60 = vsel %vm3147_vm6, %v3193_v13, %v3194_v4  ;;  %v3206_v4 = vrot.slane %v29151_v63, 6  ;;  %v35097_v37 = vld [vmem:[#allocation185_spill] sm:$0xff] }
 0x183   : > { %23772 = vmatmul.mubr.msk.f32.gmra.mrb[2].mxu0 %vm934_vm1, %v29419_v14  ;;  %22683 = vmatprep.mubr.msk.f32.mxu1 %vm934_vm1, %v29048_v43  ;;  %35071 = vst [vmem:[#allocation139_spill] sm:$0xff] %v29457_v38  ;;  %35076 = vst [vmem:[#allocation143_spill] sm:$0xff] %v29474_v3  ;;  %v3191_v33 = vrot.slane %v35077_v34, 6  ;;  %v3198_v34 = vrot.slane %v35021_v58, 6  ;;  %v3211_v63 = vrot.slane %v29177_v2, 6  ;;  %v3216_v2 = vrot.slane %v29203_v42, 6 }
 0x184   : > { %23774 = vmatprep.mubr.msk.f32.mxu0 %vm934_vm1, %v29425_v20  ;;  %35083 = vst [vmem:[#allocation148_spill] sm:$0xff] %v29495_v60  ;;  %v3221_v42 = vrot.slane %v29229_v39, 6  ;;  %v3148_v39 = vrot.slane %v28493_v0, 6  ;;  %v3153_v0 = vrot.slane %v34975_v8, 6 }
 0x185   : > { %v29491_v62 = vsel %vm3147_vm6, %v3189_v52, %v3191_v33  ;;  %v3201_v52 = vrot.slane %v28814_v1, 6  ;;  %v3203_v33 = vrot.slane %v28821_v15, 6 }
 0x186   : > { %22684 = vmatmul.mubr.msk.f32.gmra.mrb[10].mxu1 %vm934_vm1, %v29063_v57  ;;  %35082 = vst [vmem:[#allocation146_spill] sm:$0xff] %v29491_v62  ;;  %v35092_v57 = vld [vmem:[#allocation156_spill] sm:$0xff] }
 0x187   : > { %23775 = vmatmul.mubr.msk.f32.gmra.mrb[4].mxu0 %vm934_vm1, %v29440_v26  ;;  %22686 = vmatprep.mubr.msk.f32.mxu1 %vm934_vm1, %v29067_v32 }
 0x188   : > { %23777 = vmatprep.mubr.msk.f32.mxu0 %vm934_vm1, %v29444_v50 }
 0x18a   : > { %22687 = vmatmul.mubr.msk.f32.gmra.mrb[12].mxu1 %vm934_vm1, %v29080_v46  ;;  %v35081_v46 = vld [vmem:[#allocation179_spill] sm:$0xff] }
 0x18b   : > { %23778 = vmatmul.mubr.msk.f32.gmra.mrb[6].mxu0 %vm934_vm1, %v29457_v38  ;;  %22689 = vmatprep.mubr.msk.f32.mxu1 %vm934_vm1, %v29084_v31  ;;  %v35084_v31 = vld [vmem:[#allocation181_spill] sm:$0xff] }
 0x18c   : > { %23780 = vmatprep.mubr.msk.f32.mxu0 %vm934_vm1, %v29461_v55 }
 0x18e   : > { %22690 = vmatmul.mubr.msk.f32.gmra.mrb[14].mxu1 %vm934_vm1, %v35081_v46  ;;  %v3199_v46 = vrot.slane %v35022_v41, 6 }
 0x18f   : > { %23781 = vmatmul.mubr.msk.f32.gmra.mrb[8].mxu0 %vm934_vm1, %v29474_v3  ;;  %22692 = vmatprep.mubr.msk.f32.mxu1 %vm934_vm1, %v29101_v24  ;;  %v35087_v24 = vld [vmem:[#allocation152_spill] sm:$0xff] }
 0x190   : > { %23783 = vmatprep.mubr.msk.f32.mxu0 %vm934_vm1, %v29478_v22  ;;  %v29512_v13 = vsel %vm3147_vm6, %v3198_v34, %v3199_v46  ;;  %v29525_v1 = vsel %vm3147_vm6, %v3199_v46, %v3201_v52  ;;  %v3208_v34 = vrot.slane %v29158_v49, 6 }
 0x191   : > { %35086 = vst [vmem:[#allocation225_spill] sm:$0xff] %v29512_v13  ;;  %35089 = vst [vmem:[#allocation226_spill] sm:$0xff] %v29525_v1 }
 0x192   : > { %22693 = vmatmul.mubr.msk.f32.gmra.mrb[16].mxu1 %vm934_vm1, %v35084_v31  ;;  %v3204_v31 = vrot.slane %v35026_v59, 6 }
 0x193   : > { %23784 = vmatmul.mubr.msk.f32.gmra.mrb[10].mxu0 %vm934_vm1, %v29491_v62  ;;  %22695 = vmatprep.mubr.msk.f32.mxu1 %vm934_vm1, %v29118_v5  ;;  %v35088_v5 = vld [vmem:[#allocation153_spill] sm:$0xff] }
 0x194   : > { %23786 = vmatprep.mubr.msk.f32.mxu0 %vm934_vm1, %v29495_v60  ;;  %v29529_v51 = vsel %vm3147_vm6, %v3203_v33, %v3204_v31  ;;  %v29542_v46 = vsel %vm3147_vm6, %v3204_v31, %v3206_v4  ;;  %v3213_v33 = vrot.slane %v29184_v28, 6  ;;  %v35103_v28 = vld [vmem:[#allocation189_spill] sm:$0xff] }
 0x195   : > { %35090 = vst [vmem:[#allocation227_spill] sm:$0xff] %v29529_v51 }
 0x196   : > { %22696 = vmatmul.mubr.msk.f32.gmra.mrb[18].mxu1 %vm934_vm1, %v35087_v24  ;;  %v35091_v24 = vld [vmem:[#allocation184_spill] sm:$0xff] }
 0x197   : > { %23787 = vmatmul.mubr.msk.f32.gmra.mrb[12].mxu0 %vm934_vm1, %v29508_v35  ;;  %22698 = vmatprep.mubr.msk.f32.mxu1 %vm934_vm1, %v35088_v5  ;;  %v3209_v32 = vrot.slane %v35091_v24, 6  ;;  %v35093_v5 = vld [vmem:[#allocation183_spill] sm:$0xff]  ;;  %35094 = vst [vmem:[#allocation184_spill] sm:$0xff] %v29542_v46 }
 0x198   : > { %23789 = vmatprep.mubr.msk.f32.mxu0 %vm934_vm1, %v29512_v13 }
 0x199   : > { %v29546_v52 = vsel %vm3147_vm6, %v3208_v34, %v3209_v32  ;;  %v29559_v31 = vsel %vm3147_vm6, %v3209_v32, %v3211_v63  ;;  %v35101_v34 = vld [vmem:[#allocation191_spill] sm:$0xff]  ;;  %v35105_v63 = vld [vmem:[#allocation194_spill] sm:$0xff] }
 0x19a   : > { %22699 = vmatmul.mubr.msk.f32.gmra.mrb[20].mxu1 %vm934_vm1, %v35092_v57  ;;  %35095 = vst [vmem:[#allocation228_spill] sm:$0xff] %v29546_v52  ;;  %v35096_v57 = vld [vmem:[#allocation188_spill] sm:$0xff]  ;;  %35099 = vst [vmem:[#allocation229_spill] sm:$0xff] %v29559_v31  ;;  %v3218_v47 = vrot.slane %v35101_v34, 6  ;;  %v35108_v34 = vld [vmem:[#allocation193_spill] sm:$0xff] }
 0x19b   : > { %23790 = vmatmul.mubr.msk.f32.gmra.mrb[14].mxu0 %vm934_vm1, %v29525_v1  ;;  %22701 = vmatprep.mubr.msk.f32.mxu1 %vm934_vm1, %v35093_v5  ;;  %v3214_v43 = vrot.slane %v35096_v57, 6  ;;  %v35098_v5 = vld [vmem:[#allocation186_spill] sm:$0xff] }
 0x19c   : > { %23792 = vmatprep.mubr.msk.f32.mxu0 %vm934_vm1, %v29529_v51 }
 0x19d   : > { %v29563_v4 = vsel %vm3147_vm6, %v3213_v33, %v3214_v43  ;;  %v29576_v32 = vsel %vm3147_vm6, %v3214_v43, %v3216_v2  ;;  %v3223_v33 = vrot.slane %v35105_v63, 6  ;;  %v35113_v2 = vld [vmem:[#allocation114_spill] sm:$0xff]  ;;  %v35114_v63 = vld [vmem:[#allocation201_spill] sm:$0xff] }
 0x19e   : > { %22702 = vmatmul.mubr.msk.f32.gmra.mrb[22].mxu1 %vm934_vm1, %v35097_v37  ;;  %35100 = vst [vmem:[#allocation230_spill] sm:$0xff] %v29563_v4  ;;  %v35102_v37 = vld [vmem:[#allocation192_spill] sm:$0xff]  ;;  %35104 = vst [vmem:[#allocation231_spill] sm:$0xff] %v29576_v32 }
 0x19f   : > { %23793 = vmatmul.mubr.msk.f32.gmra.mrb[16].mxu0 %vm934_vm1, %v29542_v46  ;;  %22704 = vmatprep.mubr.msk.f32.mxu1 %vm934_vm1, %v35098_v5  ;;  %v3219_v57 = vrot.slane %v35102_v37, 6  ;;  %v35106_v5 = vld [vmem:[#allocation195_spill] sm:$0xff] }
 0x1a0   : > { %23795 = vmatprep.mubr.msk.f32.mxu0 %vm934_vm1, %v29546_v52  ;;  %v3224_v37 = vrot.slane %v35106_v5, 6  ;;  %v5178_v5 = vrot.slane %v29264_v45, 6 }
 0x1a1   : > { %v29594_v43 = vsel %vm3147_vm6, %v3219_v57, %v3221_v42  ;;  %v35117_v42 = vld [vmem:[#allocation54_spill] sm:$0xff] }
 0x1a2   : > { %22705 = vmatmul.mubr.msk.f32.gmra.mrb[24].mxu1 %vm934_vm1, %v35103_v28  ;;  %v29582_v28 = vsel %vm3147_vm6, %v3218_v47, %v3219_v57  ;;  %v29597_v47 = vsel %vm3147_vm6, %v3223_v33, %v3224_v37  ;;  %v3151_v33 = vrot.slane %v35117_v42, 6 }
 0x1a3   : > { %23796 = vmatmul.mubr.msk.f32.gmra.mrb[18].mxu0 %vm934_vm1, %v29559_v31  ;;  %22707 = vmatprep.mubr.msk.f32.mxu1 %vm934_vm1, %v29207_v11  ;;  %35107 = vst [vmem:[#allocation232_spill] sm:$0xff] %v29582_v28  ;;  %v35109_v11 = vld [vmem:[#allocation197_spill] sm:$0xff]  ;;  %v35110_v31 = vld [vmem:[#allocation196_spill] sm:$0xff]  ;;  %35112 = vst [vmem:[#allocation233_spill] sm:$0xff] %v29597_v47 }
 0x1a4   : > { %23798 = vmatprep.mubr.msk.f32.mxu0 %vm934_vm1, %v29563_v4  ;;  %v3226_v4 = vrot.slane %v35109_v11, 6  ;;  %35111 = vst [vmem:[#allocation197_spill] sm:$0xff] %v29594_v43  ;;  %v5179_v11 = vrot.slane %v35114_v63, 6  ;;  %v35120_v63 = vld [vmem:[#allocation204_spill] sm:$0xff] }
 0x1a5   : > { %v7073_v45 = vrot.slane %v35120_v63, 6 }
 0x1a6   : > { %22708 = vmatmul.mubr.msk.f32.gmra.mrb[26].mxu1 %vm934_vm1, %v35108_v34  ;;  %v3149_v34 = vrot.slane %v35113_v2, 6  ;;  %v29608_v57 = vsel %vm3147_vm6, %v3224_v37, %v3226_v4  ;;  %v35119_v2 = vld [vmem:[#allocation116_spill] sm:$0xff]  ;;  %v29622_v4 = vsel %vm3147_vm6, %v5178_v5, %v5179_v11  ;;  %v3156_v5 = vrot.slane %v28550_v12, 6  ;;  %v29653_v12 = vld [vmem:[%s34755_s1 + $0x20] sm:$0x7] }
 0x1a7   : > { %23799 = vmatmul.mubr.msk.f32.gmra.mrb[20].mxu0 %vm934_vm1, %v29576_v32  ;;  %22710 = vmatprep.mubr.msk.f32.mxu1 %vm934_vm1, %v35110_v31  ;;  %v35115_v32 = vld [vmem:[#allocation198_spill] sm:$0xff]  ;;  %35116 = vst [vmem:[#allocation114_spill] sm:$0xff] %v29608_v57  ;;  %v35118_v31 = vld [vmem:[#allocation203_spill] sm:$0xff]  ;;  %35122 = vst [vmem:[#allocation54_spill] sm:$0xff] %v29622_v4 }
 0x1a8   : > { %23801 = vmatprep.mubr.msk.f32.mxu0 %vm934_vm1, %v29582_v28  ;;  %v5181_v28 = vrot.slane %v35118_v31, 6  ;;  %v3150_v37 = vsel %vm3147_vm6, %v3148_v39, %v3149_v34  ;;  %v3152_v31 = vsel %vm3147_vm6, %v3149_v34, %v3151_v33  ;;  %v35127_v33 = vld [vmem:[#allocation121_spill] sm:$0xff] }
 0x1aa   : > { %22711 = vmatmul.mubr.msk.f32.gmra.mrb[28].mxu1 %vm934_vm1, %v35115_v32  ;;  %v3154_v32 = vrot.slane %v35119_v2, 6  ;;  %v29630_v8 = vsel %vm3147_vm6, %v5179_v11, %v5181_v28  ;;  %v7076_v2 = vrot.slane %v29320_v30, 6  ;;  %v3159_v28 = vrot.slane %v35127_v33, 6  ;;  %v35128_v11 = vld [vmem:[#allocation210_spill] sm:$0xff] }
 0x1ab   : > { %23802 = vmatmul.mubr.msk.f32.gmra.mrb[22].mxu0 %vm934_vm1, %v29594_v43  ;;  %22713 = vmatprep.mubr.msk.f32.mxu1 %vm934_vm1, %v29259_v19  ;;  %v35121_v43 = vld [vmem:[#allocation205_spill] sm:$0xff]  ;;  %35123 = vst [vmem:[#allocation203_spill] sm:$0xff] %v29630_v8  ;;  %v8968_v19 = vrot.slane %v35128_v11, 6  ;;  %v3161_v30 = vrot.slane %v28586_v56, 6 }
 0x1ac   : > { %23804 = vmatprep.mubr.msk.f32.mxu0 %vm934_vm1, %v29597_v47  ;;  %v7074_v52 = vrot.slane %v35121_v43, 6  ;;  %v29636_v39 = vsel %vm3147_vm6, %v3153_v0, %v3154_v32  ;;  %v8971_v0 = vrot.slane %v29353_v40, 6  ;;  %v29702_v40 = vld [vmem:[%s34755_s1 + $0x78] sm:$0x7] }
 0x1ad   : > { %35124 = vst [vmem:[#allocation116_spill] sm:$0xff] %v29636_v39  ;;  %v29684_v56 = vsel %vm3147_vm6, %v3159_v28, %v3161_v30  ;;  %v29863_v30 = vld [vmem:[%s27441_s7 + $0x78] sm:$0xff] }
 0x1ae   : > { %22714 = vmatmul.mubr.msk.f32.gmra.mrb[30].mxu1 %vm934_vm1, %v29276_v61  ;;  %v29640_v42 = vsel %vm3147_vm6, %v7073_v45, %v7074_v52  ;;  %v35126_v61 = vld [vmem:[#allocation120_spill] sm:$0xff]  ;;  %v29658_v45 = vsel %vm3147_vm6, %v3154_v32, %v3156_v5  ;;  %35134 = vst [vmem:[#allocation234_spill] sm:$0xff] %v29684_v56  ;;  %v29826_v32 = vld [vmem:[%s27441_s7 + $0x1c8] sm:$0xff] }
 0x1af   : > { %23805 = vmatmul.mubr.msk.f32.gmra.mrb[24].mxu0 %vm934_vm1, %v29608_v57  ;;  %22718 = vmatprep.mubr.msk.f32.mxu1 %vm934_vm1, %v3150_v37  ;;  %35125 = vst [vmem:[#allocation204_spill] sm:$0xff] %v29640_v42  ;;  %v3158_v34 = vrot.slane %v35126_v61, 6  ;;  %v35129_v37 = vld [vmem:[#allocation211_spill] sm:$0xff]  ;;  %35130 = vst [vmem:[#allocation120_spill] sm:$0xff] %v29658_v45  ;;  %v29663_v61 = vsel %vm3147_vm6, %v7074_v52, %v7076_v2  ;;  %v27100_v52 = vld [vmem:[%s27441_s7 + $0x30] sm:$0xff] }
 0x1b0   : > { %23807 = vmatprep.mubr.msk.f32.mxu0 %vm934_vm1, %v29622_v4  ;;  %v8969_v43 = vrot.slane %v35129_v37, 6  ;;  %35131 = vst [vmem:[#allocation121_spill] sm:$0xff] %v29663_v61  ;;  %v29841_v5 = vld [vmem:[%s27441_s7 + $0x1d0] sm:$0xff] }
 0x1b1   : > { %v27103_v2 = vld [vmem:[%s27441_s7 + $0x50] sm:$0xff] }
 0x1b2   : > { %22719 = vmatmul.mubr.msk.f32.vlgmr.msra.gmra.mrb[0].mxu1 %vm934_vm1, %v3152_v31  ;;  %v29668_v31 = vsel %vm3147_vm6, %v3158_v34, %v3159_v28  ;;  %v29671_v33 = vsel %vm3147_vm6, %v8968_v19, %v8969_v43  ;;  %v29689_v19 = vsel %vm3147_vm6, %v8969_v43, %v8971_v0  ;;  %v27102_v43 = vld [vmem:[%s27441_s7 + $0x48] sm:$0xff]  ;;  %v27104_v34 = vld [vmem:[%s27441_s7 + $0x60] sm:$0xff]  ;;  %v35151_v28 = vld [vmem:[#allocation21_spill] sm:$0xff] }
 0x1b3   : > { %23808 = vmatmul.mubr.msk.f32.gmra.mrb[26].mxu0 %vm934_vm1, %v29630_v8  ;;  %22721 = vmatprep.mubr.msk.f32.mxu1 %vm934_vm1, %v29636_v39  ;;  %35132 = vst [vmem:[#allocation210_spill] sm:$0xff] %v29668_v31  ;;  %35133 = vst [vmem:[#allocation211_spill] sm:$0xff] %v29671_v33  ;;  %v35154_v0 = vld [vmem:[#allocation24_spill] sm:$0xff]  ;;  %v35194_v39 = vld [vmem:[#allocation66_spill] sm:$0xff] }
 0x1b4   : > { %23810 = vmatprep.mubr.msk.f32.mxu0 %vm934_vm1, %v29640_v42  ;;  %22767 = vmatpush3.msk.msra.mxu1 %vm999_vm0, %v29339_v27  ;;  %35135 = vst [vmem:[#allocation235_spill] sm:$0xff] %v29689_v19  ;;  %v27098_v27 = vld [vmem:[%s27441_s7 + $0x18] sm:$0xff]  ;;  %v35193_v42 = vld [vmem:[#allocation15_spill] sm:$0xff] }
 0x1b5   : > { %22816 = vmatprep.subr.msk.mxu1 %vm999_vm0, %v29653_v12 }
 0x1b6   : > { %22722 = vmatmul.mubr.msk.f32.gmra.mrb[2].mxu1 %vm934_vm1, %v29658_v45  ;;  %v9509_v45 = vrot.slane %v29841_v5, 1 }
 0x1b7   : > { %23811 = vmatmul.mubr.msk.f32.gmra.mrb[28].mxu0 %vm934_vm1, %v29663_v61  ;;  %22724 = vmatprep.mubr.msk.f32.mxu1 %vm934_vm1, %v29668_v31  ;;  %v35183_v31 = vld [vmem:[#allocation48_spill] sm:$0xff]  ;;  %v35192_v61 = vld [vmem:[#allocation65_spill] sm:$0xff] }
 0x1b8   : > { %23813 = vmatprep.mubr.msk.f32.mxu0 %vm934_vm1, %v29671_v33  ;;  %v35180_v33 = vld [vmem:[#allocation44_spill] sm:$0xff] }
 0x1ba   : > { %22725 = vmatmul.mubr.msk.f32.gmra.mrb[4].mxu1 %vm934_vm1, %v29684_v56  ;;  %v35178_v56 = vld [vmem:[#allocation42_spill] sm:$0xff] }
 0x1bb   : > { %23814 = vmatmul.mubr.msk.f32.gmra.mrb[30].mxu0 %vm934_vm1, %v29689_v19  ;;  %22727 = vmatprep.mubr.msk.f32.mxu1 %vm934_vm1, %v29384_v7  ;;  %v35174_v7 = vld [vmem:[#allocation39_spill] sm:$0xff]  ;;  %v35176_v19 = vld [vmem:[#allocation41_spill] sm:$0xff] }
 0x1bc   : > { %23818 = vmatprep.mubr.msk.f32.mxu0 %vm934_vm1, %v28630_v17  ;;  %v35139_v17 = vld [vmem:[#allocation188_spill] sm:$0xff] }
 0x1be   : > { %22728 = vmatmul.mubr.msk.f32.gmra.mrb[6].mxu1 %vm934_vm1, %v29397_v25  ;;  %v35172_v25 = vld [vmem:[#allocation38_spill] sm:$0xff] }
 0x1bf   : > { %23819 = vmatmul.mubr.msk.f32.vlgmr.msra.gmra.mrb[0].mxu0 %vm934_vm1, %v34993_v36  ;;  %22730 = vmatprep.mubr.msk.f32.mxu1 %vm934_vm1, %v29403_v9  ;;  %v35147_v36 = vld [vmem:[#allocation195_spill] sm:$0xff] }
 0x1c0   : > { %23867 = vmatpush3.msk.msra.mxu0 %vm999_vm0, %v29408_v44  ;;  %23821 = vmatprep.mubr.msk.f32.mxu0 %vm934_vm1, %v28653_v53  ;;  %v35138_v53 = vld [vmem:[#allocation229_spill] sm:$0xff] }
 0x1c1   : > { %23916 = vmatprep.subr.msk.mxu0 %vm999_vm0, %v29702_v40  ;;  %v35150_v44 = vld [vmem:[#allocation205_spill] sm:$0xff] }
 0x1c2   : > { %22731 = vmatmul.mubr.msk.f32.gmra.mrb[8].mxu1 %vm934_vm1, %v29419_v14 }
 0x1c3   : > { %23822 = vmatmul.mubr.msk.f32.gmra.mrb[2].mxu0 %vm934_vm1, %v34995_v6  ;;  %22733 = vmatprep.mubr.msk.f32.mxu1 %vm934_vm1, %v29425_v20  ;;  %v35148_v6 = vld [vmem:[#allocation200_spill] sm:$0xff] }
 0x1c4   : > { %23824 = vmatprep.mubr.msk.f32.mxu0 %vm934_vm1, %v35000_v48  ;;  %v35136_v48 = vld [vmem:[#allocation228_spill] sm:$0xff] }
 0x1c6   : > { %22734 = vmatmul.mubr.msk.f32.gmra.mrb[10].mxu1 %vm934_vm1, %v29440_v26 }
 0x1c7   : > { %23825 = vmatmul.mubr.msk.f32.gmra.mrb[4].mxu0 %vm934_vm1, %v35001_v29  ;;  %22736 = vmatprep.mubr.msk.f32.mxu1 %vm934_vm1, %v29444_v50  ;;  %v35145_v29 = vld [vmem:[#allocation194_spill] sm:$0xff] }
 0x1c8   : > { %23827 = vmatprep.mubr.msk.f32.mxu0 %vm934_vm1, %v28717_v16  ;;  %v35140_v16 = vld [vmem:[#allocation230_spill] sm:$0xff] }
 0x1ca   : > { %22737 = vmatmul.mubr.msk.f32.gmra.mrb[12].mxu1 %vm934_vm1, %v29457_v38 }
 0x1cb   : > { %23828 = vmatmul.mubr.msk.f32.gmra.mrb[6].mxu0 %vm934_vm1, %v35070_v21  ;;  %22739 = vmatprep.mubr.msk.f32.mxu1 %vm934_vm1, %v29461_v55  ;;  %v29819_v21 = vld [vmem:[%s34755_s1 + $0x24] sm:$0x7] }
 0x1cc   : > { %23830 = vmatprep.mubr.msk.f32.mxu0 %vm934_vm1, %v35074_v54  ;;  %v35146_v54 = vld [vmem:[#allocation197_spill] sm:$0xff] }
 0x1ce   : > { %22740 = vmatmul.mubr.msk.f32.gmra.mrb[14].mxu1 %vm934_vm1, %v29474_v3 }
 0x1cf   : > { %23831 = vmatmul.mubr.msk.f32.gmra.mrb[8].mxu0 %vm934_vm1, %v35075_v18  ;;  %22742 = vmatprep.mubr.msk.f32.mxu1 %vm934_vm1, %v29478_v22  ;;  %v27099_v18 = vld [vmem:[%s27441_s7 + $0x20] sm:$0xff] }
 0x1d0   : > { %23833 = vmatprep.mubr.msk.f32.mxu0 %vm934_vm1, %v35079_v23  ;;  %v35143_v23 = vld [vmem:[#allocation192_spill] sm:$0xff] }
 0x1d2   : > { %22743 = vmatmul.mubr.msk.f32.gmra.mrb[16].mxu1 %vm934_vm1, %v29491_v62 }
 0x1d3   : > { %23834 = vmatmul.mubr.msk.f32.gmra.mrb[10].mxu0 %vm934_vm1, %v35080_v10  ;;  %22745 = vmatprep.mubr.msk.f32.mxu1 %vm934_vm1, %v29495_v60  ;;  %v35144_v10 = vld [vmem:[#allocation232_spill] sm:$0xff] }
 0x1d4   : > { %23836 = vmatprep.mubr.msk.f32.mxu0 %vm934_vm1, %v35021_v58  ;;  %v35142_v58 = vld [vmem:[#allocation231_spill] sm:$0xff] }
 0x1d6   : > { %22746 = vmatmul.mubr.msk.f32.gmra.mrb[18].mxu1 %vm934_vm1, %v29508_v35 }
 0x1d7   : > { %23837 = vmatmul.mubr.msk.f32.gmra.mrb[12].mxu0 %vm934_vm1, %v35022_v41  ;;  %22748 = vmatprep.mubr.msk.f32.mxu1 %vm934_vm1, %v29512_v13  ;;  %v35141_v41 = vld [vmem:[#allocation191_spill] sm:$0xff] }
 0x1d8   : > { %23839 = vmatprep.mubr.msk.f32.mxu0 %vm934_vm1, %v28821_v15  ;;  %v35137_v15 = vld [vmem:[#allocation187_spill] sm:$0xff] }
 0x1d9   : > { %35153 = vst [vmem:[#allocation187_spill] sm:$0xff] %v29863_v30 }
 0x1da   : > { %22749 = vmatmul.mubr.msk.f32.gmra.mrb[20].mxu1 %vm934_vm1, %v29525_v1 }
 0x1db   : > { %23840 = vmatmul.mubr.msk.f32.gmra.mrb[14].mxu0 %vm934_vm1, %v35026_v59  ;;  %22751 = vmatprep.mubr.msk.f32.mxu1 %vm934_vm1, %v29529_v51  ;;  %v35149_v59 = vld [vmem:[#allocation201_spill] sm:$0xff] }
 0x1dc   : > { %23842 = vmatprep.mubr.msk.f32.mxu0 %vm934_vm1, %v29158_v49 }
 0x1de   : > { %22752 = vmatmul.mubr.msk.f32.gmra.mrb[22].mxu1 %vm934_vm1, %v29542_v46 }
 0x1df   : > { %23843 = vmatmul.mubr.msk.f32.gmra.mrb[16].mxu0 %vm934_vm1, %v35091_v24  ;;  %22754 = vmatprep.mubr.msk.f32.mxu1 %vm934_vm1, %v35136_v48 }
 0x1e0   : > { %23845 = vmatprep.mubr.msk.f32.mxu0 %vm934_vm1, %v35137_v15 }
 0x1e2   : > { %22755 = vmatmul.mubr.msk.f32.gmra.mrb[24].mxu1 %vm934_vm1, %v35138_v53 }
 0x1e3   : > { %23846 = vmatmul.mubr.msk.f32.gmra.mrb[18].mxu0 %vm934_vm1, %v35139_v17  ;;  %22757 = vmatprep.mubr.msk.f32.mxu1 %vm934_vm1, %v35140_v16 }
 0x1e4   : > { %23848 = vmatprep.mubr.msk.f32.mxu0 %vm934_vm1, %v35141_v41 }
 0x1e6   : > { %22758 = vmatmul.mubr.msk.f32.gmra.mrb[26].mxu1 %vm934_vm1, %v35142_v58 }
 0x1e7   : > { %23849 = vmatmul.mubr.msk.f32.gmra.mrb[20].mxu0 %vm934_vm1, %v35143_v23  ;;  %22760 = vmatprep.mubr.msk.f32.mxu1 %vm934_vm1, %v35144_v10 }
 0x1e8   : > { %23851 = vmatprep.mubr.msk.f32.mxu0 %vm934_vm1, %v35145_v29 }
 0x1ea   : > { %22761 = vmatmul.mubr.msk.f32.gmra.mrb[28].mxu1 %vm934_vm1, %v35146_v54 }
 0x1eb   : > { %23852 = vmatmul.mubr.msk.f32.gmra.mrb[22].mxu0 %vm934_vm1, %v35147_v36  ;;  %22763 = vmatprep.mubr.msk.f32.mxu1 %vm934_vm1, %v29597_v47 }
 0x1ec   : > { %23854 = vmatprep.mubr.msk.f32.mxu0 %vm934_vm1, %v35148_v6 }
 0x1ee   : > { %22764 = vmatmul.mubr.msk.f32.gmra.mrb[30].mxu1 %vm934_vm1, %v29608_v57 }
 0x1ef   : > { %23855 = vmatmul.mubr.msk.f32.gmra.mrb[24].mxu0 %vm934_vm1, %v35149_v59  ;;  %22768 = vmatprep.mubr.msk.f32.mxu1 %vm934_vm1, %v27098_v27  ;;  %v29872_v27 = vld [vmem:[%s27441_s7 + $0x80] sm:$0xff] }
 0x1f0   : > { %23857 = vmatprep.mubr.msk.f32.mxu0 %vm934_vm1, %v35120_v63  ;;  %v27101_v63 = vld [vmem:[%s27441_s7 + $0x38] sm:$0xff]  ;;  %35155 = vst [vmem:[#allocation188_spill] sm:$0xff] %v29872_v27 }
 0x1f2   : > { %22769 = vmatmul.mubr.msk.f32.vlgmr.msra.gmra.mrb[0].mxu1 %vm934_vm1, %v27099_v18  ;;  %v35156_v18 = vld [vmem:[#allocation26_spill] sm:$0xff] }
 0x1f3   : > { %23858 = vmatmul.mubr.msk.f32.gmra.mrb[26].mxu0 %vm934_vm1, %v35150_v44  ;;  %22771 = vmatprep.mubr.msk.f32.mxu1 %vm934_vm1, %v27100_v52  ;;  %v35158_v44 = vld [vmem:[#allocation27_spill] sm:$0xff]  ;;  %v29886_v52 = vld [vmem:[%s27441_s7 + $0x98] sm:$0xff] }
 0x1f4   : > { %23860 = vmatprep.mubr.msk.f32.mxu0 %vm934_vm1, %v35128_v11  ;;  %22817 = vmatpush3.msk.msra.mxu1 %vm999_vm0, %v29653_v12  ;;  %v29854_v11 = vld [vmem:[%s34755_s1 + $0x7c] sm:$0x7]  ;;  %v35152_v12 = vld [vmem:[#allocation23_spill] sm:$0xff]  ;;  %35159 = vst [vmem:[#allocation192_spill] sm:$0xff] %v29886_v52 }
 0x1f5   : > { %22866 = vmatprep.subr.msk.mxu1 %vm999_vm0, %v29819_v21 }
 0x1f6   : > { %22772 = vmatmul.mubr.msk.f32.gmra.mrb[2].mxu1 %vm934_vm1, %v27101_v63  ;;  %v35160_v63 = vld [vmem:[#allocation29_spill] sm:$0xff] }
 0x1f7   : > { %23861 = vmatmul.mubr.msk.f32.gmra.mrb[28].mxu0 %vm934_vm1, %v35129_v37  ;;  %22774 = vmatprep.mubr.msk.f32.mxu1 %vm934_vm1, %v27102_v43  ;;  %v27105_v37 = vld [vmem:[%s27441_s7 + $0x68] sm:$0xff] }
 0x1f8   : > { %23863 = vmatprep.mubr.msk.f32.mxu0 %vm934_vm1, %v29826_v32  ;;  %v29893_v43 = vld [vmem:[%s27441_s7 + $0xa8] sm:$0xff] }
 0x1f9   : > { %35161 = vst [vmem:[#allocation194_spill] sm:$0xff] %v29893_v43 }
 0x1fa   : > { %22775 = vmatmul.mubr.msk.f32.gmra.mrb[4].mxu1 %vm934_vm1, %v27103_v2  ;;  %v35162_v2 = vld [vmem:[#allocation30_spill] sm:$0xff] }
 0x1fb   : > { %23864 = vmatmul.mubr.msk.f32.gmra.mrb[30].mxu0 %vm934_vm1, %v29841_v5  ;;  %22777 = vmatprep.mubr.msk.f32.mxu1 %vm934_vm1, %v27104_v34  ;;  %v29900_v34 = vld [vmem:[%s27441_s7 + $0xb0] sm:$0xff] }
 0x1fc   : > { %23868 = vmatprep.mubr.msk.f32.mxu0 %vm934_vm1, %v35151_v28  ;;  %35163 = vst [vmem:[#allocation195_spill] sm:$0xff] %v29900_v34 }
 0x1fe   : > { %22778 = vmatmul.mubr.msk.f32.gmra.mrb[6].mxu1 %vm934_vm1, %v27105_v37  ;;  %v35164_v37 = vld [vmem:[#allocation32_spill] sm:$0xff] }
 0x1ff   : > { %23869 = vmatmul.mubr.msk.f32.vlgmr.msra.gmra.mrb[0].mxu0 %vm934_vm1, %v35152_v12  ;;  %22780 = vmatprep.mubr.msk.f32.mxu1 %vm934_vm1, %v29863_v30  ;;  %v35170_v30 = vld [vmem:[#allocation36_spill] sm:$0xff] }
 0x200   : > { %23917 = vmatpush3.msk.msra.mxu0 %vm999_vm0, %v29702_v40  ;;  %23871 = vmatprep.mubr.msk.f32.mxu0 %vm934_vm1, %v35154_v0  ;;  %v29879_v40 = vld [vmem:[%s27441_s7 + $0x90] sm:$0xff] }
 0x201   : > { %23966 = vmatprep.subr.msk.mxu0 %vm999_vm0, %v29854_v11  ;;  %35157 = vst [vmem:[#allocation191_spill] sm:$0xff] %v29879_v40 }
 0x202   : > { %22781 = vmatmul.mubr.msk.f32.gmra.mrb[8].mxu1 %vm934_vm1, %v29872_v27  ;;  %v35168_v27 = vld [vmem:[#allocation35_spill] sm:$0xff] }
 0x203   : > { %23872 = vmatmul.mubr.msk.f32.gmra.mrb[2].mxu0 %vm934_vm1, %v35156_v18  ;;  %22783 = vmatprep.mubr.msk.f32.mxu1 %vm934_vm1, %v29879_v40  ;;  %v35166_v40 = vld [vmem:[#allocation33_spill] sm:$0xff] }
 0x204   : > { %23874 = vmatprep.mubr.msk.f32.mxu0 %vm934_vm1, %v35158_v44 }
 0x206   : > { %22784 = vmatmul.mubr.msk.f32.gmra.mrb[10].mxu1 %vm934_vm1, %v29886_v52  ;;  %v29907_v52 = vld [vmem:[%s27441_s7 + $0xc0] sm:$0xff] }
 0x207   : > { %23875 = vmatmul.mubr.msk.f32.gmra.mrb[4].mxu0 %vm934_vm1, %v35160_v63  ;;  %22786 = vmatprep.mubr.msk.f32.mxu1 %vm934_vm1, %v29893_v43  ;;  %35165 = vst [vmem:[#allocation200_spill] sm:$0xff] %v29907_v52  ;;  %v29914_v43 = vld [vmem:[%s27441_s7 + $0xc8] sm:$0xff] }
 0x208   : > { %23877 = vmatprep.mubr.msk.f32.mxu0 %vm934_vm1, %v35162_v2  ;;  %35167 = vst [vmem:[#allocation201_spill] sm:$0xff] %v29914_v43 }
 0x20a   : > { %22787 = vmatmul.mubr.msk.f32.gmra.mrb[12].mxu1 %vm934_vm1, %v29900_v34  ;;  %v29921_v34 = vld [vmem:[%s27441_s7 + $0xd8] sm:$0xff] }
 0x20b   : > { %23878 = vmatmul.mubr.msk.f32.gmra.mrb[6].mxu0 %vm934_vm1, %v35164_v37  ;;  %22789 = vmatprep.mubr.msk.f32.mxu1 %vm934_vm1, %v29907_v52  ;;  %35169 = vst [vmem:[#allocation205_spill] sm:$0xff] %v29921_v34  ;;  %v29928_v52 = vld [vmem:[%s27441_s7 + $0xe0] sm:$0xff] }
 0x20c   : > { %23880 = vmatprep.mubr.msk.f32.mxu0 %vm934_vm1, %v35166_v40  ;;  %35171 = vst [vmem:[#allocation236_spill] sm:$0xff] %v29928_v52 }
 0x20e   : > { %22790 = vmatmul.mubr.msk.f32.gmra.mrb[14].mxu1 %vm934_vm1, %v29914_v43  ;;  %v29935_v43 = vld [vmem:[%s27441_s7 + $0xf0] sm:$0xff] }
 0x20f   : > { %23881 = vmatmul.mubr.msk.f32.gmra.mrb[8].mxu0 %vm934_vm1, %v35168_v27  ;;  %22792 = vmatprep.mubr.msk.f32.mxu1 %vm934_vm1, %v29921_v34  ;;  %35173 = vst [vmem:[#allocation237_spill] sm:$0xff] %v29935_v43  ;;  %v29942_v34 = vld [vmem:[%s27441_s7 + $0xf8] sm:$0xff] }
 0x210   : > { %23883 = vmatprep.mubr.msk.f32.mxu0 %vm934_vm1, %v35170_v30  ;;  %35175 = vst [vmem:[#allocation238_spill] sm:$0xff] %v29942_v34 }
 0x212   : > { %22793 = vmatmul.mubr.msk.f32.gmra.mrb[16].mxu1 %vm934_vm1, %v29928_v52  ;;  %v29949_v52 = vld [vmem:[%s27441_s7 + $0x108] sm:$0xff] }
 0x213   : > { %23884 = vmatmul.mubr.msk.f32.gmra.mrb[10].mxu0 %vm934_vm1, %v35172_v25  ;;  %22795 = vmatprep.mubr.msk.f32.mxu1 %vm934_vm1, %v29935_v43  ;;  %35177 = vst [vmem:[#allocation239_spill] sm:$0xff] %v29949_v52  ;;  %v29956_v43 = vld [vmem:[%s27441_s7 + $0x110] sm:$0xff] }
 0x214   : > { %23886 = vmatprep.mubr.msk.f32.mxu0 %vm934_vm1, %v35174_v7  ;;  %35179 = vst [vmem:[#allocation240_spill] sm:$0xff] %v29956_v43 }
 0x216   : > { %22796 = vmatmul.mubr.msk.f32.gmra.mrb[18].mxu1 %vm934_vm1, %v29942_v34  ;;  %v35181_v34 = vld [vmem:[#allocation45_spill] sm:$0xff] }
 0x217   : > { %23887 = vmatmul.mubr.msk.f32.gmra.mrb[12].mxu0 %vm934_vm1, %v35176_v19  ;;  %22798 = vmatprep.mubr.msk.f32.mxu1 %vm934_vm1, %v29949_v52  ;;  %v35182_v52 = vld [vmem:[#allocation47_spill] sm:$0xff] }
 0x218   : > { %23889 = vmatprep.mubr.msk.f32.mxu0 %vm934_vm1, %v35178_v56 }
 0x21a   : > { %22799 = vmatmul.mubr.msk.f32.gmra.mrb[20].mxu1 %vm934_vm1, %v29956_v43  ;;  %v35184_v43 = vld [vmem:[#allocation50_spill] sm:$0xff] }
 0x21b   : > { %23890 = vmatmul.mubr.msk.f32.gmra.mrb[14].mxu0 %vm934_vm1, %v35180_v33  ;;  %22801 = vmatprep.mubr.msk.f32.mxu1 %vm934_vm1, %v29158_v49  ;;  %v35185_v49 = vld [vmem:[#allocation51_spill] sm:$0xff] }
 0x21c   : > { %23892 = vmatprep.mubr.msk.f32.mxu0 %vm934_vm1, %v35181_v34 }
 0x21e   : > { %22802 = vmatmul.mubr.msk.f32.gmra.mrb[22].mxu1 %vm934_vm1, %v35091_v24  ;;  %v35186_v24 = vld [vmem:[#allocation55_spill] sm:$0xff] }
 0x21f   : > { %23893 = vmatmul.mubr.msk.f32.gmra.mrb[16].mxu0 %vm934_vm1, %v35182_v52  ;;  %22804 = vmatprep.mubr.msk.f32.mxu1 %vm934_vm1, %v35137_v15  ;;  %v35187_v15 = vld [vmem:[#allocation56_spill] sm:$0xff] }
 0x220   : > { %23895 = vmatprep.mubr.msk.f32.mxu0 %vm934_vm1, %v35183_v31 }
 0x222   : > { %22805 = vmatmul.mubr.msk.f32.gmra.mrb[24].mxu1 %vm934_vm1, %v35139_v17  ;;  %v35188_v17 = vld [vmem:[#allocation60_spill] sm:$0xff] }
 0x223   : > { %23896 = vmatmul.mubr.msk.f32.gmra.mrb[18].mxu0 %vm934_vm1, %v35184_v43  ;;  %22807 = vmatprep.mubr.msk.f32.mxu1 %vm934_vm1, %v35141_v41  ;;  %v35189_v41 = vld [vmem:[#allocation61_spill] sm:$0xff] }
 0x224   : > { %23898 = vmatprep.mubr.msk.f32.mxu0 %vm934_vm1, %v35185_v49 }
 0x226   : > { %22808 = vmatmul.mubr.msk.f32.gmra.mrb[26].mxu1 %vm934_vm1, %v35143_v23  ;;  %v35190_v23 = vld [vmem:[#allocation64_spill] sm:$0xff] }
 0x227   : > { %23899 = vmatmul.mubr.msk.f32.gmra.mrb[20].mxu0 %vm934_vm1, %v35186_v24  ;;  %22810 = vmatprep.mubr.msk.f32.mxu1 %vm934_vm1, %v35145_v29  ;;  %v35191_v29 = vld [vmem:[#allocation14_spill] sm:$0xff] }
 0x228   : > { %23901 = vmatprep.mubr.msk.f32.mxu0 %vm934_vm1, %v35187_v15 }
 0x22a   : > { %22811 = vmatmul.mubr.msk.f32.gmra.mrb[28].mxu1 %vm934_vm1, %v35147_v36  ;;  %v9508_v36 = vrot.slane %v29826_v32, 1 }
 0x22b   : > { %23902 = vmatmul.mubr.msk.f32.gmra.mrb[22].mxu0 %vm934_vm1, %v35188_v17  ;;  %22813 = vmatprep.mubr.msk.f32.mxu1 %vm934_vm1, %v35148_v6  ;;  %v30009_v6 = vld [vmem:[%s27441_s7 + $0x1d8] sm:$0x3f] }
 0x22c   : > { %23904 = vmatprep.mubr.msk.f32.mxu0 %vm934_vm1, %v35189_v41  ;;  %v9511_v8 = vrot.slane %v30009_v6, 1  ;;  %v30026_v4 = vsel %vm851_vm2, %v9508_v36, %v9509_v45 }
 0x22d   : > { %35197 = vst [vmem:[#allocation14_spill] sm:$0xff] %v30026_v4 }
 0x22e   : > { %22814 = vmatmul.mubr.msk.f32.gmra.mrb[30].mxu1 %vm934_vm1, %v35149_v59  ;;  %v30018_v59 = vld [vmem:[%s34755_s1 + $0x28] sm:$0x7]  ;;  %v30041_v36 = vsel %vm851_vm2, %v9509_v45, %v9511_v8  ;;  %v35204_v8 = vld [vmem:[#allocation72_spill] sm:$0xff]  ;;  %v35205_v45 = vld [vmem:[#allocation73_spill] sm:$0xff] }
 0x22f   : > { %23905 = vmatmul.mubr.msk.f32.gmra.mrb[24].mxu0 %vm934_vm1, %v35190_v23  ;;  %22818 = vmatprep.mubr.msk.f32.mxu1 %vm934_vm1, %v35191_v29  ;;  %v35195_v29 = vld [vmem:[#allocation16_spill] sm:$0xff]  ;;  %35201 = vst [vmem:[#allocation15_spill] sm:$0xff] %v30041_v36 }
 0x230   : > { %23907 = vmatprep.mubr.msk.f32.mxu0 %vm934_vm1, %v35192_v61  ;;  %v35196_v61 = vld [vmem:[#allocation67_spill] sm:$0xff] }
 0x232   : > { %22819 = vmatmul.mubr.msk.f32.vlgmr.msra.gmra.mrb[0].mxu1 %vm934_vm1, %v35193_v42  ;;  %v35198_v42 = vld [vmem:[#allocation17_spill] sm:$0xff] }
 0x233   : > { %23908 = vmatmul.mubr.msk.f32.gmra.mrb[26].mxu0 %vm934_vm1, %v35194_v39  ;;  %22821 = vmatprep.mubr.msk.f32.mxu1 %vm934_vm1, %v35195_v29  ;;  %v35199_v39 = vld [vmem:[#allocation68_spill] sm:$0xff]  ;;  %v35200_v29 = vld [vmem:[#allocation18_spill] sm:$0xff] }
 0x234   : > { %23910 = vmatprep.mubr.msk.f32.mxu0 %vm934_vm1, %v35196_v61  ;;  %22867 = vmatpush3.msk.msra.mxu1 %vm999_vm0, %v29819_v21  ;;  %v35202_v61 = vld [vmem:[#allocation20_spill] sm:$0xff]  ;;  %v35203_v21 = vld [vmem:[#allocation71_spill] sm:$0xff] }
 0x235   : > { %22916 = vmatprep.subr.msk.mxu1 %vm999_vm0, %v30018_v59 }
 0x236   : > { %22822 = vmatmul.mubr.msk.f32.gmra.mrb[2].mxu1 %vm934_vm1, %v35198_v42  ;;  %v35213_v42 = vld [vmem:[#allocation81_spill] sm:$0xff] }
 0x237   : > { %23911 = vmatmul.mubr.msk.f32.gmra.mrb[28].mxu0 %vm934_vm1, %v35199_v39  ;;  %22824 = vmatprep.mubr.msk.f32.mxu1 %vm934_vm1, %v35200_v29  ;;  %v30054_v29 = vld [vmem:[%s34755_s1 + $0x80] sm:$0x7]  ;;  %v35212_v39 = vld [vmem:[#allocation80_spill] sm:$0xff] }
 0x238   : > { %23913 = vmatprep.mubr.msk.f32.mxu0 %vm934_vm1, %v30026_v4  ;;  %v35211_v4 = vld [vmem:[#allocation79_spill] sm:$0xff] }
 0x23a   : > { %22825 = vmatmul.mubr.msk.f32.gmra.mrb[4].mxu1 %vm934_vm1, %v35202_v61  ;;  %v35210_v61 = vld [vmem:[#allocation78_spill] sm:$0xff] }
 0x23b   : > { %23914 = vmatmul.mubr.msk.f32.gmra.mrb[30].mxu0 %vm934_vm1, %v30041_v36  ;;  %22827 = vmatprep.mubr.msk.f32.mxu1 %vm934_vm1, %v35151_v28  ;;  %v35206_v28 = vld [vmem:[#allocation74_spill] sm:$0xff]  ;;  %v35209_v36 = vld [vmem:[#allocation77_spill] sm:$0xff] }
 0x23c   : > { %23918 = vmatprep.mubr.msk.f32.mxu0 %vm934_vm1, %v35203_v21 }
 0x23e   : > { %22828 = vmatmul.mubr.msk.f32.gmra.mrb[6].mxu1 %vm934_vm1, %v35152_v12  ;;  %v35207_v12 = vld [vmem:[#allocation75_spill] sm:$0xff] }
 0x23f   : > { %23919 = vmatmul.mubr.msk.f32.vlgmr.msra.gmra.mrb[0].mxu0 %vm934_vm1, %v35204_v8  ;;  %22830 = vmatprep.mubr.msk.f32.mxu1 %vm934_vm1, %v35154_v0 }
 0x240   : > { %23967 = vmatpush3.msk.msra.mxu0 %vm999_vm0, %v29854_v11  ;;  %23921 = vmatprep.mubr.msk.f32.mxu0 %vm934_vm1, %v35205_v45  ;;  %v35208_v11 = vld [vmem:[#allocation76_spill] sm:$0xff] }
 0x241   : > { %24016 = vmatprep.subr.msk.mxu0 %vm999_vm0, %v30054_v29 }
 0x242   : > { %22831 = vmatmul.mubr.msk.f32.gmra.mrb[8].mxu1 %vm934_vm1, %v35156_v18  ;;  %v35233_v18 = vld [vmem:[#allocation13_spill] sm:$0xff] }
 0x243   : > { %23922 = vmatmul.mubr.msk.f32.gmra.mrb[2].mxu0 %vm934_vm1, %v35206_v28  ;;  %22833 = vmatprep.mubr.msk.f32.mxu1 %vm934_vm1, %v35158_v44  ;;  %v35232_v44 = vld [vmem:[#allocation97_spill] sm:$0xff] }
 0x244   : > { %23924 = vmatprep.mubr.msk.f32.mxu0 %vm934_vm1, %v35207_v12 }
 0x246   : > { %22834 = vmatmul.mubr.msk.f32.gmra.mrb[10].mxu1 %vm934_vm1, %v35160_v63  ;;  %v9780_v63 = vrot.slane %v29841_v5, 2 }
 0x247   : > { %23925 = vmatmul.mubr.msk.f32.gmra.mrb[4].mxu0 %vm934_vm1, %v35208_v11  ;;  %22836 = vmatprep.mubr.msk.f32.mxu1 %vm934_vm1, %v35162_v2  ;;  %v35230_v2 = vld [vmem:[#allocation12_spill] sm:$0xff] }
 0x248   : > { %23927 = vmatprep.mubr.msk.f32.mxu0 %vm934_vm1, %v35209_v36 }
 0x24a   : > { %22837 = vmatmul.mubr.msk.f32.gmra.mrb[12].mxu1 %vm934_vm1, %v35164_v37  ;;  %v35214_v37 = vld [vmem:[#allocation82_spill] sm:$0xff] }
 0x24b   : > { %23928 = vmatmul.mubr.msk.f32.gmra.mrb[6].mxu0 %vm934_vm1, %v35210_v61  ;;  %22839 = vmatprep.mubr.msk.f32.mxu1 %vm934_vm1, %v35166_v40  ;;  %v35215_v40 = vld [vmem:[#allocation83_spill] sm:$0xff] }
 0x24c   : > { %23930 = vmatprep.mubr.msk.f32.mxu0 %vm934_vm1, %v35211_v4 }
 0x24e   : > { %22840 = vmatmul.mubr.msk.f32.gmra.mrb[14].mxu1 %vm934_vm1, %v35168_v27  ;;  %v35216_v27 = vld [vmem:[#allocation84_spill] sm:$0xff] }
 0x24f   : > { %23931 = vmatmul.mubr.msk.f32.gmra.mrb[8].mxu0 %vm934_vm1, %v35212_v39  ;;  %22842 = vmatprep.mubr.msk.f32.mxu1 %vm934_vm1, %v35170_v30  ;;  %v35217_v30 = vld [vmem:[#allocation85_spill] sm:$0xff] }
 0x250   : > { %23933 = vmatprep.mubr.msk.f32.mxu0 %vm934_vm1, %v35213_v42 }
 0x252   : > { %22843 = vmatmul.mubr.msk.f32.gmra.mrb[16].mxu1 %vm934_vm1, %v35172_v25  ;;  %v35218_v25 = vld [vmem:[#allocation86_spill] sm:$0xff] }
 0x253   : > { %23934 = vmatmul.mubr.msk.f32.gmra.mrb[10].mxu0 %vm934_vm1, %v35214_v37  ;;  %22845 = vmatprep.mubr.msk.f32.mxu1 %vm934_vm1, %v35174_v7  ;;  %v35219_v7 = vld [vmem:[#allocation87_spill] sm:$0xff] }
 0x254   : > { %23936 = vmatprep.mubr.msk.f32.mxu0 %vm934_vm1, %v35215_v40 }
 0x256   : > { %22846 = vmatmul.mubr.msk.f32.gmra.mrb[18].mxu1 %vm934_vm1, %v35176_v19  ;;  %v35220_v19 = vld [vmem:[#allocation88_spill] sm:$0xff] }
 0x257   : > { %23937 = vmatmul.mubr.msk.f32.gmra.mrb[12].mxu0 %vm934_vm1, %v35216_v27  ;;  %22848 = vmatprep.mubr.msk.f32.mxu1 %vm934_vm1, %v35178_v56  ;;  %v35221_v56 = vld [vmem:[#allocation89_spill] sm:$0xff] }
 0x258   : > { %23939 = vmatprep.mubr.msk.f32.mxu0 %vm934_vm1, %v35217_v30 }
 0x25a   : > { %22849 = vmatmul.mubr.msk.f32.gmra.mrb[20].mxu1 %vm934_vm1, %v35180_v33  ;;  %v35222_v33 = vld [vmem:[#allocation90_spill] sm:$0xff] }
 0x25b   : > { %23940 = vmatmul.mubr.msk.f32.gmra.mrb[14].mxu0 %vm934_vm1, %v35218_v25  ;;  %22851 = vmatprep.mubr.msk.f32.mxu1 %vm934_vm1, %v35181_v34  ;;  %v35223_v34 = vld [vmem:[#allocation91_spill] sm:$0xff] }
 0x25c   : > { %23942 = vmatprep.mubr.msk.f32.mxu0 %vm934_vm1, %v35219_v7 }
 0x25e   : > { %22852 = vmatmul.mubr.msk.f32.gmra.mrb[22].mxu1 %vm934_vm1, %v35182_v52  ;;  %v35224_v52 = vld [vmem:[#allocation92_spill] sm:$0xff] }
 0x25f   : > { %23943 = vmatmul.mubr.msk.f32.gmra.mrb[16].mxu0 %vm934_vm1, %v35220_v19  ;;  %22854 = vmatprep.mubr.msk.f32.mxu1 %vm934_vm1, %v35183_v31  ;;  %v35225_v31 = vld [vmem:[#allocation93_spill] sm:$0xff] }
 0x260   : > { %23945 = vmatprep.mubr.msk.f32.mxu0 %vm934_vm1, %v35221_v56 }
 0x262   : > { %22855 = vmatmul.mubr.msk.f32.gmra.mrb[24].mxu1 %vm934_vm1, %v35184_v43  ;;  %v35226_v43 = vld [vmem:[#allocation11_spill] sm:$0xff] }
 0x263   : > { %23946 = vmatmul.mubr.msk.f32.gmra.mrb[18].mxu0 %vm934_vm1, %v35222_v33  ;;  %22857 = vmatprep.mubr.msk.f32.mxu1 %vm934_vm1, %v35185_v49  ;;  %v35227_v49 = vld [vmem:[#allocation94_spill] sm:$0xff] }
 0x264   : > { %23948 = vmatprep.mubr.msk.f32.mxu0 %vm934_vm1, %v35223_v34 }
 0x266   : > { %22858 = vmatmul.mubr.msk.f32.gmra.mrb[26].mxu1 %vm934_vm1, %v35186_v24  ;;  %v35228_v24 = vld [vmem:[#allocation58_spill] sm:$0xff] }
 0x267   : > { %23949 = vmatmul.mubr.msk.f32.gmra.mrb[20].mxu0 %vm934_vm1, %v35224_v52  ;;  %22860 = vmatprep.mubr.msk.f32.mxu1 %vm934_vm1, %v35187_v15  ;;  %v35229_v15 = vld [vmem:[#allocation95_spill] sm:$0xff] }
 0x268   : > { %23951 = vmatprep.mubr.msk.f32.mxu0 %vm934_vm1, %v35225_v31 }
 0x26a   : > { %22861 = vmatmul.mubr.msk.f32.gmra.mrb[28].mxu1 %vm934_vm1, %v35188_v17  ;;  %v9779_v17 = vrot.slane %v29826_v32, 2 }
 0x26b   : > { %23952 = vmatmul.mubr.msk.f32.gmra.mrb[22].mxu0 %vm934_vm1, %v35226_v43  ;;  %22863 = vmatprep.mubr.msk.f32.mxu1 %vm934_vm1, %v35189_v41  ;;  %v35231_v41 = vld [vmem:[#allocation96_spill] sm:$0xff] }
 0x26c   : > { %23954 = vmatprep.mubr.msk.f32.mxu0 %vm934_vm1, %v35227_v49  ;;  %v30181_v0 = vsel %vm1520_vm3, %v9779_v17, %v9780_v63 }
 0x26d   : > { %35235 = vst [vmem:[#allocation95_spill] sm:$0xff] %v30181_v0 }
 0x26e   : > { %22864 = vmatmul.mubr.msk.f32.gmra.mrb[30].mxu1 %vm934_vm1, %v35190_v23  ;;  %v30173_v23 = vld [vmem:[%s34755_s1 + $0x2c] sm:$0x7] }
 0x26f   : > { %23955 = vmatmul.mubr.msk.f32.gmra.mrb[24].mxu0 %vm934_vm1, %v35228_v24  ;;  %22868 = vmatprep.mubr.msk.f32.mxu1 %vm934_vm1, %v35229_v15  ;;  %v35234_v15 = vld [vmem:[#allocation98_spill] sm:$0xff] }
 0x270   : > { %23957 = vmatprep.mubr.msk.f32.mxu0 %vm934_vm1, %v35230_v2  ;;  %v9782_v2 = vrot.slane %v30009_v6, 2 }
 0x272   : > { %22869 = vmatmul.mubr.msk.f32.vlgmr.msra.gmra.mrb[0].mxu1 %vm934_vm1, %v35231_v41  ;;  %v35236_v41 = vld [vmem:[#allocation99_spill] sm:$0xff]  ;;  %v30196_v17 = vsel %vm1520_vm3, %v9780_v63, %v9782_v2  ;;  %v35243_v2 = vld [vmem:[#allocation22_spill] sm:$0xff] }
 0x273   : > { %23958 = vmatmul.mubr.msk.f32.gmra.mrb[26].mxu0 %vm934_vm1, %v35232_v44  ;;  %22871 = vmatprep.mubr.msk.f32.mxu1 %vm934_vm1, %v35233_v18  ;;  %v35237_v44 = vld [vmem:[#allocation100_spill] sm:$0xff]  ;;  %v35238_v18 = vld [vmem:[#allocation69_spill] sm:$0xff]  ;;  %35239 = vst [vmem:[#allocation96_spill] sm:$0xff] %v30196_v17  ;;  %v35242_v63 = vld [vmem:[#allocation103_spill] sm:$0xff] }
 0x274   : > { %23960 = vmatprep.mubr.msk.f32.mxu0 %vm934_vm1, %v35234_v15  ;;  %22917 = vmatpush3.msk.msra.mxu1 %vm999_vm0, %v30018_v59  ;;  %v35240_v15 = vld [vmem:[#allocation70_spill] sm:$0xff]  ;;  %v35241_v59 = vld [vmem:[#allocation19_spill] sm:$0xff] }
 0x275   : > { %22966 = vmatprep.subr.msk.mxu1 %vm999_vm0, %v30173_v23 }
 0x276   : > { %22872 = vmatmul.mubr.msk.f32.gmra.mrb[2].mxu1 %vm934_vm1, %v35236_v41  ;;  %v35251_v41 = vld [vmem:[#allocation34_spill] sm:$0xff] }
 0x277   : > { %23961 = vmatmul.mubr.msk.f32.gmra.mrb[28].mxu0 %vm934_vm1, %v35237_v44  ;;  %22874 = vmatprep.mubr.msk.f32.mxu1 %vm934_vm1, %v35238_v18  ;;  %v30209_v18 = vld [vmem:[%s34755_s1 + $0x84] sm:$0x7]  ;;  %v35250_v44 = vld [vmem:[#allocation107_spill] sm:$0xff] }
 0x278   : > { %23963 = vmatprep.mubr.msk.f32.mxu0 %vm934_vm1, %v30181_v0  ;;  %v35249_v0 = vld [vmem:[#allocation31_spill] sm:$0xff] }
 0x27a   : > { %22875 = vmatmul.mubr.msk.f32.gmra.mrb[4].mxu1 %vm934_vm1, %v35240_v15  ;;  %v35248_v15 = vld [vmem:[#allocation106_spill] sm:$0xff] }
 0x27b   : > { %23964 = vmatmul.mubr.msk.f32.gmra.mrb[30].mxu0 %vm934_vm1, %v30196_v17  ;;  %22877 = vmatprep.mubr.msk.f32.mxu1 %vm934_vm1, %v35203_v21  ;;  %v35244_v21 = vld [vmem:[#allocation104_spill] sm:$0xff] }
 0x27c   : > { %23968 = vmatprep.mubr.msk.f32.mxu0 %vm934_vm1, %v35241_v59  ;;  %v35247_v17 = vld [vmem:[#allocation28_spill] sm:$0xff] }
 0x27e   : > { %22878 = vmatmul.mubr.msk.f32.gmra.mrb[6].mxu1 %vm934_vm1, %v35204_v8  ;;  %v35245_v8 = vld [vmem:[#allocation25_spill] sm:$0xff] }
 0x27f   : > { %23969 = vmatmul.mubr.msk.f32.vlgmr.msra.gmra.mrb[0].mxu0 %vm934_vm1, %v35242_v63  ;;  %22880 = vmatprep.mubr.msk.f32.mxu1 %vm934_vm1, %v35205_v45 }
 0x280   : > { %24017 = vmatpush3.msk.msra.mxu0 %vm999_vm0, %v30054_v29  ;;  %23971 = vmatprep.mubr.msk.f32.mxu0 %vm934_vm1, %v35243_v2  ;;  %v35246_v29 = vld [vmem:[#allocation105_spill] sm:$0xff] }
 0x281   : > { %24066 = vmatprep.subr.msk.mxu0 %vm999_vm0, %v30209_v18 }
 0x282   : > { %22881 = vmatmul.mubr.msk.f32.gmra.mrb[8].mxu1 %vm934_vm1, %v35206_v28  ;;  %v35271_v28 = vld [vmem:[#allocation124_spill] sm:$0xff] }
 0x283   : > { %23972 = vmatmul.mubr.msk.f32.gmra.mrb[2].mxu0 %vm934_vm1, %v35244_v21  ;;  %22883 = vmatprep.mubr.msk.f32.mxu1 %vm934_vm1, %v35207_v12  ;;  %v35270_v12 = vld [vmem:[#allocation123_spill] sm:$0xff] }
 0x284   : > { %23974 = vmatprep.mubr.msk.f32.mxu0 %vm934_vm1, %v35245_v8 }
 0x286   : > { %22884 = vmatmul.mubr.msk.f32.gmra.mrb[10].mxu1 %vm934_vm1, %v35208_v11  ;;  %v10051_v11 = vrot.slane %v29841_v5, 3 }
 0x287   : > { %23975 = vmatmul.mubr.msk.f32.gmra.mrb[4].mxu0 %vm934_vm1, %v35246_v29  ;;  %22886 = vmatprep.mubr.msk.f32.mxu1 %vm934_vm1, %v35209_v36  ;;  %v35268_v36 = vld [vmem:[#allocation119_spill] sm:$0xff] }
 0x288   : > { %23977 = vmatprep.mubr.msk.f32.mxu0 %vm934_vm1, %v35247_v17 }
 0x28a   : > { %22887 = vmatmul.mubr.msk.f32.gmra.mrb[12].mxu1 %vm934_vm1, %v35210_v61  ;;  %v35252_v61 = vld [vmem:[#allocation108_spill] sm:$0xff] }
 0x28b   : > { %23978 = vmatmul.mubr.msk.f32.gmra.mrb[6].mxu0 %vm934_vm1, %v35248_v15  ;;  %22889 = vmatprep.mubr.msk.f32.mxu1 %vm934_vm1, %v35211_v4  ;;  %v35253_v4 = vld [vmem:[#allocation37_spill] sm:$0xff] }
 0x28c   : > { %23980 = vmatprep.mubr.msk.f32.mxu0 %vm934_vm1, %v35249_v0 }
 0x28e   : > { %22890 = vmatmul.mubr.msk.f32.gmra.mrb[14].mxu1 %vm934_vm1, %v35212_v39  ;;  %v35254_v39 = vld [vmem:[#allocation109_spill] sm:$0xff] }
 0x28f   : > { %23981 = vmatmul.mubr.msk.f32.gmra.mrb[8].mxu0 %vm934_vm1, %v35250_v44  ;;  %22892 = vmatprep.mubr.msk.f32.mxu1 %vm934_vm1, %v35213_v42  ;;  %v35255_v42 = vld [vmem:[#allocation40_spill] sm:$0xff] }
 0x290   : > { %23983 = vmatprep.mubr.msk.f32.mxu0 %vm934_vm1, %v35251_v41 }
 0x292   : > { %22893 = vmatmul.mubr.msk.f32.gmra.mrb[16].mxu1 %vm934_vm1, %v35214_v37  ;;  %v35256_v37 = vld [vmem:[#allocation110_spill] sm:$0xff] }
 0x293   : > { %23984 = vmatmul.mubr.msk.f32.gmra.mrb[10].mxu0 %vm934_vm1, %v35252_v61  ;;  %22895 = vmatprep.mubr.msk.f32.mxu1 %vm934_vm1, %v35215_v40  ;;  %v35257_v40 = vld [vmem:[#allocation43_spill] sm:$0xff] }
 0x294   : > { %23986 = vmatprep.mubr.msk.f32.mxu0 %vm934_vm1, %v35253_v4 }
 0x296   : > { %22896 = vmatmul.mubr.msk.f32.gmra.mrb[18].mxu1 %vm934_vm1, %v35216_v27  ;;  %v35258_v27 = vld [vmem:[#allocation111_spill] sm:$0xff] }
 0x297   : > { %23987 = vmatmul.mubr.msk.f32.gmra.mrb[12].mxu0 %vm934_vm1, %v35254_v39  ;;  %22898 = vmatprep.mubr.msk.f32.mxu1 %vm934_vm1, %v35217_v30  ;;  %v35259_v30 = vld [vmem:[#allocation46_spill] sm:$0xff] }
 0x298   : > { %23989 = vmatprep.mubr.msk.f32.mxu0 %vm934_vm1, %v35255_v42 }
 0x29a   : > { %22899 = vmatmul.mubr.msk.f32.gmra.mrb[20].mxu1 %vm934_vm1, %v35218_v25  ;;  %v35260_v25 = vld [vmem:[#allocation112_spill] sm:$0xff] }
 0x29b   : > { %23990 = vmatmul.mubr.msk.f32.gmra.mrb[14].mxu0 %vm934_vm1, %v35256_v37  ;;  %22901 = vmatprep.mubr.msk.f32.mxu1 %vm934_vm1, %v35219_v7  ;;  %v35261_v7 = vld [vmem:[#allocation49_spill] sm:$0xff] }
 0x29c   : > { %23992 = vmatprep.mubr.msk.f32.mxu0 %vm934_vm1, %v35257_v40 }
 0x29e   : > { %22902 = vmatmul.mubr.msk.f32.gmra.mrb[22].mxu1 %vm934_vm1, %v35220_v19  ;;  %v35262_v19 = vld [vmem:[#allocation52_spill] sm:$0xff] }
 0x29f   : > { %23993 = vmatmul.mubr.msk.f32.gmra.mrb[16].mxu0 %vm934_vm1, %v35258_v27  ;;  %22904 = vmatprep.mubr.msk.f32.mxu1 %vm934_vm1, %v35221_v56  ;;  %v35263_v56 = vld [vmem:[#allocation113_spill] sm:$0xff] }
 0x2a0   : > { %23995 = vmatprep.mubr.msk.f32.mxu0 %vm934_vm1, %v35259_v30 }
 0x2a2   : > { %22905 = vmatmul.mubr.msk.f32.gmra.mrb[24].mxu1 %vm934_vm1, %v35222_v33  ;;  %v35264_v33 = vld [vmem:[#allocation53_spill] sm:$0xff] }
 0x2a3   : > { %23996 = vmatmul.mubr.msk.f32.gmra.mrb[18].mxu0 %vm934_vm1, %v35260_v25  ;;  %22907 = vmatprep.mubr.msk.f32.mxu1 %vm934_vm1, %v35223_v34  ;;  %v35265_v34 = vld [vmem:[#allocation59_spill] sm:$0xff] }
 0x2a4   : > { %23998 = vmatprep.mubr.msk.f32.mxu0 %vm934_vm1, %v35261_v7 }
 0x2a6   : > { %22908 = vmatmul.mubr.msk.f32.gmra.mrb[26].mxu1 %vm934_vm1, %v35224_v52  ;;  %v35266_v52 = vld [vmem:[#allocation117_spill] sm:$0xff] }
 0x2a7   : > { %23999 = vmatmul.mubr.msk.f32.gmra.mrb[20].mxu0 %vm934_vm1, %v35262_v19  ;;  %22910 = vmatprep.mubr.msk.f32.mxu1 %vm934_vm1, %v35225_v31  ;;  %v35267_v31 = vld [vmem:[#allocation118_spill] sm:$0xff] }
 0x2a8   : > { %24001 = vmatprep.mubr.msk.f32.mxu0 %vm934_vm1, %v35263_v56 }
 0x2aa   : > { %22911 = vmatmul.mubr.msk.f32.gmra.mrb[28].mxu1 %vm934_vm1, %v35226_v43  ;;  %v10050_v43 = vrot.slane %v29826_v32, 3 }
 0x2ab   : > { %24002 = vmatmul.mubr.msk.f32.gmra.mrb[22].mxu0 %vm934_vm1, %v35264_v33  ;;  %22913 = vmatprep.mubr.msk.f32.mxu1 %vm934_vm1, %v35227_v49  ;;  %v35269_v49 = vld [vmem:[#allocation122_spill] sm:$0xff] }
 0x2ac   : > { %24004 = vmatprep.mubr.msk.f32.mxu0 %vm934_vm1, %v35265_v34  ;;  %v30336_v45 = vsel %vm1927_vm4, %v10050_v43, %v10051_v11 }
 0x2ad   : > { %35273 = vst [vmem:[#allocation118_spill] sm:$0xff] %v30336_v45 }
 0x2ae   : > { %22914 = vmatmul.mubr.msk.f32.gmra.mrb[30].mxu1 %vm934_vm1, %v35228_v24  ;;  %v30328_v24 = vld [vmem:[%s34755_s1 + $0x30] sm:$0x7] }
 0x2af   : > { %24005 = vmatmul.mubr.msk.f32.gmra.mrb[24].mxu0 %vm934_vm1, %v35266_v52  ;;  %22918 = vmatprep.mubr.msk.f32.mxu1 %vm934_vm1, %v35267_v31  ;;  %v35272_v31 = vld [vmem:[#allocation125_spill] sm:$0xff] }
 0x2b0   : > { %24007 = vmatprep.mubr.msk.f32.mxu0 %vm934_vm1, %v35268_v36  ;;  %v10053_v36 = vrot.slane %v30009_v6, 3 }
 0x2b2   : > { %22919 = vmatmul.mubr.msk.f32.vlgmr.msra.gmra.mrb[0].mxu1 %vm934_vm1, %v35269_v49  ;;  %v35274_v49 = vld [vmem:[#allocation126_spill] sm:$0xff]  ;;  %v30351_v43 = vsel %vm1927_vm4, %v10051_v11, %v10053_v36  ;;  %v35280_v36 = vld [vmem:[#allocation133_spill] sm:$0xff] }
 0x2b3   : > { %24008 = vmatmul.mubr.msk.f32.gmra.mrb[26].mxu0 %vm934_vm1, %v35270_v12  ;;  %22921 = vmatprep.mubr.msk.f32.mxu1 %vm934_vm1, %v35271_v28  ;;  %v35275_v12 = vld [vmem:[#allocation127_spill] sm:$0xff]  ;;  %v35276_v28 = vld [vmem:[#allocation101_spill] sm:$0xff]  ;;  %35277 = vst [vmem:[#allocation122_spill] sm:$0xff] %v30351_v43  ;;  %v35281_v11 = vld [vmem:[#allocation134_spill] sm:$0xff] }
 0x2b4   : > { %24010 = vmatprep.mubr.msk.f32.mxu0 %vm934_vm1, %v35272_v31  ;;  %22967 = vmatpush3.msk.msra.mxu1 %vm999_vm0, %v30173_v23  ;;  %v35278_v31 = vld [vmem:[#allocation102_spill] sm:$0xff]  ;;  %v35279_v23 = vld [vmem:[#allocation132_spill] sm:$0xff] }
 0x2b5   : > { %23016 = vmatprep.subr.msk.mxu1 %vm999_vm0, %v30328_v24 }
 0x2b6   : > { %22922 = vmatmul.mubr.msk.f32.gmra.mrb[2].mxu1 %vm934_vm1, %v35274_v49  ;;  %v35289_v49 = vld [vmem:[#allocation151_spill] sm:$0xff] }
 0x2b7   : > { %24011 = vmatmul.mubr.msk.f32.gmra.mrb[28].mxu0 %vm934_vm1, %v35275_v12  ;;  %22924 = vmatprep.mubr.msk.f32.mxu1 %vm934_vm1, %v35276_v28  ;;  %v30364_v28 = vld [vmem:[%s34755_s1 + $0x88] sm:$0x7]  ;;  %v35288_v12 = vld [vmem:[#allocation150_spill] sm:$0xff] }
 0x2b8   : > { %24013 = vmatprep.mubr.msk.f32.mxu0 %vm934_vm1, %v30336_v45  ;;  %v35287_v45 = vld [vmem:[#allocation147_spill] sm:$0xff] }
 0x2ba   : > { %22925 = vmatmul.mubr.msk.f32.gmra.mrb[4].mxu1 %vm934_vm1, %v35278_v31  ;;  %v35286_v31 = vld [vmem:[#allocation145_spill] sm:$0xff] }
 0x2bb   : > { %24014 = vmatmul.mubr.msk.f32.gmra.mrb[30].mxu0 %vm934_vm1, %v30351_v43  ;;  %22927 = vmatprep.mubr.msk.f32.mxu1 %vm934_vm1, %v35241_v59  ;;  %v35282_v59 = vld [vmem:[#allocation137_spill] sm:$0xff]  ;;  %v35285_v43 = vld [vmem:[#allocation142_spill] sm:$0xff] }
 0x2bc   : > { %24018 = vmatprep.mubr.msk.f32.mxu0 %vm934_vm1, %v35279_v23 }
 0x2be   : > { %22928 = vmatmul.mubr.msk.f32.gmra.mrb[6].mxu1 %vm934_vm1, %v35242_v63  ;;  %v35283_v63 = vld [vmem:[#allocation138_spill] sm:$0xff] }
 0x2bf   : > { %24019 = vmatmul.mubr.msk.f32.vlgmr.msra.gmra.mrb[0].mxu0 %vm934_vm1, %v35280_v36  ;;  %22930 = vmatprep.mubr.msk.f32.mxu1 %vm934_vm1, %v35243_v2 }
 0x2c0   : > { %24067 = vmatpush3.msk.msra.mxu0 %vm999_vm0, %v30209_v18  ;;  %24021 = vmatprep.mubr.msk.f32.mxu0 %vm934_vm1, %v35281_v11  ;;  %v35284_v18 = vld [vmem:[#allocation140_spill] sm:$0xff] }
 0x2c1   : > { %24116 = vmatprep.subr.msk.mxu0 %vm999_vm0, %v30364_v28 }
 0x2c2   : > { %22931 = vmatmul.mubr.msk.f32.gmra.mrb[8].mxu1 %vm934_vm1, %v35244_v21  ;;  %v35309_v21 = vld [vmem:[#allocation170_spill] sm:$0xff] }
 0x2c3   : > { %24022 = vmatmul.mubr.msk.f32.gmra.mrb[2].mxu0 %vm934_vm1, %v35282_v59  ;;  %22933 = vmatprep.mubr.msk.f32.mxu1 %vm934_vm1, %v35245_v8  ;;  %v35308_v8 = vld [vmem:[#allocation63_spill] sm:$0xff] }
 0x2c4   : > { %24024 = vmatprep.mubr.msk.f32.mxu0 %vm934_vm1, %v35283_v63 }
 0x2c6   : > { %22934 = vmatmul.mubr.msk.f32.gmra.mrb[10].mxu1 %vm934_vm1, %v35246_v29  ;;  %v10322_v29 = vrot.slane %v29841_v5, 4 }
 0x2c7   : > { %24025 = vmatmul.mubr.msk.f32.gmra.mrb[4].mxu0 %vm934_vm1, %v35284_v18  ;;  %22936 = vmatprep.mubr.msk.f32.mxu1 %vm934_vm1, %v35247_v17  ;;  %v35306_v17 = vld [vmem:[#allocation169_spill] sm:$0xff] }
 0x2c8   : > { %24027 = vmatprep.mubr.msk.f32.mxu0 %vm934_vm1, %v35285_v43 }
 0x2ca   : > { %22937 = vmatmul.mubr.msk.f32.gmra.mrb[12].mxu1 %vm934_vm1, %v35248_v15  ;;  %v35290_v15 = vld [vmem:[#allocation154_spill] sm:$0xff] }
 0x2cb   : > { %24028 = vmatmul.mubr.msk.f32.gmra.mrb[6].mxu0 %vm934_vm1, %v35286_v31  ;;  %22939 = vmatprep.mubr.msk.f32.mxu1 %vm934_vm1, %v35249_v0  ;;  %v35291_v0 = vld [vmem:[#allocation155_spill] sm:$0xff] }
 0x2cc   : > { %24030 = vmatprep.mubr.msk.f32.mxu0 %vm934_vm1, %v35287_v45 }
 0x2ce   : > { %22940 = vmatmul.mubr.msk.f32.gmra.mrb[14].mxu1 %vm934_vm1, %v35250_v44  ;;  %v35292_v44 = vld [vmem:[#allocation157_spill] sm:$0xff] }
 0x2cf   : > { %24031 = vmatmul.mubr.msk.f32.gmra.mrb[8].mxu0 %vm934_vm1, %v35288_v12  ;;  %22942 = vmatprep.mubr.msk.f32.mxu1 %vm934_vm1, %v35251_v41  ;;  %v35293_v41 = vld [vmem:[#allocation158_spill] sm:$0xff] }
 0x2d0   : > { %24033 = vmatprep.mubr.msk.f32.mxu0 %vm934_vm1, %v35289_v49 }
 0x2d2   : > { %22943 = vmatmul.mubr.msk.f32.gmra.mrb[16].mxu1 %vm934_vm1, %v35252_v61  ;;  %v35294_v61 = vld [vmem:[#allocation159_spill] sm:$0xff] }
 0x2d3   : > { %24034 = vmatmul.mubr.msk.f32.gmra.mrb[10].mxu0 %vm934_vm1, %v35290_v15  ;;  %22945 = vmatprep.mubr.msk.f32.mxu1 %vm934_vm1, %v35253_v4  ;;  %v35295_v4 = vld [vmem:[#allocation160_spill] sm:$0xff] }
 0x2d4   : > { %24036 = vmatprep.mubr.msk.f32.mxu0 %vm934_vm1, %v35291_v0 }
 0x2d6   : > { %22946 = vmatmul.mubr.msk.f32.gmra.mrb[18].mxu1 %vm934_vm1, %v35254_v39  ;;  %v35296_v39 = vld [vmem:[#allocation161_spill] sm:$0xff] }
 0x2d7   : > { %24037 = vmatmul.mubr.msk.f32.gmra.mrb[12].mxu0 %vm934_vm1, %v35292_v44  ;;  %22948 = vmatprep.mubr.msk.f32.mxu1 %vm934_vm1, %v35255_v42  ;;  %v35297_v42 = vld [vmem:[#allocation162_spill] sm:$0xff] }
 0x2d8   : > { %24039 = vmatprep.mubr.msk.f32.mxu0 %vm934_vm1, %v35293_v41 }
 0x2da   : > { %22949 = vmatmul.mubr.msk.f32.gmra.mrb[20].mxu1 %vm934_vm1, %v35256_v37  ;;  %v35298_v37 = vld [vmem:[#allocation163_spill] sm:$0xff] }
 0x2db   : > { %24040 = vmatmul.mubr.msk.f32.gmra.mrb[14].mxu0 %vm934_vm1, %v35294_v61  ;;  %22951 = vmatprep.mubr.msk.f32.mxu1 %vm934_vm1, %v35257_v40  ;;  %v35299_v40 = vld [vmem:[#allocation164_spill] sm:$0xff] }
 0x2dc   : > { %24042 = vmatprep.mubr.msk.f32.mxu0 %vm934_vm1, %v35295_v4 }
 0x2de   : > { %22952 = vmatmul.mubr.msk.f32.gmra.mrb[22].mxu1 %vm934_vm1, %v35258_v27  ;;  %v35300_v27 = vld [vmem:[#allocation165_spill] sm:$0xff] }
 0x2df   : > { %24043 = vmatmul.mubr.msk.f32.gmra.mrb[16].mxu0 %vm934_vm1, %v35296_v39  ;;  %22954 = vmatprep.mubr.msk.f32.mxu1 %vm934_vm1, %v35259_v30  ;;  %v35301_v30 = vld [vmem:[#allocation166_spill] sm:$0xff] }
 0x2e0   : > { %24045 = vmatprep.mubr.msk.f32.mxu0 %vm934_vm1, %v35297_v42 }
 0x2e2   : > { %22955 = vmatmul.mubr.msk.f32.gmra.mrb[24].mxu1 %vm934_vm1, %v35260_v25  ;;  %v35302_v25 = vld [vmem:[#allocation167_spill] sm:$0xff] }
 0x2e3   : > { %24046 = vmatmul.mubr.msk.f32.gmra.mrb[18].mxu0 %vm934_vm1, %v35298_v37  ;;  %22957 = vmatprep.mubr.msk.f32.mxu1 %vm934_vm1, %v35261_v7  ;;  %v35303_v7 = vld [vmem:[#allocation57_spill] sm:$0xff] }
 0x2e4   : > { %24048 = vmatprep.mubr.msk.f32.mxu0 %vm934_vm1, %v35299_v40 }
 0x2e6   : > { %22958 = vmatmul.mubr.msk.f32.gmra.mrb[26].mxu1 %vm934_vm1, %v35262_v19  ;;  %v35304_v19 = vld [vmem:[#allocation115_spill] sm:$0xff] }
 0x2e7   : > { %24049 = vmatmul.mubr.msk.f32.gmra.mrb[20].mxu0 %vm934_vm1, %v35300_v27  ;;  %22960 = vmatprep.mubr.msk.f32.mxu1 %vm934_vm1, %v35263_v56  ;;  %v35305_v56 = vld [vmem:[#allocation168_spill] sm:$0xff] }
 0x2e8   : > { %24051 = vmatprep.mubr.msk.f32.mxu0 %vm934_vm1, %v35301_v30 }
 0x2ea   : > { %22961 = vmatmul.mubr.msk.f32.gmra.mrb[28].mxu1 %vm934_vm1, %v35264_v33  ;;  %v10321_v33 = vrot.slane %v29826_v32, 4 }
 0x2eb   : > { %24052 = vmatmul.mubr.msk.f32.gmra.mrb[22].mxu0 %vm934_vm1, %v35302_v25  ;;  %22963 = vmatprep.mubr.msk.f32.mxu1 %vm934_vm1, %v35265_v34  ;;  %v35307_v34 = vld [vmem:[#allocation62_spill] sm:$0xff] }
 0x2ec   : > { %24054 = vmatprep.mubr.msk.f32.mxu0 %vm934_vm1, %v35303_v7  ;;  %v30491_v2 = vsel %vm2334_vm5, %v10321_v33, %v10322_v29 }
 0x2ed   : > { %35311 = vst [vmem:[#allocation168_spill] sm:$0xff] %v30491_v2 }
 0x2ee   : > { %22964 = vmatmul.mubr.msk.f32.gmra.mrb[30].mxu1 %vm934_vm1, %v35266_v52  ;;  %v30483_v52 = vld [vmem:[%s34755_s1 + $0x34] sm:$0x7] }
 0x2ef   : > { %24055 = vmatmul.mubr.msk.f32.gmra.mrb[24].mxu0 %vm934_vm1, %v35304_v19  ;;  %22968 = vmatprep.mubr.msk.f32.mxu1 %vm934_vm1, %v35305_v56  ;;  %v35310_v56 = vld [vmem:[#allocation171_spill] sm:$0xff] }
 0x2f0   : > { %24057 = vmatprep.mubr.msk.f32.mxu0 %vm934_vm1, %v35306_v17  ;;  %v10324_v17 = vrot.slane %v30009_v6, 4 }
 0x2f2   : > { %22969 = vmatmul.mubr.msk.f32.vlgmr.msra.gmra.mrb[0].mxu1 %vm934_vm1, %v35307_v34  ;;  %v35312_v34 = vld [vmem:[#allocation172_spill] sm:$0xff]  ;;  %v30506_v33 = vsel %vm2334_vm5, %v10322_v29, %v10324_v17  ;;  %v35318_v17 = vld [vmem:[#allocation175_spill] sm:$0xff] }
 0x2f3   : > { %24058 = vmatmul.mubr.msk.f32.gmra.mrb[26].mxu0 %vm934_vm1, %v35308_v8  ;;  %22971 = vmatprep.mubr.msk.f32.mxu1 %vm934_vm1, %v35309_v21  ;;  %v35313_v8 = vld [vmem:[#allocation173_spill] sm:$0xff]  ;;  %v35314_v21 = vld [vmem:[#allocation128_spill] sm:$0xff]  ;;  %35315 = vst [vmem:[#allocation62_spill] sm:$0xff] %v30506_v33 }
 0x2f4   : > { %24060 = vmatprep.mubr.msk.f32.mxu0 %vm934_vm1, %v35310_v56  ;;  %23017 = vmatpush3.msk.msra.mxu1 %vm999_vm0, %v30328_v24  ;;  %v35316_v56 = vld [vmem:[#allocation130_spill] sm:$0xff]  ;;  %v35317_v24 = vld [vmem:[#allocation131_spill] sm:$0xff]  ;;  %v35319_v29 = vld [vmem:[#allocation176_spill] sm:$0xff] }
 0x2f5   : > { %23066 = vmatprep.subr.msk.mxu1 %vm999_vm0, %v30483_v52 }
 0x2f6   : > { %22972 = vmatmul.mubr.msk.f32.gmra.mrb[2].mxu1 %vm934_vm1, %v35312_v34  ;;  %v35327_v34 = vld [vmem:[#allocation182_spill] sm:$0xff] }
 0x2f7   : > { %24061 = vmatmul.mubr.msk.f32.gmra.mrb[28].mxu0 %vm934_vm1, %v35313_v8  ;;  %22974 = vmatprep.mubr.msk.f32.mxu1 %vm934_vm1, %v35314_v21  ;;  %v30519_v21 = vld [vmem:[%s34755_s1 + $0x8c] sm:$0x7]  ;;  %v35326_v8 = vld [vmem:[#allocation181_spill] sm:$0xff] }
 0x2f8   : > { %24063 = vmatprep.mubr.msk.f32.mxu0 %vm934_vm1, %v30491_v2  ;;  %v35325_v2 = vld [vmem:[#allocation180_spill] sm:$0xff] }
 0x2fa   : > { %22975 = vmatmul.mubr.msk.f32.gmra.mrb[4].mxu1 %vm934_vm1, %v35316_v56  ;;  %v35324_v56 = vld [vmem:[#allocation179_spill] sm:$0xff] }
 0x2fb   : > { %24064 = vmatmul.mubr.msk.f32.gmra.mrb[30].mxu0 %vm934_vm1, %v30506_v33  ;;  %22977 = vmatprep.mubr.msk.f32.mxu1 %vm934_vm1, %v35279_v23  ;;  %v35320_v23 = vld [vmem:[#allocation135_spill] sm:$0xff]  ;;  %v35323_v33 = vld [vmem:[#allocation178_spill] sm:$0xff] }
 0x2fc   : > { %24068 = vmatprep.mubr.msk.f32.mxu0 %vm934_vm1, %v35317_v24 }
 0x2fe   : > { %22978 = vmatmul.mubr.msk.f32.gmra.mrb[6].mxu1 %vm934_vm1, %v35280_v36  ;;  %v35321_v36 = vld [vmem:[#allocation136_spill] sm:$0xff] }
 0x2ff   : > { %24069 = vmatmul.mubr.msk.f32.vlgmr.msra.gmra.mrb[0].mxu0 %vm934_vm1, %v35318_v17  ;;  %22980 = vmatprep.mubr.msk.f32.mxu1 %vm934_vm1, %v35281_v11 }
 0x300   : > { %24117 = vmatpush3.msk.msra.mxu0 %vm999_vm0, %v30364_v28  ;;  %24071 = vmatprep.mubr.msk.f32.mxu0 %vm934_vm1, %v35319_v29  ;;  %v35322_v28 = vld [vmem:[#allocation177_spill] sm:$0xff] }
 0x301   : > { %24166 = vmatprep.subr.msk.mxu0 %vm999_vm0, %v30519_v21 }
 0x302   : > { %22981 = vmatmul.mubr.msk.f32.gmra.mrb[8].mxu1 %vm934_vm1, %v35282_v59  ;;  %v35347_v59 = vld [vmem:[#allocation214_spill] sm:$0xff] }
 0x303   : > { %24072 = vmatmul.mubr.msk.f32.gmra.mrb[2].mxu0 %vm934_vm1, %v35320_v23  ;;  %22983 = vmatprep.mubr.msk.f32.mxu1 %vm934_vm1, %v35283_v63  ;;  %v35346_v63 = vld [vmem:[#allocation213_spill] sm:$0xff] }
 0x304   : > { %24074 = vmatprep.mubr.msk.f32.mxu0 %vm934_vm1, %v35321_v36 }
 0x306   : > { %22984 = vmatmul.mubr.msk.f32.gmra.mrb[10].mxu1 %vm934_vm1, %v35284_v18  ;;  %v10593_v18 = vrot.slane %v29841_v5, 5 }
 0x307   : > { %24075 = vmatmul.mubr.msk.f32.gmra.mrb[4].mxu0 %vm934_vm1, %v35322_v28  ;;  %22986 = vmatprep.mubr.msk.f32.mxu1 %vm934_vm1, %v35285_v43  ;;  %v35344_v43 = vld [vmem:[#allocation209_spill] sm:$0xff] }
 0x308   : > { %24077 = vmatprep.mubr.msk.f32.mxu0 %vm934_vm1, %v35323_v33 }
 0x30a   : > { %22987 = vmatmul.mubr.msk.f32.gmra.mrb[12].mxu1 %vm934_vm1, %v35286_v31  ;;  %v35328_v31 = vld [vmem:[#allocation152_spill] sm:$0xff] }
 0x30b   : > { %24078 = vmatmul.mubr.msk.f32.gmra.mrb[6].mxu0 %vm934_vm1, %v35324_v56  ;;  %22989 = vmatprep.mubr.msk.f32.mxu1 %vm934_vm1, %v35287_v45  ;;  %v35329_v45 = vld [vmem:[#allocation153_spill] sm:$0xff] }
 0x30c   : > { %24080 = vmatprep.mubr.msk.f32.mxu0 %vm934_vm1, %v35325_v2 }
 0x30e   : > { %22990 = vmatmul.mubr.msk.f32.gmra.mrb[14].mxu1 %vm934_vm1, %v35288_v12  ;;  %v35330_v12 = vld [vmem:[#allocation156_spill] sm:$0xff] }
 0x30f   : > { %24081 = vmatmul.mubr.msk.f32.gmra.mrb[8].mxu0 %vm934_vm1, %v35326_v8  ;;  %22992 = vmatprep.mubr.msk.f32.mxu1 %vm934_vm1, %v35289_v49  ;;  %v35331_v49 = vld [vmem:[#allocation183_spill] sm:$0xff] }
 0x310   : > { %24083 = vmatprep.mubr.msk.f32.mxu0 %vm934_vm1, %v35327_v34 }
 0x312   : > { %22993 = vmatmul.mubr.msk.f32.gmra.mrb[16].mxu1 %vm934_vm1, %v35290_v15  ;;  %v35332_v15 = vld [vmem:[#allocation185_spill] sm:$0xff] }
 0x313   : > { %24084 = vmatmul.mubr.msk.f32.gmra.mrb[10].mxu0 %vm934_vm1, %v35328_v31  ;;  %22995 = vmatprep.mubr.msk.f32.mxu1 %vm934_vm1, %v35291_v0  ;;  %v35333_v0 = vld [vmem:[#allocation186_spill] sm:$0xff] }
 0x314   : > { %24086 = vmatprep.mubr.msk.f32.mxu0 %vm934_vm1, %v35329_v45 }
 0x316   : > { %22996 = vmatmul.mubr.msk.f32.gmra.mrb[18].mxu1 %vm934_vm1, %v35292_v44  ;;  %v35334_v44 = vld [vmem:[#allocation189_spill] sm:$0xff] }
 0x317   : > { %24087 = vmatmul.mubr.msk.f32.gmra.mrb[12].mxu0 %vm934_vm1, %v35330_v12  ;;  %22998 = vmatprep.mubr.msk.f32.mxu1 %vm934_vm1, %v35293_v41  ;;  %v35335_v41 = vld [vmem:[#allocation190_spill] sm:$0xff] }
 0x318   : > { %24089 = vmatprep.mubr.msk.f32.mxu0 %vm934_vm1, %v35331_v49 }
 0x31a   : > { %22999 = vmatmul.mubr.msk.f32.gmra.mrb[20].mxu1 %vm934_vm1, %v35294_v61  ;;  %v35336_v61 = vld [vmem:[#allocation193_spill] sm:$0xff] }
 0x31b   : > { %24090 = vmatmul.mubr.msk.f32.gmra.mrb[14].mxu0 %vm934_vm1, %v35332_v15  ;;  %23001 = vmatprep.mubr.msk.f32.mxu1 %vm934_vm1, %v35295_v4  ;;  %v35337_v4 = vld [vmem:[#allocation196_spill] sm:$0xff] }
 0x31c   : > { %24092 = vmatprep.mubr.msk.f32.mxu0 %vm934_vm1, %v35333_v0 }
 0x31e   : > { %23002 = vmatmul.mubr.msk.f32.gmra.mrb[22].mxu1 %vm934_vm1, %v35296_v39  ;;  %v35338_v39 = vld [vmem:[#allocation198_spill] sm:$0xff] }
 0x31f   : > { %24093 = vmatmul.mubr.msk.f32.gmra.mrb[16].mxu0 %vm934_vm1, %v35334_v44  ;;  %23004 = vmatprep.mubr.msk.f32.mxu1 %vm934_vm1, %v35297_v42  ;;  %v35339_v42 = vld [vmem:[#allocation199_spill] sm:$0xff] }
 0x320   : > { %24095 = vmatprep.mubr.msk.f32.mxu0 %vm934_vm1, %v35335_v41 }
 0x322   : > { %23005 = vmatmul.mubr.msk.f32.gmra.mrb[24].mxu1 %vm934_vm1, %v35298_v37  ;;  %v35340_v37 = vld [vmem:[#allocation202_spill] sm:$0xff] }
 0x323   : > { %24096 = vmatmul.mubr.msk.f32.gmra.mrb[18].mxu0 %vm934_vm1, %v35336_v61  ;;  %23007 = vmatprep.mubr.msk.f32.mxu1 %vm934_vm1, %v35299_v40  ;;  %v35341_v40 = vld [vmem:[#allocation206_spill] sm:$0xff] }
 0x324   : > { %24098 = vmatprep.mubr.msk.f32.mxu0 %vm934_vm1, %v35337_v4 }
 0x326   : > { %23008 = vmatmul.mubr.msk.f32.gmra.mrb[26].mxu1 %vm934_vm1, %v35300_v27  ;;  %v35342_v27 = vld [vmem:[#allocation207_spill] sm:$0xff] }
 0x327   : > { %24099 = vmatmul.mubr.msk.f32.gmra.mrb[20].mxu0 %vm934_vm1, %v35338_v39  ;;  %23010 = vmatprep.mubr.msk.f32.mxu1 %vm934_vm1, %v35301_v30  ;;  %v35343_v30 = vld [vmem:[#allocation208_spill] sm:$0xff] }
 0x328   : > { %24101 = vmatprep.mubr.msk.f32.mxu0 %vm934_vm1, %v35339_v42 }
 0x32a   : > { %23011 = vmatmul.mubr.msk.f32.gmra.mrb[28].mxu1 %vm934_vm1, %v35302_v25  ;;  %v10592_v25 = vrot.slane %v29826_v32, 5 }
 0x32b   : > { %24102 = vmatmul.mubr.msk.f32.gmra.mrb[22].mxu0 %vm934_vm1, %v35340_v37  ;;  %23013 = vmatprep.mubr.msk.f32.mxu1 %vm934_vm1, %v35303_v7  ;;  %v35345_v7 = vld [vmem:[#allocation212_spill] sm:$0xff] }
 0x32c   : > { %24104 = vmatprep.mubr.msk.f32.mxu0 %vm934_vm1, %v35341_v40  ;;  %v30646_v11 = vsel %vm999_vm0, %v10592_v25, %v10593_v18 }
 0x32d   : > { %35349 = vst [vmem:[#allocation176_spill] sm:$0xff] %v30646_v11 }
 0x32e   : > { %23014 = vmatmul.mubr.msk.f32.gmra.mrb[30].mxu1 %vm934_vm1, %v35304_v19  ;;  %v30638_v19 = vld [vmem:[%s34755_s1 + $0x38] sm:$0x7] }
 0x32f   : > { %24105 = vmatmul.mubr.msk.f32.gmra.mrb[24].mxu0 %vm934_vm1, %v35342_v27  ;;  %23018 = vmatprep.mubr.msk.f32.mxu1 %vm934_vm1, %v35343_v30  ;;  %v35348_v30 = vld [vmem:[#allocation215_spill] sm:$0xff] }
 0x330   : > { %24107 = vmatprep.mubr.msk.f32.mxu0 %vm934_vm1, %v35344_v43  ;;  %v10595_v43 = vrot.slane %v30009_v6, 5 }
 0x332   : > { %23019 = vmatmul.mubr.msk.f32.vlgmr.msra.gmra.mrb[0].mxu1 %vm934_vm1, %v35345_v7  ;;  %v35350_v7 = vld [vmem:[#allocation216_spill] sm:$0xff]  ;;  %v30661_v25 = vsel %vm999_vm0, %v10593_v18, %v10595_v43  ;;  %v35356_v43 = vld [vmem:[#allocation203_spill] sm:$0xff] }
 0x333   : > { %24108 = vmatmul.mubr.msk.f32.gmra.mrb[26].mxu0 %vm934_vm1, %v35346_v63  ;;  %23021 = vmatprep.mubr.msk.f32.mxu1 %vm934_vm1, %v35347_v59  ;;  %v35351_v63 = vld [vmem:[#allocation217_spill] sm:$0xff]  ;;  %v35352_v59 = vld [vmem:[#allocation174_spill] sm:$0xff]  ;;  %35353 = vst [vmem:[#allocation135_spill] sm:$0xff] %v30661_v25  ;;  %v35357_v18 = vld [vmem:[#allocation116_spill] sm:$0xff] }
 0x334   : > { %24110 = vmatprep.mubr.msk.f32.mxu0 %vm934_vm1, %v35348_v30  ;;  %23067 = vmatpush3.msk.msra.mxu1 %vm999_vm0, %v30483_v52  ;;  %v35354_v30 = vld [vmem:[#allocation129_spill] sm:$0xff]  ;;  %v30674_v52 = vld [vmem:[%s34755_s1 + $0x90] sm:$0x7] }
 0x335   : > { %23116 = vmatprep.subr.msk.mxu1 %vm999_vm0, %v30638_v19 }
 0x336   : > { %23022 = vmatmul.mubr.msk.f32.gmra.mrb[2].mxu1 %vm934_vm1, %v35350_v7 }
 0x337   : > { %24111 = vmatmul.mubr.msk.f32.gmra.mrb[28].mxu0 %vm934_vm1, %v35351_v63  ;;  %23024 = vmatprep.mubr.msk.f32.mxu1 %vm934_vm1, %v35352_v59  ;;  %v30793_v59 = vld [vmem:[%s34755_s1 + $0x3c] sm:$0x7]  ;;  %v35361_v63 = vld [vmem:[#allocation210_spill] sm:$0xff] }
 0x338   : > { %24113 = vmatprep.mubr.msk.f32.mxu0 %vm934_vm1, %v30646_v11  ;;  %v35360_v11 = vld [vmem:[#allocation121_spill] sm:$0xff] }
 0x33a   : > { %23025 = vmatmul.mubr.msk.f32.gmra.mrb[4].mxu1 %vm934_vm1, %v35354_v30  ;;  %v35359_v30 = vld [vmem:[#allocation120_spill] sm:$0xff] }
 0x33b   : > { %24114 = vmatmul.mubr.msk.f32.gmra.mrb[30].mxu0 %vm934_vm1, %v30661_v25  ;;  %23027 = vmatprep.mubr.msk.f32.mxu1 %vm934_vm1, %v35317_v24  ;;  %v10863_v24 = vrot.slane %v29826_v32, 6  ;;  %v10864_v25 = vrot.slane %v29841_v5, 6  ;;  %v10866_v32 = vrot.slane %v30009_v6, 6 }
 0x33c   : > { %24118 = vmatprep.mubr.msk.f32.mxu0 %vm934_vm1, %v29403_v9 }
 0x33d   : > { %v30801_v5 = vsel %vm3147_vm6, %v10863_v24, %v10864_v25  ;;  %v30816_v6 = vsel %vm3147_vm6, %v10864_v25, %v10866_v32  ;;  %v35368_v24 = vld [vmem:[#allocation219_spill] sm:$0xff]  ;;  %v35370_v25 = vld [vmem:[#allocation188_spill] sm:$0xff] }
 0x33e   : > { %23028 = vmatmul.mubr.msk.f32.gmra.mrb[6].mxu1 %vm934_vm1, %v35318_v17  ;;  %v35358_v17 = vld [vmem:[#allocation204_spill] sm:$0xff]  ;;  %35363 = vst [vmem:[#allocation208_spill] sm:$0xff] %v30801_v5  ;;  %35367 = vst [vmem:[#allocation212_spill] sm:$0xff] %v30816_v6  ;;  %v35371_v32 = vld [vmem:[#allocation191_spill] sm:$0xff] }
 0x33f   : > { %24119 = vmatmul.mubr.msk.f32.vlgmr.msra.gmra.mrb[0].mxu0 %vm934_vm1, %v29419_v14  ;;  %23030 = vmatprep.mubr.msk.f32.mxu1 %vm934_vm1, %v35319_v29 }
 0x340   : > { %24167 = vmatpush3.msk.msra.mxu0 %vm999_vm0, %v30519_v21  ;;  %24121 = vmatprep.mubr.msk.f32.mxu0 %vm934_vm1, %v29425_v20  ;;  %v35355_v21 = vld [vmem:[#allocation54_spill] sm:$0xff] }
 0x341   : > { %24216 = vmatprep.subr.msk.mxu0 %vm999_vm0, %v30674_v52 }
 0x342   : > { %23031 = vmatmul.mubr.msk.f32.gmra.mrb[8].mxu1 %vm934_vm1, %v35320_v23 }
 0x343   : > { %24122 = vmatmul.mubr.msk.f32.gmra.mrb[2].mxu0 %vm934_vm1, %v29440_v26  ;;  %23033 = vmatprep.mubr.msk.f32.mxu1 %vm934_vm1, %v35321_v36 }
 0x344   : > { %24124 = vmatprep.mubr.msk.f32.mxu0 %vm934_vm1, %v29444_v50 }
 0x346   : > { %23034 = vmatmul.mubr.msk.f32.gmra.mrb[10].mxu1 %vm934_vm1, %v35322_v28 }
 0x347   : > { %24125 = vmatmul.mubr.msk.f32.gmra.mrb[4].mxu0 %vm934_vm1, %v29457_v38  ;;  %23036 = vmatprep.mubr.msk.f32.mxu1 %vm934_vm1, %v35323_v33 }
 0x348   : > { %24127 = vmatprep.mubr.msk.f32.mxu0 %vm934_vm1, %v29461_v55 }
 0x34a   : > { %23037 = vmatmul.mubr.msk.f32.gmra.mrb[12].mxu1 %vm934_vm1, %v35324_v56 }
 0x34b   : > { %24128 = vmatmul.mubr.msk.f32.gmra.mrb[6].mxu0 %vm934_vm1, %v29474_v3  ;;  %23039 = vmatprep.mubr.msk.f32.mxu1 %vm934_vm1, %v35325_v2 }
 0x34c   : > { %24130 = vmatprep.mubr.msk.f32.mxu0 %vm934_vm1, %v29478_v22 }
 0x34e   : > { %23040 = vmatmul.mubr.msk.f32.gmra.mrb[14].mxu1 %vm934_vm1, %v35326_v8 }
 0x34f   : > { %24131 = vmatmul.mubr.msk.f32.gmra.mrb[8].mxu0 %vm934_vm1, %v29491_v62  ;;  %23042 = vmatprep.mubr.msk.f32.mxu1 %vm934_vm1, %v35327_v34 }
 0x350   : > { %24133 = vmatprep.mubr.msk.f32.mxu0 %vm934_vm1, %v29495_v60 }
 0x352   : > { %23043 = vmatmul.mubr.msk.f32.gmra.mrb[16].mxu1 %vm934_vm1, %v35328_v31 }
 0x353   : > { %24134 = vmatmul.mubr.msk.f32.gmra.mrb[10].mxu0 %vm934_vm1, %v29508_v35  ;;  %23045 = vmatprep.mubr.msk.f32.mxu1 %vm934_vm1, %v35329_v45 }
 0x354   : > { %24136 = vmatprep.mubr.msk.f32.mxu0 %vm934_vm1, %v29512_v13 }
 0x356   : > { %23046 = vmatmul.mubr.msk.f32.gmra.mrb[18].mxu1 %vm934_vm1, %v35330_v12 }
 0x357   : > { %24137 = vmatmul.mubr.msk.f32.gmra.mrb[12].mxu0 %vm934_vm1, %v29525_v1  ;;  %23048 = vmatprep.mubr.msk.f32.mxu1 %vm934_vm1, %v35331_v49 }
 0x358   : > { %24139 = vmatprep.mubr.msk.f32.mxu0 %vm934_vm1, %v29529_v51 }
 0x35a   : > { %23049 = vmatmul.mubr.msk.f32.gmra.mrb[20].mxu1 %vm934_vm1, %v35332_v15 }
 0x35b   : > { %24140 = vmatmul.mubr.msk.f32.gmra.mrb[14].mxu0 %vm934_vm1, %v29542_v46  ;;  %23051 = vmatprep.mubr.msk.f32.mxu1 %vm934_vm1, %v35333_v0 }
 0x35c   : > { %24142 = vmatprep.mubr.msk.f32.mxu0 %vm934_vm1, %v35136_v48 }
 0x35e   : > { %23052 = vmatmul.mubr.msk.f32.gmra.mrb[22].mxu1 %vm934_vm1, %v35334_v44 }
 0x35f   : > { %24143 = vmatmul.mubr.msk.f32.gmra.mrb[16].mxu0 %vm934_vm1, %v35138_v53  ;;  %23054 = vmatprep.mubr.msk.f32.mxu1 %vm934_vm1, %v35335_v41 }
 0x360   : > { %24145 = vmatprep.mubr.msk.f32.mxu0 %vm934_vm1, %v35140_v16 }
 0x362   : > { %23055 = vmatmul.mubr.msk.f32.gmra.mrb[24].mxu1 %vm934_vm1, %v35336_v61 }
 0x363   : > { %24146 = vmatmul.mubr.msk.f32.gmra.mrb[18].mxu0 %vm934_vm1, %v35142_v58  ;;  %23057 = vmatprep.mubr.msk.f32.mxu1 %vm934_vm1, %v35337_v4 }
 0x364   : > { %24148 = vmatprep.mubr.msk.f32.mxu0 %vm934_vm1, %v35144_v10 }
 0x366   : > { %23058 = vmatmul.mubr.msk.f32.gmra.mrb[26].mxu1 %vm934_vm1, %v35338_v39 }
 0x367   : > { %24149 = vmatmul.mubr.msk.f32.gmra.mrb[20].mxu0 %vm934_vm1, %v35146_v54  ;;  %23060 = vmatprep.mubr.msk.f32.mxu1 %vm934_vm1, %v35339_v42 }
 0x368   : > { %24151 = vmatprep.mubr.msk.f32.mxu0 %vm934_vm1, %v29597_v47 }
 0x36a   : > { %23061 = vmatmul.mubr.msk.f32.gmra.mrb[28].mxu1 %vm934_vm1, %v35340_v37 }
 0x36b   : > { %24152 = vmatmul.mubr.msk.f32.gmra.mrb[22].mxu0 %vm934_vm1, %v29608_v57  ;;  %23063 = vmatprep.mubr.msk.f32.mxu1 %vm934_vm1, %v35341_v40 }
 0x36c   : > { %24154 = vmatprep.mubr.msk.f32.mxu0 %vm934_vm1, %v35355_v21 }
 0x36e   : > { %23064 = vmatmul.mubr.msk.f32.gmra.mrb[30].mxu1 %vm934_vm1, %v35342_v27 }
 0x36f   : > { %24155 = vmatmul.mubr.msk.f32.gmra.mrb[24].mxu0 %vm934_vm1, %v35356_v43  ;;  %23068 = vmatprep.mubr.msk.f32.mxu1 %vm934_vm1, %v35357_v18  ;;  %v35362_v18 = vld [vmem:[#allocation211_spill] sm:$0xff] }
 0x370   : > { %24157 = vmatprep.mubr.msk.f32.mxu0 %vm934_vm1, %v35358_v17  ;;  %v27132_v17 = vld [vmem:[%s27441_s7 + $0x30] sm:$0xff] }
 0x372   : > { %23069 = vmatmul.mubr.msk.f32.vlgmr.msra.gmra.mrb[0].mxu1 %vm934_vm1, %v35359_v30  ;;  %v35364_v30 = vld [vmem:[#allocation234_spill] sm:$0xff] }
 0x373   : > { %24158 = vmatmul.mubr.msk.f32.gmra.mrb[26].mxu0 %vm934_vm1, %v35360_v11  ;;  %23071 = vmatprep.mubr.msk.f32.mxu1 %vm934_vm1, %v35361_v63  ;;  %v35365_v11 = vld [vmem:[#allocation235_spill] sm:$0xff]  ;;  %v35366_v63 = vld [vmem:[#allocation218_spill] sm:$0xff] }
 0x374   : > { %24160 = vmatprep.mubr.msk.f32.mxu0 %vm934_vm1, %v35362_v18  ;;  %23117 = vmatpush3.msk.msra.mxu1 %vm999_vm0, %v30638_v19  ;;  %v35369_v19 = vld [vmem:[#allocation187_spill] sm:$0xff]  ;;  %v30967_v18 = vld [vmem:[%s27441_s7 + $0x1a0] sm:$0xff] }
 0x375   : > { %23166 = vmatprep.subr.msk.mxu1 %vm999_vm0, %v30793_v59 }
 0x376   : > { %23072 = vmatmul.mubr.msk.f32.gmra.mrb[2].mxu1 %vm934_vm1, %v35364_v30  ;;  %v30960_v30 = vld [vmem:[%s27441_s7 + $0x198] sm:$0xff] }
 0x377   : > { %24161 = vmatmul.mubr.msk.f32.gmra.mrb[28].mxu0 %vm934_vm1, %v35365_v11  ;;  %23074 = vmatprep.mubr.msk.f32.mxu1 %vm934_vm1, %v35366_v63  ;;  %v30829_v63 = vld [vmem:[%s34755_s1 + $0x94] sm:$0x7]  ;;  %v30953_v11 = vld [vmem:[%s27441_s7 + $0x188] sm:$0xff] }
 0x378   : > { %24163 = vmatprep.mubr.msk.f32.mxu0 %vm934_vm1, %v30801_v5  ;;  %v30946_v5 = vld [vmem:[%s27441_s7 + $0x180] sm:$0xff] }
 0x37a   : > { %23075 = vmatmul.mubr.msk.f32.gmra.mrb[4].mxu1 %vm934_vm1, %v35368_v24  ;;  %v30939_v24 = vld [vmem:[%s27441_s7 + $0x170] sm:$0xff] }
 0x37b   : > { %24164 = vmatmul.mubr.msk.f32.gmra.mrb[30].mxu0 %vm934_vm1, %v30816_v6  ;;  %23077 = vmatprep.mubr.msk.f32.mxu1 %vm934_vm1, %v29403_v9  ;;  %v30925_v9 = vld [vmem:[%s27441_s7 + $0x158] sm:$0xff]  ;;  %v30932_v6 = vld [vmem:[%s27441_s7 + $0x168] sm:$0xff] }
 0x37c   : > { %24168 = vmatprep.mubr.msk.f32.mxu0 %vm934_vm1, %v35369_v19  ;;  %v35372_v19 = vld [vmem:[#allocation192_spill] sm:$0xff] }
 0x37e   : > { %23078 = vmatmul.mubr.msk.f32.gmra.mrb[6].mxu1 %vm934_vm1, %v29419_v14  ;;  %v30918_v14 = vld [vmem:[%s27441_s7 + $0x150] sm:$0xff] }
 0x37f   : > { %24169 = vmatmul.mubr.msk.f32.vlgmr.msra.gmra.mrb[0].mxu0 %vm934_vm1, %v35370_v25  ;;  %23080 = vmatprep.mubr.msk.f32.mxu1 %vm934_vm1, %v29425_v20  ;;  %v35373_v25 = vld [vmem:[#allocation194_spill] sm:$0xff] }
 0x380   : > { %24217 = vmatpush3.msk.msra.mxu0 %vm999_vm0, %v30674_v52  ;;  %24171 = vmatprep.mubr.msk.f32.mxu0 %vm934_vm1, %v35371_v32  ;;  %v35374_v52 = vld [vmem:[#allocation195_spill] sm:$0xff]  ;;  %v35375_v32 = vld [vmem:[#allocation200_spill] sm:$0xff] }
 0x381   : > { %24266 = vmatprep.subr.msk.mxu0 %vm999_vm0, %v30829_v63 }
 0x382   : > { %23081 = vmatmul.mubr.msk.f32.gmra.mrb[8].mxu1 %vm934_vm1, %v29440_v26  ;;  %v35424_v26 = vld [vmem:[#allocation68_spill] sm:$0xff] }
 0x383   : > { %24172 = vmatmul.mubr.msk.f32.gmra.mrb[2].mxu0 %vm934_vm1, %v35372_v19  ;;  %23083 = vmatprep.mubr.msk.f32.mxu1 %vm934_vm1, %v29444_v50  ;;  %v35376_v19 = vld [vmem:[#allocation201_spill] sm:$0xff] }
 0x384   : > { %24174 = vmatprep.mubr.msk.f32.mxu0 %vm934_vm1, %v35373_v25  ;;  %v35377_v25 = vld [vmem:[#allocation205_spill] sm:$0xff] }
 0x385   : > { %v35423_v50 = vld [vmem:[#allocation17_spill] sm:$0xff] }
 0x386   : > { %23084 = vmatmul.mubr.msk.f32.gmra.mrb[10].mxu1 %vm934_vm1, %v29457_v38 }
 0x387   : > { %24175 = vmatmul.mubr.msk.f32.gmra.mrb[4].mxu0 %vm934_vm1, %v35374_v52  ;;  %23086 = vmatprep.mubr.msk.f32.mxu1 %vm934_vm1, %v29461_v55  ;;  %v35378_v52 = vld [vmem:[#allocation236_spill] sm:$0xff]  ;;  %v35422_v55 = vld [vmem:[#allocation67_spill] sm:$0xff] }
 0x388   : > { %24177 = vmatprep.mubr.msk.f32.mxu0 %vm934_vm1, %v35375_v32  ;;  %v35379_v32 = vld [vmem:[#allocation237_spill] sm:$0xff] }
 0x38a   : > { %23087 = vmatmul.mubr.msk.f32.gmra.mrb[12].mxu1 %vm934_vm1, %v29474_v3  ;;  %v35411_v3 = vld [vmem:[#allocation48_spill] sm:$0xff] }
 0x38b   : > { %24178 = vmatmul.mubr.msk.f32.gmra.mrb[6].mxu0 %vm934_vm1, %v35376_v19  ;;  %23089 = vmatprep.mubr.msk.f32.mxu1 %vm934_vm1, %v29478_v22  ;;  %v35380_v19 = vld [vmem:[#allocation238_spill] sm:$0xff]  ;;  %v35408_v22 = vld [vmem:[#allocation44_spill] sm:$0xff] }
 0x38c   : > { %24180 = vmatprep.mubr.msk.f32.mxu0 %vm934_vm1, %v35377_v25  ;;  %v35381_v25 = vld [vmem:[#allocation239_spill] sm:$0xff] }
 0x38e   : > { %23090 = vmatmul.mubr.msk.f32.gmra.mrb[14].mxu1 %vm934_vm1, %v29491_v62  ;;  %v35406_v62 = vld [vmem:[#allocation42_spill] sm:$0xff] }
 0x38f   : > { %24181 = vmatmul.mubr.msk.f32.gmra.mrb[8].mxu0 %vm934_vm1, %v35378_v52  ;;  %23092 = vmatprep.mubr.msk.f32.mxu1 %vm934_vm1, %v29495_v60  ;;  %v35382_v52 = vld [vmem:[#allocation240_spill] sm:$0xff]  ;;  %v35404_v60 = vld [vmem:[#allocation41_spill] sm:$0xff] }
 0x390   : > { %24183 = vmatprep.mubr.msk.f32.mxu0 %vm934_vm1, %v35379_v32  ;;  %v30890_v32 = vld [vmem:[%s27441_s7 + $0x120] sm:$0xff] }
 0x392   : > { %23093 = vmatmul.mubr.msk.f32.gmra.mrb[16].mxu1 %vm934_vm1, %v29508_v35  ;;  %v35402_v35 = vld [vmem:[#allocation39_spill] sm:$0xff] }
 0x393   : > { %24184 = vmatmul.mubr.msk.f32.gmra.mrb[10].mxu0 %vm934_vm1, %v35380_v19  ;;  %23095 = vmatprep.mubr.msk.f32.mxu1 %vm934_vm1, %v29512_v13  ;;  %v30897_v19 = vld [vmem:[%s27441_s7 + $0x128] sm:$0xff]  ;;  %v35400_v13 = vld [vmem:[#allocation38_spill] sm:$0xff] }
 0x394   : > { %24186 = vmatprep.mubr.msk.f32.mxu0 %vm934_vm1, %v35381_v25  ;;  %v30904_v25 = vld [vmem:[%s27441_s7 + $0x138] sm:$0xff] }
 0x396   : > { %23096 = vmatmul.mubr.msk.f32.gmra.mrb[18].mxu1 %vm934_vm1, %v29525_v1  ;;  %v35398_v1 = vld [vmem:[#allocation36_spill] sm:$0xff] }
 0x397   : > { %24187 = vmatmul.mubr.msk.f32.gmra.mrb[12].mxu0 %vm934_vm1, %v35382_v52  ;;  %23098 = vmatprep.mubr.msk.f32.mxu1 %vm934_vm1, %v29529_v51  ;;  %v30911_v52 = vld [vmem:[%s27441_s7 + $0x140] sm:$0xff]  ;;  %v35396_v51 = vld [vmem:[#allocation35_spill] sm:$0xff] }
 0x398   : > { %24189 = vmatprep.mubr.msk.f32.mxu0 %vm934_vm1, %v30890_v32 }
 0x39a   : > { %23099 = vmatmul.mubr.msk.f32.gmra.mrb[20].mxu1 %vm934_vm1, %v29542_v46  ;;  %v35394_v46 = vld [vmem:[#allocation33_spill] sm:$0xff] }
 0x39b   : > { %24190 = vmatmul.mubr.msk.f32.gmra.mrb[14].mxu0 %vm934_vm1, %v30897_v19  ;;  %23101 = vmatprep.mubr.msk.f32.mxu1 %vm934_vm1, %v35136_v48  ;;  %v35392_v48 = vld [vmem:[#allocation32_spill] sm:$0xff] }
 0x39c   : > { %24192 = vmatprep.mubr.msk.f32.mxu0 %vm934_vm1, %v30904_v25 }
 0x39e   : > { %23102 = vmatmul.mubr.msk.f32.gmra.mrb[22].mxu1 %vm934_vm1, %v35138_v53  ;;  %v31049_v53 = vld [vmem:[%s27441_s7 + $0xb0] sm:$0xff] }
 0x39f   : > { %24193 = vmatmul.mubr.msk.f32.gmra.mrb[16].mxu0 %vm934_vm1, %v30911_v52  ;;  %23104 = vmatprep.mubr.msk.f32.mxu1 %vm934_vm1, %v35140_v16  ;;  %v35388_v16 = vld [vmem:[#allocation29_spill] sm:$0xff]  ;;  %35391 = vst [vmem:[#allocation188_spill] sm:$0xff] %v31049_v53 }
 0x3a0   : > { %24195 = vmatprep.mubr.msk.f32.mxu0 %vm934_vm1, %v30918_v14 }
 0x3a2   : > { %23105 = vmatmul.mubr.msk.f32.gmra.mrb[24].mxu1 %vm934_vm1, %v35142_v58  ;;  %v35386_v58 = vld [vmem:[#allocation27_spill] sm:$0xff] }
 0x3a3   : > { %24196 = vmatmul.mubr.msk.f32.gmra.mrb[18].mxu0 %vm934_vm1, %v30925_v9  ;;  %23107 = vmatprep.mubr.msk.f32.mxu1 %vm934_vm1, %v35144_v10  ;;  %v27143_v10 = vld [vmem:[%s27441_s7 + $0x80] sm:$0xff] }
 0x3a4   : > { %24198 = vmatprep.mubr.msk.f32.mxu0 %vm934_vm1, %v30932_v6 }
 0x3a6   : > { %23108 = vmatmul.mubr.msk.f32.gmra.mrb[26].mxu1 %vm934_vm1, %v35146_v54  ;;  %v27136_v54 = vld [vmem:[%s27441_s7 + $0x48] sm:$0xff] }
 0x3a7   : > { %24199 = vmatmul.mubr.msk.f32.gmra.mrb[20].mxu0 %vm934_vm1, %v30939_v24  ;;  %23110 = vmatprep.mubr.msk.f32.mxu1 %vm934_vm1, %v29597_v47  ;;  %v27135_v47 = vld [vmem:[%s27441_s7 + $0x1b8] sm:$0xff] }
 0x3a8   : > { %24201 = vmatprep.mubr.msk.f32.mxu0 %vm934_vm1, %v30946_v5 }
 0x3aa   : > { %23111 = vmatmul.mubr.msk.f32.gmra.mrb[28].mxu1 %vm934_vm1, %v29608_v57  ;;  %v27134_v57 = vld [vmem:[%s27441_s7 + $0x38] sm:$0xff] }
 0x3ab   : > { %24202 = vmatmul.mubr.msk.f32.gmra.mrb[22].mxu0 %vm934_vm1, %v30953_v11  ;;  %23113 = vmatprep.mubr.msk.f32.mxu1 %vm934_vm1, %v35355_v21  ;;  %v27133_v21 = vld [vmem:[%s27441_s7 + $0x1b0] sm:$0xff] }
 0x3ac   : > { %24204 = vmatprep.mubr.msk.f32.mxu0 %vm934_vm1, %v30960_v30 }
 0x3ae   : > { %23114 = vmatmul.mubr.msk.f32.gmra.mrb[30].mxu1 %vm934_vm1, %v35356_v43  ;;  %v30982_v43 = vld [vmem:[%s34755_s1 + $0x40] sm:$0x7] }
 0x3af   : > { %24205 = vmatmul.mubr.msk.f32.gmra.mrb[24].mxu0 %vm934_vm1, %v30967_v18  ;;  %23118 = vmatprep.mubr.msk.f32.mxu1 %vm934_vm1, %v27132_v17  ;;  %v27137_v17 = vld [vmem:[%s27441_s7 + $0x1c8] sm:$0xff] }
 0x3b0   : > { %24207 = vmatprep.mubr.msk.f32.mxu0 %vm934_vm1, %v27133_v21  ;;  %v30989_v21 = vld [vmem:[%s27441_s7 + $0x1e0] sm:$0xff] }
 0x3b2   : > { %23119 = vmatmul.mubr.msk.f32.vlgmr.msra.gmra.mrb[0].mxu1 %vm934_vm1, %v27134_v57  ;;  %v27139_v57 = vld [vmem:[%s27441_s7 + $0x1d0] sm:$0xff] }
 0x3b3   : > { %24208 = vmatmul.mubr.msk.f32.gmra.mrb[26].mxu0 %vm934_vm1, %v27135_v47  ;;  %23121 = vmatprep.mubr.msk.f32.mxu1 %vm934_vm1, %v27136_v54  ;;  %v27138_v47 = vld [vmem:[%s27441_s7 + $0x50] sm:$0xff]  ;;  %v27140_v54 = vld [vmem:[%s27441_s7 + $0x60] sm:$0xff] }
 0x3b4   : > { %24210 = vmatprep.mubr.msk.f32.mxu0 %vm934_vm1, %v27137_v17  ;;  %23167 = vmatpush3.msk.msra.mxu1 %vm999_vm0, %v30793_v59  ;;  %v31004_v17 = vld [vmem:[%s27441_s7 + $0x1e8] sm:$0xff] }
 0x3b5   : > { %23216 = vmatprep.subr.msk.mxu1 %vm999_vm0, %v30982_v43  ;;  %v27141_v59 = vld [vmem:[%s27441_s7 + $0x68] sm:$0xff]  ;;  %v11404_v38 = vrot.slane %v31004_v17, 1 }
 0x3b6   : > { %23122 = vmatmul.mubr.msk.f32.gmra.mrb[2].mxu1 %vm934_vm1, %v27138_v47  ;;  %v27142_v47 = vld [vmem:[%s27441_s7 + $0x78] sm:$0xff] }
 0x3b7   : > { %24211 = vmatmul.mubr.msk.f32.gmra.mrb[28].mxu0 %vm934_vm1, %v27139_v57  ;;  %23124 = vmatprep.mubr.msk.f32.mxu1 %vm934_vm1, %v27140_v54  ;;  %v35383_v57 = vld [vmem:[#allocation24_spill] sm:$0xff]  ;;  %v31017_v54 = vld [vmem:[%s34755_s1 + $0x98] sm:$0x7] }
 0x3b8   : > { %24213 = vmatprep.mubr.msk.f32.mxu0 %vm934_vm1, %v30989_v21 }
 0x3ba   : > { %23125 = vmatmul.mubr.msk.f32.gmra.mrb[4].mxu1 %vm934_vm1, %v27141_v59  ;;  %v35384_v59 = vld [vmem:[#allocation26_spill] sm:$0xff] }
 0x3bb   : > { %24214 = vmatmul.mubr.msk.f32.gmra.mrb[30].mxu0 %vm934_vm1, %v31004_v17  ;;  %23127 = vmatprep.mubr.msk.f32.mxu1 %vm934_vm1, %v27142_v47  ;;  %v31026_v47 = vld [vmem:[%s27441_s7 + $0x90] sm:$0xff] }
 0x3bc   : > { %24218 = vmatprep.mubr.msk.f32.mxu0 %vm934_vm1, %v35383_v57  ;;  %35385 = vst [vmem:[#allocation116_spill] sm:$0xff] %v31026_v47 }
 0x3be   : > { %23128 = vmatmul.mubr.msk.f32.gmra.mrb[6].mxu1 %vm934_vm1, %v27143_v10  ;;  %v31035_v10 = vld [vmem:[%s27441_s7 + $0x98] sm:$0xff] }
 0x3bf   : > { %24219 = vmatmul.mubr.msk.f32.vlgmr.msra.gmra.mrb[0].mxu0 %vm934_vm1, %v35384_v59  ;;  %23130 = vmatprep.mubr.msk.f32.mxu1 %vm934_vm1, %v31026_v47  ;;  %35387 = vst [vmem:[#allocation120_spill] sm:$0xff] %v31035_v10  ;;  %v35390_v47 = vld [vmem:[#allocation30_spill] sm:$0xff] }
 0x3c0   : > { %24267 = vmatpush3.msk.msra.mxu0 %vm999_vm0, %v30829_v63  ;;  %24221 = vmatprep.mubr.msk.f32.mxu0 %vm934_vm1, %v35386_v58  ;;  %v31042_v63 = vld [vmem:[%s27441_s7 + $0xa8] sm:$0xff] }
 0x3c1   : > { %24316 = vmatprep.subr.msk.mxu0 %vm999_vm0, %v31017_v54  ;;  %35389 = vst [vmem:[#allocation187_spill] sm:$0xff] %v31042_v63 }
 0x3c2   : > { %23131 = vmatmul.mubr.msk.f32.gmra.mrb[8].mxu1 %vm934_vm1, %v31035_v10  ;;  %v31056_v10 = vld [vmem:[%s27441_s7 + $0xc0] sm:$0xff] }
 0x3c3   : > { %24222 = vmatmul.mubr.msk.f32.gmra.mrb[2].mxu0 %vm934_vm1, %v35388_v16  ;;  %23133 = vmatprep.mubr.msk.f32.mxu1 %vm934_vm1, %v31042_v63  ;;  %35393 = vst [vmem:[#allocation191_spill] sm:$0xff] %v31056_v10  ;;  %v31063_v63 = vld [vmem:[%s27441_s7 + $0xc8] sm:$0xff] }
 0x3c4   : > { %24224 = vmatprep.mubr.msk.f32.mxu0 %vm934_vm1, %v35390_v47  ;;  %35395 = vst [vmem:[#allocation192_spill] sm:$0xff] %v31063_v63 }
 0x3c6   : > { %23134 = vmatmul.mubr.msk.f32.gmra.mrb[10].mxu1 %vm934_vm1, %v31049_v53  ;;  %v31070_v53 = vld [vmem:[%s27441_s7 + $0xd8] sm:$0xff] }
 0x3c7   : > { %24225 = vmatmul.mubr.msk.f32.gmra.mrb[4].mxu0 %vm934_vm1, %v35392_v48  ;;  %23136 = vmatprep.mubr.msk.f32.mxu1 %vm934_vm1, %v31056_v10  ;;  %35397 = vst [vmem:[#allocation194_spill] sm:$0xff] %v31070_v53  ;;  %v31077_v10 = vld [vmem:[%s27441_s7 + $0xe0] sm:$0xff] }
 0x3c8   : > { %24227 = vmatprep.mubr.msk.f32.mxu0 %vm934_vm1, %v35394_v46  ;;  %35399 = vst [vmem:[#allocation195_spill] sm:$0xff] %v31077_v10 }
 0x3ca   : > { %23137 = vmatmul.mubr.msk.f32.gmra.mrb[12].mxu1 %vm934_vm1, %v31063_v63  ;;  %v31084_v63 = vld [vmem:[%s27441_s7 + $0xf0] sm:$0xff] }
 0x3cb   : > { %24228 = vmatmul.mubr.msk.f32.gmra.mrb[6].mxu0 %vm934_vm1, %v35396_v51  ;;  %23139 = vmatprep.mubr.msk.f32.mxu1 %vm934_vm1, %v31070_v53  ;;  %35401 = vst [vmem:[#allocation200_spill] sm:$0xff] %v31084_v63  ;;  %v31091_v53 = vld [vmem:[%s27441_s7 + $0xf8] sm:$0xff] }
 0x3cc   : > { %24230 = vmatprep.mubr.msk.f32.mxu0 %vm934_vm1, %v35398_v1  ;;  %35403 = vst [vmem:[#allocation201_spill] sm:$0xff] %v31091_v53 }
 0x3ce   : > { %23140 = vmatmul.mubr.msk.f32.gmra.mrb[14].mxu1 %vm934_vm1, %v31077_v10  ;;  %v31098_v10 = vld [vmem:[%s27441_s7 + $0x108] sm:$0xff] }
 0x3cf   : > { %24231 = vmatmul.mubr.msk.f32.gmra.mrb[8].mxu0 %vm934_vm1, %v35400_v13  ;;  %23142 = vmatprep.mubr.msk.f32.mxu1 %vm934_vm1, %v31084_v63  ;;  %35405 = vst [vmem:[#allocation205_spill] sm:$0xff] %v31098_v10  ;;  %v31105_v63 = vld [vmem:[%s27441_s7 + $0x110] sm:$0xff] }
 0x3d0   : > { %24233 = vmatprep.mubr.msk.f32.mxu0 %vm934_vm1, %v35402_v35  ;;  %35407 = vst [vmem:[#allocation236_spill] sm:$0xff] %v31105_v63 }
 0x3d2   : > { %23143 = vmatmul.mubr.msk.f32.gmra.mrb[16].mxu1 %vm934_vm1, %v31091_v53  ;;  %v35409_v53 = vld [vmem:[#allocation45_spill] sm:$0xff] }
 0x3d3   : > { %24234 = vmatmul.mubr.msk.f32.gmra.mrb[10].mxu0 %vm934_vm1, %v35404_v60  ;;  %23145 = vmatprep.mubr.msk.f32.mxu1 %vm934_vm1, %v31098_v10  ;;  %v35410_v10 = vld [vmem:[#allocation47_spill] sm:$0xff] }
 0x3d4   : > { %24236 = vmatprep.mubr.msk.f32.mxu0 %vm934_vm1, %v35406_v62 }
 0x3d6   : > { %23146 = vmatmul.mubr.msk.f32.gmra.mrb[18].mxu1 %vm934_vm1, %v31105_v63  ;;  %v35412_v63 = vld [vmem:[#allocation50_spill] sm:$0xff] }
 0x3d7   : > { %24237 = vmatmul.mubr.msk.f32.gmra.mrb[12].mxu0 %vm934_vm1, %v35408_v22  ;;  %23148 = vmatprep.mubr.msk.f32.mxu1 %vm934_vm1, %v30890_v32  ;;  %v35413_v32 = vld [vmem:[#allocation51_spill] sm:$0xff] }
 0x3d8   : > { %24239 = vmatprep.mubr.msk.f32.mxu0 %vm934_vm1, %v35409_v53 }
 0x3da   : > { %23149 = vmatmul.mubr.msk.f32.gmra.mrb[20].mxu1 %vm934_vm1, %v30897_v19  ;;  %v35414_v19 = vld [vmem:[#allocation55_spill] sm:$0xff] }
 0x3db   : > { %24240 = vmatmul.mubr.msk.f32.gmra.mrb[14].mxu0 %vm934_vm1, %v35410_v10  ;;  %23151 = vmatprep.mubr.msk.f32.mxu1 %vm934_vm1, %v30904_v25  ;;  %v35415_v25 = vld [vmem:[#allocation56_spill] sm:$0xff] }
 0x3dc   : > { %24242 = vmatprep.mubr.msk.f32.mxu0 %vm934_vm1, %v35411_v3 }
 0x3de   : > { %23152 = vmatmul.mubr.msk.f32.gmra.mrb[22].mxu1 %vm934_vm1, %v30911_v52  ;;  %v35419_v52 = vld [vmem:[#allocation65_spill] sm:$0xff] }
 0x3df   : > { %24243 = vmatmul.mubr.msk.f32.gmra.mrb[16].mxu0 %vm934_vm1, %v35412_v63  ;;  %23154 = vmatprep.mubr.msk.f32.mxu1 %vm934_vm1, %v30918_v14  ;;  %v35416_v14 = vld [vmem:[#allocation60_spill] sm:$0xff] }
 0x3e0   : > { %24245 = vmatprep.mubr.msk.f32.mxu0 %vm934_vm1, %v35413_v32 }
 0x3e2   : > { %23155 = vmatmul.mubr.msk.f32.gmra.mrb[24].mxu1 %vm934_vm1, %v30925_v9  ;;  %v35417_v9 = vld [vmem:[#allocation61_spill] sm:$0xff] }
 0x3e3   : > { %24246 = vmatmul.mubr.msk.f32.gmra.mrb[18].mxu0 %vm934_vm1, %v35414_v19  ;;  %23157 = vmatprep.mubr.msk.f32.mxu1 %vm934_vm1, %v30932_v6  ;;  %v35418_v6 = vld [vmem:[#allocation64_spill] sm:$0xff] }
 0x3e4   : > { %24248 = vmatprep.mubr.msk.f32.mxu0 %vm934_vm1, %v35415_v25 }
 0x3e6   : > { %23158 = vmatmul.mubr.msk.f32.gmra.mrb[26].mxu1 %vm934_vm1, %v30939_v24  ;;  %v35420_v24 = vld [vmem:[#allocation66_spill] sm:$0xff] }
 0x3e7   : > { %24249 = vmatmul.mubr.msk.f32.gmra.mrb[20].mxu0 %vm934_vm1, %v35416_v14  ;;  %23160 = vmatprep.mubr.msk.f32.mxu1 %vm934_vm1, %v30946_v5  ;;  %v35421_v5 = vld [vmem:[#allocation16_spill] sm:$0xff] }
 0x3e8   : > { %24251 = vmatprep.mubr.msk.f32.mxu0 %vm934_vm1, %v35417_v9 }
 0x3ea   : > { %23161 = vmatmul.mubr.msk.f32.gmra.mrb[28].mxu1 %vm934_vm1, %v30953_v11  ;;  %v11403_v11 = vrot.slane %v30989_v21, 1 }
 0x3eb   : > { %24252 = vmatmul.mubr.msk.f32.gmra.mrb[22].mxu0 %vm934_vm1, %v35418_v6  ;;  %23163 = vmatprep.mubr.msk.f32.mxu1 %vm934_vm1, %v30960_v30  ;;  %v31166_v30 = vld [vmem:[%s27441_s7 + $0x1f0] sm:$0x3f] }
 0x3ec   : > { %24254 = vmatprep.mubr.msk.f32.mxu0 %vm934_vm1, %v35419_v52  ;;  %v11406_v20 = vrot.slane %v31166_v30, 1  ;;  %v31183_v7 = vsel %vm851_vm2, %v11403_v11, %v11404_v38 }
 0x3ed   : > { %35427 = vst [vmem:[#allocation237_spill] sm:$0xff] %v31183_v7 }
 0x3ee   : > { %23164 = vmatmul.mubr.msk.f32.gmra.mrb[30].mxu1 %vm934_vm1, %v30967_v18  ;;  %v31175_v18 = vld [vmem:[%s34755_s1 + $0x44] sm:$0x7]  ;;  %v31198_v11 = vsel %vm851_vm2, %v11404_v38, %v11406_v20  ;;  %v35435_v38 = vld [vmem:[#allocation75_spill] sm:$0xff] }
 0x3ef   : > { %24255 = vmatmul.mubr.msk.f32.gmra.mrb[24].mxu0 %vm934_vm1, %v35420_v24  ;;  %23168 = vmatprep.mubr.msk.f32.mxu1 %vm934_vm1, %v35421_v5  ;;  %v35425_v5 = vld [vmem:[#allocation18_spill] sm:$0xff]  ;;  %35431 = vst [vmem:[#allocation238_spill] sm:$0xff] %v31198_v11 }
 0x3f0   : > { %24257 = vmatprep.mubr.msk.f32.mxu0 %vm934_vm1, %v35422_v55  ;;  %v35426_v55 = vld [vmem:[#allocation14_spill] sm:$0xff] }
 0x3f1   : > { %v35434_v20 = vld [vmem:[#allocation74_spill] sm:$0xff] }
 0x3f2   : > { %23169 = vmatmul.mubr.msk.f32.vlgmr.msra.gmra.mrb[0].mxu1 %vm934_vm1, %v35423_v50  ;;  %v35428_v50 = vld [vmem:[#allocation20_spill] sm:$0xff] }
 0x3f3   : > { %24258 = vmatmul.mubr.msk.f32.gmra.mrb[26].mxu0 %vm934_vm1, %v35424_v26  ;;  %23171 = vmatprep.mubr.msk.f32.mxu1 %vm934_vm1, %v35425_v5  ;;  %v35429_v26 = vld [vmem:[#allocation15_spill] sm:$0xff]  ;;  %v35430_v5 = vld [vmem:[#allocation21_spill] sm:$0xff] }
 0x3f4   : > { %24260 = vmatprep.mubr.msk.f32.mxu0 %vm934_vm1, %v35426_v55  ;;  %23217 = vmatpush3.msk.msra.mxu1 %vm999_vm0, %v30982_v43  ;;  %v35432_v55 = vld [vmem:[#allocation23_spill] sm:$0xff]  ;;  %v35433_v43 = vld [vmem:[#allocation73_spill] sm:$0xff] }
 0x3f5   : > { %23266 = vmatprep.subr.msk.mxu1 %vm999_vm0, %v31175_v18 }
 0x3f6   : > { %23172 = vmatmul.mubr.msk.f32.gmra.mrb[2].mxu1 %vm934_vm1, %v35428_v50  ;;  %v31211_v50 = vld [vmem:[%s34755_s1 + $0x9c] sm:$0x7] }
 0x3f7   : > { %24261 = vmatmul.mubr.msk.f32.gmra.mrb[28].mxu0 %vm934_vm1, %v35429_v26  ;;  %23174 = vmatprep.mubr.msk.f32.mxu1 %vm934_vm1, %v35430_v5  ;;  %v35440_v5 = vld [vmem:[#allocation80_spill] sm:$0xff]  ;;  %v35443_v26 = vld [vmem:[#allocation83_spill] sm:$0xff] }
 0x3f8   : > { %24263 = vmatprep.mubr.msk.f32.mxu0 %vm934_vm1, %v31183_v7  ;;  %v35442_v7 = vld [vmem:[#allocation82_spill] sm:$0xff] }
 0x3fa   : > { %23175 = vmatmul.mubr.msk.f32.gmra.mrb[4].mxu1 %vm934_vm1, %v35432_v55  ;;  %v35436_v55 = vld [vmem:[#allocation76_spill] sm:$0xff] }
 0x3fb   : > { %24264 = vmatmul.mubr.msk.f32.gmra.mrb[30].mxu0 %vm934_vm1, %v31198_v11  ;;  %23177 = vmatprep.mubr.msk.f32.mxu1 %vm934_vm1, %v35383_v57  ;;  %v35437_v57 = vld [vmem:[#allocation77_spill] sm:$0xff] }
 0x3fc   : > { %24268 = vmatprep.mubr.msk.f32.mxu0 %vm934_vm1, %v35433_v43  ;;  %v35441_v11 = vld [vmem:[#allocation81_spill] sm:$0xff] }
 0x3fe   : > { %23178 = vmatmul.mubr.msk.f32.gmra.mrb[6].mxu1 %vm934_vm1, %v35384_v59  ;;  %v35439_v59 = vld [vmem:[#allocation79_spill] sm:$0xff] }
 0x3ff   : > { %24269 = vmatmul.mubr.msk.f32.vlgmr.msra.gmra.mrb[0].mxu0 %vm934_vm1, %v35434_v20  ;;  %23180 = vmatprep.mubr.msk.f32.mxu1 %vm934_vm1, %v35386_v58 }
 0x400   : > { %24317 = vmatpush3.msk.msra.mxu0 %vm999_vm0, %v31017_v54  ;;  %24271 = vmatprep.mubr.msk.f32.mxu0 %vm934_vm1, %v35435_v38  ;;  %v35438_v54 = vld [vmem:[#allocation78_spill] sm:$0xff] }
 0x401   : > { %24366 = vmatprep.subr.msk.mxu0 %vm999_vm0, %v31211_v50 }
 0x402   : > { %23181 = vmatmul.mubr.msk.f32.gmra.mrb[8].mxu1 %vm934_vm1, %v35388_v16  ;;  %v35463_v16 = vld [vmem:[#allocation69_spill] sm:$0xff] }
 0x403   : > { %24272 = vmatmul.mubr.msk.f32.gmra.mrb[2].mxu0 %vm934_vm1, %v35436_v55  ;;  %23183 = vmatprep.mubr.msk.f32.mxu1 %vm934_vm1, %v35390_v47  ;;  %v35462_v47 = vld [vmem:[#allocation100_spill] sm:$0xff] }
 0x404   : > { %24274 = vmatprep.mubr.msk.f32.mxu0 %vm934_vm1, %v35437_v57 }
 0x406   : > { %23184 = vmatmul.mubr.msk.f32.gmra.mrb[10].mxu1 %vm934_vm1, %v35392_v48  ;;  %v11675_v48 = vrot.slane %v31004_v17, 2 }
 0x407   : > { %24275 = vmatmul.mubr.msk.f32.gmra.mrb[4].mxu0 %vm934_vm1, %v35438_v54  ;;  %23186 = vmatprep.mubr.msk.f32.mxu1 %vm934_vm1, %v35394_v46  ;;  %v35460_v46 = vld [vmem:[#allocation98_spill] sm:$0xff] }
 0x408   : > { %24277 = vmatprep.mubr.msk.f32.mxu0 %vm934_vm1, %v35439_v59 }
 0x40a   : > { %23187 = vmatmul.mubr.msk.f32.gmra.mrb[12].mxu1 %vm934_vm1, %v35396_v51  ;;  %v35444_v51 = vld [vmem:[#allocation84_spill] sm:$0xff] }
 0x40b   : > { %24278 = vmatmul.mubr.msk.f32.gmra.mrb[6].mxu0 %vm934_vm1, %v35440_v5  ;;  %23189 = vmatprep.mubr.msk.f32.mxu1 %vm934_vm1, %v35398_v1  ;;  %v35445_v1 = vld [vmem:[#allocation85_spill] sm:$0xff] }
 0x40c   : > { %24280 = vmatprep.mubr.msk.f32.mxu0 %vm934_vm1, %v35441_v11 }
 0x40e   : > { %23190 = vmatmul.mubr.msk.f32.gmra.mrb[14].mxu1 %vm934_vm1, %v35400_v13  ;;  %v35446_v13 = vld [vmem:[#allocation86_spill] sm:$0xff] }
 0x40f   : > { %24281 = vmatmul.mubr.msk.f32.gmra.mrb[8].mxu0 %vm934_vm1, %v35442_v7  ;;  %23192 = vmatprep.mubr.msk.f32.mxu1 %vm934_vm1, %v35402_v35  ;;  %v35447_v35 = vld [vmem:[#allocation87_spill] sm:$0xff] }
 0x410   : > { %24283 = vmatprep.mubr.msk.f32.mxu0 %vm934_vm1, %v35443_v26 }
 0x412   : > { %23193 = vmatmul.mubr.msk.f32.gmra.mrb[16].mxu1 %vm934_vm1, %v35404_v60  ;;  %v35448_v60 = vld [vmem:[#allocation88_spill] sm:$0xff] }
 0x413   : > { %24284 = vmatmul.mubr.msk.f32.gmra.mrb[10].mxu0 %vm934_vm1, %v35444_v51  ;;  %23195 = vmatprep.mubr.msk.f32.mxu1 %vm934_vm1, %v35406_v62  ;;  %v35449_v62 = vld [vmem:[#allocation89_spill] sm:$0xff] }
 0x414   : > { %24286 = vmatprep.mubr.msk.f32.mxu0 %vm934_vm1, %v35445_v1 }
 0x416   : > { %23196 = vmatmul.mubr.msk.f32.gmra.mrb[18].mxu1 %vm934_vm1, %v35408_v22  ;;  %v35450_v22 = vld [vmem:[#allocation90_spill] sm:$0xff] }
 0x417   : > { %24287 = vmatmul.mubr.msk.f32.gmra.mrb[12].mxu0 %vm934_vm1, %v35446_v13  ;;  %23198 = vmatprep.mubr.msk.f32.mxu1 %vm934_vm1, %v35409_v53  ;;  %v35451_v53 = vld [vmem:[#allocation91_spill] sm:$0xff] }
 0x418   : > { %24289 = vmatprep.mubr.msk.f32.mxu0 %vm934_vm1, %v35447_v35 }
 0x41a   : > { %23199 = vmatmul.mubr.msk.f32.gmra.mrb[20].mxu1 %vm934_vm1, %v35410_v10  ;;  %v35452_v10 = vld [vmem:[#allocation92_spill] sm:$0xff] }
 0x41b   : > { %24290 = vmatmul.mubr.msk.f32.gmra.mrb[14].mxu0 %vm934_vm1, %v35448_v60  ;;  %23201 = vmatprep.mubr.msk.f32.mxu1 %vm934_vm1, %v35411_v3  ;;  %v35453_v3 = vld [vmem:[#allocation93_spill] sm:$0xff] }
 0x41c   : > { %24292 = vmatprep.mubr.msk.f32.mxu0 %vm934_vm1, %v35449_v62 }
 0x41e   : > { %23202 = vmatmul.mubr.msk.f32.gmra.mrb[22].mxu1 %vm934_vm1, %v35412_v63  ;;  %v35454_v63 = vld [vmem:[#allocation11_spill] sm:$0xff] }
 0x41f   : > { %24293 = vmatmul.mubr.msk.f32.gmra.mrb[16].mxu0 %vm934_vm1, %v35450_v22  ;;  %23204 = vmatprep.mubr.msk.f32.mxu1 %vm934_vm1, %v35413_v32  ;;  %v35455_v32 = vld [vmem:[#allocation94_spill] sm:$0xff] }
 0x420   : > { %24295 = vmatprep.mubr.msk.f32.mxu0 %vm934_vm1, %v35451_v53 }
 0x422   : > { %23205 = vmatmul.mubr.msk.f32.gmra.mrb[24].mxu1 %vm934_vm1, %v35414_v19  ;;  %v35456_v19 = vld [vmem:[#allocation58_spill] sm:$0xff] }
 0x423   : > { %24296 = vmatmul.mubr.msk.f32.gmra.mrb[18].mxu0 %vm934_vm1, %v35452_v10  ;;  %23207 = vmatprep.mubr.msk.f32.mxu1 %vm934_vm1, %v35415_v25  ;;  %v35457_v25 = vld [vmem:[#allocation12_spill] sm:$0xff] }
 0x424   : > { %24298 = vmatprep.mubr.msk.f32.mxu0 %vm934_vm1, %v35453_v3 }
 0x426   : > { %23208 = vmatmul.mubr.msk.f32.gmra.mrb[26].mxu1 %vm934_vm1, %v35416_v14  ;;  %v35458_v14 = vld [vmem:[#allocation97_spill] sm:$0xff] }
 0x427   : > { %24299 = vmatmul.mubr.msk.f32.gmra.mrb[20].mxu0 %vm934_vm1, %v35454_v63  ;;  %23210 = vmatprep.mubr.msk.f32.mxu1 %vm934_vm1, %v35417_v9  ;;  %v35459_v9 = vld [vmem:[#allocation13_spill] sm:$0xff] }
 0x428   : > { %24301 = vmatprep.mubr.msk.f32.mxu0 %vm934_vm1, %v35455_v32 }
 0x42a   : > { %23211 = vmatmul.mubr.msk.f32.gmra.mrb[28].mxu1 %vm934_vm1, %v35418_v6  ;;  %v11674_v6 = vrot.slane %v30989_v21, 2 }
 0x42b   : > { %24302 = vmatmul.mubr.msk.f32.gmra.mrb[22].mxu0 %vm934_vm1, %v35456_v19  ;;  %23213 = vmatprep.mubr.msk.f32.mxu1 %vm934_vm1, %v35419_v52  ;;  %v35461_v52 = vld [vmem:[#allocation99_spill] sm:$0xff] }
 0x42c   : > { %24304 = vmatprep.mubr.msk.f32.mxu0 %vm934_vm1, %v35457_v25  ;;  %v31338_v58 = vsel %vm1520_vm3, %v11674_v6, %v11675_v48 }
 0x42d   : > { %35465 = vst [vmem:[#allocation239_spill] sm:$0xff] %v31338_v58 }
 0x42e   : > { %23214 = vmatmul.mubr.msk.f32.gmra.mrb[30].mxu1 %vm934_vm1, %v35420_v24  ;;  %v31330_v24 = vld [vmem:[%s34755_s1 + $0x48] sm:$0x7] }
 0x42f   : > { %24305 = vmatmul.mubr.msk.f32.gmra.mrb[24].mxu0 %vm934_vm1, %v35458_v14  ;;  %23218 = vmatprep.mubr.msk.f32.mxu1 %vm934_vm1, %v35459_v9  ;;  %v35464_v9 = vld [vmem:[#allocation95_spill] sm:$0xff] }
 0x430   : > { %24307 = vmatprep.mubr.msk.f32.mxu0 %vm934_vm1, %v35460_v46  ;;  %v11677_v46 = vrot.slane %v31166_v30, 2 }
 0x432   : > { %23219 = vmatmul.mubr.msk.f32.vlgmr.msra.gmra.mrb[0].mxu1 %vm934_vm1, %v35461_v52  ;;  %v35466_v52 = vld [vmem:[#allocation70_spill] sm:$0xff]  ;;  %v31353_v6 = vsel %vm1520_vm3, %v11675_v48, %v11677_v46  ;;  %v35472_v46 = vld [vmem:[#allocation104_spill] sm:$0xff]  ;;  %v35473_v48 = vld [vmem:[#allocation25_spill] sm:$0xff] }
 0x433   : > { %24308 = vmatmul.mubr.msk.f32.gmra.mrb[26].mxu0 %vm934_vm1, %v35462_v47  ;;  %23221 = vmatprep.mubr.msk.f32.mxu1 %vm934_vm1, %v35463_v16  ;;  %v35467_v47 = vld [vmem:[#allocation96_spill] sm:$0xff]  ;;  %v35468_v16 = vld [vmem:[#allocation71_spill] sm:$0xff]  ;;  %35469 = vst [vmem:[#allocation240_spill] sm:$0xff] %v31353_v6 }
 0x434   : > { %24310 = vmatprep.mubr.msk.f32.mxu0 %vm934_vm1, %v35464_v9  ;;  %23267 = vmatpush3.msk.msra.mxu1 %vm999_vm0, %v31175_v18  ;;  %v35470_v9 = vld [vmem:[#allocation72_spill] sm:$0xff]  ;;  %v35471_v18 = vld [vmem:[#allocation22_spill] sm:$0xff] }
 0x435   : > { %23316 = vmatprep.subr.msk.mxu1 %vm999_vm0, %v31330_v24 }
 0x436   : > { %23222 = vmatmul.mubr.msk.f32.gmra.mrb[2].mxu1 %vm934_vm1, %v35466_v52  ;;  %v31366_v52 = vld [vmem:[%s34755_s1 + $0xa0] sm:$0x7] }
 0x437   : > { %24311 = vmatmul.mubr.msk.f32.gmra.mrb[28].mxu0 %vm934_vm1, %v35467_v47  ;;  %23224 = vmatprep.mubr.msk.f32.mxu1 %vm934_vm1, %v35468_v16  ;;  %v35478_v16 = vld [vmem:[#allocation107_spill] sm:$0xff]  ;;  %v35481_v47 = vld [vmem:[#allocation37_spill] sm:$0xff] }
 0x438   : > { %24313 = vmatprep.mubr.msk.f32.mxu0 %vm934_vm1, %v31338_v58  ;;  %v35480_v58 = vld [vmem:[#allocation108_spill] sm:$0xff] }
 0x43a   : > { %23225 = vmatmul.mubr.msk.f32.gmra.mrb[4].mxu1 %vm934_vm1, %v35470_v9  ;;  %v35477_v9 = vld [vmem:[#allocation31_spill] sm:$0xff] }
 0x43b   : > { %24314 = vmatmul.mubr.msk.f32.gmra.mrb[30].mxu0 %vm934_vm1, %v31353_v6  ;;  %23227 = vmatprep.mubr.msk.f32.mxu1 %vm934_vm1, %v35433_v43  ;;  %v35474_v43 = vld [vmem:[#allocation105_spill] sm:$0xff]  ;;  %v35479_v6 = vld [vmem:[#allocation34_spill] sm:$0xff] }
 0x43c   : > { %24318 = vmatprep.mubr.msk.f32.mxu0 %vm934_vm1, %v35471_v18 }
 0x43e   : > { %23228 = vmatmul.mubr.msk.f32.gmra.mrb[6].mxu1 %vm934_vm1, %v35434_v20  ;;  %v35475_v20 = vld [vmem:[#allocation28_spill] sm:$0xff] }
 0x43f   : > { %24319 = vmatmul.mubr.msk.f32.vlgmr.msra.gmra.mrb[0].mxu0 %vm934_vm1, %v35472_v46  ;;  %23230 = vmatprep.mubr.msk.f32.mxu1 %vm934_vm1, %v35435_v38 }
 0x440   : > { %24367 = vmatpush3.msk.msra.mxu0 %vm999_vm0, %v31211_v50  ;;  %24321 = vmatprep.mubr.msk.f32.mxu0 %vm934_vm1, %v35473_v48  ;;  %v35476_v50 = vld [vmem:[#allocation106_spill] sm:$0xff] }
 0x441   : > { %24416 = vmatprep.subr.msk.mxu0 %vm999_vm0, %v31366_v52 }
 0x442   : > { %23231 = vmatmul.mubr.msk.f32.gmra.mrb[8].mxu1 %vm934_vm1, %v35436_v55  ;;  %v35501_v55 = vld [vmem:[#allocation101_spill] sm:$0xff] }
 0x443   : > { %24322 = vmatmul.mubr.msk.f32.gmra.mrb[2].mxu0 %vm934_vm1, %v35474_v43  ;;  %23233 = vmatprep.mubr.msk.f32.mxu1 %vm934_vm1, %v35437_v57  ;;  %v35500_v57 = vld [vmem:[#allocation127_spill] sm:$0xff] }
 0x444   : > { %24324 = vmatprep.mubr.msk.f32.mxu0 %vm934_vm1, %v35475_v20 }
 0x446   : > { %23234 = vmatmul.mubr.msk.f32.gmra.mrb[10].mxu1 %vm934_vm1, %v35438_v54  ;;  %v11946_v54 = vrot.slane %v31004_v17, 3 }
 0x447   : > { %24325 = vmatmul.mubr.msk.f32.gmra.mrb[4].mxu0 %vm934_vm1, %v35476_v50  ;;  %23236 = vmatprep.mubr.msk.f32.mxu1 %vm934_vm1, %v35439_v59  ;;  %v35498_v59 = vld [vmem:[#allocation125_spill] sm:$0xff] }
 0x448   : > { %24327 = vmatprep.mubr.msk.f32.mxu0 %vm934_vm1, %v35477_v9 }
 0x44a   : > { %23237 = vmatmul.mubr.msk.f32.gmra.mrb[12].mxu1 %vm934_vm1, %v35440_v5  ;;  %v35482_v5 = vld [vmem:[#allocation109_spill] sm:$0xff] }
 0x44b   : > { %24328 = vmatmul.mubr.msk.f32.gmra.mrb[6].mxu0 %vm934_vm1, %v35478_v16  ;;  %23239 = vmatprep.mubr.msk.f32.mxu1 %vm934_vm1, %v35441_v11  ;;  %v35483_v11 = vld [vmem:[#allocation40_spill] sm:$0xff] }
 0x44c   : > { %24330 = vmatprep.mubr.msk.f32.mxu0 %vm934_vm1, %v35479_v6 }
 0x44e   : > { %23240 = vmatmul.mubr.msk.f32.gmra.mrb[14].mxu1 %vm934_vm1, %v35442_v7  ;;  %v35484_v7 = vld [vmem:[#allocation110_spill] sm:$0xff] }
 0x44f   : > { %24331 = vmatmul.mubr.msk.f32.gmra.mrb[8].mxu0 %vm934_vm1, %v35480_v58  ;;  %23242 = vmatprep.mubr.msk.f32.mxu1 %vm934_vm1, %v35443_v26  ;;  %v35485_v26 = vld [vmem:[#allocation43_spill] sm:$0xff] }
 0x450   : > { %24333 = vmatprep.mubr.msk.f32.mxu0 %vm934_vm1, %v35481_v47 }
 0x452   : > { %23243 = vmatmul.mubr.msk.f32.gmra.mrb[16].mxu1 %vm934_vm1, %v35444_v51  ;;  %v35486_v51 = vld [vmem:[#allocation111_spill] sm:$0xff] }
 0x453   : > { %24334 = vmatmul.mubr.msk.f32.gmra.mrb[10].mxu0 %vm934_vm1, %v35482_v5  ;;  %23245 = vmatprep.mubr.msk.f32.mxu1 %vm934_vm1, %v35445_v1  ;;  %v35487_v1 = vld [vmem:[#allocation46_spill] sm:$0xff] }
 0x454   : > { %24336 = vmatprep.mubr.msk.f32.mxu0 %vm934_vm1, %v35483_v11 }
 0x456   : > { %23246 = vmatmul.mubr.msk.f32.gmra.mrb[18].mxu1 %vm934_vm1, %v35446_v13  ;;  %v35488_v13 = vld [vmem:[#allocation112_spill] sm:$0xff] }
 0x457   : > { %24337 = vmatmul.mubr.msk.f32.gmra.mrb[12].mxu0 %vm934_vm1, %v35484_v7  ;;  %23248 = vmatprep.mubr.msk.f32.mxu1 %vm934_vm1, %v35447_v35  ;;  %v35489_v35 = vld [vmem:[#allocation49_spill] sm:$0xff] }
 0x458   : > { %24339 = vmatprep.mubr.msk.f32.mxu0 %vm934_vm1, %v35485_v26 }
 0x45a   : > { %23249 = vmatmul.mubr.msk.f32.gmra.mrb[20].mxu1 %vm934_vm1, %v35448_v60  ;;  %v35490_v60 = vld [vmem:[#allocation52_spill] sm:$0xff] }
 0x45b   : > { %24340 = vmatmul.mubr.msk.f32.gmra.mrb[14].mxu0 %vm934_vm1, %v35486_v51  ;;  %23251 = vmatprep.mubr.msk.f32.mxu1 %vm934_vm1, %v35449_v62  ;;  %v35491_v62 = vld [vmem:[#allocation113_spill] sm:$0xff] }
 0x45c   : > { %24342 = vmatprep.mubr.msk.f32.mxu0 %vm934_vm1, %v35487_v1 }
 0x45e   : > { %23252 = vmatmul.mubr.msk.f32.gmra.mrb[22].mxu1 %vm934_vm1, %v35450_v22  ;;  %v35492_v22 = vld [vmem:[#allocation53_spill] sm:$0xff] }
 0x45f   : > { %24343 = vmatmul.mubr.msk.f32.gmra.mrb[16].mxu0 %vm934_vm1, %v35488_v13  ;;  %23254 = vmatprep.mubr.msk.f32.mxu1 %vm934_vm1, %v35451_v53  ;;  %v35493_v53 = vld [vmem:[#allocation59_spill] sm:$0xff] }
 0x460   : > { %24345 = vmatprep.mubr.msk.f32.mxu0 %vm934_vm1, %v35489_v35 }
 0x462   : > { %23255 = vmatmul.mubr.msk.f32.gmra.mrb[24].mxu1 %vm934_vm1, %v35452_v10  ;;  %v35494_v10 = vld [vmem:[#allocation117_spill] sm:$0xff] }
 0x463   : > { %24346 = vmatmul.mubr.msk.f32.gmra.mrb[18].mxu0 %vm934_vm1, %v35490_v60  ;;  %23257 = vmatprep.mubr.msk.f32.mxu1 %vm934_vm1, %v35453_v3  ;;  %v35495_v3 = vld [vmem:[#allocation119_spill] sm:$0xff] }
 0x464   : > { %24348 = vmatprep.mubr.msk.f32.mxu0 %vm934_vm1, %v35491_v62 }
 0x466   : > { %23258 = vmatmul.mubr.msk.f32.gmra.mrb[26].mxu1 %vm934_vm1, %v35454_v63  ;;  %v35496_v63 = vld [vmem:[#allocation123_spill] sm:$0xff] }
 0x467   : > { %24349 = vmatmul.mubr.msk.f32.gmra.mrb[20].mxu0 %vm934_vm1, %v35492_v22  ;;  %23260 = vmatprep.mubr.msk.f32.mxu1 %vm934_vm1, %v35455_v32  ;;  %v35497_v32 = vld [vmem:[#allocation124_spill] sm:$0xff] }
 0x468   : > { %24351 = vmatprep.mubr.msk.f32.mxu0 %vm934_vm1, %v35493_v53 }
 0x46a   : > { %23261 = vmatmul.mubr.msk.f32.gmra.mrb[28].mxu1 %vm934_vm1, %v35456_v19  ;;  %v11945_v19 = vrot.slane %v30989_v21, 3 }
 0x46b   : > { %24352 = vmatmul.mubr.msk.f32.gmra.mrb[22].mxu0 %vm934_vm1, %v35494_v10  ;;  %23263 = vmatprep.mubr.msk.f32.mxu1 %vm934_vm1, %v35457_v25  ;;  %v35499_v25 = vld [vmem:[#allocation126_spill] sm:$0xff] }
 0x46c   : > { %24354 = vmatprep.mubr.msk.f32.mxu0 %vm934_vm1, %v35495_v3  ;;  %v31493_v38 = vsel %vm1927_vm4, %v11945_v19, %v11946_v54 }
 0x46d   : > { %35503 = vst [vmem:[#allocation24_spill] sm:$0xff] %v31493_v38 }
 0x46e   : > { %23264 = vmatmul.mubr.msk.f32.gmra.mrb[30].mxu1 %vm934_vm1, %v35458_v14  ;;  %v31485_v14 = vld [vmem:[%s34755_s1 + $0x4c] sm:$0x7] }
 0x46f   : > { %24355 = vmatmul.mubr.msk.f32.gmra.mrb[24].mxu0 %vm934_vm1, %v35496_v63  ;;  %23268 = vmatprep.mubr.msk.f32.mxu1 %vm934_vm1, %v35497_v32  ;;  %v35502_v32 = vld [vmem:[#allocation118_spill] sm:$0xff] }
 0x470   : > { %24357 = vmatprep.mubr.msk.f32.mxu0 %vm934_vm1, %v35498_v59  ;;  %v11948_v59 = vrot.slane %v31166_v30, 3 }
 0x472   : > { %23269 = vmatmul.mubr.msk.f32.vlgmr.msra.gmra.mrb[0].mxu1 %vm934_vm1, %v35499_v25  ;;  %v35504_v25 = vld [vmem:[#allocation102_spill] sm:$0xff]  ;;  %v31508_v19 = vsel %vm1927_vm4, %v11946_v54, %v11948_v59  ;;  %v35510_v54 = vld [vmem:[#allocation137_spill] sm:$0xff] }
 0x473   : > { %24358 = vmatmul.mubr.msk.f32.gmra.mrb[26].mxu0 %vm934_vm1, %v35500_v57  ;;  %23271 = vmatprep.mubr.msk.f32.mxu1 %vm934_vm1, %v35501_v55  ;;  %v35505_v57 = vld [vmem:[#allocation122_spill] sm:$0xff]  ;;  %v35506_v55 = vld [vmem:[#allocation19_spill] sm:$0xff]  ;;  %35507 = vst [vmem:[#allocation26_spill] sm:$0xff] %v31508_v19 }
 0x474   : > { %24360 = vmatprep.mubr.msk.f32.mxu0 %vm934_vm1, %v35502_v32  ;;  %23317 = vmatpush3.msk.msra.mxu1 %vm999_vm0, %v31330_v24  ;;  %v35508_v32 = vld [vmem:[#allocation103_spill] sm:$0xff]  ;;  %v35509_v24 = vld [vmem:[#allocation134_spill] sm:$0xff] }
 0x475   : > { %23366 = vmatprep.subr.msk.mxu1 %vm999_vm0, %v31485_v14  ;;  %v35511_v59 = vld [vmem:[#allocation138_spill] sm:$0xff] }
 0x476   : > { %23272 = vmatmul.mubr.msk.f32.gmra.mrb[2].mxu1 %vm934_vm1, %v35504_v25  ;;  %v31521_v25 = vld [vmem:[%s34755_s1 + $0xa4] sm:$0x7] }
 0x477   : > { %24361 = vmatmul.mubr.msk.f32.gmra.mrb[28].mxu0 %vm934_vm1, %v35505_v57  ;;  %23274 = vmatprep.mubr.msk.f32.mxu1 %vm934_vm1, %v35506_v55  ;;  %v35516_v55 = vld [vmem:[#allocation150_spill] sm:$0xff]  ;;  %v35519_v57 = vld [vmem:[#allocation155_spill] sm:$0xff] }
 0x478   : > { %24363 = vmatprep.mubr.msk.f32.mxu0 %vm934_vm1, %v31493_v38  ;;  %v35518_v38 = vld [vmem:[#allocation154_spill] sm:$0xff] }
 0x47a   : > { %23275 = vmatmul.mubr.msk.f32.gmra.mrb[4].mxu1 %vm934_vm1, %v35508_v32  ;;  %v35515_v32 = vld [vmem:[#allocation147_spill] sm:$0xff] }
 0x47b   : > { %24364 = vmatmul.mubr.msk.f32.gmra.mrb[30].mxu0 %vm934_vm1, %v31508_v19  ;;  %23277 = vmatprep.mubr.msk.f32.mxu1 %vm934_vm1, %v35471_v18  ;;  %v35512_v18 = vld [vmem:[#allocation140_spill] sm:$0xff]  ;;  %v35517_v19 = vld [vmem:[#allocation151_spill] sm:$0xff] }
 0x47c   : > { %24368 = vmatprep.mubr.msk.f32.mxu0 %vm934_vm1, %v35509_v24 }
 0x47e   : > { %23278 = vmatmul.mubr.msk.f32.gmra.mrb[6].mxu1 %vm934_vm1, %v35472_v46  ;;  %v35513_v46 = vld [vmem:[#allocation142_spill] sm:$0xff] }
 0x47f   : > { %24369 = vmatmul.mubr.msk.f32.vlgmr.msra.gmra.mrb[0].mxu0 %vm934_vm1, %v35510_v54  ;;  %23280 = vmatprep.mubr.msk.f32.mxu1 %vm934_vm1, %v35473_v48 }
 0x480   : > { %24417 = vmatpush3.msk.msra.mxu0 %vm999_vm0, %v31366_v52  ;;  %24371 = vmatprep.mubr.msk.f32.mxu0 %vm934_vm1, %v35511_v59  ;;  %v35514_v52 = vld [vmem:[#allocation145_spill] sm:$0xff] }
 0x481   : > { %24466 = vmatprep.subr.msk.mxu0 %vm999_vm0, %v31521_v25 }
 0x482   : > { %23281 = vmatmul.mubr.msk.f32.gmra.mrb[8].mxu1 %vm934_vm1, %v35474_v43  ;;  %v35539_v43 = vld [vmem:[#allocation128_spill] sm:$0xff] }
 0x483   : > { %24372 = vmatmul.mubr.msk.f32.gmra.mrb[2].mxu0 %vm934_vm1, %v35512_v18  ;;  %23283 = vmatprep.mubr.msk.f32.mxu1 %vm934_vm1, %v35475_v20  ;;  %v35538_v20 = vld [vmem:[#allocation173_spill] sm:$0xff] }
 0x484   : > { %24374 = vmatprep.mubr.msk.f32.mxu0 %vm934_vm1, %v35513_v46 }
 0x486   : > { %23284 = vmatmul.mubr.msk.f32.gmra.mrb[10].mxu1 %vm934_vm1, %v35476_v50  ;;  %v12217_v50 = vrot.slane %v31004_v17, 4 }
 0x487   : > { %24375 = vmatmul.mubr.msk.f32.gmra.mrb[4].mxu0 %vm934_vm1, %v35514_v52  ;;  %23286 = vmatprep.mubr.msk.f32.mxu1 %vm934_vm1, %v35477_v9  ;;  %v35536_v9 = vld [vmem:[#allocation171_spill] sm:$0xff] }
 0x488   : > { %24377 = vmatprep.mubr.msk.f32.mxu0 %vm934_vm1, %v35515_v32 }
 0x48a   : > { %23287 = vmatmul.mubr.msk.f32.gmra.mrb[12].mxu1 %vm934_vm1, %v35478_v16  ;;  %v35520_v16 = vld [vmem:[#allocation157_spill] sm:$0xff] }
 0x48b   : > { %24378 = vmatmul.mubr.msk.f32.gmra.mrb[6].mxu0 %vm934_vm1, %v35516_v55  ;;  %23289 = vmatprep.mubr.msk.f32.mxu1 %vm934_vm1, %v35479_v6  ;;  %v35521_v6 = vld [vmem:[#allocation158_spill] sm:$0xff] }
 0x48c   : > { %24380 = vmatprep.mubr.msk.f32.mxu0 %vm934_vm1, %v35517_v19 }
 0x48e   : > { %23290 = vmatmul.mubr.msk.f32.gmra.mrb[14].mxu1 %vm934_vm1, %v35480_v58  ;;  %v35522_v58 = vld [vmem:[#allocation159_spill] sm:$0xff] }
 0x48f   : > { %24381 = vmatmul.mubr.msk.f32.gmra.mrb[8].mxu0 %vm934_vm1, %v35518_v38  ;;  %23292 = vmatprep.mubr.msk.f32.mxu1 %vm934_vm1, %v35481_v47  ;;  %v35523_v47 = vld [vmem:[#allocation160_spill] sm:$0xff] }
 0x490   : > { %24383 = vmatprep.mubr.msk.f32.mxu0 %vm934_vm1, %v35519_v57 }
 0x492   : > { %23293 = vmatmul.mubr.msk.f32.gmra.mrb[16].mxu1 %vm934_vm1, %v35482_v5  ;;  %v35524_v5 = vld [vmem:[#allocation161_spill] sm:$0xff] }
 0x493   : > { %24384 = vmatmul.mubr.msk.f32.gmra.mrb[10].mxu0 %vm934_vm1, %v35520_v16  ;;  %23295 = vmatprep.mubr.msk.f32.mxu1 %vm934_vm1, %v35483_v11  ;;  %v35525_v11 = vld [vmem:[#allocation162_spill] sm:$0xff] }
 0x494   : > { %24386 = vmatprep.mubr.msk.f32.mxu0 %vm934_vm1, %v35521_v6 }
 0x496   : > { %23296 = vmatmul.mubr.msk.f32.gmra.mrb[18].mxu1 %vm934_vm1, %v35484_v7  ;;  %v35526_v7 = vld [vmem:[#allocation163_spill] sm:$0xff] }
 0x497   : > { %24387 = vmatmul.mubr.msk.f32.gmra.mrb[12].mxu0 %vm934_vm1, %v35522_v58  ;;  %23298 = vmatprep.mubr.msk.f32.mxu1 %vm934_vm1, %v35485_v26  ;;  %v35527_v26 = vld [vmem:[#allocation164_spill] sm:$0xff] }
 0x498   : > { %24389 = vmatprep.mubr.msk.f32.mxu0 %vm934_vm1, %v35523_v47 }
 0x49a   : > { %23299 = vmatmul.mubr.msk.f32.gmra.mrb[20].mxu1 %vm934_vm1, %v35486_v51  ;;  %v35528_v51 = vld [vmem:[#allocation165_spill] sm:$0xff] }
 0x49b   : > { %24390 = vmatmul.mubr.msk.f32.gmra.mrb[14].mxu0 %vm934_vm1, %v35524_v5  ;;  %23301 = vmatprep.mubr.msk.f32.mxu1 %vm934_vm1, %v35487_v1  ;;  %v35529_v1 = vld [vmem:[#allocation166_spill] sm:$0xff] }
 0x49c   : > { %24392 = vmatprep.mubr.msk.f32.mxu0 %vm934_vm1, %v35525_v11 }
 0x49e   : > { %23302 = vmatmul.mubr.msk.f32.gmra.mrb[22].mxu1 %vm934_vm1, %v35488_v13  ;;  %v35530_v13 = vld [vmem:[#allocation167_spill] sm:$0xff] }
 0x49f   : > { %24393 = vmatmul.mubr.msk.f32.gmra.mrb[16].mxu0 %vm934_vm1, %v35526_v7  ;;  %23304 = vmatprep.mubr.msk.f32.mxu1 %vm934_vm1, %v35489_v35  ;;  %v35531_v35 = vld [vmem:[#allocation57_spill] sm:$0xff] }
 0x4a0   : > { %24395 = vmatprep.mubr.msk.f32.mxu0 %vm934_vm1, %v35527_v26 }
 0x4a2   : > { %23305 = vmatmul.mubr.msk.f32.gmra.mrb[24].mxu1 %vm934_vm1, %v35490_v60  ;;  %v35532_v60 = vld [vmem:[#allocation115_spill] sm:$0xff] }
 0x4a3   : > { %24396 = vmatmul.mubr.msk.f32.gmra.mrb[18].mxu0 %vm934_vm1, %v35528_v51  ;;  %23307 = vmatprep.mubr.msk.f32.mxu1 %vm934_vm1, %v35491_v62  ;;  %v35533_v62 = vld [vmem:[#allocation169_spill] sm:$0xff] }
 0x4a4   : > { %24398 = vmatprep.mubr.msk.f32.mxu0 %vm934_vm1, %v35529_v1 }
 0x4a6   : > { %23308 = vmatmul.mubr.msk.f32.gmra.mrb[26].mxu1 %vm934_vm1, %v35492_v22  ;;  %v35534_v22 = vld [vmem:[#allocation63_spill] sm:$0xff] }
 0x4a7   : > { %24399 = vmatmul.mubr.msk.f32.gmra.mrb[20].mxu0 %vm934_vm1, %v35530_v13  ;;  %23310 = vmatprep.mubr.msk.f32.mxu1 %vm934_vm1, %v35493_v53  ;;  %v35535_v53 = vld [vmem:[#allocation170_spill] sm:$0xff] }
 0x4a8   : > { %24401 = vmatprep.mubr.msk.f32.mxu0 %vm934_vm1, %v35531_v35 }
 0x4aa   : > { %23311 = vmatmul.mubr.msk.f32.gmra.mrb[28].mxu1 %vm934_vm1, %v35494_v10  ;;  %v12216_v10 = vrot.slane %v30989_v21, 4 }
 0x4ab   : > { %24402 = vmatmul.mubr.msk.f32.gmra.mrb[22].mxu0 %vm934_vm1, %v35532_v60  ;;  %23313 = vmatprep.mubr.msk.f32.mxu1 %vm934_vm1, %v35495_v3  ;;  %v35537_v3 = vld [vmem:[#allocation172_spill] sm:$0xff] }
 0x4ac   : > { %24404 = vmatprep.mubr.msk.f32.mxu0 %vm934_vm1, %v35533_v62  ;;  %v31648_v48 = vsel %vm2334_vm5, %v12216_v10, %v12217_v50 }
 0x4ad   : > { %35541 = vst [vmem:[#allocation16_spill] sm:$0xff] %v31648_v48 }
 0x4ae   : > { %23314 = vmatmul.mubr.msk.f32.gmra.mrb[30].mxu1 %vm934_vm1, %v35496_v63  ;;  %v31640_v63 = vld [vmem:[%s34755_s1 + $0x50] sm:$0x7] }
 0x4af   : > { %24405 = vmatmul.mubr.msk.f32.gmra.mrb[24].mxu0 %vm934_vm1, %v35534_v22  ;;  %23318 = vmatprep.mubr.msk.f32.mxu1 %vm934_vm1, %v35535_v53  ;;  %v35540_v53 = vld [vmem:[#allocation168_spill] sm:$0xff] }
 0x4b0   : > { %24407 = vmatprep.mubr.msk.f32.mxu0 %vm934_vm1, %v35536_v9  ;;  %v12219_v9 = vrot.slane %v31166_v30, 4 }
 0x4b2   : > { %23319 = vmatmul.mubr.msk.f32.vlgmr.msra.gmra.mrb[0].mxu1 %vm934_vm1, %v35537_v3  ;;  %v35542_v3 = vld [vmem:[#allocation130_spill] sm:$0xff]  ;;  %v31663_v10 = vsel %vm2334_vm5, %v12217_v50, %v12219_v9  ;;  %v35547_v50 = vld [vmem:[#allocation209_spill] sm:$0xff] }
 0x4b3   : > { %24408 = vmatmul.mubr.msk.f32.gmra.mrb[26].mxu0 %vm934_vm1, %v35538_v20  ;;  %23321 = vmatprep.mubr.msk.f32.mxu1 %vm934_vm1, %v35539_v43  ;;  %v35543_v20 = vld [vmem:[#allocation62_spill] sm:$0xff]  ;;  %v35544_v43 = vld [vmem:[#allocation132_spill] sm:$0xff]  ;;  %35545 = vst [vmem:[#allocation17_spill] sm:$0xff] %v31663_v10  ;;  %v35548_v9 = vld [vmem:[#allocation213_spill] sm:$0xff] }
 0x4b4   : > { %24410 = vmatprep.mubr.msk.f32.mxu0 %vm934_vm1, %v35540_v53  ;;  %23367 = vmatpush3.msk.msra.mxu1 %vm999_vm0, %v31485_v14  ;;  %v35546_v53 = vld [vmem:[#allocation133_spill] sm:$0xff]  ;;  %v31676_v14 = vld [vmem:[%s34755_s1 + $0xa8] sm:$0x7] }
 0x4b5   : > { %23416 = vmatprep.subr.msk.mxu1 %vm999_vm0, %v31640_v63 }
 0x4b6   : > { %23322 = vmatmul.mubr.msk.f32.gmra.mrb[2].mxu1 %vm934_vm1, %v35542_v3  ;;  %v35551_v3 = vld [vmem:[#allocation216_spill] sm:$0xff] }
 0x4b7   : > { %24411 = vmatmul.mubr.msk.f32.gmra.mrb[28].mxu0 %vm934_vm1, %v35543_v20  ;;  %23324 = vmatprep.mubr.msk.f32.mxu1 %vm934_vm1, %v35544_v43  ;;  %v35552_v43 = vld [vmem:[#allocation217_spill] sm:$0xff] }
 0x4b8   : > { %24413 = vmatprep.mubr.msk.f32.mxu0 %vm934_vm1, %v31648_v48  ;;  %v35554_v48 = vld [vmem:[#allocation176_spill] sm:$0xff] }
 0x4ba   : > { %23325 = vmatmul.mubr.msk.f32.gmra.mrb[4].mxu1 %vm934_vm1, %v35546_v53  ;;  %v12488_v53 = vrot.slane %v31004_v17, 5 }
 0x4bb   : > { %24414 = vmatmul.mubr.msk.f32.gmra.mrb[30].mxu0 %vm934_vm1, %v31663_v10  ;;  %23327 = vmatprep.mubr.msk.f32.mxu1 %vm934_vm1, %v35509_v24  ;;  %v35549_v24 = vld [vmem:[#allocation214_spill] sm:$0xff] }
 0x4bc   : > { %24418 = vmatprep.mubr.msk.f32.mxu0 %vm934_vm1, %v35319_v29  ;;  %v35553_v10 = vld [vmem:[#allocation174_spill] sm:$0xff] }
 0x4be   : > { %23328 = vmatmul.mubr.msk.f32.gmra.mrb[6].mxu1 %vm934_vm1, %v35510_v54  ;;  %v12487_v54 = vrot.slane %v30989_v21, 5 }
 0x4bf   : > { %24419 = vmatmul.mubr.msk.f32.vlgmr.msra.gmra.mrb[0].mxu0 %vm934_vm1, %v35320_v23  ;;  %23330 = vmatprep.mubr.msk.f32.mxu1 %vm934_vm1, %v35511_v59 }
 0x4c0   : > { %24467 = vmatpush3.msk.msra.mxu0 %vm999_vm0, %v31521_v25  ;;  %24421 = vmatprep.mubr.msk.f32.mxu0 %vm934_vm1, %v35321_v36  ;;  %v35550_v25 = vld [vmem:[#allocation215_spill] sm:$0xff] }
 0x4c1   : > { %24516 = vmatprep.subr.msk.mxu0 %vm999_vm0, %v31676_v14 }
 0x4c2   : > { %23331 = vmatmul.mubr.msk.f32.gmra.mrb[8].mxu1 %vm934_vm1, %v35512_v18 }
 0x4c3   : > { %24422 = vmatmul.mubr.msk.f32.gmra.mrb[2].mxu0 %vm934_vm1, %v35322_v28  ;;  %23333 = vmatprep.mubr.msk.f32.mxu1 %vm934_vm1, %v35513_v46 }
 0x4c4   : > { %24424 = vmatprep.mubr.msk.f32.mxu0 %vm934_vm1, %v35323_v33 }
 0x4c6   : > { %23334 = vmatmul.mubr.msk.f32.gmra.mrb[10].mxu1 %vm934_vm1, %v35514_v52 }
 0x4c7   : > { %24425 = vmatmul.mubr.msk.f32.gmra.mrb[4].mxu0 %vm934_vm1, %v35324_v56  ;;  %23336 = vmatprep.mubr.msk.f32.mxu1 %vm934_vm1, %v35515_v32 }
 0x4c8   : > { %24427 = vmatprep.mubr.msk.f32.mxu0 %vm934_vm1, %v35325_v2 }
 0x4ca   : > { %23337 = vmatmul.mubr.msk.f32.gmra.mrb[12].mxu1 %vm934_vm1, %v35516_v55 }
 0x4cb   : > { %24428 = vmatmul.mubr.msk.f32.gmra.mrb[6].mxu0 %vm934_vm1, %v35326_v8  ;;  %23339 = vmatprep.mubr.msk.f32.mxu1 %vm934_vm1, %v35517_v19 }
 0x4cc   : > { %24430 = vmatprep.mubr.msk.f32.mxu0 %vm934_vm1, %v35327_v34 }
 0x4ce   : > { %23340 = vmatmul.mubr.msk.f32.gmra.mrb[14].mxu1 %vm934_vm1, %v35518_v38 }
 0x4cf   : > { %24431 = vmatmul.mubr.msk.f32.gmra.mrb[8].mxu0 %vm934_vm1, %v35328_v31  ;;  %23342 = vmatprep.mubr.msk.f32.mxu1 %vm934_vm1, %v35519_v57 }
 0x4d0   : > { %24433 = vmatprep.mubr.msk.f32.mxu0 %vm934_vm1, %v35329_v45 }
 0x4d2   : > { %23343 = vmatmul.mubr.msk.f32.gmra.mrb[16].mxu1 %vm934_vm1, %v35520_v16 }
 0x4d3   : > { %24434 = vmatmul.mubr.msk.f32.gmra.mrb[10].mxu0 %vm934_vm1, %v35330_v12  ;;  %23345 = vmatprep.mubr.msk.f32.mxu1 %vm934_vm1, %v35521_v6 }
 0x4d4   : > { %24436 = vmatprep.mubr.msk.f32.mxu0 %vm934_vm1, %v35331_v49 }
 0x4d6   : > { %23346 = vmatmul.mubr.msk.f32.gmra.mrb[18].mxu1 %vm934_vm1, %v35522_v58 }
 0x4d7   : > { %24437 = vmatmul.mubr.msk.f32.gmra.mrb[12].mxu0 %vm934_vm1, %v35332_v15  ;;  %23348 = vmatprep.mubr.msk.f32.mxu1 %vm934_vm1, %v35523_v47 }
 0x4d8   : > { %24439 = vmatprep.mubr.msk.f32.mxu0 %vm934_vm1, %v35333_v0 }
 0x4da   : > { %23349 = vmatmul.mubr.msk.f32.gmra.mrb[20].mxu1 %vm934_vm1, %v35524_v5 }
 0x4db   : > { %24440 = vmatmul.mubr.msk.f32.gmra.mrb[14].mxu0 %vm934_vm1, %v35334_v44  ;;  %23351 = vmatprep.mubr.msk.f32.mxu1 %vm934_vm1, %v35525_v11 }
 0x4dc   : > { %24442 = vmatprep.mubr.msk.f32.mxu0 %vm934_vm1, %v35335_v41 }
 0x4de   : > { %23352 = vmatmul.mubr.msk.f32.gmra.mrb[22].mxu1 %vm934_vm1, %v35526_v7 }
 0x4df   : > { %24443 = vmatmul.mubr.msk.f32.gmra.mrb[16].mxu0 %vm934_vm1, %v35336_v61  ;;  %23354 = vmatprep.mubr.msk.f32.mxu1 %vm934_vm1, %v35527_v26 }
 0x4e0   : > { %24445 = vmatprep.mubr.msk.f32.mxu0 %vm934_vm1, %v35337_v4 }
 0x4e2   : > { %23355 = vmatmul.mubr.msk.f32.gmra.mrb[24].mxu1 %vm934_vm1, %v35528_v51 }
 0x4e3   : > { %24446 = vmatmul.mubr.msk.f32.gmra.mrb[18].mxu0 %vm934_vm1, %v35338_v39  ;;  %23357 = vmatprep.mubr.msk.f32.mxu1 %vm934_vm1, %v35529_v1 }
 0x4e4   : > { %24448 = vmatprep.mubr.msk.f32.mxu0 %vm934_vm1, %v35339_v42 }
 0x4e6   : > { %23358 = vmatmul.mubr.msk.f32.gmra.mrb[26].mxu1 %vm934_vm1, %v35530_v13 }
 0x4e7   : > { %24449 = vmatmul.mubr.msk.f32.gmra.mrb[20].mxu0 %vm934_vm1, %v35340_v37  ;;  %23360 = vmatprep.mubr.msk.f32.mxu1 %vm934_vm1, %v35531_v35 }
 0x4e8   : > { %24451 = vmatprep.mubr.msk.f32.mxu0 %vm934_vm1, %v35341_v40 }
 0x4ea   : > { %23361 = vmatmul.mubr.msk.f32.gmra.mrb[28].mxu1 %vm934_vm1, %v35532_v60 }
 0x4eb   : > { %24452 = vmatmul.mubr.msk.f32.gmra.mrb[22].mxu0 %vm934_vm1, %v35342_v27  ;;  %23363 = vmatprep.mubr.msk.f32.mxu1 %vm934_vm1, %v35533_v62 }
 0x4ec   : > { %24454 = vmatprep.mubr.msk.f32.mxu0 %vm934_vm1, %v35547_v50 }
 0x4ee   : > { %23364 = vmatmul.mubr.msk.f32.gmra.mrb[30].mxu1 %vm934_vm1, %v35534_v22 }
 0x4ef   : > { %24455 = vmatmul.mubr.msk.f32.gmra.mrb[24].mxu0 %vm934_vm1, %v35548_v9  ;;  %23368 = vmatprep.mubr.msk.f32.mxu1 %vm934_vm1, %v35549_v24  ;;  %v12490_v24 = vrot.slane %v31166_v30, 5 }
 0x4f0   : > { %24457 = vmatprep.mubr.msk.f32.mxu0 %vm934_vm1, %v35550_v25  ;;  %v31798_v25 = vsel %vm999_vm0, %v12487_v54, %v12488_v53  ;;  %v35560_v54 = vld [vmem:[#allocation175_spill] sm:$0xff] }
 0x4f1   : > { %35555 = vst [vmem:[#allocation18_spill] sm:$0xff] %v31798_v25 }
 0x4f2   : > { %23369 = vmatmul.mubr.msk.f32.vlgmr.msra.gmra.mrb[0].mxu1 %vm934_vm1, %v35551_v3  ;;  %v31805_v3 = vld [vmem:[%s34755_s1 + $0x54] sm:$0x7] }
 0x4f3   : > { %24458 = vmatmul.mubr.msk.f32.gmra.mrb[26].mxu0 %vm934_vm1, %v35552_v43  ;;  %23371 = vmatprep.mubr.msk.f32.mxu1 %vm934_vm1, %v35553_v10  ;;  %v35556_v10 = vld [vmem:[#allocation129_spill] sm:$0xff]  ;;  %v35558_v43 = vld [vmem:[#allocation131_spill] sm:$0xff] }
 0x4f4   : > { %24460 = vmatprep.mubr.msk.f32.mxu0 %vm934_vm1, %v35554_v48  ;;  %23417 = vmatpush3.msk.msra.mxu1 %vm999_vm0, %v31640_v63  ;;  %v35557_v48 = vld [vmem:[#allocation135_spill] sm:$0xff]  ;;  %v31818_v63 = vsel %vm999_vm0, %v12488_v53, %v12490_v24 }
 0x4f5   : > { %25330 = vmatprep.subr.msk.mxu1 %vm999_vm0, %v31805_v3  ;;  %35559 = vst [vmem:[#allocation20_spill] sm:$0xff] %v31818_v63  ;;  %v35562_v53 = vld [vmem:[#allocation223_spill] sm:$0xff] }
 0x4f6   : > { %23372 = vmatmul.mubr.msk.f32.gmra.mrb[2].mxu1 %vm934_vm1, %v35556_v10  ;;  %v35561_v10 = vld [vmem:[#allocation222_spill] sm:$0xff]  ;;  %v35564_v24 = vld [vmem:[#allocation139_spill] sm:$0xff] }
 0x4f7   : > { %24461 = vmatmul.mubr.msk.f32.gmra.mrb[28].mxu0 %vm934_vm1, %v35557_v48  ;;  %23374 = vmatprep.mubr.msk.f32.mxu1 %vm934_vm1, %v35558_v43  ;;  %v31831_v43 = vld [vmem:[%s34755_s1 + $0xac] sm:$0x7]  ;;  %v35570_v48 = vld [vmem:[#allocation149_spill] sm:$0xff] }
 0x4f8   : > { %24463 = vmatprep.mubr.msk.f32.mxu0 %vm934_vm1, %v31798_v25  ;;  %v35569_v25 = vld [vmem:[#allocation148_spill] sm:$0xff] }
 0x4fa   : > { %23375 = vmatmul.mubr.msk.f32.gmra.mrb[4].mxu1 %vm934_vm1, %v35560_v54  ;;  %v35567_v54 = vld [vmem:[#allocation144_spill] sm:$0xff] }
 0x4fb   : > { %24464 = vmatmul.mubr.msk.f32.gmra.mrb[30].mxu0 %vm934_vm1, %v31818_v63  ;;  %23377 = vmatprep.mubr.msk.f32.mxu1 %vm934_vm1, %v35319_v29  ;;  %v35563_v29 = vld [vmem:[#allocation224_spill] sm:$0xff]  ;;  %v35568_v63 = vld [vmem:[#allocation146_spill] sm:$0xff] }
 0x4fc   : > { %24468 = vmatprep.mubr.msk.f32.mxu0 %vm934_vm1, %v35561_v10 }
 0x4fe   : > { %23378 = vmatmul.mubr.msk.f32.gmra.mrb[6].mxu1 %vm934_vm1, %v35320_v23  ;;  %v35565_v23 = vld [vmem:[#allocation141_spill] sm:$0xff] }
 0x4ff   : > { %24469 = vmatmul.mubr.msk.f32.vlgmr.msra.gmra.mrb[0].mxu0 %vm934_vm1, %v35562_v53  ;;  %23380 = vmatprep.mubr.msk.f32.mxu1 %vm934_vm1, %v35321_v36  ;;  %v35592_v36 = vld [vmem:[#allocation208_spill] sm:$0xff] }
 0x500   : > { %24517 = vmatpush3.msk.msra.mxu0 %vm999_vm0, %v31676_v14  ;;  %24471 = vmatprep.mubr.msk.f32.mxu0 %vm934_vm1, %v35563_v29  ;;  %v35566_v14 = vld [vmem:[#allocation143_spill] sm:$0xff] }
 0x501   : > { %24566 = vmatprep.subr.msk.mxu0 %vm999_vm0, %v31831_v43 }
 0x502   : > { %23381 = vmatmul.mubr.msk.f32.gmra.mrb[8].mxu1 %vm934_vm1, %v35322_v28  ;;  %v35590_v28 = vld [vmem:[#allocation235_spill] sm:$0xff] }
 0x503   : > { %24472 = vmatmul.mubr.msk.f32.gmra.mrb[2].mxu0 %vm934_vm1, %v35564_v24  ;;  %23383 = vmatprep.mubr.msk.f32.mxu1 %vm934_vm1, %v35323_v33  ;;  %v12759_v33 = vrot.slane %v31004_v17, 6  ;;  %v35595_v17 = vld [vmem:[#allocation212_spill] sm:$0xff] }
 0x504   : > { %24474 = vmatprep.mubr.msk.f32.mxu0 %vm934_vm1, %v35565_v23 }
 0x506   : > { %23384 = vmatmul.mubr.msk.f32.gmra.mrb[10].mxu1 %vm934_vm1, %v35324_v56  ;;  %v35588_v56 = vld [vmem:[#allocation211_spill] sm:$0xff] }
 0x507   : > { %24475 = vmatmul.mubr.msk.f32.gmra.mrb[4].mxu0 %vm934_vm1, %v35566_v14  ;;  %23386 = vmatprep.mubr.msk.f32.mxu1 %vm934_vm1, %v35325_v2  ;;  %v35571_v2 = vld [vmem:[#allocation225_spill] sm:$0xff] }
 0x508   : > { %24477 = vmatprep.mubr.msk.f32.mxu0 %vm934_vm1, %v35567_v54 }
 0x50a   : > { %23387 = vmatmul.mubr.msk.f32.gmra.mrb[12].mxu1 %vm934_vm1, %v35326_v8  ;;  %v35572_v8 = vld [vmem:[#allocation226_spill] sm:$0xff] }
 0x50b   : > { %24478 = vmatmul.mubr.msk.f32.gmra.mrb[6].mxu0 %vm934_vm1, %v35568_v63  ;;  %23389 = vmatprep.mubr.msk.f32.mxu1 %vm934_vm1, %v35327_v34  ;;  %v35573_v34 = vld [vmem:[#allocation227_spill] sm:$0xff] }
 0x50c   : > { %24480 = vmatprep.mubr.msk.f32.mxu0 %vm934_vm1, %v35569_v25 }
 0x50e   : > { %23390 = vmatmul.mubr.msk.f32.gmra.mrb[14].mxu1 %vm934_vm1, %v35328_v31  ;;  %v35574_v31 = vld [vmem:[#allocation184_spill] sm:$0xff] }
 0x50f   : > { %24481 = vmatmul.mubr.msk.f32.gmra.mrb[8].mxu0 %vm934_vm1, %v35570_v48  ;;  %23392 = vmatprep.mubr.msk.f32.mxu1 %vm934_vm1, %v35329_v45  ;;  %v35575_v45 = vld [vmem:[#allocation228_spill] sm:$0xff] }
 0x510   : > { %24483 = vmatprep.mubr.msk.f32.mxu0 %vm934_vm1, %v35571_v2 }
 0x512   : > { %23393 = vmatmul.mubr.msk.f32.gmra.mrb[16].mxu1 %vm934_vm1, %v35330_v12  ;;  %v35576_v12 = vld [vmem:[#allocation229_spill] sm:$0xff] }
 0x513   : > { %24484 = vmatmul.mubr.msk.f32.gmra.mrb[10].mxu0 %vm934_vm1, %v35572_v8  ;;  %23395 = vmatprep.mubr.msk.f32.mxu1 %vm934_vm1, %v35331_v49  ;;  %v35577_v49 = vld [vmem:[#allocation230_spill] sm:$0xff] }
 0x514   : > { %24486 = vmatprep.mubr.msk.f32.mxu0 %vm934_vm1, %v35573_v34 }
 0x516   : > { %23396 = vmatmul.mubr.msk.f32.gmra.mrb[18].mxu1 %vm934_vm1, %v35332_v15  ;;  %v35578_v15 = vld [vmem:[#allocation231_spill] sm:$0xff] }
 0x517   : > { %24487 = vmatmul.mubr.msk.f32.gmra.mrb[12].mxu0 %vm934_vm1, %v35574_v31  ;;  %23398 = vmatprep.mubr.msk.f32.mxu1 %vm934_vm1, %v35333_v0  ;;  %v35579_v0 = vld [vmem:[#allocation232_spill] sm:$0xff] }
 0x518   : > { %24489 = vmatprep.mubr.msk.f32.mxu0 %vm934_vm1, %v35575_v45 }
 0x51a   : > { %23399 = vmatmul.mubr.msk.f32.gmra.mrb[20].mxu1 %vm934_vm1, %v35334_v44  ;;  %v35580_v44 = vld [vmem:[#allocation197_spill] sm:$0xff] }
 0x51b   : > { %24490 = vmatmul.mubr.msk.f32.gmra.mrb[14].mxu0 %vm934_vm1, %v35576_v12  ;;  %23401 = vmatprep.mubr.msk.f32.mxu1 %vm934_vm1, %v35335_v41  ;;  %v35581_v41 = vld [vmem:[#allocation233_spill] sm:$0xff] }
 0x51c   : > { %24492 = vmatprep.mubr.msk.f32.mxu0 %vm934_vm1, %v35577_v49 }
 0x51e   : > { %23402 = vmatmul.mubr.msk.f32.gmra.mrb[22].mxu1 %vm934_vm1, %v35336_v61  ;;  %v35582_v61 = vld [vmem:[#allocation114_spill] sm:$0xff] }
 0x51f   : > { %24493 = vmatmul.mubr.msk.f32.gmra.mrb[16].mxu0 %vm934_vm1, %v35578_v15  ;;  %23404 = vmatprep.mubr.msk.f32.mxu1 %vm934_vm1, %v35337_v4  ;;  %v35583_v4 = vld [vmem:[#allocation54_spill] sm:$0xff] }
 0x520   : > { %24495 = vmatprep.mubr.msk.f32.mxu0 %vm934_vm1, %v35579_v0 }
 0x522   : > { %23405 = vmatmul.mubr.msk.f32.gmra.mrb[24].mxu1 %vm934_vm1, %v35338_v39  ;;  %v35584_v39 = vld [vmem:[#allocation203_spill] sm:$0xff] }
 0x523   : > { %24496 = vmatmul.mubr.msk.f32.gmra.mrb[18].mxu0 %vm934_vm1, %v35580_v44  ;;  %23407 = vmatprep.mubr.msk.f32.mxu1 %vm934_vm1, %v35339_v42  ;;  %v35585_v42 = vld [vmem:[#allocation204_spill] sm:$0xff] }
 0x524   : > { %24498 = vmatprep.mubr.msk.f32.mxu0 %vm934_vm1, %v35581_v41 }
 0x526   : > { %23408 = vmatmul.mubr.msk.f32.gmra.mrb[26].mxu1 %vm934_vm1, %v35340_v37  ;;  %v35586_v37 = vld [vmem:[#allocation121_spill] sm:$0xff] }
 0x527   : > { %24499 = vmatmul.mubr.msk.f32.gmra.mrb[20].mxu0 %vm934_vm1, %v35582_v61  ;;  %23410 = vmatprep.mubr.msk.f32.mxu1 %vm934_vm1, %v35341_v40  ;;  %v35587_v40 = vld [vmem:[#allocation210_spill] sm:$0xff] }
 0x528   : > { %24501 = vmatprep.mubr.msk.f32.mxu0 %vm934_vm1, %v35583_v4 }
 0x52a   : > { %23411 = vmatmul.mubr.msk.f32.gmra.mrb[28].mxu1 %vm934_vm1, %v35342_v27  ;;  %v12758_v27 = vrot.slane %v30989_v21, 6  ;;  %v35594_v21 = vld [vmem:[#allocation219_spill] sm:$0xff] }
 0x52b   : > { %24502 = vmatmul.mubr.msk.f32.gmra.mrb[22].mxu0 %vm934_vm1, %v35584_v39  ;;  %23413 = vmatprep.mubr.msk.f32.mxu1 %vm934_vm1, %v35547_v50  ;;  %v35589_v50 = vld [vmem:[#allocation234_spill] sm:$0xff] }
 0x52c   : > { %24504 = vmatprep.mubr.msk.f32.mxu0 %vm934_vm1, %v35585_v42 }
 0x52e   : > { %23414 = vmatmul.mubr.msk.f32.gmra.mrb[30].mxu1 %vm934_vm1, %v35548_v9  ;;  %v35591_v9 = vld [vmem:[#allocation218_spill] sm:$0xff] }
 0x52f   : > { %24505 = vmatmul.mubr.msk.f32.gmra.mrb[24].mxu0 %vm934_vm1, %v35586_v37  ;;  %23418 = vmatprep.mubr.msk.f32.mxu1 %vm934_vm1, %v35587_v40  ;;  %v12761_v40 = vrot.slane %v31166_v30, 6 }
 0x530   : > { %24507 = vmatprep.mubr.msk.f32.mxu0 %vm934_vm1, %v35588_v56  ;;  %v31953_v56 = vsel %vm3147_vm6, %v12758_v27, %v12759_v33  ;;  %v35598_v27 = vld [vmem:[#allocation221_spill] sm:$0xff] }
 0x531   : > { %35593 = vst [vmem:[#allocation21_spill] sm:$0xff] %v31953_v56  ;;  %v31966_v30 = vsel %vm3147_vm6, %v12759_v33, %v12761_v40  ;;  %v35600_v33 = vld [vmem:[#allocation120_spill] sm:$0xff] }
 0x532   : > { %23419 = vmatmul.mubr.msk.f32.vlgmr.msra.gmra.mrb[0].mxu1 %vm934_vm1, %v35589_v50  ;;  %v35596_v50 = vld [vmem:[#allocation220_spill] sm:$0xff]  ;;  %35597 = vst [vmem:[#allocation23_spill] sm:$0xff] %v31966_v30 }
 0x533   : > { %24508 = vmatmul.mubr.msk.f32.gmra.mrb[26].mxu0 %vm934_vm1, %v35590_v28  ;;  %23421 = vmatprep.mubr.msk.f32.mxu1 %vm934_vm1, %v35591_v9  ;;  %v35599_v9 = vld [vmem:[#allocation116_spill] sm:$0xff]  ;;  %v32053_v28 = vld [vmem:[%s27441_s7 + $0x140] sm:$0xff] }
 0x534   : > { %24510 = vmatprep.mubr.msk.f32.mxu0 %vm934_vm1, %v35592_v36  ;;  %25331 = vmatpush3.msk.msra.mxu1 %vm999_vm0, %v31805_v3  ;;  %v31979_v3 = vld [vmem:[%s34755_s1 + $0xb0] sm:$0x7]  ;;  %v32046_v36 = vld [vmem:[%s27441_s7 + $0x138] sm:$0xff] }
 0x535   : > { %v35602_v40 = vld [vmem:[#allocation188_spill] sm:$0xff] }
 0x536   : > { %23422 = vmatmul.mubr.msk.f32.gmra.mrb[2].mxu1 %vm934_vm1, %v35594_v21  ;;  %v35605_v21 = vld [vmem:[#allocation194_spill] sm:$0xff] }
 0x537   : > { %24511 = vmatmul.mubr.msk.f32.gmra.mrb[28].mxu0 %vm934_vm1, %v35595_v17  ;;  %23424 = vmatprep.mubr.msk.f32.mxu1 %vm934_vm1, %v35596_v50  ;;  %v35606_v50 = vld [vmem:[#allocation195_spill] sm:$0xff] }
 0x538   : > { %24513 = vmatprep.mubr.msk.f32.mxu0 %vm934_vm1, %v31953_v56  ;;  %v32032_v56 = vld [vmem:[%s27441_s7 + $0x120] sm:$0xff]  ;;  %v32039_v17 = vld [vmem:[%s27441_s7 + $0x128] sm:$0xff] }
 0x53a   : > { %23425 = vmatmul.mubr.msk.f32.gmra.mrb[4].mxu1 %vm934_vm1, %v35598_v27  ;;  %v35607_v27 = vld [vmem:[#allocation200_spill] sm:$0xff] }
 0x53b   : > { %24514 = vmatmul.mubr.msk.f32.gmra.mrb[30].mxu0 %vm934_vm1, %v31966_v30  ;;  %23427 = vmatprep.mubr.msk.f32.mxu1 %vm934_vm1, %v35561_v10  ;;  %v35601_v10 = vld [vmem:[#allocation187_spill] sm:$0xff]  ;;  %v35610_v30 = vld [vmem:[#allocation236_spill] sm:$0xff] }
 0x53c   : > { %24518 = vmatprep.mubr.msk.f32.mxu0 %vm934_vm1, %v35599_v9  ;;  %v35608_v9 = vld [vmem:[#allocation201_spill] sm:$0xff] }
 0x53e   : > { %23428 = vmatmul.mubr.msk.f32.gmra.mrb[6].mxu1 %vm934_vm1, %v35562_v53  ;;  %v35603_v53 = vld [vmem:[#allocation191_spill] sm:$0xff] }
 0x53f   : > { %24519 = vmatmul.mubr.msk.f32.vlgmr.msra.gmra.mrb[0].mxu0 %vm934_vm1, %v35600_v33  ;;  %23430 = vmatprep.mubr.msk.f32.mxu1 %vm934_vm1, %v35563_v29  ;;  %v35609_v33 = vld [vmem:[#allocation205_spill] sm:$0xff] }
 0x540   : > { %24567 = vmatpush3.msk.msra.mxu0 %vm999_vm0, %v31831_v43  ;;  %24521 = vmatprep.mubr.msk.f32.mxu0 %vm934_vm1, %v35601_v10  ;;  %v35604_v43 = vld [vmem:[#allocation192_spill] sm:$0xff] }
 0x541   : > { %24616 = vmatprep.subr.msk.mxu0 %vm999_vm0, %v31979_v3 }
 0x542   : > { %23431 = vmatmul.mubr.msk.f32.gmra.mrb[8].mxu1 %vm934_vm1, %v35564_v24 }
 0x543   : > { %24522 = vmatmul.mubr.msk.f32.gmra.mrb[2].mxu0 %vm934_vm1, %v35602_v40  ;;  %23433 = vmatprep.mubr.msk.f32.mxu1 %vm934_vm1, %v35565_v23 }
 0x544   : > { %24524 = vmatprep.mubr.msk.f32.mxu0 %vm934_vm1, %v35603_v53 }
 0x546   : > { %23434 = vmatmul.mubr.msk.f32.gmra.mrb[10].mxu1 %vm934_vm1, %v35566_v14 }
 0x547   : > { %24525 = vmatmul.mubr.msk.f32.gmra.mrb[4].mxu0 %vm934_vm1, %v35604_v43  ;;  %23436 = vmatprep.mubr.msk.f32.mxu1 %vm934_vm1, %v35567_v54 }
 0x548   : > { %24527 = vmatprep.mubr.msk.f32.mxu0 %vm934_vm1, %v35605_v21 }
 0x54a   : > { %23437 = vmatmul.mubr.msk.f32.gmra.mrb[12].mxu1 %vm934_vm1, %v35568_v63 }
 0x54b   : > { %24528 = vmatmul.mubr.msk.f32.gmra.mrb[6].mxu0 %vm934_vm1, %v35606_v50  ;;  %23439 = vmatprep.mubr.msk.f32.mxu1 %vm934_vm1, %v35569_v25 }
 0x54c   : > { %24530 = vmatprep.mubr.msk.f32.mxu0 %vm934_vm1, %v35607_v27 }
 0x54e   : > { %23440 = vmatmul.mubr.msk.f32.gmra.mrb[14].mxu1 %vm934_vm1, %v35570_v48 }
 0x54f   : > { %24531 = vmatmul.mubr.msk.f32.gmra.mrb[8].mxu0 %vm934_vm1, %v35608_v9  ;;  %23442 = vmatprep.mubr.msk.f32.mxu1 %vm934_vm1, %v35571_v2 }
 0x550   : > { %24533 = vmatprep.mubr.msk.f32.mxu0 %vm934_vm1, %v35609_v33 }
 0x552   : > { %23443 = vmatmul.mubr.msk.f32.gmra.mrb[16].mxu1 %vm934_vm1, %v35572_v8 }
 0x553   : > { %24534 = vmatmul.mubr.msk.f32.gmra.mrb[10].mxu0 %vm934_vm1, %v35610_v30  ;;  %23445 = vmatprep.mubr.msk.f32.mxu1 %vm934_vm1, %v35573_v34  ;;  %v32122_v34 = vld [vmem:[%s27441_s7 + $0x1f8] sm:$0xff] }
 0x554   : > { %24536 = vmatprep.mubr.msk.f32.mxu0 %vm934_vm1, %v32032_v56 }
 0x556   : > { %23446 = vmatmul.mubr.msk.f32.gmra.mrb[18].mxu1 %vm934_vm1, %v35574_v31  ;;  %v27166_v31 = vld [vmem:[%s27441_s7 + $0x188] sm:$0xff] }
 0x557   : > { %24537 = vmatmul.mubr.msk.f32.gmra.mrb[12].mxu0 %vm934_vm1, %v32039_v17  ;;  %23448 = vmatprep.mubr.msk.f32.mxu1 %vm934_vm1, %v35575_v45  ;;  %v32060_v45 = vld [vmem:[%s27441_s7 + $0x150] sm:$0xff] }
 0x558   : > { %24539 = vmatprep.mubr.msk.f32.mxu0 %vm934_vm1, %v32046_v36 }
 0x55a   : > { %23449 = vmatmul.mubr.msk.f32.gmra.mrb[20].mxu1 %vm934_vm1, %v35576_v12  ;;  %v32067_v12 = vld [vmem:[%s27441_s7 + $0x158] sm:$0xff] }
 0x55b   : > { %24540 = vmatmul.mubr.msk.f32.gmra.mrb[14].mxu0 %vm934_vm1, %v32053_v28  ;;  %23451 = vmatprep.mubr.msk.f32.mxu1 %vm934_vm1, %v35577_v49  ;;  %v32074_v49 = vld [vmem:[%s27441_s7 + $0x168] sm:$0xff] }
 0x55c   : > { %24542 = vmatprep.mubr.msk.f32.mxu0 %vm934_vm1, %v32060_v45 }
 0x55e   : > { %23452 = vmatmul.mubr.msk.f32.gmra.mrb[22].mxu1 %vm934_vm1, %v35578_v15  ;;  %v32081_v15 = vld [vmem:[%s27441_s7 + $0x170] sm:$0xff] }
 0x55f   : > { %24543 = vmatmul.mubr.msk.f32.gmra.mrb[16].mxu0 %vm934_vm1, %v32067_v12  ;;  %23454 = vmatprep.mubr.msk.f32.mxu1 %vm934_vm1, %v35579_v0  ;;  %v27165_v0 = vld [vmem:[%s27441_s7 + $0x180] sm:$0xff] }
 0x560   : > { %24545 = vmatprep.mubr.msk.f32.mxu0 %vm934_vm1, %v32074_v49 }
 0x562   : > { %23455 = vmatmul.mubr.msk.f32.gmra.mrb[24].mxu1 %vm934_vm1, %v35580_v44  ;;  %v27167_v44 = vld [vmem:[%s27441_s7 + $0x198] sm:$0xff] }
 0x563   : > { %24546 = vmatmul.mubr.msk.f32.gmra.mrb[18].mxu0 %vm934_vm1, %v32081_v15  ;;  %23457 = vmatprep.mubr.msk.f32.mxu1 %vm934_vm1, %v35581_v41  ;;  %v27168_v41 = vld [vmem:[%s27441_s7 + $0x1a0] sm:$0xff] }
 0x564   : > { %24548 = vmatprep.mubr.msk.f32.mxu0 %vm934_vm1, %v27165_v0 }
 0x566   : > { %23458 = vmatmul.mubr.msk.f32.gmra.mrb[26].mxu1 %vm934_vm1, %v35582_v61  ;;  %v27169_v61 = vld [vmem:[%s27441_s7 + $0x1b0] sm:$0xff] }
 0x567   : > { %24549 = vmatmul.mubr.msk.f32.gmra.mrb[20].mxu0 %vm934_vm1, %v27166_v31  ;;  %23460 = vmatprep.mubr.msk.f32.mxu1 %vm934_vm1, %v35583_v4  ;;  %v27170_v4 = vld [vmem:[%s27441_s7 + $0x1b8] sm:$0xff] }
 0x568   : > { %24551 = vmatprep.mubr.msk.f32.mxu0 %vm934_vm1, %v27167_v44 }
 0x56a   : > { %23461 = vmatmul.mubr.msk.f32.gmra.mrb[28].mxu1 %vm934_vm1, %v35584_v39  ;;  %v27171_v39 = vld [vmem:[%s27441_s7 + $0x1c8] sm:$0xff] }
 0x56b   : > { %24552 = vmatmul.mubr.msk.f32.gmra.mrb[22].mxu0 %vm934_vm1, %v27168_v41  ;;  %23463 = vmatprep.mubr.msk.f32.mxu1 %vm934_vm1, %v35585_v42  ;;  %v27172_v42 = vld [vmem:[%s27441_s7 + $0x1d0] sm:$0xff] }
 0x56c   : > { %24554 = vmatprep.mubr.msk.f32.mxu0 %vm934_vm1, %v27169_v61 }
 0x56e   : > { %23464 = vmatmul.mubr.msk.f32.gmra.mrb[30].mxu1 %vm934_vm1, %v35586_v37  ;;  %v27173_v37 = vld [vmem:[%s27441_s7 + $0x1e0] sm:$0xff] }
 0x56f   : > { %24555 = vmatmul.mubr.msk.f32.gmra.mrb[24].mxu0 %vm934_vm1, %v27170_v4  ;;  %23480 = vmatprep.mubr.msk.f32.mxu1 %vm934_vm1, %v35601_v10  ;;  %v27174_v10 = vld [vmem:[%s27441_s7 + $0x1e8] sm:$0xff] }
 0x570   : > { %24557 = vmatprep.mubr.msk.f32.mxu0 %vm934_vm1, %v27171_v39  ;;  %v32133_v39 = vld [vmem:[%s27441_s7 + $0x200] sm:$0xff] }
 0x572   : > { %23481 = vmatmul.mubr.msk.f32.vlgmr.msra.gmra.mrb[8].mxu1 %vm934_vm1, %v35602_v40  ;;  %v35612_v40 = vld [vmem:[#allocation29_spill] sm:$0xff] }
 0x573   : > { %24558 = vmatmul.mubr.msk.f32.gmra.mrb[26].mxu0 %vm934_vm1, %v27172_v42  ;;  %23483 = vmatprep.mubr.msk.f32.mxu1 %vm934_vm1, %v35603_v53  ;;  %v20207_v42 = vld [vmem:[%s34755_s1 + $0xb4] sm:$0x7]  ;;  %v35613_v53 = vld [vmem:[#allocation30_spill] sm:$0xff] }
 0x574   : > { %24560 = vmatprep.mubr.msk.f32.mxu0 %vm934_vm1, %v27173_v37  ;;  %v35611_v37 = vld [vmem:[#allocation27_spill] sm:$0xff] }
 0x576   : > { %23484 = vmatmul.mubr.msk.f32.gmra.mrb[10].mxu1 %vm934_vm1, %v35604_v43  ;;  %v35614_v43 = vld [vmem:[#allocation32_spill] sm:$0xff] }
 0x577   : > { %24561 = vmatmul.mubr.msk.f32.gmra.mrb[28].mxu0 %vm934_vm1, %v27174_v10  ;;  %23486 = vmatprep.mubr.msk.f32.mxu1 %vm934_vm1, %v35605_v21  ;;  %v35615_v21 = vld [vmem:[#allocation33_spill] sm:$0xff]  ;;  %v35636_v10 = vld [vmem:[#allocation68_spill] sm:$0xff] }
 0x578   : > { %24563 = vmatprep.mubr.msk.f32.mxu0 %vm934_vm1, %v32122_v34 }
 0x57a   : > { %23487 = vmatmul.mubr.msk.f32.gmra.mrb[12].mxu1 %vm934_vm1, %v35606_v50  ;;  %v35617_v50 = vld [vmem:[#allocation36_spill] sm:$0xff] }
 0x57b   : > { %24564 = vmatmul.mubr.msk.f32.gmra.mrb[30].mxu0 %vm934_vm1, %v32133_v39  ;;  %23489 = vmatprep.mubr.msk.f32.mxu1 %vm934_vm1, %v35607_v27  ;;  %v35630_v27 = vld [vmem:[#allocation60_spill] sm:$0xff] }
 0x57c   : > { %24568 = vmatprep.mubr.msk.f32.mxu0 %vm934_vm1, %v35611_v37  ;;  %v35637_v37 = vld [vmem:[#allocation14_spill] sm:$0xff] }
 0x57e   : > { %23490 = vmatmul.mubr.msk.f32.gmra.mrb[14].mxu1 %vm934_vm1, %v35608_v9  ;;  %v35632_v9 = vld [vmem:[#allocation64_spill] sm:$0xff] }
 0x57f   : > { %24569 = vmatmul.mubr.msk.f32.vlgmr.msra.gmra.mrb[0].mxu0 %vm934_vm1, %v35612_v40  ;;  %23492 = vmatprep.mubr.msk.f32.mxu1 %vm934_vm1, %v35609_v33  ;;  %v35634_v33 = vld [vmem:[#allocation66_spill] sm:$0xff]  ;;  %v13298_v40 = vrot.slane %v32122_v34, 1 }
 0x580   : > { %24617 = vmatpush3.msk.msra.mxu0 %vm999_vm0, %v31979_v3  ;;  %24571 = vmatprep.mubr.msk.f32.mxu0 %vm934_vm1, %v35613_v53  ;;  %v35616_v3 = vld [vmem:[#allocation35_spill] sm:$0xff]  ;;  %v13299_v53 = vrot.slane %v32133_v39, 1 }
 0x581   : > { %24666 = vmatprep.subr.msk.mxu0 %vm999_vm0, %v20207_v42 }
 0x582   : > { %23493 = vmatmul.mubr.msk.f32.gmra.mrb[16].mxu1 %vm934_vm1, %v35610_v30  ;;  %v35618_v30 = vld [vmem:[#allocation38_spill] sm:$0xff] }
 0x583   : > { %24572 = vmatmul.mubr.msk.f32.gmra.mrb[2].mxu0 %vm934_vm1, %v35614_v43  ;;  %23495 = vmatprep.mubr.msk.f32.mxu1 %vm934_vm1, %v32032_v56  ;;  %v35619_v56 = vld [vmem:[#allocation39_spill] sm:$0xff] }
 0x584   : > { %24574 = vmatprep.mubr.msk.f32.mxu0 %vm934_vm1, %v35615_v21  ;;  %v32232_v43 = vld [vmem:[%s27441_s7 + $0x208] sm:$0x3f] }
 0x585   : > { %v35638_v21 = vld [vmem:[#allocation15_spill] sm:$0xff] }
 0x586   : > { %23496 = vmatmul.mubr.msk.f32.gmra.mrb[18].mxu1 %vm934_vm1, %v32039_v17  ;;  %v35620_v17 = vld [vmem:[#allocation41_spill] sm:$0xff] }
 0x587   : > { %24575 = vmatmul.mubr.msk.f32.gmra.mrb[4].mxu0 %vm934_vm1, %v35616_v3  ;;  %23498 = vmatprep.mubr.msk.f32.mxu1 %vm934_vm1, %v32046_v36  ;;  %v35621_v36 = vld [vmem:[#allocation42_spill] sm:$0xff]  ;;  %v35639_v3 = vld [vmem:[#allocation237_spill] sm:$0xff] }
 0x588   : > { %24577 = vmatprep.mubr.msk.f32.mxu0 %vm934_vm1, %v35617_v50  ;;  %v13301_v50 = vrot.slane %v32232_v43, 1 }
 0x58a   : > { %23499 = vmatmul.mubr.msk.f32.gmra.mrb[20].mxu1 %vm934_vm1, %v32053_v28  ;;  %v35622_v28 = vld [vmem:[#allocation44_spill] sm:$0xff] }
 0x58b   : > { %24578 = vmatmul.mubr.msk.f32.gmra.mrb[6].mxu0 %vm934_vm1, %v35618_v30  ;;  %23501 = vmatprep.mubr.msk.f32.mxu1 %vm934_vm1, %v32060_v45  ;;  %v35623_v45 = vld [vmem:[#allocation45_spill] sm:$0xff]  ;;  %v13300_v30 = vsel %vm851_vm2, %v13298_v40, %v13299_v53  ;;  %v35658_v40 = vld [vmem:[#allocation92_spill] sm:$0xff] }
 0x58c   : > { %24580 = vmatprep.mubr.msk.f32.mxu0 %vm934_vm1, %v35619_v56  ;;  %v35640_v56 = vld [vmem:[#allocation238_spill] sm:$0xff] }
 0x58e   : > { %23502 = vmatmul.mubr.msk.f32.gmra.mrb[22].mxu1 %vm934_vm1, %v32067_v12  ;;  %v35624_v12 = vld [vmem:[#allocation47_spill] sm:$0xff] }
 0x58f   : > { %24581 = vmatmul.mubr.msk.f32.gmra.mrb[8].mxu0 %vm934_vm1, %v35620_v17  ;;  %23504 = vmatprep.mubr.msk.f32.mxu1 %vm934_vm1, %v32074_v49  ;;  %v35625_v49 = vld [vmem:[#allocation48_spill] sm:$0xff]  ;;  %v13302_v17 = vsel %vm851_vm2, %v13299_v53, %v13301_v50  ;;  %v35659_v53 = vld [vmem:[#allocation93_spill] sm:$0xff]  ;;  %v35662_v50 = vld [vmem:[#allocation58_spill] sm:$0xff] }
 0x590   : > { %24583 = vmatprep.mubr.msk.f32.mxu0 %vm934_vm1, %v35621_v36  ;;  %v35641_v36 = vld [vmem:[#allocation75_spill] sm:$0xff] }
 0x592   : > { %23505 = vmatmul.mubr.msk.f32.gmra.mrb[24].mxu1 %vm934_vm1, %v32081_v15  ;;  %v35626_v15 = vld [vmem:[#allocation50_spill] sm:$0xff] }
 0x593   : > { %24584 = vmatmul.mubr.msk.f32.gmra.mrb[10].mxu0 %vm934_vm1, %v35622_v28  ;;  %23507 = vmatprep.mubr.msk.f32.mxu1 %vm934_vm1, %v27165_v0  ;;  %v35627_v0 = vld [vmem:[#allocation51_spill] sm:$0xff]  ;;  %v20241_v28 = vld [vmem:[%s34755_s1 + $0xb8] sm:$0x7] }
 0x594   : > { %24586 = vmatprep.mubr.msk.f32.mxu0 %vm934_vm1, %v35623_v45  ;;  %v35642_v45 = vld [vmem:[#allocation76_spill] sm:$0xff] }
 0x596   : > { %23508 = vmatmul.mubr.msk.f32.gmra.mrb[26].mxu1 %vm934_vm1, %v27166_v31  ;;  %v35628_v31 = vld [vmem:[#allocation55_spill] sm:$0xff] }
 0x597   : > { %24587 = vmatmul.mubr.msk.f32.gmra.mrb[12].mxu0 %vm934_vm1, %v35624_v12  ;;  %23510 = vmatprep.mubr.msk.f32.mxu1 %vm934_vm1, %v27167_v44  ;;  %v35629_v44 = vld [vmem:[#allocation56_spill] sm:$0xff]  ;;  %v35643_v12 = vld [vmem:[#allocation77_spill] sm:$0xff] }
 0x598   : > { %24589 = vmatprep.mubr.msk.f32.mxu0 %vm934_vm1, %v35625_v49  ;;  %v35644_v49 = vld [vmem:[#allocation78_spill] sm:$0xff] }
 0x59a   : > { %23511 = vmatmul.mubr.msk.f32.gmra.mrb[28].mxu1 %vm934_vm1, %v27168_v41  ;;  %v35631_v41 = vld [vmem:[#allocation61_spill] sm:$0xff] }
 0x59b   : > { %24590 = vmatmul.mubr.msk.f32.gmra.mrb[14].mxu0 %vm934_vm1, %v35626_v15  ;;  %23513 = vmatprep.mubr.msk.f32.mxu1 %vm934_vm1, %v27169_v61  ;;  %v35633_v61 = vld [vmem:[#allocation65_spill] sm:$0xff]  ;;  %v35645_v15 = vld [vmem:[#allocation79_spill] sm:$0xff] }
 0x59c   : > { %24592 = vmatprep.mubr.msk.f32.mxu0 %vm934_vm1, %v35627_v0  ;;  %v35646_v0 = vld [vmem:[#allocation80_spill] sm:$0xff] }
 0x59e   : > { %23514 = vmatmul.mubr.msk.f32.gmra.mrb[30].mxu1 %vm934_vm1, %v27170_v4  ;;  %v35635_v4 = vld [vmem:[#allocation67_spill] sm:$0xff] }
 0x59f   : > { %24593 = vmatmul.mubr.msk.f32.gmra.mrb[16].mxu0 %vm934_vm1, %v35628_v31  ;;  %v35647_v31 = vld [vmem:[#allocation81_spill] sm:$0xff] }
 0x5a0   : > { %24595 = vmatprep.mubr.msk.f32.mxu0 %vm934_vm1, %v35629_v44  ;;  %v35648_v44 = vld [vmem:[#allocation82_spill] sm:$0xff] }
 0x5a3   : > { %24596 = vmatmul.mubr.msk.f32.gmra.mrb[18].mxu0 %vm934_vm1, %v35630_v27  ;;  %v35650_v27 = vld [vmem:[#allocation84_spill] sm:$0xff] }
 0x5a4   : > { %24598 = vmatprep.mubr.msk.f32.mxu0 %vm934_vm1, %v35631_v41  ;;  %v35651_v41 = vld [vmem:[#allocation85_spill] sm:$0xff] }
 0x5a7   : > { %24599 = vmatmul.mubr.msk.f32.gmra.mrb[20].mxu0 %vm934_vm1, %v35632_v9  ;;  %v35652_v9 = vld [vmem:[#allocation86_spill] sm:$0xff] }
 0x5a8   : > { %24601 = vmatprep.mubr.msk.f32.mxu0 %vm934_vm1, %v35633_v61  ;;  %v35653_v61 = vld [vmem:[#allocation87_spill] sm:$0xff] }
 0x5ab   : > { %24602 = vmatmul.mubr.msk.f32.gmra.mrb[22].mxu0 %vm934_vm1, %v35634_v33  ;;  %v35654_v33 = vld [vmem:[#allocation88_spill] sm:$0xff] }
 0x5ac   : > { %24604 = vmatprep.mubr.msk.f32.mxu0 %vm934_vm1, %v35635_v4  ;;  %v35655_v4 = vld [vmem:[#allocation89_spill] sm:$0xff] }
 0x5af   : > { %24605 = vmatmul.mubr.msk.f32.gmra.mrb[24].mxu0 %vm934_vm1, %v35636_v10  ;;  %v35656_v10 = vld [vmem:[#allocation90_spill] sm:$0xff] }
 0x5b0   : > { %24607 = vmatprep.mubr.msk.f32.mxu0 %vm934_vm1, %v35637_v37  ;;  %v35657_v37 = vld [vmem:[#allocation91_spill] sm:$0xff] }
 0x5b3   : > { %24608 = vmatmul.mubr.msk.f32.gmra.mrb[26].mxu0 %vm934_vm1, %v35638_v21  ;;  %v35660_v21 = vld [vmem:[#allocation11_spill] sm:$0xff] }
 0x5b4   : > { %24610 = vmatprep.mubr.msk.f32.mxu0 %vm934_vm1, %v35639_v3  ;;  %v35661_v3 = vld [vmem:[#allocation94_spill] sm:$0xff] }
 0x5b7   : > { %24611 = vmatmul.mubr.msk.f32.gmra.mrb[28].mxu0 %vm934_vm1, %v35640_v56  ;;  %v35664_v56 = vld [vmem:[#allocation97_spill] sm:$0xff] }
 0x5b8   : > { %24613 = vmatprep.mubr.msk.f32.mxu0 %vm934_vm1, %v13300_v30  ;;  %v35663_v30 = vld [vmem:[#allocation12_spill] sm:$0xff] }
 0x5bb   : > { %24614 = vmatmul.mubr.msk.f32.gmra.mrb[30].mxu0 %vm934_vm1, %v13302_v17  ;;  %v35665_v17 = vld [vmem:[#allocation98_spill] sm:$0xff] }
 0x5bc   : > { %24618 = vmatprep.mubr.msk.f32.mxu0 %vm934_vm1, %v35641_v36  ;;  %v35666_v36 = vld [vmem:[#allocation100_spill] sm:$0xff] }
 0x5bf   : > { %24619 = vmatmul.mubr.msk.f32.vlgmr.msra.gmra.mrb[0].mxu0 %vm934_vm1, %v35642_v45  ;;  %v35667_v45 = vld [vmem:[#allocation95_spill] sm:$0xff] }
 0x5c0   : > { %24667 = vmatpush3.msk.msra.mxu0 %vm999_vm0, %v20207_v42  ;;  %24621 = vmatprep.mubr.msk.f32.mxu0 %vm934_vm1, %v35643_v12  ;;  %v35649_v42 = vld [vmem:[#allocation83_spill] sm:$0xff]  ;;  %v13569_v12 = vrot.slane %v32122_v34, 2 }
 0x5c1   : > { %24716 = vmatprep.subr.msk.mxu0 %vm999_vm0, %v20241_v28 }
 0x5c3   : > { %24622 = vmatmul.mubr.msk.f32.gmra.mrb[2].mxu0 %vm934_vm1, %v35644_v49  ;;  %v13570_v49 = vrot.slane %v32133_v39, 2 }
 0x5c4   : > { %24624 = vmatprep.mubr.msk.f32.mxu0 %vm934_vm1, %v35645_v15  ;;  %v35668_v15 = vld [vmem:[#allocation96_spill] sm:$0xff] }
 0x5c7   : > { %24625 = vmatmul.mubr.msk.f32.gmra.mrb[4].mxu0 %vm934_vm1, %v35646_v0  ;;  %v35669_v0 = vld [vmem:[#allocation239_spill] sm:$0xff] }
 0x5c8   : > { %24627 = vmatprep.mubr.msk.f32.mxu0 %vm934_vm1, %v35647_v31  ;;  %v13572_v31 = vrot.slane %v32232_v43, 2 }
 0x5cb   : > { %24628 = vmatmul.mubr.msk.f32.gmra.mrb[6].mxu0 %vm934_vm1, %v35648_v44  ;;  %v13571_v44 = vsel %vm1520_vm3, %v13569_v12, %v13570_v49 }
 0x5cc   : > { %24630 = vmatprep.mubr.msk.f32.mxu0 %vm934_vm1, %v35649_v42  ;;  %v35670_v42 = vld [vmem:[#allocation240_spill] sm:$0xff] }
 0x5cf   : > { %24631 = vmatmul.mubr.msk.f32.gmra.mrb[8].mxu0 %vm934_vm1, %v35650_v27  ;;  %v13573_v27 = vsel %vm1520_vm3, %v13570_v49, %v13572_v31  ;;  %v35684_v31 = vld [vmem:[#allocation111_spill] sm:$0xff] }
 0x5d0   : > { %24633 = vmatprep.mubr.msk.f32.mxu0 %vm934_vm1, %v35651_v41  ;;  %v35671_v41 = vld [vmem:[#allocation25_spill] sm:$0xff] }
 0x5d3   : > { %24634 = vmatmul.mubr.msk.f32.gmra.mrb[10].mxu0 %vm934_vm1, %v35652_v9  ;;  %v20275_v9 = vld [vmem:[%s34755_s1 + $0xbc] sm:$0x7] }
 0x5d4   : > { %24636 = vmatprep.mubr.msk.f32.mxu0 %vm934_vm1, %v35653_v61  ;;  %v35672_v61 = vld [vmem:[#allocation105_spill] sm:$0xff] }
 0x5d7   : > { %24637 = vmatmul.mubr.msk.f32.gmra.mrb[12].mxu0 %vm934_vm1, %v35654_v33  ;;  %v35673_v33 = vld [vmem:[#allocation28_spill] sm:$0xff] }
 0x5d8   : > { %24639 = vmatprep.mubr.msk.f32.mxu0 %vm934_vm1, %v35655_v4  ;;  %v35674_v4 = vld [vmem:[#allocation106_spill] sm:$0xff] }
 0x5db   : > { %24640 = vmatmul.mubr.msk.f32.gmra.mrb[14].mxu0 %vm934_vm1, %v35656_v10  ;;  %v35675_v10 = vld [vmem:[#allocation31_spill] sm:$0xff] }
 0x5dc   : > { %24642 = vmatprep.mubr.msk.f32.mxu0 %vm934_vm1, %v35657_v37 }
 0x5df   : > { %24643 = vmatmul.mubr.msk.f32.gmra.mrb[16].mxu0 %vm934_vm1, %v35658_v40 }
 0x5e0   : > { %24645 = vmatprep.mubr.msk.f32.mxu0 %vm934_vm1, %v35659_v53  ;;  %v35676_v53 = vld [vmem:[#allocation107_spill] sm:$0xff] }
 0x5e3   : > { %24646 = vmatmul.mubr.msk.f32.gmra.mrb[18].mxu0 %vm934_vm1, %v35660_v21  ;;  %v35677_v21 = vld [vmem:[#allocation34_spill] sm:$0xff] }
 0x5e4   : > { %24648 = vmatprep.mubr.msk.f32.mxu0 %vm934_vm1, %v35661_v3 }
 0x5e7   : > { %24649 = vmatmul.mubr.msk.f32.gmra.mrb[20].mxu0 %vm934_vm1, %v35662_v50  ;;  %v35678_v50 = vld [vmem:[#allocation108_spill] sm:$0xff] }
 0x5e8   : > { %24651 = vmatprep.mubr.msk.f32.mxu0 %vm934_vm1, %v35663_v30  ;;  %v35679_v30 = vld [vmem:[#allocation37_spill] sm:$0xff] }
 0x5eb   : > { %24652 = vmatmul.mubr.msk.f32.gmra.mrb[22].mxu0 %vm934_vm1, %v35664_v56 }
 0x5ec   : > { %24654 = vmatprep.mubr.msk.f32.mxu0 %vm934_vm1, %v35665_v17 }
 0x5ef   : > { %24655 = vmatmul.mubr.msk.f32.gmra.mrb[24].mxu0 %vm934_vm1, %v35666_v36  ;;  %v35680_v36 = vld [vmem:[#allocation109_spill] sm:$0xff] }
 0x5f0   : > { %24657 = vmatprep.mubr.msk.f32.mxu0 %vm934_vm1, %v35667_v45  ;;  %v35681_v45 = vld [vmem:[#allocation40_spill] sm:$0xff] }
 0x5f3   : > { %24658 = vmatmul.mubr.msk.f32.gmra.mrb[26].mxu0 %vm934_vm1, %v35668_v15  ;;  %v35682_v15 = vld [vmem:[#allocation110_spill] sm:$0xff] }
 0x5f4   : > { %24660 = vmatprep.mubr.msk.f32.mxu0 %vm934_vm1, %v35669_v0  ;;  %v35683_v0 = vld [vmem:[#allocation43_spill] sm:$0xff] }
 0x5f7   : > { %24661 = vmatmul.mubr.msk.f32.gmra.mrb[28].mxu0 %vm934_vm1, %v35670_v42  ;;  %v35686_v42 = vld [vmem:[#allocation112_spill] sm:$0xff] }
 0x5f8   : > { %24663 = vmatprep.mubr.msk.f32.mxu0 %vm934_vm1, %v13571_v44  ;;  %v35685_v44 = vld [vmem:[#allocation46_spill] sm:$0xff] }
 0x5fb   : > { %24664 = vmatmul.mubr.msk.f32.gmra.mrb[30].mxu0 %vm934_vm1, %v13573_v27  ;;  %v35687_v27 = vld [vmem:[#allocation49_spill] sm:$0xff] }
 0x5fc   : > { %24668 = vmatprep.mubr.msk.f32.mxu0 %vm934_vm1, %v35671_v41  ;;  %v35688_v41 = vld [vmem:[#allocation52_spill] sm:$0xff] }
 0x5ff   : > { %24669 = vmatmul.mubr.msk.f32.vlgmr.msra.gmra.mrb[0].mxu0 %vm934_vm1, %v35672_v61  ;;  %v35689_v61 = vld [vmem:[#allocation113_spill] sm:$0xff] }
 0x600   : > { %24717 = vmatpush3.msk.msra.mxu0 %vm999_vm0, %v20241_v28  ;;  %24671 = vmatprep.mubr.msk.f32.mxu0 %vm934_vm1, %v35673_v33  ;;  %v35690_v33 = vld [vmem:[#allocation53_spill] sm:$0xff] }
 0x601   : > { %24766 = vmatprep.subr.msk.mxu0 %vm999_vm0, %v20275_v9 }
 0x603   : > { %24672 = vmatmul.mubr.msk.f32.gmra.mrb[2].mxu0 %vm934_vm1, %v35674_v4  ;;  %v35691_v4 = vld [vmem:[#allocation59_spill] sm:$0xff] }
 0x604   : > { %24674 = vmatprep.mubr.msk.f32.mxu0 %vm934_vm1, %v35675_v10  ;;  %v35692_v10 = vld [vmem:[#allocation117_spill] sm:$0xff] }
 0x605   : > { %v32332_v37 = vpop.f32.mrb[0].mxu1 }
 0x606   : > { %v32334_v40 = vpop.f32.mrb[1].mxu1 }
 0x607   : > { %24675 = vmatmul.mubr.msk.f32.gmra.mrb[4].mxu0 %vm934_vm1, %v35676_v53  ;;  %v35693_v53 = vld [vmem:[#allocation119_spill] sm:$0xff] }
 0x608   : > { %24677 = vmatprep.mubr.msk.f32.mxu0 %vm934_vm1, %v35677_v21  ;;  %v35694_v21 = vld [vmem:[#allocation123_spill] sm:$0xff] }
 0x609   : > { %v32340_v28 = vpop.f32.mrb[2].mxu1 }
 0x60a   : > { %v32342_v3 = vpop.f32.mrb[3].mxu1 }
 0x60b   : > { %24678 = vmatmul.mubr.msk.f32.gmra.mrb[6].mxu0 %vm934_vm1, %v35678_v50  ;;  %v35695_v50 = vld [vmem:[#allocation125_spill] sm:$0xff] }
 0x60c   : > { %24680 = vmatprep.mubr.msk.f32.mxu0 %vm934_vm1, %v35679_v30  ;;  %v35696_v30 = vld [vmem:[#allocation127_spill] sm:$0xff] }
 0x60d   : > { %v32348_v56 = vpop.f32.mrb[4].mxu1 }
 0x60e   : > { %v32350_v17 = vpop.f32.mrb[5].mxu1 }
 0x60f   : > { %24681 = vmatmul.mubr.msk.f32.gmra.mrb[8].mxu0 %vm934_vm1, %v35680_v36  ;;  %v35697_v36 = vld [vmem:[#allocation118_spill] sm:$0xff] }
 0x610   : > { %24683 = vmatprep.mubr.msk.f32.mxu0 %vm934_vm1, %v35681_v45  ;;  %v13840_v45 = vrot.slane %v32122_v34, 3 }
 0x611   : > { %v32356_v12 = vpop.f32.mrb[6].mxu1 }
 0x612   : > { %v32358_v49 = vpop.f32.mrb[7].mxu1 }
 0x613   : > { %24684 = vmatmul.mubr.msk.f32.gmra.mrb[10].mxu0 %vm934_vm1, %v35682_v15  ;;  %v13841_v15 = vrot.slane %v32133_v39, 3 }
 0x614   : > { %24686 = vmatprep.mubr.msk.f32.mxu0 %vm934_vm1, %v35683_v0  ;;  %v35698_v0 = vld [vmem:[#allocation122_spill] sm:$0xff] }
 0x617   : > { %24687 = vmatmul.mubr.msk.f32.gmra.mrb[12].mxu0 %vm934_vm1, %v35684_v31  ;;  %v35699_v31 = vld [vmem:[#allocation24_spill] sm:$0xff] }
 0x618   : > { %24689 = vmatprep.mubr.msk.f32.mxu0 %vm934_vm1, %v35685_v44  ;;  %v13843_v44 = vrot.slane %v32232_v43, 3 }
 0x61b   : > { %24690 = vmatmul.mubr.msk.f32.gmra.mrb[14].mxu0 %vm934_vm1, %v35686_v42  ;;  %v13842_v42 = vsel %vm1927_vm4, %v13840_v45, %v13841_v15 }
 0x61c   : > { %24692 = vmatprep.mubr.msk.f32.mxu0 %vm934_vm1, %v35687_v27  ;;  %v35700_v27 = vld [vmem:[#allocation26_spill] sm:$0xff] }
 0x61f   : > { %24693 = vmatmul.mubr.msk.f32.gmra.mrb[16].mxu0 %vm934_vm1, %v35688_v41  ;;  %v13844_v41 = vsel %vm1927_vm4, %v13841_v15, %v13843_v44  ;;  %v35706_v15 = vld [vmem:[#allocation136_spill] sm:$0xff] }
 0x620   : > { %24695 = vmatprep.mubr.msk.f32.mxu0 %vm934_vm1, %v35689_v61  ;;  %v32410_v61 = vld [vmem:[%s34755_s1 + $0xc0] sm:$0x7]  ;;  %v35710_v44 = vld [vmem:[#allocation180_spill] sm:$0xff]  ;;  %s27241_s1 = smov 112  }
 0x623   : > { %24696 = vmatmul.mubr.msk.f32.gmra.mrb[18].mxu0 %vm934_vm1, %v35690_v33 }
 0x624   : > { %24698 = vmatprep.mubr.msk.f32.mxu0 %vm934_vm1, %v35691_v4  ;;  %v35702_v4 = vld [vmem:[#allocation173_spill] sm:$0xff] }
 0x627   : > { %24699 = vmatmul.mubr.msk.f32.gmra.mrb[20].mxu0 %vm934_vm1, %v35692_v10  ;;  %v14112_v10 = vrot.slane %v32133_v39, 4 }
 0x628   : > { %24701 = vmatprep.mubr.msk.f32.mxu0 %vm934_vm1, %v35693_v53 }
 0x62b   : > { %24702 = vmatmul.mubr.msk.f32.gmra.mrb[22].mxu0 %vm934_vm1, %v35694_v21  ;;  %v35704_v21 = vld [vmem:[#allocation16_spill] sm:$0xff] }
 0x62c   : > { %24704 = vmatprep.mubr.msk.f32.mxu0 %vm934_vm1, %v35695_v50  ;;  %v14114_v50 = vrot.slane %v32232_v43, 4 }
 0x62e   : > { %v14115_v45 = vsel %vm2334_vm5, %v14112_v10, %v14114_v50  ;;  %v35721_v50 = vld [vmem:[#allocation193_spill] sm:$0xff] }
 0x62f   : > { %24705 = vmatmul.mubr.msk.f32.gmra.mrb[24].mxu0 %vm934_vm1, %v35696_v30 }
 0x630   : > { %24707 = vmatprep.mubr.msk.f32.mxu0 %vm934_vm1, %v35697_v36  ;;  %v35705_v36 = vld [vmem:[#allocation17_spill] sm:$0xff] }
 0x633   : > { %24708 = vmatmul.mubr.msk.f32.gmra.mrb[26].mxu0 %vm934_vm1, %v35698_v0  ;;  %v35708_v0 = vld [vmem:[#allocation178_spill] sm:$0xff] }
 0x634   : > { %24710 = vmatprep.mubr.msk.f32.mxu0 %vm934_vm1, %v35699_v31  ;;  %v35709_v31 = vld [vmem:[#allocation179_spill] sm:$0xff] }
 0x637   : > { %24711 = vmatmul.mubr.msk.f32.gmra.mrb[28].mxu0 %vm934_vm1, %v35700_v27  ;;  %v35712_v27 = vld [vmem:[#allocation182_spill] sm:$0xff] }
 0x638   : > { %24713 = vmatprep.mubr.msk.f32.mxu0 %vm934_vm1, %v13842_v42  ;;  %v35711_v42 = vld [vmem:[#allocation181_spill] sm:$0xff] }
 0x63b   : > { %24714 = vmatmul.mubr.msk.f32.gmra.mrb[30].mxu0 %vm934_vm1, %v13844_v41  ;;  %v35713_v41 = vld [vmem:[#allocation152_spill] sm:$0xff] }
 0x63c   : > { %24718 = vmatprep.mubr.msk.f32.mxu0 %vm934_vm1, %v35511_v59 }
 0x63f   : > { %24719 = vmatmul.mubr.msk.f32.vlgmr.msra.gmra.mrb[0].mxu0 %vm934_vm1, %v35512_v18 }
 0x640   : > { %24767 = vmatpush3.msk.msra.mxu0 %vm999_vm0, %v20275_v9  ;;  %24721 = vmatprep.mubr.msk.f32.mxu0 %vm934_vm1, %v35513_v46 }
 0x641   : > { %24816 = vmatprep.subr.msk.mxu0 %vm999_vm0, %v32410_v61 }
 0x643   : > { %24722 = vmatmul.mubr.msk.f32.gmra.mrb[2].mxu0 %vm934_vm1, %v35514_v52 }
 0x644   : > { %24724 = vmatprep.mubr.msk.f32.mxu0 %vm934_vm1, %v35515_v32 }
 0x645   : > { %v32423_v59 = vpop.f32.mrb[8].mxu1 }
 0x646   : > { %v32425_v33 = vpop.f32.mrb[9].mxu1 }
 0x647   : > { %24725 = vmatmul.mubr.msk.f32.gmra.mrb[4].mxu0 %vm934_vm1, %v35516_v55 }
 0x648   : > { %24727 = vmatprep.mubr.msk.f32.mxu0 %vm934_vm1, %v35517_v19 }
 0x649   : > { %v32431_v18 = vpop.f32.mrb[10].mxu1 }
 0x64a   : > { %v32433_v46 = vpop.f32.mrb[11].mxu1 }
 0x64b   : > { %24728 = vmatmul.mubr.msk.f32.gmra.mrb[6].mxu0 %vm934_vm1, %v35518_v38 }
 0x64c   : > { %24730 = vmatprep.mubr.msk.f32.mxu0 %vm934_vm1, %v35519_v57 }
 0x64d   : > { %v32439_v52 = vpop.f32.mrb[12].mxu1 }
 0x64e   : > { %v32441_v32 = vpop.f32.mrb[13].mxu1 }
 0x64f   : > { %24731 = vmatmul.mubr.msk.f32.gmra.mrb[8].mxu0 %vm934_vm1, %v35520_v16 }
 0x650   : > { %24733 = vmatprep.mubr.msk.f32.mxu0 %vm934_vm1, %v35521_v6 }
 0x651   : > { %v32447_v19 = vpop.f32.mrb[14].mxu1 }
 0x652   : > { %v32449_v55 = vpop.f32.mrb[15].mxu1 }
 0x653   : > { %24734 = vmatmul.mubr.msk.f32.gmra.mrb[10].mxu0 %vm934_vm1, %v35522_v58 }
 0x654   : > { %24736 = vmatprep.mubr.msk.f32.mxu0 %vm934_vm1, %v35523_v47 }
 0x655   : > { %v32455_v38 = vpop.f32.mrb[16].mxu1 }
 0x656   : > { %v32457_v57 = vpop.f32.mrb[17].mxu1 }
 0x657   : > { %24737 = vmatmul.mubr.msk.f32.gmra.mrb[12].mxu0 %vm934_vm1, %v35524_v5 }
 0x658   : > { %24739 = vmatprep.mubr.msk.f32.mxu0 %vm934_vm1, %v35525_v11 }
 0x659   : > { %v32463_v6 = vpop.f32.mrb[18].mxu1 }
 0x65a   : > { %v32465_v16 = vpop.f32.mrb[19].mxu1 }
 0x65b   : > { %24740 = vmatmul.mubr.msk.f32.gmra.mrb[14].mxu0 %vm934_vm1, %v35526_v7 }
 0x65c   : > { %24742 = vmatprep.mubr.msk.f32.mxu0 %vm934_vm1, %v35527_v26 }
 0x65d   : > { %v32471_v58 = vpop.f32.mrb[20].mxu1 }
 0x65e   : > { %v32473_v47 = vpop.f32.mrb[21].mxu1 }
 0x65f   : > { %24743 = vmatmul.mubr.msk.f32.gmra.mrb[16].mxu0 %vm934_vm1, %v35528_v51 }
 0x660   : > { %24745 = vmatprep.mubr.msk.f32.mxu0 %vm934_vm1, %v35529_v1 }
 0x661   : > { %v32479_v11 = vpop.f32.mrb[22].mxu1 }
 0x662   : > { %v32481_v5 = vpop.f32.mrb[23].mxu1 }
 0x663   : > { %24746 = vmatmul.mubr.msk.f32.gmra.mrb[18].mxu0 %vm934_vm1, %v35530_v13  ;;  %v35701_v13 = vld [vmem:[#allocation171_spill] sm:$0xff] }
 0x664   : > { %24748 = vmatprep.mubr.msk.f32.mxu0 %vm934_vm1, %v35531_v35 }
 0x665   : > { %v32487_v26 = vpop.f32.mrb[24].mxu1 }
 0x666   : > { %v32489_v7 = vpop.f32.mrb[25].mxu1 }
 0x667   : > { %24749 = vmatmul.mubr.msk.f32.gmra.mrb[20].mxu0 %vm934_vm1, %v35532_v60  ;;  %v35703_v60 = vld [vmem:[#allocation168_spill] sm:$0xff] }
 0x668   : > { %24751 = vmatprep.mubr.msk.f32.mxu0 %vm934_vm1, %v35533_v62  ;;  %v14111_v62 = vrot.slane %v32122_v34, 4 }
 0x669   : > { %v32495_v1 = vpop.f32.mrb[26].mxu1 }
 0x66a   : > { %v32497_v51 = vpop.f32.mrb[27].mxu1  ;;  %v14113_v30 = vsel %vm2334_vm5, %v14111_v62, %v14112_v10  ;;  %v35718_v62 = vld [vmem:[#allocation186_spill] sm:$0xff]  ;;  %v35719_v10 = vld [vmem:[#allocation189_spill] sm:$0xff] }
 0x66b   : > { %24752 = vmatmul.mubr.msk.f32.gmra.mrb[22].mxu0 %vm934_vm1, %v35534_v22 }
 0x66c   : > { %24754 = vmatprep.mubr.msk.f32.mxu0 %vm934_vm1, %v35701_v13  ;;  %v35714_v13 = vld [vmem:[#allocation153_spill] sm:$0xff] }
 0x66d   : > { %v32503_v35 = vpop.f32.mrb[28].mxu1 }
 0x66e   : > { %v32505_v9 = vpop.f32.mrb[29].mxu1 }
 0x66f   : > { %24755 = vmatmul.mubr.msk.f32.gmra.mrb[24].mxu0 %vm934_vm1, %v35702_v4  ;;  %v35716_v4 = vld [vmem:[#allocation183_spill] sm:$0xff] }
 0x670   : > { %24757 = vmatprep.mubr.msk.f32.mxu0 %vm934_vm1, %v35703_v60  ;;  %v35717_v60 = vld [vmem:[#allocation185_spill] sm:$0xff] }
 0x671   : > { %v32513_v53 = vpop.f32.mrb[30].mxu1 }
 0x672   : > { %v32515_v22 = vpop.f32.mrb[31].mxu1 }
 0x673   : > { %24758 = vmatmul.mubr.msk.f32.gmra.mrb[26].mxu0 %vm934_vm1, %v35543_v20  ;;  %v35707_v20 = vld [vmem:[#allocation177_spill] sm:$0xff] }
 0x674   : > { %24760 = vmatprep.mubr.msk.f32.mxu0 %vm934_vm1, %v35704_v21  ;;  %v35720_v21 = vld [vmem:[#allocation190_spill] sm:$0xff] }
 0x677   : > { %24761 = vmatmul.mubr.msk.f32.gmra.mrb[28].mxu0 %vm934_vm1, %v35705_v36  ;;  %v35723_v36 = vld [vmem:[#allocation198_spill] sm:$0xff] }
 0x678   : > { %24763 = vmatprep.mubr.msk.f32.mxu0 %vm934_vm1, %v14113_v30  ;;  %v35722_v30 = vld [vmem:[#allocation196_spill] sm:$0xff] }
 0x67b   : > { %24764 = vmatmul.mubr.msk.f32.gmra.mrb[30].mxu0 %vm934_vm1, %v14115_v45  ;;  %v35724_v45 = vld [vmem:[#allocation199_spill] sm:$0xff] }
 0x67c   : > { %24768 = vmatprep.mubr.msk.f32.mxu0 %vm934_vm1, %v35706_v15  ;;  %v35725_v15 = vld [vmem:[#allocation202_spill] sm:$0xff] }
 0x67f   : > { %24769 = vmatmul.mubr.msk.f32.vlgmr.msra.gmra.mrb[0].mxu0 %vm934_vm1, %v35707_v20  ;;  %v35726_v20 = vld [vmem:[#allocation206_spill] sm:$0xff] }
 0x680   : > { %24817 = vmatpush3.msk.msra.mxu0 %vm999_vm0, %v32410_v61  ;;  %24771 = vmatprep.mubr.msk.f32.mxu0 %vm934_vm1, %v35708_v0  ;;  %v35715_v61 = vld [vmem:[#allocation156_spill] sm:$0xff]  ;;  %v35727_v0 = vld [vmem:[#allocation207_spill] sm:$0xff] }
 0x683   : > { %24772 = vmatmul.mubr.msk.f32.gmra.mrb[2].mxu0 %vm934_vm1, %v35709_v31  ;;  %v35728_v31 = vld [vmem:[#allocation209_spill] sm:$0xff] }
 0x684   : > { %24774 = vmatprep.mubr.msk.f32.mxu0 %vm934_vm1, %v35710_v44  ;;  %v35729_v44 = vld [vmem:[#allocation213_spill] sm:$0xff] }
 0x687   : > { %24775 = vmatmul.mubr.msk.f32.gmra.mrb[4].mxu0 %vm934_vm1, %v35711_v42  ;;  %v35730_v42 = vld [vmem:[#allocation215_spill] sm:$0xff] }
 0x688   : > { %24777 = vmatprep.mubr.msk.f32.mxu0 %vm934_vm1, %v35712_v27  ;;  %v35731_v27 = vld [vmem:[#allocation217_spill] sm:$0xff] }
 0x68b   : > { %24778 = vmatmul.mubr.msk.f32.gmra.mrb[6].mxu0 %vm934_vm1, %v35713_v41  ;;  %v35732_v41 = vld [vmem:[#allocation176_spill] sm:$0xff] }
 0x68c   : > { %24780 = vmatprep.mubr.msk.f32.mxu0 %vm934_vm1, %v35714_v13  ;;  %v14382_v13 = vrot.slane %v32122_v34, 5 }
 0x68f   : > { %24781 = vmatmul.mubr.msk.f32.gmra.mrb[8].mxu0 %vm934_vm1, %v35715_v61  ;;  %v14383_v61 = vrot.slane %v32133_v39, 5 }
 0x690   : > { %24783 = vmatprep.mubr.msk.f32.mxu0 %vm934_vm1, %v35716_v4  ;;  %v35733_v4 = vld [vmem:[#allocation135_spill] sm:$0xff] }
 0x693   : > { %24784 = vmatmul.mubr.msk.f32.gmra.mrb[10].mxu0 %vm934_vm1, %v35717_v60  ;;  %v35734_v60 = vld [vmem:[#allocation18_spill] sm:$0xff] }
 0x694   : > { %24786 = vmatprep.mubr.msk.f32.mxu0 %vm934_vm1, %v35718_v62  ;;  %v14385_v62 = vrot.slane %v32232_v43, 5 }
 0x697   : > { %24787 = vmatmul.mubr.msk.f32.gmra.mrb[12].mxu0 %vm934_vm1, %v35719_v10  ;;  %v14384_v10 = vsel %vm999_vm0, %v14382_v13, %v14383_v61  ;;  %v14656_v13 = vrot.slane %v32232_v43, 6 }
 0x698   : > { %24789 = vmatprep.mubr.msk.f32.mxu0 %vm934_vm1, %v35720_v21  ;;  %v35735_v21 = vld [vmem:[#allocation20_spill] sm:$0xff] }
 0x69b   : > { %24790 = vmatmul.mubr.msk.f32.gmra.mrb[14].mxu0 %vm934_vm1, %v35721_v50  ;;  %v14386_v50 = vsel %vm999_vm0, %v14383_v61, %v14385_v62  ;;  %v20355_v62 = vld [vmem:[%s35758_s2] ss:$0 sm:$0xff] }
 0x69c   : > { %24792 = vmatprep.mubr.msk.f32.mxu0 %vm934_vm1, %v35722_v30  ;;  %v35746_v30 = vld [vmem:[#allocation54_spill] sm:$0xff]  ;;  %15545 = vrot.lane.b32.xlu0 %v20355_v62, %s27239_s30 }
 0x69f   : > { %24793 = vmatmul.mubr.msk.f32.gmra.mrb[16].mxu0 %vm934_vm1, %v35723_v36  ;;  %v35747_v36 = vld [vmem:[#allocation203_spill] sm:$0xff] }
 0x6a0   : > { %24795 = vmatprep.mubr.msk.f32.mxu0 %vm934_vm1, %v35724_v45  ;;  %v35748_v45 = vld [vmem:[#allocation204_spill] sm:$0xff] }
 0x6a3   : > { %24796 = vmatmul.mubr.msk.f32.gmra.mrb[18].mxu0 %vm934_vm1, %v35725_v15  ;;  %v35749_v15 = vld [vmem:[#allocation121_spill] sm:$0xff] }
 0x6a4   : > { %24798 = vmatprep.mubr.msk.f32.mxu0 %vm934_vm1, %v35726_v20  ;;  %v35750_v20 = vld [vmem:[#allocation211_spill] sm:$0xff] }
 0x6a7   : > { %24799 = vmatmul.mubr.msk.f32.gmra.mrb[20].mxu0 %vm934_vm1, %v35727_v0  ;;  %v35751_v0 = vld [vmem:[#allocation235_spill] sm:$0xff] }
 0x6a8   : > { %24801 = vmatprep.mubr.msk.f32.mxu0 %vm934_vm1, %v35728_v31  ;;  %v35752_v31 = vld [vmem:[#allocation208_spill] sm:$0xff] }
 0x6ab   : > { %24802 = vmatmul.mubr.msk.f32.gmra.mrb[22].mxu0 %vm934_vm1, %v35729_v44  ;;  %v14653_v44 = vrot.slane %v32122_v34, 6  ;;  %v15369_v34 = vld [vmem:[%s35756_s27] sm:$0xff]  ;;  %s35760_s27 = sld [smem:[#allocation243_spill]] }
 0x6ac   : > { %24804 = vmatprep.mubr.msk.f32.mxu0 %vm934_vm1, %v35730_v42  ;;  %v14654_v42 = vrot.slane %v32133_v39, 6  ;;  %v15370_v39 = vld [vmem:[%s35757_s29 + $0x8] sm:$0xff] }
 0x6ad   : > { %v25230_v43 = vpack.c.bf16 %v15370_v39, %v15369_v34 }
 0x6ae   : > { %v14655_v61 = vsel %vm3147_vm6, %v14653_v44, %v14654_v42 }
 0x6af   : > { %24805 = vmatmul.mubr.msk.f32.gmra.mrb[24].mxu0 %vm934_vm1, %v35731_v27  ;;  %v35753_v27 = vld [vmem:[#allocation212_spill] sm:$0xff]  ;;  %25231 = vmatprep.subr.bf16.mxu1 %v25230_v43 }
 0x6b0   : > { %24807 = vmatprep.mubr.msk.f32.mxu0 %vm934_vm1, %v35732_v41  ;;  %v35754_v41 = vld [vmem:[#allocation21_spill] sm:$0xff]  ;;  %25233 = vmatpush3.bf16.msra.mxu1 %v25230_v43 }
 0x6b3   : > { %24808 = vmatmul.mubr.msk.f32.gmra.mrb[26].mxu0 %vm934_vm1, %v35733_v4  ;;  %v35755_v4 = vld [vmem:[#allocation23_spill] sm:$0xff] }
 0x6b4   : > { %24810 = vmatprep.mubr.msk.f32.mxu0 %vm934_vm1, %v35734_v60  ;;  %v14657_v60 = vsel %vm3147_vm6, %v14654_v42, %v14656_v13 }
 0x6b7   : > { %24811 = vmatmul.mubr.msk.f32.gmra.mrb[28].mxu0 %vm934_vm1, %v35735_v21 }
 0x6b8   : > { %24813 = vmatprep.mubr.msk.f32.mxu0 %vm934_vm1, %v14384_v10  ;;  %v20356_v10 = vld [vmem:[%s35759_s24] ss:$0 sm:$0xff] }
 0x6b9   : > { %15562 = vrot.lane.b32.xlu0 %v20356_v10, %s27239_s30 }
 0x6bb   : > { %24814 = vmatmul.mubr.msk.f32.gmra.mrb[30].mxu0 %vm934_vm1, %v14386_v50  ;;  %v32679_v50 = vld [vmem:[%s35760_s27] ss:$0 sm:$0xff] }
 0x6bc   : > { %24818 = vmatprep.mubr.msk.f32.mxu0 %vm934_vm1, %v35563_v29  ;;  %v35736_v29 = vld [vmem:[#allocation227_spill] sm:$0xff] }
 0x6bf   : > { %24819 = vmatmul.mubr.msk.f32.vlgmr.msra.gmra.mrb[0].mxu0 %vm934_vm1, %v35564_v24  ;;  %v35737_v24 = vld [vmem:[#allocation184_spill] sm:$0xff] }
 0x6c0   : > { %24821 = vmatprep.mubr.msk.f32.mxu0 %vm934_vm1, %v35565_v23  ;;  %v35738_v23 = vld [vmem:[#allocation228_spill] sm:$0xff] }
 0x6c3   : > { %24822 = vmatmul.mubr.msk.f32.gmra.mrb[2].mxu0 %vm934_vm1, %v35566_v14  ;;  %v35744_v14 = vld [vmem:[#allocation233_spill] sm:$0xff] }
 0x6c4   : > { %24824 = vmatprep.mubr.msk.f32.mxu0 %vm934_vm1, %v35567_v54  ;;  %v35745_v54 = vld [vmem:[#allocation114_spill] sm:$0xff] }
 0x6c7   : > { %24825 = vmatmul.mubr.msk.f32.gmra.mrb[4].mxu0 %vm934_vm1, %v35568_v63  ;;  %v35739_v63 = vld [vmem:[#allocation229_spill] sm:$0xff] }
 0x6c8   : > { %24827 = vmatprep.mubr.msk.f32.mxu0 %vm934_vm1, %v35569_v25  ;;  %v35740_v25 = vld [vmem:[#allocation230_spill] sm:$0xff] }
 0x6cb   : > { %24828 = vmatmul.mubr.msk.f32.gmra.mrb[6].mxu0 %vm934_vm1, %v35570_v48  ;;  %v35741_v48 = vld [vmem:[#allocation231_spill] sm:$0xff] }
 0x6cc   : > { %24830 = vmatprep.mubr.msk.f32.mxu0 %vm934_vm1, %v35571_v2  ;;  %v35742_v2 = vld [vmem:[#allocation232_spill] sm:$0xff] }
 0x6cf   : > { %24831 = vmatmul.mubr.msk.f32.gmra.mrb[8].mxu0 %vm934_vm1, %v35572_v8  ;;  %v35743_v8 = vld [vmem:[#allocation197_spill] sm:$0xff] }
 0x6d0   : > { %24833 = vmatprep.mubr.msk.f32.mxu0 %vm934_vm1, %v35736_v29 }
 0x6d3   : > { %24834 = vmatmul.mubr.msk.f32.gmra.mrb[10].mxu0 %vm934_vm1, %v35737_v24 }
 0x6d4   : > { %24836 = vmatprep.mubr.msk.f32.mxu0 %vm934_vm1, %v35738_v23 }
 0x6d7   : > { %24837 = vmatmul.mubr.msk.f32.gmra.mrb[12].mxu0 %vm934_vm1, %v35739_v63 }
 0x6d8   : > { %24839 = vmatprep.mubr.msk.f32.mxu0 %vm934_vm1, %v35740_v25  ;;  %v32687_v25 = vld [vmem:[%s35761_s8] ss:$0 sm:$0xff] }
 0x6db   : > { %24840 = vmatmul.mubr.msk.f32.gmra.mrb[14].mxu0 %vm934_vm1, %v35741_v48 }
 0x6dc   : > { %24842 = vmatprep.mubr.msk.f32.mxu0 %vm934_vm1, %v35742_v2 }
 0x6df   : > { %24843 = vmatmul.mubr.msk.f32.gmra.mrb[16].mxu0 %vm934_vm1, %v35743_v8 }
 0x6e0   : > { %24845 = vmatprep.mubr.msk.f32.mxu0 %vm934_vm1, %v35744_v14 }
 0x6e3   : > { %24846 = vmatmul.mubr.msk.f32.gmra.mrb[18].mxu0 %vm934_vm1, %v35745_v54 }
 0x6e4   : > { %24848 = vmatprep.mubr.msk.f32.mxu0 %vm934_vm1, %v35746_v30 }
 0x6e7   : > { %24849 = vmatmul.mubr.msk.f32.gmra.mrb[20].mxu0 %vm934_vm1, %v35747_v36 }
 0x6e8   : > { %24851 = vmatprep.mubr.msk.f32.mxu0 %vm934_vm1, %v35748_v45 }
 0x6eb   : > { %24852 = vmatmul.mubr.msk.f32.gmra.mrb[22].mxu0 %vm934_vm1, %v35749_v15 }
 0x6ec   : > { %24854 = vmatprep.mubr.msk.f32.mxu0 %vm934_vm1, %v35750_v20 }
 0x6ef   : > { %24855 = vmatmul.mubr.msk.f32.gmra.mrb[24].mxu0 %vm934_vm1, %v35751_v0 }
 0x6f0   : > { %24857 = vmatprep.mubr.msk.f32.mxu0 %vm934_vm1, %v35752_v31 }
 0x6f3   : > { %24858 = vmatmul.mubr.msk.f32.gmra.mrb[26].mxu0 %vm934_vm1, %v35753_v27 }
 0x6f4   : > { %24860 = vmatprep.mubr.msk.f32.mxu0 %vm934_vm1, %v35754_v41 }
 0x6f7   : > { %24861 = vmatmul.mubr.msk.f32.gmra.mrb[28].mxu0 %vm934_vm1, %v35755_v4 }
 0x6f8   : > { %24863 = vmatprep.mubr.msk.f32.mxu0 %vm934_vm1, %v14655_v61 }
 0x6fb   : > { %24864 = vmatmul.mubr.msk.f32.gmra.mrb[30].mxu0 %vm934_vm1, %v14657_v60 }
 0x792   : > { %v24820_v21 = vpop.f32.mrb[0].mxu0 }
 0x793   : > { %v25332_v29 = vadd.f32 %v24820_v21, %v32332_v37  ;;  %v14733_v24 = vpop.f32.mrb[1].mxu0 }
 0x794   : > { %v25333_v23 = vadd.f32 %v14733_v24, %v32334_v40 }
 0x795   : > { %v14932_v63 = vmul.f32 %v25332_v29, %v32679_v50 }
 0x796   : > { %v14931_v48 = vmul.f32 %v25333_v23, %v32679_v50  ;;  %v24823_v2 = vpop.f32.mrb[2].mxu0 }
 0x797   : > { %v25334_v8 = vadd.f32 %v24823_v2, %v32340_v28  ;;  %v14743_v14 = vpop.f32.mrb[3].mxu0  ;;  %v14971_v37 = vadd.f32 %v32687_v25, %v14932_v63 }
 0x798   : > { %v25335_v54 = vadd.f32 %v14743_v14, %v32342_v3  ;;  %v14970_v40 = vadd.f32 %v32687_v25, %v14931_v48 }
 0x799   : > { %v14934_v30 = vmul.f32 %v25334_v8, %v32679_v50  ;;  %v15003_v44 = vmax.f32 %v14971_v37, 0.0 }
 0x79a   : > { %v14933_v36 = vmul.f32 %v25335_v54, %v32679_v50  ;;  %v24826_v45 = vpop.f32.mrb[4].mxu0  ;;  %v15002_v27 = vmax.f32 %v14970_v40, 0.0 }
 0x79b   : > { %v14973_v15 = vadd.f32 %v32687_v25, %v14934_v30  ;;  %v25336_v20 = vadd.f32 %v24826_v45, %v32348_v56  ;;  %v14753_v0 = vpop.f32.mrb[5].mxu0 }
 0x79c   : > { %v14972_v31 = vadd.f32 %v32687_v25, %v14933_v36  ;;  %v25337_v28 = vadd.f32 %v14753_v0, %v32350_v17 }
 0x79d   : > { %v15005_v3 = vmax.f32 %v14973_v15, 0.0  ;;  %v14936_v42 = vmul.f32 %v25336_v20, %v32679_v50 }
 0x79e   : > { %v15004_v41 = vmax.f32 %v14972_v31, 0.0  ;;  %v14935_v13 = vmul.f32 %v25337_v28, %v32679_v50  ;;  %v24829_v61 = vpop.f32.mrb[6].mxu0 }
 0x79f   : > { %v15035_v4 = vmax.f32 %v15003_v44, %v15005_v3  ;;  %v14975_v60 = vadd.f32 %v32687_v25, %v14936_v42  ;;  %v25338_v34 = vadd.f32 %v24829_v61, %v32356_v12  ;;  %v14763_v56 = vpop.f32.mrb[7].mxu0 }
 0x7a0   : > { %v15034_v39 = vmax.f32 %v15002_v27, %v15004_v41  ;;  %v14974_v43 = vadd.f32 %v32687_v25, %v14935_v13  ;;  %v25339_v17 = vadd.f32 %v14763_v56, %v32358_v49 }
 0x7a1   : > { %v15128_v62 = vrot.slane %v15035_v4, 1  ;;  %v15007_v10 = vmax.f32 %v14975_v60, 0.0  ;;  %v14938_v21 = vmul.f32 %v25338_v34, %v32679_v50  ;;  %v15152_v29 = vrot.slane %v15035_v4, 2 }
 0x7a2   : > { %v15072_v24 = vrot.slane %v15034_v39, 1  ;;  %v15006_v23 = vmax.f32 %v14974_v43, 0.0  ;;  %v14937_v63 = vmul.f32 %v25339_v17, %v32679_v50  ;;  %v24832_v48 = vpop.f32.mrb[8].mxu0  ;;  %v15096_v36 = vrot.slane %v15034_v39, 2 }
 0x7a3   : > { %v15176_v2 = vmax.f32 %v15035_v4, %v15128_v62  ;;  %v15144_v8 = vmax.f32 %v15034_v39, %v15128_v62  ;;  %v15037_v14 = vmax.f32 %v15005_v3, %v15007_v10  ;;  %v14977_v12 = vadd.f32 %v32687_v25, %v14938_v21  ;;  %v14773_v54 = vpop.f32.mrb[9].mxu0 }
 0x7a4   : > { %v32709_v37 = vmax.f32 %v15034_v39, %v15072_v24  ;;  %v15036_v30 = vmax.f32 %v15004_v41, %v15006_v23  ;;  %v14976_v49 = vadd.f32 %v32687_v25, %v14937_v63  ;;  %v25340_v40 = vadd.f32 %v24832_v48, %v32423_v59 }
 0x7a5   : > { %v15009_v45 = vmax.f32 %v14977_v12, 0.0  ;;  %v25341_v15 = vadd.f32 %v14773_v54, %v32425_v33  ;;  %v32714_v20 = vmax.f32 %v15144_v8, %v15152_v29  ;;  %v32717_v44 = vmax.f32 %v15176_v2, %v15152_v29 }
 0x7a6   : > { %v15008_v0 = vmax.f32 %v14976_v49, 0.0  ;;  %v14940_v31 = vmul.f32 %v25340_v40, %v32679_v50  ;;  %v24835_v28 = vpop.f32.mrb[10].mxu0  ;;  %v32720_v3 = vmax.f32 %v32709_v37, %v15096_v36 }
 0x7a7   : > { %v15039_v42 = vmax.f32 %v15037_v14, %v15009_v45  ;;  %v14939_v27 = vmul.f32 %v25341_v15, %v32679_v50  ;;  %v25342_v59 = vadd.f32 %v24835_v28, %v32431_v18  ;;  %v14783_v41 = vpop.f32.mrb[11].mxu0  ;;  %v15240_v4 = vrot.slane %v32714_v20, 3 }
 0x7a8   : > { %v15038_v13 = vmax.f32 %v15036_v30, %v15008_v0  ;;  %v14979_v33 = vadd.f32 %v32687_v25, %v14940_v31  ;;  %v25343_v61 = vadd.f32 %v14783_v41, %v32433_v46  ;;  %v15200_v30 = vrot.slane %v32720_v3, 1 }
 0x7a9   : > { %v15129_v60 = vrot.slane %v15039_v42, 1  ;;  %v15153_v34 = vrot.slane %v15039_v42, 2  ;;  %v14978_v56 = vadd.f32 %v32687_v25, %v14939_v27  ;;  %v14942_v39 = vmul.f32 %v25342_v59, %v32679_v50 }
 0x7aa   : > { %v15073_v43 = vrot.slane %v15038_v13, 1  ;;  %v15097_v17 = vrot.slane %v15038_v13, 2  ;;  %v15011_v62 = vmax.f32 %v14979_v33, 0.0  ;;  %v14941_v18 = vmul.f32 %v25343_v61, %v32679_v50  ;;  %v24838_v10 = vpop.f32.mrb[12].mxu0 }
 0x7ab   : > { %v15177_v21 = vmax.f32 %v15039_v42, %v15129_v60  ;;  %v15145_v29 = vmax.f32 %v15038_v13, %v15129_v60  ;;  %v15010_v24 = vmax.f32 %v14978_v56, 0.0  ;;  %v14981_v23 = vadd.f32 %v32687_v25, %v14942_v39  ;;  %v14793_v46 = vpop.f32.mrb[13].mxu0 }
 0x7ac   : > { %v15089_v63 = vmax.f32 %v15038_v13, %v15073_v43  ;;  %v15041_v48 = vmax.f32 %v15009_v45, %v15011_v62  ;;  %v14980_v2 = vadd.f32 %v32687_v25, %v14941_v18  ;;  %v25344_v8 = vadd.f32 %v24838_v10, %v32439_v52 }
 0x7ad   : > { %v32733_v14 = vmax.f32 %v15145_v29, %v15153_v34  ;;  %v15040_v12 = vmax.f32 %v15008_v0, %v15010_v24  ;;  %v15013_v54 = vmax.f32 %v14981_v23, 0.0  ;;  %v25345_v15 = vadd.f32 %v14793_v46, %v32441_v32 }
 0x7ae   : > { %v32736_v49 = vmax.f32 %v15089_v63, %v15097_v17  ;;  %v15012_v40 = vmax.f32 %v14980_v2, 0.0  ;;  %v14944_v36 = vmul.f32 %v25344_v8, %v32679_v50  ;;  %v24841_v31 = vpop.f32.mrb[14].mxu0  ;;  %v32740_v28 = vmax.f32 %v15177_v21, %v15153_v34 }
 0x7af   : > { %v15241_v45 = vrot.slane %v32733_v14, 3  ;;  %v32743_v42 = vmax.f32 %v15041_v48, %v15013_v54  ;;  %v25346_v52 = vadd.f32 %v24841_v31, %v32447_v19  ;;  %v14803_v0 = vpop.f32.mrb[15].mxu0  ;;  %v15216_v13 = vrot.slane %v32720_v3, 2 }
 0x7b0   : > { %v15201_v27 = vrot.slane %v32736_v49, 1  ;;  %v15217_v59 = vrot.slane %v32736_v49, 2  ;;  %v15042_v41 = vmax.f32 %v15040_v12, %v15012_v40  ;;  %v32751_v32 = vsel %vm15312_vm7, %v15089_v63, %v32736_v49 }
 0x7b1   : > { %v15130_v33 = vrot.slane %v32743_v42, 1  ;;  %v14983_v61 = vadd.f32 %v32687_v25, %v14944_v36  ;;  %v14943_v60 = vmul.f32 %v25345_v15, %v32679_v50  ;;  %v15154_v19 = vrot.slane %v32743_v42, 2 }
 0x7b2   : > { %v15074_v34 = vrot.slane %v15042_v41, 1  ;;  %v14946_v56 = vmul.f32 %v25346_v52, %v32679_v50  ;;  %v25347_v39 = vadd.f32 %v14803_v0, %v32449_v55  ;;  %v24844_v43 = vpop.f32.mrb[16].mxu0  ;;  %v15098_v17 = vrot.slane %v15042_v41, 2 }
 0x7b3   : > { %v32759_v62 = vmax.f32 %v15042_v41, %v15130_v33  ;;  %v15015_v18 = vmax.f32 %v14983_v61, 0.0  ;;  %v14982_v10 = vadd.f32 %v32687_v25, %v14943_v60  ;;  %v14813_v21 = vpop.f32.mrb[17].mxu0  ;;  %v32763_v29 = vmax.f32 %v32743_v42, %v15130_v33 }
 0x7b4   : > { %v32765_v24 = vmax.f32 %v15042_v41, %v15074_v34  ;;  %v14985_v23 = vadd.f32 %v32687_v25, %v14946_v56  ;;  %v14945_v46 = vmul.f32 %v25347_v39, %v32679_v50  ;;  %v15264_v48 = vrot.slane %v32717_v44, 4 }
 0x7b5   : > { %v15045_v63 = vmax.f32 %v15013_v54, %v15015_v18  ;;  %v15014_v55 = vmax.f32 %v14982_v10, 0.0  ;;  %v15280_v2 = vrot.slane %v32717_v44, 5  ;;  %v15296_v36 = vrot.slane %v32717_v44, 6 }
 0x7b6   : > { %v15017_v8 = vmax.f32 %v14985_v23, 0.0  ;;  %v14984_v12 = vadd.f32 %v32687_v25, %v14945_v46  ;;  %v15313_v15 = vsel %vm15312_vm7, %v32709_v37, %v32720_v3  ;;  %v24847_v31 = vpop.f32.mrb[18].mxu0  ;;  %v25348_v54 = vadd.f32 %v24844_v43, %v32455_v38 }
 0x7b7   : > { %v15044_v52 = vmax.f32 %v15012_v40, %v15014_v55  ;;  %v15321_v0 = vsel %vm3147_vm6, %v15313_v15, %v15200_v30  ;;  %v25349_v41 = vadd.f32 %v14813_v21, %v32457_v57  ;;  %v14823_v33 = vpop.f32.mrb[19].mxu0  ;;  %v25350_v44 = vadd.f32 %v24847_v31, %v32463_v6 }
 0x7b8   : > { %v32779_v61 = vmax.f32 %v15045_v63, %v15017_v8  ;;  %v15016_v60 = vmax.f32 %v14984_v12, 0.0  ;;  %v15329_v34 = vsel %vm999_vm0, %v15321_v0, %v15216_v13  ;;  %v14948_v3 = vmul.f32 %v25348_v54, %v32679_v50 }
 0x7b9   : > { %v15337_v37 = vsel %vm2334_vm5, %v15329_v34, %v15240_v4  ;;  %v14947_v30 = vmul.f32 %v25349_v41, %v32679_v50  ;;  %v25351_v38 = vadd.f32 %v14823_v33, %v32465_v16  ;;  %v32790_v57 = vmax.f32 %v32765_v24, %v15098_v17 }
 0x7ba   : > { %v15131_v40 = vrot.slane %v32779_v61, 1  ;;  %v15046_v56 = vmax.f32 %v15044_v52, %v15016_v60  ;;  %v15345_v13 = vsel %vm1927_vm4, %v15337_v37, %v15264_v48  ;;  %v24850_v39 = vpop.f32.mrb[20].mxu0  ;;  %v14987_v20 = vadd.f32 %v32687_v25, %v14948_v3 }
 0x7bb   : > { %v15353_v6 = vsel %vm1520_vm3, %v15345_v13, %v15280_v2  ;;  %v14986_v4 = vadd.f32 %v32687_v25, %v14947_v30  ;;  %v14950_v43 = vmul.f32 %v25350_v44, %v32679_v50  ;;  %v14833_v18 = vpop.f32.mrb[21].mxu0  ;;  %v15155_v16 = vrot.slane %v32779_v61, 2 }
 0x7bc   : > { %v32800_v17 = vmax.f32 %v32779_v61, %v15131_v40  ;;  %v15075_v10 = vrot.slane %v15046_v56, 1  ;;  %v32802_v21 = vmax.f32 %v15046_v56, %v15131_v40  ;;  %v15361_v23 = vsel %vm851_vm2, %v15353_v6, %v15296_v36 }
 0x7bd   : > { %v15019_v46 = vmax.f32 %v14987_v20, 0.0  ;;  %v15018_v63 = vmax.f32 %v14986_v4, 0.0  ;;  %v14989_v55 = vadd.f32 %v32687_v25, %v14950_v43  ;;  %v15099_v2 = vrot.slane %v15046_v56, 2  ;;  %24870 = vmatprep.mubr.msk.f32.mxu1 %vm15371_vm8, %v15361_v23 }
 0x7be   : > { %v32806_v48 = vmax.f32 %v15046_v56, %v15075_v10  ;;  %v14949_v12 = vmul.f32 %v25351_v38, %v32679_v50  ;;  %v15265_v15 = vrot.slane %v32740_v28, 4  ;;  %v24853_v31 = vpop.f32.mrb[22].mxu0  ;;  %v15281_v41 = vrot.slane %v32740_v28, 5 }
 0x7bf   : > { %v15049_v52 = vmax.f32 %v15017_v8, %v15019_v46  ;;  %v15048_v0 = vmax.f32 %v15016_v60, %v15018_v63  ;;  %v15021_v54 = vmax.f32 %v14989_v55, 0.0  ;;  %v14843_v36 = vpop.f32.mrb[23].mxu0  ;;  %v15297_v34 = vrot.slane %v32740_v28, 6 }
 0x7c0   : > { %v14988_v33 = vadd.f32 %v32687_v25, %v14949_v12  ;;  %v15322_v44 = vsel %vm3147_vm6, %v32751_v32, %v15201_v27  ;;  %v25352_v37 = vadd.f32 %v24850_v39, %v32471_v58  ;;  %v25353_v60 = vadd.f32 %v14833_v18, %v32473_v47 }
 0x7c1   : > { %v32819_v3 = vmax.f32 %v15049_v52, %v15021_v54  ;;  %v15330_v8 = vsel %vm999_vm0, %v15322_v44, %v15217_v59  ;;  %v25354_v30 = vadd.f32 %v24853_v31, %v32479_v11  ;;  %v25355_v27 = vadd.f32 %v14843_v36, %v32481_v5 }
 0x7c2   : > { %v15020_v38 = vmax.f32 %v14988_v33, 0.0  ;;  %v15338_v28 = vsel %vm2334_vm5, %v15330_v8, %v15241_v45  ;;  %v14952_v40 = vmul.f32 %v25352_v37, %v32679_v50  ;;  %v24856_v58 = vpop.f32.mrb[24].mxu0  ;;  %v32832_v32 = vmax.f32 %v32806_v48, %v15099_v2 }
 0x7c3   : > { %v15132_v49 = vrot.slane %v32819_v3, 1  ;;  %v15346_v59 = vsel %vm1927_vm4, %v15338_v28, %v15265_v15  ;;  %v14951_v47 = vmul.f32 %v25353_v60, %v32679_v50  ;;  %v14853_v11 = vpop.f32.mrb[25].mxu0  ;;  %v14954_v13 = vmul.f32 %v25354_v30, %v32679_v50 }
 0x7c4   : > { %v15050_v56 = vmax.f32 %v15048_v0, %v15020_v38  ;;  %v15354_v14 = vsel %vm1520_vm3, %v15346_v59, %v15281_v41  ;;  %v14991_v45 = vadd.f32 %v32687_v25, %v14952_v40  ;;  %v15156_v5 = vrot.slane %v32819_v3, 2 }
 0x7c5   : > { %v15362_v39 = vsel %vm851_vm2, %v15354_v14, %v15297_v34  ;;  %v14990_v6 = vadd.f32 %v32687_v25, %v14951_v47  ;;  %v14953_v20 = vmul.f32 %v25355_v27, %v32679_v50  ;;  %v14993_v63 = vadd.f32 %v32687_v25, %v14954_v13 }
 0x7c6   : > { %v15076_v4 = vrot.slane %v15050_v56, 1  ;;  %v15100_v43 = vrot.slane %v15050_v56, 2  ;;  %v32844_v18 = vmax.f32 %v15050_v56, %v15132_v49  ;;  %24871 = vmatmul.mubr.msk.f32.vlgmr.msra.gmra.mrb[32].mxu1 %vm15371_vm8, %v15362_v39  ;;  %v15023_v10 = vmax.f32 %v14991_v45, 0.0  ;;  %v24859_v23 = vpop.f32.mrb[26].mxu0 }
 0x7c7   : > { %v15022_v46 = vmax.f32 %v14990_v6, 0.0  ;;  %v14992_v55 = vadd.f32 %v32687_v25, %v14953_v20  ;;  %v15170_v2 = vmax.f32 %v32759_v62, %v15154_v19  ;;  %v14863_v12 = vpop.f32.mrb[27].mxu0  ;;  %v15186_v52 = vmax.f32 %v32763_v29, %v15154_v19 }
 0x7c8   : > { %v32852_v15 = vmax.f32 %v15050_v56, %v15076_v4  ;;  %v15053_v31 = vmax.f32 %v15021_v54, %v15023_v10  ;;  %v15202_v0 = vrot.slane %v32790_v57, 1  ;;  %v32859_v41 = vmax.f32 %v32819_v3, %v15132_v49 }
 0x7c9   : > { %v15052_v36 = vmax.f32 %v15020_v38, %v15022_v46  ;;  %v15025_v33 = vmax.f32 %v14993_v63, 0.0  ;;  %v15024_v34 = vmax.f32 %v14992_v55, 0.0  ;;  %v15218_v62 = vrot.slane %v32790_v57, 2 }
 0x7ca   : > { %v32862_v44 = vmax.f32 %v32852_v15, %v15100_v43  ;;  %v15242_v37 = vrot.slane %v15170_v2, 3  ;;  %v15266_v8 = vrot.slane %v15186_v52, 4  ;;  %v24862_v54 = vpop.f32.mrb[28].mxu0  ;;  %v15282_v19 = vrot.slane %v15186_v52, 5 }
 0x7cb   : > { %v32865_v60 = vmax.f32 %v15053_v31, %v15025_v33  ;;  %v15054_v42 = vmax.f32 %v15052_v36, %v15024_v34  ;;  %v15315_v29 = vsel %vm15312_vm7, %v32765_v24, %v32790_v57  ;;  %v14873_v30 = vpop.f32.mrb[29].mxu0  ;;  %v25356_v28 = vadd.f32 %v24856_v58, %v32487_v26 }
 0x7cc   : > { %v15323_v38 = vsel %vm3147_vm6, %v15315_v29, %v15202_v0  ;;  %v25357_v40 = vadd.f32 %v14853_v11, %v32489_v7  ;;  %v25358_v27 = vadd.f32 %v24859_v23, %v32495_v1  ;;  %v15298_v56 = vrot.slane %v15186_v52, 6 }
 0x7cd   : > { %v15133_v49 = vrot.slane %v32865_v60, 1  ;;  %v15157_v59 = vrot.slane %v32865_v60, 2  ;;  %v15077_v47 = vrot.slane %v15054_v42, 1  ;;  %v15331_v14 = vsel %vm999_vm0, %v15323_v38, %v15218_v62 }
 0x7ce   : > { %v14956_v45 = vmul.f32 %v25356_v28, %v32679_v50  ;;  %v14955_v24 = vmul.f32 %v25357_v40, %v32679_v50  ;;  %v14958_v57 = vmul.f32 %v25358_v27, %v32679_v50  ;;  %v24865_v13 = vpop.f32.mrb[30].mxu0  ;;  %v15101_v7 = vrot.slane %v15054_v42, 2 }
 0x7cf   : > { %v32880_v26 = vmax.f32 %v15054_v42, %v15077_v47  ;;  %v32882_v58 = vmax.f32 %v15054_v42, %v15133_v49  ;;  %v15339_v1 = vsel %vm2334_vm5, %v15331_v14, %v15242_v37  ;;  %v14883_v11 = vpop.f32.mrb[31].mxu0  ;;  %v32890_v43 = vmax.f32 %v32865_v60, %v15133_v49 }
 0x7d0   : > { %v15347_v39 = vsel %vm1927_vm4, %v15339_v1, %v15266_v8  ;;  %v14995_v6 = vadd.f32 %v32687_v25, %v14956_v45  ;;  %v14994_v20 = vadd.f32 %v32687_v25, %v14955_v24  ;;  %v14997_v4 = vadd.f32 %v32687_v25, %v14958_v57 }
 0x7d1   : > { %v15355_v10 = vsel %vm1520_vm3, %v15347_v39, %v15282_v19  ;;  %v25359_v23 = vadd.f32 %v14863_v12, %v32497_v51  ;;  %v15171_v46 = vmax.f32 %v32802_v21, %v15155_v16  ;;  %v15187_v0 = vmax.f32 %v32800_v17, %v15155_v16 }
 0x7d2   : > { %v15363_v63 = vsel %vm851_vm2, %v15355_v10, %v15298_v56  ;;  %v15027_v55 = vmax.f32 %v14995_v6, 0.0  ;;  %v15026_v2 = vmax.f32 %v14994_v20, 0.0  ;;  %v15029_v31 = vmax.f32 %v14997_v4, 0.0 }
 0x7d3   : > { %24873 = vmatprep.mubr.msk.f32.mxu1 %vm15371_vm8, %v15363_v63  ;;  %v14957_v52 = vmul.f32 %v25359_v23, %v32679_v50  ;;  %v15203_v36 = vrot.slane %v32832_v32, 1  ;;  %v15219_v51 = vrot.slane %v32832_v32, 2  ;;  %v32906_v12 = vmax.f32 %v32880_v26, %v15101_v7 }
 0x7d4   : > { %v15057_v21 = vmax.f32 %v15025_v33, %v15027_v55  ;;  %v15056_v62 = vmax.f32 %v15024_v34, %v15026_v2  ;;  %v15316_v37 = vsel %vm15312_vm7, %v32806_v48, %v32832_v32  ;;  %v15243_v42 = vrot.slane %v15171_v46, 3 }
 0x7d5   : > { %v14996_v8 = vadd.f32 %v32687_v25, %v14957_v52  ;;  %v15267_v19 = vrot.slane %v15187_v0, 4  ;;  %v15283_v61 = vrot.slane %v15187_v0, 5  ;;  %v15324_v16 = vsel %vm3147_vm6, %v15316_v37, %v15203_v36 }
 0x7d6   : > { %v32912_v29 = vmax.f32 %v15057_v21, %v15029_v31  ;;  %v25360_v17 = vadd.f32 %v24862_v54, %v32503_v35  ;;  %v25361_v38 = vadd.f32 %v14873_v30, %v32505_v9  ;;  %v15332_v33 = vsel %vm999_vm0, %v15324_v16, %v15219_v51 }
 0x7d7   : > { %v15028_v28 = vmax.f32 %v14996_v8, 0.0  ;;  %v25362_v34 = vadd.f32 %v24865_v13, %v32513_v53  ;;  %v25363_v48 = vadd.f32 %v14883_v11, %v32515_v22  ;;  %v15299_v40 = vrot.slane %v15187_v0, 6 }
 0x7d8   : > { %v15134_v32 = vrot.slane %v32912_v29, 1  ;;  %v15340_v27 = vsel %vm2334_vm5, %v15332_v33, %v15243_v42  ;;  %v14960_v49 = vmul.f32 %v25360_v17, %v32679_v50  ;;  %v14959_v35 = vmul.f32 %v25361_v38, %v32679_v50 }
 0x7d9   : > { %v15058_v47 = vmax.f32 %v15056_v62, %v15028_v28  ;;  %v15348_v56 = vsel %vm1927_vm4, %v15340_v27, %v15267_v19  ;;  %v14962_v9 = vmul.f32 %v25362_v34, %v32679_v50  ;;  %v15158_v54 = vrot.slane %v32912_v29, 2 }
 0x7da   : > { %v15356_v53 = vsel %vm1520_vm3, %v15348_v56, %v15283_v61  ;;  %v14999_v22 = vadd.f32 %v32687_v25, %v14960_v49  ;;  %v14961_v30 = vmul.f32 %v25363_v48, %v32679_v50  ;;  %v14998_v7 = vadd.f32 %v32687_v25, %v14959_v35 }
 0x7db   : > { %v15078_v14 = vrot.slane %v15058_v47, 1  ;;  %v15102_v45 = vrot.slane %v15058_v47, 2  ;;  %v15150_v24 = vmax.f32 %v15058_v47, %v15134_v32  ;;  %v15364_v57 = vsel %vm851_vm2, %v15356_v53, %v15299_v40 }
 0x7dc   : > { %24874 = vmatmul.mubr.msk.f32.gmra.mrb[34].mxu1 %vm15371_vm8, %v15364_v57  ;;  %v15031_v13 = vmax.f32 %v14999_v22, 0.0  ;;  %v15001_v1 = vadd.f32 %v32687_v25, %v14962_v9  ;;  %v15000_v11 = vadd.f32 %v32687_v25, %v14961_v30  ;;  %v15172_v6 = vmax.f32 %v32844_v18, %v15156_v5 }
 0x7dd   : > { %v15094_v39 = vmax.f32 %v15058_v47, %v15078_v14  ;;  %v15188_v50 = vmax.f32 %v32859_v41, %v15156_v5  ;;  %v15204_v20 = vrot.slane %v32862_v44, 1  ;;  %v15030_v10 = vmax.f32 %v14998_v7, 0.0 }
 0x7de   : > { %v15061_v4 = vmax.f32 %v15029_v31, %v15031_v13  ;;  %v15033_v23 = vmax.f32 %v15001_v1, 0.0  ;;  %v15032_v46 = vmax.f32 %v15000_v11, 0.0  ;;  %v15182_v63 = vmax.f32 %v32912_v29, %v15134_v32 }
 0x7df   : > { %v15118_v55 = vmax.f32 %v15094_v39, %v15102_v45  ;;  %v15220_v25 = vrot.slane %v32862_v44, 2  ;;  %v15244_v2 = vrot.slane %v15172_v6, 3  ;;  %v15060_v52 = vmax.f32 %v15028_v28, %v15030_v10 }
 0x7e0   : > { %v15063_v0 = vmax.f32 %v15061_v4, %v15033_v23  ;;  %v15268_v36 = vrot.slane %v15188_v50, 4  ;;  %v15284_v18 = vrot.slane %v15188_v50, 5  ;;  %v15300_v51 = vrot.slane %v15188_v50, 6 }
 0x7e1   : > { %v15317_v3 = vsel %vm15312_vm7, %v32852_v15, %v32862_v44  ;;  %v15173_v5 = vmax.f32 %v32882_v58, %v15157_v59  ;;  %v15189_v41 = vmax.f32 %v32890_v43, %v15157_v59  ;;  %v15062_v21 = vmax.f32 %v15060_v52, %v15032_v46 }
 0x7e2   : > { %v15135_v31 = vrot.slane %v15063_v0, 1  ;;  %v15325_v62 = vsel %vm3147_vm6, %v15317_v3, %v15204_v20  ;;  %v15205_v37 = vrot.slane %v32906_v12, 1  ;;  %v15159_v8 = vrot.slane %v15063_v0, 2 }
 0x7e3   : > { %v15333_v42 = vsel %vm999_vm0, %v15325_v62, %v15220_v25  ;;  %v15221_v19 = vrot.slane %v32906_v12, 2  ;;  %v15245_v15 = vrot.slane %v15173_v5, 3  ;;  %v15079_v61 = vrot.slane %v15062_v21, 1 }
 0x7e4   : > { %v15183_v44 = vmax.f32 %v15063_v0, %v15135_v31  ;;  %v15151_v29 = vmax.f32 %v15062_v21, %v15135_v31  ;;  %v15269_v58 = vrot.slane %v15189_v41, 4  ;;  %v15103_v16 = vrot.slane %v15062_v21, 2 }
 0x7e5   : > { %v15341_v60 = vsel %vm2334_vm5, %v15333_v42, %v15244_v2  ;;  %v15285_v59 = vrot.slane %v15189_v41, 5  ;;  %v15318_v43 = vsel %vm15312_vm7, %v32880_v26, %v32906_v12  ;;  %v15095_v17 = vmax.f32 %v15062_v21, %v15079_v61  ;;  %v15619_v42 = vld [vmem:[%s33896_s9 + $0x8] sm:$0xff] }
 0x7e6   : > { %v15349_v38 = vsel %vm1927_vm4, %v15341_v60, %v15268_v36  ;;  %v15326_v28 = vsel %vm3147_vm6, %v15318_v43, %v15205_v37  ;;  %v15174_v33 = vmax.f32 %v15150_v24, %v15158_v54  ;;  %v15190_v32 = vmax.f32 %v15182_v63, %v15158_v54  ;;  %v20357_v36 = vld [vmem:[%s33896_s9 + $0x10] sm:$0xff] }
 0x7e7   : > { %v15357_v34 = vsel %vm1520_vm3, %v15349_v38, %v15284_v18  ;;  %v15334_v48 = vsel %vm999_vm0, %v15326_v28, %v15221_v19  ;;  %v15206_v40 = vrot.slane %v15118_v55, 1  ;;  %v15119_v27 = vmax.f32 %v15095_v17, %v15103_v16  ;;  %v20358_v18 = vld [vmem:[%s33896_s9 + $0x18] sm:$0xff] }
 0x7e8   : > { %v15365_v49 = vsel %vm851_vm2, %v15357_v34, %v15300_v51  ;;  %v15342_v47 = vsel %vm2334_vm5, %v15334_v48, %v15245_v15  ;;  %v15222_v56 = vrot.slane %v15118_v55, 2  ;;  %v15301_v26 = vrot.slane %v15189_v41, 6  ;;  %v33013_v15 = vpop.permute.xlu0 %15545 }
 0x7e9   : > { %24876 = vmatprep.mubr.msk.f32.mxu1 %vm15371_vm8, %v15365_v49  ;;  %v15350_v12 = vsel %vm1927_vm4, %v15342_v47, %v15269_v58  ;;  %v15246_v9 = vrot.slane %v15174_v33, 3  ;;  %v15319_v53 = vsel %vm15312_vm7, %v15094_v39, %v15118_v55  ;;  %v15175_v22 = vmax.f32 %v15151_v29, %v15159_v8  ;;  %v33023_v29 = vld [vmem:[%s35763_s28] ss:$0 sm:$0xff]  ;;  %s728_s28 = sand.u32 1, %s27229_s26  }
 0x7ea   : > { %v15358_v35 = vsel %vm1520_vm3, %v15350_v12, %v15285_v59  ;;  %v15327_v30 = vsel %vm3147_vm6, %v15319_v53, %v15206_v40  ;;  %v15191_v14 = vmax.f32 %v15183_v44, %v15159_v8  ;;  %v15207_v45 = vrot.slane %v15119_v27, 1  ;;  %v15618_v8 = vld [vmem:[%s33896_s9] sm:$0xff]  ;;  %s18676_s2 = sshll.u32 %s728_s28, 6  ;;  %s33846_s6 = scalar_lea.sflag [#allocation3], %s728_s28 }
 0x7eb   : > { %v15366_v54 = vsel %vm851_vm2, %v15358_v35, %v15301_v26  ;;  %v15270_v24 = vrot.slane %v15190_v32, 4  ;;  %v15335_v57 = vsel %vm999_vm0, %v15327_v30, %v15222_v56  ;;  %v15223_v13 = vrot.slane %v15119_v27, 2  ;;  %v33018_v44 = vld [vmem:[%s35762_s25] ss:$0 sm:$0xff]  ;;  %v20376_v26 = vld [vmem:[%s33896_s9 + $0x28] sm:$0xff]  ;;  %s33805_s30 = scalar_lea.vmem [#allocation2], %s18676_s2 }
 0x7ec   : > { %24877 = vmatmul.mubr.msk.f32.gmra.mrb[36].mxu1 %vm15371_vm8, %v15366_v54  ;;  %v15320_v7 = vsel %vm15312_vm7, %v15095_v17, %v15119_v27  ;;  %v15286_v1 = vrot.slane %v15190_v32, 5  ;;  %v15343_v11 = vsel %vm2334_vm5, %v15335_v57, %v15246_v9  ;;  %v15302_v6 = vrot.slane %v15190_v32, 6  ;;  %v33026_v60 = vpop.permute.xlu0 %15562  ;;  %v20375_v56 = vld [vmem:[%s33896_s9 + $0x20] sm:$0xff]  ;;  %s18610_s5 = sshll.u32 %s33805_s30, 4  ;;  %s35764_s25 = sld [smem:[#allocation250_spill]]  ;;  %s33838_s5 = int_to_ptr.vmem [resolvable:$true] %s18610_s5 }
 0x7ed   : > { %v15351_v39 = vsel %vm1927_vm4, %v15343_v11, %v15270_v24  ;;  %v15247_v50 = vrot.slane %v15175_v22, 3  ;;  %v15328_v20 = vsel %vm3147_vm6, %v15320_v7, %v15207_v45  ;;  %v15271_v10 = vrot.slane %v15191_v14, 4  ;;  %s27175_s24 = scalar_lea.vmem %s33838_s5, 1024 }
 0x7ee   : > { %v15359_v4 = vsel %vm1520_vm3, %v15351_v39, %v15286_v1  ;;  %v15336_v23 = vsel %vm999_vm0, %v15328_v20, %v15223_v13  ;;  %v15287_v63 = vrot.slane %v15191_v14, 5  ;;  %v15303_v25 = vrot.slane %v15191_v14, 6  ;;  %p27176_p11 = scmp.ne.s32.totalorder %s33838_s5, %s27175_s24 }
 0x7ef   : > { %v15367_v46 = vsel %vm851_vm2, %v15359_v4, %v15302_v6  ;;  %v15344_v55 = vsel %vm2334_vm5, %v15336_v23, %v15247_v50  ;;  %v25234_v51 = vpack.c.bf16 %v20358_v18, %v20357_v36  ;;  %v27240_v3 = vmov 0.0  }
 0x7f0   : > { %24879 = vmatprep.mubr.msk.f32.mxu1 %vm15371_vm8, %v15367_v46  ;;  %v15352_v2 = vsel %vm1927_vm4, %v15344_v55, %v15271_v10  ;;  %v15582_v5 = vrot.slane %v27240_v3, 7  ;;  %v25238_v19 = vpack.c.bf16 %v15619_v42, %v15618_v8  ;;  %v33059_v30 = vpack.c.bf16 %v20376_v26, %v20375_v56  ;;  %p27177_p12 = pnand %p27176_p11, %p27408_p5 }
 0x7f1   : > { %v15360_v52 = vsel %vm1520_vm3, %v15352_v2, %v15287_v63  ;;  %25235 = vmatprep.subr.bf16.mxu1 %v25234_v51 }
 0x7f2   : > { %v15368_v0 = vsel %vm851_vm2, %v15360_v52, %v15303_v25  ;;  %v32995_v41 = vsel %vm15312_vm7, 0.0, %v15582_v5  ;;  %v32998_v31 = vsel %vm15312_vm7, %v15582_v5, 0.0  ;;  %25237 = vmatpush3.bf16.msra.mxu1 %v25234_v51  ;;  %s33836_s8 = scalar_lea.hbm %s35764_s25, %s20572_s0  ;;  %p27178_p13 = pneg %p27177_p12 }
 0x7f3   : > { %24880 = vmatmul.mubr.msk.f32.gmra.mrb[38].mxu1 %vm15371_vm8, %v15368_v0  ;;  %v15636_v21 = vrot.slane %v32995_v41, 1  ;;  %v15637_v62 = vrot.slane %v32998_v31, 1  ;;  %25239 = vmatprep.subr.bf16.mxu1 %v25238_v19 }
 0x7f5   : > { %v33003_v37 = vsel %vm851_vm2, %v15636_v21, %v15637_v62 }
 0x7f6   : > { %24886 = vmatprep.mubr.msk.f32.mxu1 %vm15371_vm8, %v33003_v37 }
 0x899   : > { %v24872_v61 = vpop.f32.mrb[32].mxu1 }
 0x89a   : > { %v15509_v58 = vmul.f32 %v24872_v61, %v33018_v44  ;;  %v15462_v16 = vpop.f32.mrb[33].mxu1  ;;  %v15549_v38 = vmul.f32 %v24872_v61, %v33013_v15 }
 0x89b   : > { %v15508_v59 = vmul.f32 %v33018_v44, %v15462_v16  ;;  %v15548_v43 = vmul.f32 %v33013_v15, %v15462_v16 }
 0x89c   : > { %v15524_v17 = vadd.f32 %v33023_v29, %v15509_v58  ;;  %v15566_v27 = vadd.f32 %v33026_v60, %v15549_v38 }
 0x89d   : > { %v15523_v28 = vadd.f32 %v33023_v29, %v15508_v59  ;;  %v15565_v33 = vadd.f32 %v33026_v60, %v15548_v43 }
 0x89e   : > { %v15532_v34 = vmax.f32 %v15524_v17, 0.0 }
 0x89f   : > { %v15531_v48 = vmax.f32 %v15523_v28, 0.0  ;;  %16978 = vrot.lane.b32.xlu1 %v15565_v33, %s27241_s1 }
 0x8a0   : > { %v15584_v32 = vrot.slane %v15532_v34, 7 }
 0x8a1   : > { %v15583_v40 = vrot.slane %v15531_v48, 7 }
 0x8a2   : > { %v33037_v49 = vsel %vm15312_vm7, 0.0, %v15584_v32  ;;  %v33040_v47 = vsel %vm15312_vm7, %v15584_v32, 0.0 }
 0x8a3   : > { %v15643_v12 = vrot.slane %v33040_v47, 1  ;;  %v33050_v35 = vsel %vm15312_vm7, 0.0, %v15583_v40  ;;  %v33053_v9 = vsel %vm15312_vm7, %v15583_v40, 0.0  ;;  %16980 = vrot.lane.b32.xlu1 %v15566_v27, %s27241_s1  ;;  %v15642_v54 = vrot.slane %v33037_v49, 1 }
 0x8a4   : > { %v15639_v53 = vrot.slane %v33050_v35, 1  ;;  %v15640_v22 = vrot.slane %v33053_v9, 1 }
 0x8a5   : > { %v33067_v45 = vsel %vm851_vm2, %v15642_v54, %v15643_v12 }
 0x8a6   : > { %v33062_v14 = vsel %vm851_vm2, %v15639_v53, %v15640_v22 }
 0x8a7   : > { %24887 = vmatmul.mubr.msk.f32.vlgmr.msra.gmra.mrb[40].mxu1 %vm15371_vm8, %v33062_v14 }
 0x8a8   : > { %24889 = vmatprep.mubr.msk.f32.mxu1 %vm15371_vm8, %v33067_v45  ;;  %25241 = vmatpush3.bf16.msra.mxu1 %v25238_v19 }
 0x8a9   : > { %25243 = vmatprep.subr.bf16.mxu1 %v33059_v30 }
 0x8af   : > { %v24875_v24 = vpop.f32.mrb[34].mxu1 }
 0x8b0   : > { %v15511_v57 = vmul.f32 %v24875_v24, %v33018_v44  ;;  %v15551_v13 = vmul.f32 %v24875_v24, %v33013_v15  ;;  %v15472_v7 = vpop.f32.mrb[35].mxu1 }
 0x8b1   : > { %v15510_v1 = vmul.f32 %v33018_v44, %v15472_v7  ;;  %v15550_v11 = vmul.f32 %v33013_v15, %v15472_v7 }
 0x8b2   : > { %v15526_v6 = vadd.f32 %v33023_v29, %v15511_v57  ;;  %v15568_v39 = vadd.f32 %v33026_v60, %v15551_v13 }
 0x8b3   : > { %v15525_v50 = vadd.f32 %v33023_v29, %v15510_v1  ;;  %v15567_v20 = vadd.f32 %v33026_v60, %v15550_v11 }
 0x8b4   : > { %v15534_v4 = vmax.f32 %v15526_v6, 0.0  ;;  %16984 = vrot.lane.b32.xlu1 %v15568_v39, %s27241_s1 }
 0x8b5   : > { %v15533_v10 = vmax.f32 %v15525_v50, 0.0  ;;  %16982 = vrot.lane.b32.xlu0 %v15567_v20, %s27241_s1 }
 0x8b6   : > { %v15586_v23 = vrot.slane %v15534_v4, 7 }
 0x8b7   : > { %v15585_v46 = vrot.slane %v15533_v10, 7 }
 0x8b8   : > { %v33083_v63 = vsel %vm15312_vm7, 0.0, %v15586_v23  ;;  %v33086_v55 = vsel %vm15312_vm7, %v15586_v23, 0.0  ;;  %v20386_v23 = vld [vmem:[%s33896_s9 + $0x38] sm:$0xff] }
 0x8b9   : > { %v15649_v25 = vrot.slane %v33086_v55, 1  ;;  %v33090_v2 = vsel %vm15312_vm7, 0.0, %v15585_v46  ;;  %v33093_v52 = vsel %vm15312_vm7, %v15585_v46, 0.0  ;;  %v15648_v18 = vrot.slane %v33083_v63, 1 }
 0x8ba   : > { %v15646_v0 = vrot.slane %v33093_v52, 1  ;;  %v15645_v36 = vrot.slane %v33090_v2, 1 }
 0x8bb   : > { %v33104_v3 = vsel %vm851_vm2, %v15648_v18, %v15649_v25  ;;  %v15905_v25 = vrot.slane %v32995_v41, 2  ;;  %v15909_v18 = vrot.slane %v33053_v9, 2  ;;  %v15915_v9 = vrot.slane %v33093_v52, 2 }
 0x8bc   : > { %v33099_v51 = vsel %vm851_vm2, %v15645_v36, %v15646_v0  ;;  %v15906_v0 = vrot.slane %v32998_v31, 2  ;;  %v15908_v36 = vrot.slane %v33050_v35, 2  ;;  %v20396_v31 = vld [vmem:[%s33896_s9 + $0x48] sm:$0xff] }
 0x8bd   : > { %24890 = vmatmul.mubr.msk.f32.gmra.mrb[42].mxu1 %vm15371_vm8, %v33099_v51 }
 0x8be   : > { %24892 = vmatprep.mubr.msk.f32.mxu1 %vm15371_vm8, %v33104_v3 }
 0x8bf   : > { %v24878_v5 = vpop.f32.mrb[36].mxu1 }
 0x8c0   : > { %v15513_v21 = vmul.f32 %v24878_v5, %v33018_v44  ;;  %v15553_v62 = vmul.f32 %v24878_v5, %v33013_v15  ;;  %v15482_v8 = vpop.f32.mrb[37].mxu1  ;;  %v20395_v5 = vld [vmem:[%s33896_s9 + $0x40] sm:$0xff] }
 0x8c1   : > { %v15512_v42 = vmul.f32 %v33018_v44, %v15482_v8  ;;  %v15552_v19 = vmul.f32 %v33013_v15, %v15482_v8  ;;  %v25250_v8 = vpack.c.bf16 %v20396_v31, %v20395_v5 }
 0x8c2   : > { %v15528_v61 = vadd.f32 %v33023_v29, %v15513_v21  ;;  %v15570_v58 = vadd.f32 %v33026_v60, %v15553_v62  ;;  %v15912_v21 = vrot.slane %v33040_v47, 2  ;;  %v15911_v62 = vrot.slane %v33037_v49, 2 }
 0x8c3   : > { %v15527_v16 = vadd.f32 %v33023_v29, %v15512_v42  ;;  %v15569_v59 = vadd.f32 %v33026_v60, %v15552_v19  ;;  %v15910_v42 = vsel %vm1520_vm3, %v15908_v36, %v15909_v18  ;;  %v15914_v19 = vrot.slane %v33090_v2, 2  ;;  %v17020_v36 = vld [vmem:[%s33902_s15 + $0x10] sm:$0xff]  ;;  %v17021_v18 = vld [vmem:[%s33902_s15 + $0x18] sm:$0xff] }
 0x8c4   : > { %v15536_v43 = vmax.f32 %v15528_v61, 0.0  ;;  %16988 = vrot.lane.b32.xlu1 %v15570_v58, %s27241_s1  ;;  %v15918_v61 = vrot.slane %v33086_v55, 2  ;;  %v33212_v47 = vsel %vm1520_vm3, %v15911_v62, %v15912_v21  ;;  %v15917_v58 = vrot.slane %v33083_v63, 2 }
 0x8c5   : > { %v15535_v17 = vmax.f32 %v15527_v16, 0.0  ;;  %16986 = vrot.lane.b32.xlu0 %v15569_v59, %s27241_s1  ;;  %v33219_v16 = vsel %vm1520_vm3, %v15914_v19, %v15915_v9 }
 0x8c6   : > { %v15588_v38 = vrot.slane %v15536_v43, 7  ;;  %v24881_v33 = vpop.f32.mrb[38].mxu1  ;;  %v33226_v43 = vsel %vm1520_vm3, %v15917_v58, %v15918_v61 }
 0x8c7   : > { %v15587_v28 = vrot.slane %v15535_v17, 7  ;;  %v15515_v32 = vmul.f32 %v24881_v33, %v33018_v44  ;;  %v15555_v40 = vmul.f32 %v24881_v33, %v33013_v15  ;;  %v15492_v27 = vpop.f32.mrb[39].mxu1 }
 0x8c8   : > { %v33119_v34 = vsel %vm15312_vm7, 0.0, %v15588_v38  ;;  %v33122_v48 = vsel %vm15312_vm7, %v15588_v38, 0.0  ;;  %v15514_v13 = vmul.f32 %v33018_v44, %v15492_v27  ;;  %v15554_v7 = vmul.f32 %v33013_v15, %v15492_v27  ;;  %v20406_v27 = vld [vmem:[%s33896_s9 + $0x58] sm:$0xff] }
 0x8c9   : > { %v15655_v56 = vrot.slane %v33122_v48, 1  ;;  %v33128_v26 = vsel %vm15312_vm7, 0.0, %v15587_v28  ;;  %v33131_v12 = vsel %vm15312_vm7, %v15587_v28, 0.0  ;;  %v15654_v54 = vrot.slane %v33119_v34, 1 }
 0x8ca   : > { %v15652_v53 = vrot.slane %v33131_v12, 1  ;;  %v15651_v22 = vrot.slane %v33128_v26, 1  ;;  %v33137_v24 = vadd.f32 %v33023_v29, %v15515_v32  ;;  %v15572_v57 = vadd.f32 %v33026_v60, %v15555_v40  ;;  %v20405_v40 = vld [vmem:[%s33896_s9 + $0x50] sm:$0xff] }
 0x8cb   : > { %v33148_v11 = vsel %vm851_vm2, %v15654_v54, %v15655_v56  ;;  %v15529_v6 = vadd.f32 %v33023_v29, %v15514_v13  ;;  %v15571_v39 = vadd.f32 %v33026_v60, %v15554_v7  ;;  %v20385_v60 = vld [vmem:[%s33896_s9 + $0x30] sm:$0xff]  ;;  %v15921_v52 = vrot.slane %v33131_v12, 2  ;;  %v20416_v54 = vld [vmem:[%s33896_s9 + $0x68] sm:$0xff] }
 0x8cc   : > { %v33143_v1 = vsel %vm851_vm2, %v15651_v22, %v15652_v53  ;;  %16992 = vrot.lane.b32.xlu1 %v15572_v57, %s27241_s1  ;;  %v25246_v46 = vpack.c.bf16 %v20386_v23, %v20385_v60  ;;  %v15920_v59 = vrot.slane %v33128_v26, 2  ;;  %v15924_v55 = vrot.slane %v33122_v48, 2  ;;  %v20415_v22 = vld [vmem:[%s33896_s9 + $0x60] sm:$0xff]  ;;  %v20436_v60 = vld [vmem:[%s33896_s9 + $0x88] sm:$0xff] }
 0x8cd   : > { %24893 = vmatmul.mubr.msk.f32.gmra.mrb[44].mxu1 %vm15371_vm8, %v33143_v1  ;;  %v15537_v44 = vmax.f32 %v15529_v6, 0.0  ;;  %16990 = vrot.lane.b32.xlu0 %v15571_v39, %s27241_s1  ;;  %v15923_v17 = vrot.slane %v33119_v34, 2  ;;  %v25254_v56 = vpack.c.bf16 %v20406_v27, %v20405_v40  ;;  %v15538_v12 = vmax.f32 %v33137_v24, 0.0  ;;  %v20425_v6 = vld [vmem:[%s33896_s9 + $0x70] sm:$0xff]  ;;  %v20426_v39 = vld [vmem:[%s33896_s9 + $0x78] sm:$0xff]  ;;  %s27242_s1 = smov [#allocation2]  }
 0x8ce   : > { %24895 = vmatprep.mubr.msk.f32.mxu1 %vm15371_vm8, %v33148_v11  ;;  %v33232_v28 = vsel %vm1520_vm3, %v15920_v59, %v15921_v52  ;;  %v25258_v24 = vpack.c.bf16 %v20416_v54, %v20415_v22  ;;  %v17024_v54 = vld [vmem:[%s33902_s15 + $0x30] sm:$0xff]  ;;  %s27179_s4 = sshll.u32 %s27242_s1, 4  ;;  %s27180_s4 = int_to_ptr.vmem [resolvable:$false] %s27179_s4 }
 0x8cf   : > { %v15589_v15 = vrot.slane %v15537_v44, 7  ;;  %v33238_v48 = vsel %vm1520_vm3, %v15923_v17, %v15924_v55  ;;  %v15590_v53 = vrot.slane %v15538_v12, 7  ;;  %v25262_v44 = vpack.c.bf16 %v20426_v39, %v20425_v6  ;;  %v20455_v39 = vld [vmem:[%s33900_s13] ss:$0 sm:$0xff]  ;;  %s27181_s2 = scalar_lea.vmem %s27180_s4, 2048  ;;  %p27182_p0 = scmp.lt.s32.totalorder %s33838_s5, %s27180_s4 }
 0x8d0   : > { %p27183_p1 = scmp.lt.s32.totalorder %s27181_s2, %s27175_s24 }
 0x8d1   : > { %v33157_v50 = vsel %vm15312_vm7, 0.0, %v15589_v15  ;;  %v15616_v20 = vsel %vm15312_vm7, %v15589_v15, 0.0  ;;  %v15617_v57 = vsel %vm15312_vm7, %v15590_v53, 0.0 }
 0x8d2   : > { %v15658_v4 = vrot.slane %v15616_v20, 1  ;;  %v15657_v10 = vrot.slane %v33157_v50, 1  ;;  %v15927_v38 = vrot.slane %v15616_v20, 2  ;;  %v15926_v33 = vrot.slane %v33157_v50, 2  ;;  %p27184_p2 = por %p27183_p1, %p27182_p0 }
 0x8d3   : > { %v16182_v13 = vrot.slane %v15617_v57, 1  ;;  %v16303_v15 = vrot.slane %v15617_v57, 2 }
 0x8d4   : > { %v33162_v29 = vsel %vm851_vm2, %v15657_v10, %v15658_v4  ;;  %v33243_v32 = vsel %vm1520_vm3, %v15926_v33, %v15927_v38  ;;  %v20435_v10 = vld [vmem:[%s33896_s9 + $0x80] sm:$0xff]  ;;  %p27185_p3 = pnand %p27184_p2, %p27178_p13 }
 0x8d5   : > { %24896 = vmatmul.mubr.msk.f32.gmra.mrb[46].mxu1 %vm15371_vm8, %v33162_v29  ;;  %v25266_v23 = vpack.c.bf16 %v20436_v60, %v20435_v10 }
 0x8d6   : > { %24902 = vmatprep.mubr.msk.f32.mxu1 %vm15371_vm8, %v32995_v41 }
 0x8d9   : > { %24903 = vmatmul.mubr.msk.f32.vlgmr.msra.gmra.mrb[40].mxu1 %vm15371_vm8, %v33050_v35 }
 0x8da   : > { %25245 = vmatpush3.bf16.msra.mxu1 %v33059_v30  ;;  %24905 = vmatprep.mubr.msk.f32.mxu1 %vm15371_vm8, %v33037_v49  ;;  %v33190_v30 = vsel %vm1520_vm3, %v15905_v25, %v15906_v0 }
 0x8db   : > { %25247 = vmatprep.subr.bf16.mxu1 %v25246_v46 }
 0x8dd   : > { %24906 = vmatmul.mubr.msk.f32.gmra.mrb[42].mxu1 %vm15371_vm8, %v33090_v2 }
 0x8de   : > { %24908 = vmatprep.mubr.msk.f32.mxu1 %vm15371_vm8, %v33083_v63 }
 0x8e1   : > { %24909 = vmatmul.mubr.msk.f32.gmra.mrb[44].mxu1 %vm15371_vm8, %v33128_v26 }
 0x8e2   : > { %24911 = vmatprep.mubr.msk.f32.mxu1 %vm15371_vm8, %v33119_v34 }
 0x8e5   : > { %24912 = vmatmul.mubr.msk.f32.gmra.mrb[46].mxu1 %vm15371_vm8, %v33157_v50 }
 0x8e6   : > { %24918 = vmatprep.mubr.msk.f32.mxu1 %vm15371_vm8, %v33190_v30 }
 0x8e9   : > { %24919 = vmatmul.mubr.msk.f32.vlgmr.msra.gmra.mrb[40].mxu1 %vm15371_vm8, %v15910_v42 }
 0x8ea   : > { %25249 = vmatpush3.bf16.msra.mxu1 %v25246_v46  ;;  %24921 = vmatprep.mubr.msk.f32.mxu1 %vm15371_vm8, %v33212_v47 }
 0x8eb   : > { %25251 = vmatprep.subr.bf16.mxu1 %v25250_v8 }
 0x8ed   : > { %24922 = vmatmul.mubr.msk.f32.gmra.mrb[42].mxu1 %vm15371_vm8, %v33219_v16 }
 0x8ee   : > { %24924 = vmatprep.mubr.msk.f32.mxu1 %vm15371_vm8, %v33226_v43 }
 0x8f1   : > { %24925 = vmatmul.mubr.msk.f32.gmra.mrb[44].mxu1 %vm15371_vm8, %v33232_v28 }
 0x8f2   : > { %24927 = vmatprep.mubr.msk.f32.mxu1 %vm15371_vm8, %v33238_v48 }
 0x8f5   : > { %24928 = vmatmul.mubr.msk.f32.gmra.mrb[46].mxu1 %vm15371_vm8, %v33243_v32 }
 0x8f6   : > { %24934 = vmatprep.mubr.msk.f32.mxu1 %vm15371_vm8, %v33050_v35  ;;  %v15608_v35 = vsel %vm15312_vm7, 0.0, %v15590_v53  ;;  %v17022_v53 = vld [vmem:[%s33902_s15 + $0x20] sm:$0xff] }
 0x8f7   : > { %v16181_v7 = vrot.slane %v15608_v35, 1  ;;  %v16302_v20 = vrot.slane %v15608_v35, 2 }
 0x8f9   : > { %24935 = vmatmul.mubr.msk.f32.vlgmr.msra.gmra.mrb[40].mxu1 %vm15371_vm8, %v33037_v49  ;;  %v16304_v4 = vsel %vm1520_vm3, %v16302_v20, %v16303_v15  ;;  %v20456_v15 = vld [vmem:[%s33901_s14] ss:$0 sm:$0xff] }
 0x8fa   : > { %25253 = vmatpush3.bf16.msra.mxu1 %v25250_v8  ;;  %24937 = vmatprep.mubr.msk.f32.mxu1 %vm15371_vm8, %v33090_v2 }
 0x8fb   : > { %25255 = vmatprep.subr.bf16.mxu1 %v25254_v56 }
 0x8fd   : > { %24938 = vmatmul.mubr.msk.f32.gmra.mrb[42].mxu1 %vm15371_vm8, %v33083_v63 }
 0x8fe   : > { %24940 = vmatprep.mubr.msk.f32.mxu1 %vm15371_vm8, %v33128_v26 }
 0x901   : > { %24941 = vmatmul.mubr.msk.f32.gmra.mrb[44].mxu1 %vm15371_vm8, %v33119_v34 }
 0x902   : > { %24943 = vmatprep.mubr.msk.f32.mxu1 %vm15371_vm8, %v33157_v50 }
 0x905   : > { %24944 = vmatmul.mubr.msk.f32.gmra.mrb[46].mxu1 %vm15371_vm8, %v15608_v35 }
 0x906   : > { %24950 = vmatprep.mubr.msk.f32.mxu1 %vm15371_vm8, %v33062_v14  ;;  %v16183_v14 = vsel %vm851_vm2, %v16181_v7, %v16182_v13  ;;  %v20467_v13 = vld [vmem:[%s33905_s18 + $0x10] sm:$0xff]  ;;  %v20468_v7 = vld [vmem:[%s33905_s18 + $0x18] sm:$0xff] }
 0x909   : > { %24951 = vmatmul.mubr.msk.f32.vlgmr.msra.gmra.mrb[40].mxu1 %vm15371_vm8, %v33067_v45 }
 0x90a   : > { %25257 = vmatpush3.bf16.msra.mxu1 %v25254_v56  ;;  %24953 = vmatprep.mubr.msk.f32.mxu1 %vm15371_vm8, %v33099_v51 }
 0x90b   : > { %25259 = vmatprep.subr.bf16.mxu1 %v25258_v24 }
 0x90d   : > { %24954 = vmatmul.mubr.msk.f32.gmra.mrb[42].mxu1 %vm15371_vm8, %v33104_v3 }
 0x90e   : > { %24956 = vmatprep.mubr.msk.f32.mxu1 %vm15371_vm8, %v33143_v1 }
 0x911   : > { %24957 = vmatmul.mubr.msk.f32.gmra.mrb[44].mxu1 %vm15371_vm8, %v33148_v11  ;;  %v16979_v6 = vpop.permute.xlu1 %16978 }
 0x912   : > { %24959 = vmatprep.mubr.msk.f32.mxu1 %vm15371_vm8, %v33162_v29 }
 0x915   : > { %24960 = vmatmul.mubr.msk.f32.gmra.mrb[46].mxu1 %vm15371_vm8, %v16183_v14 }
 0x916   : > { %24966 = vmatprep.mubr.msk.f32.mxu1 %vm15371_vm8, %v15910_v42  ;;  %v25278_v42 = vpack.c.bf16 %v17021_v18, %v17020_v36 }
 0x919   : > { %24967 = vmatmul.mubr.msk.f32.vlgmr.msra.gmra.mrb[40].mxu1 %vm15371_vm8, %v33212_v47 }
 0x91a   : > { %25261 = vmatpush3.bf16.msra.mxu1 %v25258_v24  ;;  %24969 = vmatprep.mubr.msk.f32.mxu1 %vm15371_vm8, %v33219_v16  ;;  %v17025_v24 = vld [vmem:[%s33902_s15 + $0x38] sm:$0xff] }
 0x91b   : > { %25263 = vmatprep.subr.bf16.mxu1 %v25262_v44  ;;  %v25286_v57 = vpack.c.bf16 %v17025_v24, %v17024_v54  ;;  %v20466_v54 = vld [vmem:[%s33904_s17] ss:$0 sm:$0xff] }
 0x91d   : > { %24970 = vmatmul.mubr.msk.f32.gmra.mrb[42].mxu1 %vm15371_vm8, %v33226_v43 }
 0x91e   : > { %24972 = vmatprep.mubr.msk.f32.mxu1 %vm15371_vm8, %v33232_v28 }
 0x921   : > { %24973 = vmatmul.mubr.msk.f32.gmra.mrb[44].mxu1 %vm15371_vm8, %v33238_v48 }
 0x922   : > { %24975 = vmatprep.mubr.msk.f32.mxu1 %vm15371_vm8, %v33243_v32 }
 0x925   : > { %24976 = vmatmul.mubr.msk.f32.gmra.mrb[46].mxu1 %vm15371_vm8, %v16304_v4 }
 0x926   : > { %24982 = vmatprep.mubr.msk.f32.mxu1 %vm15371_vm8, %v33037_v49  ;;  %v16809_v49 = vld [vmem:[%s33899_s12] sm:$0xff] }
 0x929   : > { %24983 = vmatmul.mubr.msk.f32.vlgmr.msra.gmra.mrb[40].mxu1 %vm15371_vm8, %v33090_v2 }
 0x92a   : > { %25265 = vmatpush3.bf16.msra.mxu1 %v25262_v44  ;;  %24985 = vmatprep.mubr.msk.f32.mxu1 %vm15371_vm8, %v33083_v63  ;;  %v16810_v63 = vld [vmem:[%s33899_s12 + $0x8] sm:$0xff] }
 0x92b   : > { %25267 = vmatprep.subr.bf16.mxu1 %v25266_v23  ;;  %v25270_v2 = vpack.c.bf16 %v16810_v63, %v16809_v49 }
 0x92d   : > { %24986 = vmatmul.mubr.msk.f32.gmra.mrb[42].mxu1 %vm15371_vm8, %v33128_v26 }
 0x92e   : > { %24988 = vmatprep.mubr.msk.f32.mxu1 %vm15371_vm8, %v33119_v34  ;;  %v20445_v34 = vld [vmem:[%s33897_s10] ss:$0 sm:$0xff] }
 0x931   : > { %24989 = vmatmul.mubr.msk.f32.gmra.mrb[44].mxu1 %vm15371_vm8, %v33157_v50 }
 0x932   : > { %24991 = vmatprep.mubr.msk.f32.mxu1 %vm15371_vm8, %v15608_v35  ;;  %v17023_v35 = vld [vmem:[%s33902_s15 + $0x28] sm:$0xff] }
 0x933   : > { %v25282_v22 = vpack.c.bf16 %v17023_v35, %v17022_v53  ;;  %v20465_v35 = vld [vmem:[%s33903_s16] ss:$0 sm:$0xff] }
 0x935   : > { %24992 = vmatmul.mubr.msk.f32.gmra.mrb[46].mxu1 %vm15371_vm8, %v32995_v41 }
 0x936   : > { %24998 = vmatprep.mubr.msk.f32.mxu1 %vm15371_vm8, %v33067_v45  ;;  %v17018_v45 = vld [vmem:[%s33902_s15] sm:$0xff] }
 0x939   : > { %24999 = vmatmul.mubr.msk.f32.vlgmr.msra.gmra.mrb[40].mxu1 %vm15371_vm8, %v33099_v51  ;;  %v17019_v51 = vld [vmem:[%s33902_s15 + $0x8] sm:$0xff] }
 0x93a   : > { %25269 = vmatpush3.bf16.msra.mxu1 %v25266_v23  ;;  %25001 = vmatprep.mubr.msk.f32.mxu1 %vm15371_vm8, %v33104_v3  ;;  %v25274_v3 = vpack.c.bf16 %v17019_v51, %v17018_v45  ;;  %v16981_v23 = vpop.permute.xlu1 %16980 }
 0x93b   : > { %25271 = vmatprep.subr.bf16.mxu1 %v25270_v2 }
 0x93d   : > { %25002 = vmatmul.mubr.msk.f32.gmra.mrb[42].mxu1 %vm15371_vm8, %v33143_v1  ;;  %v20446_v1 = vld [vmem:[%s33898_s11] ss:$0 sm:$0xff] }
 0x93e   : > { %25004 = vmatprep.mubr.msk.f32.mxu1 %vm15371_vm8, %v33148_v11 }
 0x941   : > { %25005 = vmatmul.mubr.msk.f32.gmra.mrb[44].mxu1 %vm15371_vm8, %v33162_v29 }
 0x942   : > { %25007 = vmatprep.mubr.msk.f32.mxu1 %vm15371_vm8, %v16183_v14  ;;  %v25290_v14 = vpack.c.bf16 %v20468_v7, %v20467_v13 }
 0x945   : > { %25008 = vmatmul.mubr.msk.f32.gmra.mrb[46].mxu1 %vm15371_vm8, %v33003_v37 }
 0x946   : > { %25014 = vmatprep.mubr.msk.f32.mxu1 %vm15371_vm8, %v33212_v47 }
 0x949   : > { %25015 = vmatmul.mubr.msk.f32.vlgmr.msra.gmra.mrb[40].mxu1 %vm15371_vm8, %v33219_v16 }
 0x94a   : > { %25017 = vmatprep.mubr.msk.f32.mxu1 %vm15371_vm8, %v33226_v43  ;;  %25273 = vmatpush3.bf16.msra.mxu1 %v25270_v2 }
 0x94b   : > { %25275 = vmatprep.subr.bf16.mxu1 %v25274_v3 }
 0x94d   : > { %25018 = vmatmul.mubr.msk.f32.gmra.mrb[42].mxu1 %vm15371_vm8, %v33232_v28 }
 0x94e   : > { %25020 = vmatprep.mubr.msk.f32.mxu1 %vm15371_vm8, %v33238_v48 }
 0x951   : > { %25021 = vmatmul.mubr.msk.f32.gmra.mrb[44].mxu1 %vm15371_vm8, %v33243_v32 }
 0x952   : > { %25023 = vmatprep.mubr.msk.f32.mxu1 %vm15371_vm8, %v16304_v4 }
 0x955   : > { %25024 = vmatmul.mubr.msk.f32.gmra.mrb[46].mxu1 %vm15371_vm8, %v33190_v30 }
 0xa1c   : > { %v25016_v26 = vpop.f32.mrb[40].mxu1 }
 0xa1d   : > { %v16779_v11 = vmul.f32 %v25016_v26, %v20445_v34  ;;  %v16724_v50 = vpop.f32.mrb[41].mxu1 }
 0xa1e   : > { %v16778_v29 = vmul.f32 %v20445_v34, %v16724_v50 }
 0xa1f   : > { %v16794_v46 = vadd.f32 %v20446_v1, %v16779_v11 }
 0xa20   : > { %v16793_v25 = vadd.f32 %v20446_v1, %v16778_v29  ;;  %v25019_v0 = vpop.f32.mrb[42].mxu1 }
 0xa21   : > { %v16781_v5 = vmul.f32 %v25019_v0, %v20445_v34  ;;  %v16734_v31 = vpop.f32.mrb[43].mxu1  ;;  %v16802_v8 = vmax.f32 %v16794_v46, 0.0  ;;  %v16983_v46 = vpop.permute.xlu0 %16982 }
 0xa22   : > { %v16801_v21 = vmax.f32 %v16793_v25, 0.0  ;;  %v16780_v62 = vmul.f32 %v20445_v34, %v16734_v31 }
 0xa23   : > { %v16796_v9 = vadd.f32 %v20446_v1, %v16781_v5 }
 0xa24   : > { %v16795_v19 = vadd.f32 %v20446_v1, %v16780_v62  ;;  %v25022_v61 = vpop.f32.mrb[44].mxu1  ;;  %25030 = vmatprep.mubr.msk.f32.mxu1 %vm15371_vm8, %v16801_v21 }
 0xa25   : > { %v16783_v47 = vmul.f32 %v25022_v61, %v20445_v34  ;;  %v16744_v58 = vpop.f32.mrb[45].mxu1  ;;  %25031 = vmatmul.mubr.msk.f32.vlgmr.msra.gmra.mrb[48].mxu1 %vm15371_vm8, %v16802_v8  ;;  %v16804_v59 = vmax.f32 %v16796_v9, 0.0 }
 0xa26   : > { %v16803_v52 = vmax.f32 %v16795_v19, 0.0  ;;  %v16782_v16 = vmul.f32 %v20445_v34, %v16744_v58  ;;  %25277 = vmatpush3.bf16.msra.mxu1 %v25274_v3  ;;  %v16987_v19 = vpop.permute.xlu0 %16986 }
 0xa27   : > { %v16798_v55 = vadd.f32 %v20446_v1, %v16783_v47  ;;  %25279 = vmatprep.subr.bf16.mxu1 %v25278_v42 }
 0xa28   : > { %v16797_v43 = vadd.f32 %v20446_v1, %v16782_v16  ;;  %v25025_v17 = vpop.f32.mrb[46].mxu1  ;;  %25033 = vmatprep.mubr.msk.f32.mxu1 %vm15371_vm8, %v16803_v52 }
 0xa29   : > { %v16785_v38 = vmul.f32 %v25025_v17, %v20445_v34  ;;  %v16754_v28 = vpop.f32.mrb[47].mxu1  ;;  %25034 = vmatmul.mubr.msk.f32.gmra.mrb[50].mxu1 %vm15371_vm8, %v16804_v59  ;;  %v16806_v32 = vmax.f32 %v16798_v55, 0.0 }
 0xa2a   : > { %v16805_v33 = vmax.f32 %v16797_v43, 0.0  ;;  %v16784_v48 = vmul.f32 %v20445_v34, %v16754_v28  ;;  %25281 = vmatpush3.bf16.msra.mxu1 %v25278_v42  ;;  %v16991_v28 = vpop.permute.xlu0 %16990 }
 0xa2b   : > { %v16800_v40 = vadd.f32 %v20446_v1, %v16785_v38  ;;  %25283 = vmatprep.subr.bf16.mxu1 %v25282_v22 }
 0xa2c   : > { %v16799_v27 = vadd.f32 %v20446_v1, %v16784_v48  ;;  %25036 = vmatprep.mubr.msk.f32.mxu1 %vm15371_vm8, %v16805_v33  ;;  %v16985_v1 = vpop.permute.xlu1 %16984 }
 0xa2d   : > { %25037 = vmatmul.mubr.msk.f32.gmra.mrb[52].mxu1 %vm15371_vm8, %v16806_v32  ;;  %v16808_v12 = vmax.f32 %v16800_v40, 0.0 }
 0xa2e   : > { %v16807_v56 = vmax.f32 %v16799_v27, 0.0  ;;  %25285 = vmatpush3.bf16.msra.mxu1 %v25282_v22 }
 0xa2f   : > { %25287 = vmatprep.subr.bf16.mxu1 %v25286_v57 }
 0xa30   : > { %25039 = vmatprep.mubr.msk.f32.mxu1 %vm15371_vm8, %v16807_v56  ;;  %v16989_v62 = vpop.permute.xlu1 %16988  ;;  %v17234_v56 = vld [vmem:[%s33905_s18] sm:$0xff] }
 0xa31   : > { %25040 = vmatmul.mubr.msk.f32.gmra.mrb[54].mxu1 %vm15371_vm8, %v16808_v12  ;;  %v17235_v12 = vld [vmem:[%s33905_s18 + $0x8] sm:$0xff] }
 0xa32   : > { %25289 = vmatpush3.bf16.msra.mxu1 %v25286_v57  ;;  %v25294_v53 = vpack.c.bf16 %v17235_v12, %v17234_v56 }
 0xa33   : > { %25291 = vmatprep.subr.bf16.mxu1 %v25290_v14 }
 0xa34   : > { %v16993_v43 = vpop.permute.xlu1 %16992 }
 0xaf8   : > { %v25032_v44 = vpop.f32.mrb[48].mxu1 }
 0xaf9   : > { %v16948_v20 = vmul.f32 %v25032_v44, %v20455_v39  ;;  %v16901_v4 = vpop.f32.mrb[49].mxu1 }
 0xafa   : > { %v16947_v10 = vmul.f32 %v20455_v39, %v16901_v4 }
 0xafb   : > { %v16963_v60 = vadd.f32 %v20456_v15, %v16948_v20 }
 0xafc   : > { %v16962_v49 = vadd.f32 %v20456_v15, %v16947_v10  ;;  %v25035_v63 = vpop.f32.mrb[50].mxu1 }
 0xafd   : > { %v33421_v2 = vadd.f32 %v16981_v23, %v16963_v60  ;;  %v16950_v45 = vmul.f32 %v25035_v63, %v20455_v39  ;;  %v16911_v51 = vpop.f32.mrb[51].mxu1  ;;  %v20485_v23 = vld [vmem:[%s33905_s18 + $0x20] sm:$0xff] }
 0xafe   : > { %v33423_v3 = vadd.f32 %v16979_v6, %v16962_v49  ;;  %v16949_v34 = vmul.f32 %v20455_v39, %v16911_v51  ;;  %v20486_v49 = vld [vmem:[%s33905_s18 + $0x28] sm:$0xff] }
 0xaff   : > { %v16965_v26 = vadd.f32 %v20456_v15, %v16950_v45  ;;  %v17011_v25 = vmax.f32 %v33421_v2, 0.0 }
 0xb00   : > { %v17010_v11 = vmax.f32 %v33423_v3, 0.0  ;;  %v16964_v50 = vadd.f32 %v20456_v15, %v16949_v34  ;;  %v25038_v29 = vpop.f32.mrb[52].mxu1 }
 0xb01   : > { %v33427_v0 = vadd.f32 %v16985_v1, %v16965_v26  ;;  %v16952_v36 = vmul.f32 %v25038_v29, %v20455_v39  ;;  %v16921_v18 = vpop.f32.mrb[53].mxu1 }
 0xb02   : > { %v33429_v5 = vadd.f32 %v16983_v46, %v16964_v50  ;;  %v16951_v31 = vmul.f32 %v20455_v39, %v16921_v18  ;;  %25058 = vmatprep.mubr.msk.f32.mxu1 %vm17026_vm9, %v17010_v11  ;;  %v33495_v46 = vpack.c.bf16 %v20486_v49, %v20485_v23 }
 0xb03   : > { %v16967_v21 = vadd.f32 %v20456_v15, %v16952_v36  ;;  %25059 = vmatmul.mubr.msk.f32.vlgmr.msra.gmra.mrb[56].mxu1 %vm17026_vm9, %v17011_v25  ;;  %v17013_v61 = vmax.f32 %v33427_v0, 0.0 }
 0xb04   : > { %v17012_v8 = vmax.f32 %v33429_v5, 0.0  ;;  %v16966_v9 = vadd.f32 %v20456_v15, %v16951_v31  ;;  %v25041_v42 = vpop.f32.mrb[54].mxu1  ;;  %25293 = vmatpush3.bf16.msra.mxu1 %v25290_v14 }
 0xb05   : > { %v33439_v47 = vadd.f32 %v16989_v62, %v16967_v21  ;;  %v16954_v58 = vmul.f32 %v25041_v42, %v20455_v39  ;;  %v16931_v52 = vpop.f32.mrb[55].mxu1  ;;  %25295 = vmatprep.subr.bf16.mxu1 %v25294_v53 }
 0xb06   : > { %v33441_v16 = vadd.f32 %v16987_v19, %v16966_v9  ;;  %v16953_v59 = vmul.f32 %v20455_v39, %v16931_v52  ;;  %25061 = vmatprep.mubr.msk.f32.mxu1 %vm17026_vm9, %v17012_v8 }
 0xb07   : > { %v16969_v55 = vadd.f32 %v20456_v15, %v16954_v58  ;;  %25062 = vmatmul.mubr.msk.f32.gmra.mrb[58].mxu1 %vm17026_vm9, %v17013_v61  ;;  %v17015_v33 = vmax.f32 %v33439_v47, 0.0 }
 0xb08   : > { %v17014_v17 = vmax.f32 %v33441_v16, 0.0  ;;  %v16968_v38 = vadd.f32 %v20456_v15, %v16953_v59 }
 0xb09   : > { %v33451_v48 = vadd.f32 %v16993_v43, %v16969_v55 }
 0xb0a   : > { %v33453_v32 = vadd.f32 %v16991_v28, %v16968_v38  ;;  %25064 = vmatprep.mubr.msk.f32.mxu1 %vm17026_vm9, %v17014_v17 }
 0xb0b   : > { %25065 = vmatmul.mubr.msk.f32.gmra.mrb[60].mxu1 %vm17026_vm9, %v17015_v33  ;;  %v17017_v27 = vmax.f32 %v33451_v48, 0.0 }
 0xb0c   : > { %v17016_v40 = vmax.f32 %v33453_v32, 0.0 }
 0xb0e   : > { %25067 = vmatprep.mubr.msk.f32.mxu1 %vm17026_vm9, %v17016_v40 }
 0xb0f   : > { %25068 = vmatmul.mubr.msk.f32.gmra.mrb[62].mxu1 %vm17026_vm9, %v17017_v27 }
 0xb10   : > { %25074 = vmatprep.mubr.msk.f32.mxu1 %vm15371_vm8, %v33003_v37 }
 0xbd6   : > { %v25060_v22 = vpop.f32.mrb[56].mxu1 }
 0xbd7   : > { %v17164_v24 = vmul.f32 %v25060_v22, %v20465_v35  ;;  %v17117_v57 = vpop.f32.mrb[57].mxu1 }
 0xbd8   : > { %v17163_v13 = vmul.f32 %v20465_v35, %v17117_v57 }
 0xbd9   : > { %v17179_v7 = vadd.f32 %v20466_v54, %v17164_v24 }
 0xbda   : > { %v17178_v14 = vadd.f32 %v20466_v54, %v17163_v13  ;;  %v25063_v6 = vpop.f32.mrb[58].mxu1 }
 0xbdb   : > { %v17187_v39 = vmax.f32 %v17179_v7, 0.0  ;;  %v17166_v44 = vmul.f32 %v25063_v6, %v20465_v35  ;;  %v17127_v15 = vpop.f32.mrb[59].mxu1 }
 0xbdc   : > { %v17186_v20 = vmax.f32 %v17178_v14, 0.0  ;;  %v17165_v4 = vmul.f32 %v20465_v35, %v17127_v15 }
 0xbdd   : > { %v17203_v10 = vrot.slane %v17187_v39, 7  ;;  %v17181_v60 = vadd.f32 %v20466_v54, %v17166_v44 }
 0xbde   : > { %v17202_v63 = vrot.slane %v17186_v20, 7  ;;  %v17180_v45 = vadd.f32 %v20466_v54, %v17165_v4  ;;  %v25066_v51 = vpop.f32.mrb[60].mxu1 }
 0xbdf   : > { %v17189_v34 = vmax.f32 %v17181_v60, 0.0  ;;  %v17168_v26 = vmul.f32 %v25066_v51, %v20465_v35  ;;  %v17137_v1 = vpop.f32.mrb[61].mxu1  ;;  %v33498_v36 = vsel %vm15312_vm7, 0.0, %v17203_v10  ;;  %v33501_v18 = vsel %vm15312_vm7, %v17203_v10, 0.0 }
 0xbe0   : > { %v33490_v50 = vsel %vm15312_vm7, 0.0, %v17202_v63  ;;  %v33493_v29 = vsel %vm15312_vm7, %v17202_v63, 0.0  ;;  %v17188_v9 = vmax.f32 %v17180_v45, 0.0  ;;  %v17167_v19 = vmul.f32 %v20465_v35, %v17137_v1 }
 0xbe1   : > { %v17250_v31 = vrot.slane %v33490_v50, 1  ;;  %v17251_v21 = vrot.slane %v33493_v29, 1  ;;  %v17205_v62 = vrot.slane %v17189_v34, 7  ;;  %v17183_v42 = vadd.f32 %v20466_v54, %v17168_v26 }
 0xbe2   : > { %v25069_v58 = vpop.f32.mrb[62].mxu1  ;;  %v17254_v43 = vrot.slane %v33501_v18, 1  ;;  %v17204_v38 = vrot.slane %v17188_v9, 7  ;;  %v17253_v56 = vrot.slane %v33498_v36, 1  ;;  %v17182_v12 = vadd.f32 %v20466_v54, %v17167_v19 }
 0xbe3   : > { %v17170_v52 = vmul.f32 %v25069_v58, %v20465_v35  ;;  %v17147_v59 = vpop.f32.mrb[63].mxu1  ;;  %v33506_v55 = vsel %vm851_vm2, %v17250_v31, %v17251_v21  ;;  %v17191_v28 = vmax.f32 %v17183_v42, 0.0  ;;  %v33515_v24 = vsel %vm15312_vm7, 0.0, %v17205_v62 }
 0xbe4   : > { %25075 = vmatmul.mubr.msk.f32.vlgmr.msra.gmra.mrb[64].mxu1 %vm15371_vm8, %v33506_v55  ;;  %v33518_v57 = vsel %vm15312_vm7, %v17204_v38, 0.0  ;;  %v17169_v13 = vmul.f32 %v20465_v35, %v17147_v59  ;;  %v33522_v7 = vsel %vm15312_vm7, %v17205_v62, 0.0  ;;  %v33525_v14 = vsel %vm15312_vm7, 0.0, %v17204_v38  ;;  %v20496_v38 = vld [vmem:[%s33905_s18 + $0x38] sm:$0xff] }
 0xbe5   : > { %v33512_v22 = vadd.f32 %v20466_v54, %v17170_v52  ;;  %25297 = vmatpush3.bf16.msra.mxu1 %v25294_v53  ;;  %v17207_v6 = vrot.slane %v17191_v28, 7  ;;  %v17190_v39 = vmax.f32 %v17182_v12, 0.0  ;;  %v33528_v53 = vsel %vm851_vm2, %v17253_v56, %v17254_v43  ;;  %v20495_v43 = vld [vmem:[%s33905_s18 + $0x30] sm:$0xff]  ;;  %v20505_v12 = vld [vmem:[%s33905_s18 + $0x40] sm:$0xff] }
 0xbe6   : > { %25299 = vmatprep.subr.bf16.mxu1 %v33495_v46  ;;  %v17184_v44 = vadd.f32 %v20466_v54, %v17169_v13  ;;  %v17257_v15 = vrot.slane %v33518_v57, 1  ;;  %25077 = vmatprep.mubr.msk.f32.mxu1 %vm15371_vm8, %v33528_v53  ;;  %v17260_v35 = vrot.slane %v33522_v7, 1  ;;  %v17256_v10 = vrot.slane %v33525_v14, 1  ;;  %v20506_v13 = vld [vmem:[%s33905_s18 + $0x48] sm:$0xff] }
 0xbe7   : > { %v17206_v20 = vrot.slane %v17190_v39, 7  ;;  %v17259_v60 = vrot.slane %v33515_v24, 1  ;;  %v33537_v23 = vsel %vm15312_vm7, 0.0, %v17207_v6  ;;  %v33540_v54 = vsel %vm15312_vm7, %v17207_v6, 0.0 }
 0xbe8   : > { %v17192_v4 = vmax.f32 %v17184_v44, 0.0  ;;  %v33547_v34 = vsel %vm851_vm2, %v17256_v10, %v17257_v15  ;;  %v17266_v1 = vrot.slane %v33540_v54, 1  ;;  %v17265_v21 = vrot.slane %v33537_v23, 1 }
 0xbe9   : > { %v33543_v49 = vsel %vm15312_vm7, 0.0, %v17206_v20  ;;  %v17230_v63 = vsel %vm15312_vm7, %v17206_v20, 0.0  ;;  %25078 = vmatmul.mubr.msk.f32.gmra.mrb[66].mxu1 %vm15371_vm8, %v33547_v34  ;;  %v33554_v31 = vsel %vm851_vm2, %v17259_v60, %v17260_v35  ;;  %v25302_v28 = vpack.c.bf16 %v20496_v38, %v20495_v43 }
 0xbea   : > { %v17263_v45 = vrot.slane %v17230_v63, 1  ;;  %v17208_v51 = vrot.slane %v17192_v4, 7  ;;  %v17262_v26 = vrot.slane %v33543_v49, 1  ;;  %25080 = vmatprep.mubr.msk.f32.mxu1 %vm15371_vm8, %v33554_v31  ;;  %v33570_v52 = vsel %vm851_vm2, %v17265_v21, %v17266_v1 }
 0xbeb   : > { %v17512_v56 = vrot.slane %v33490_v50, 2  ;;  %v17516_v6 = vrot.slane %v33501_v18, 2  ;;  %v17515_v39 = vrot.slane %v33498_v36, 2  ;;  %v25306_v44 = vpack.c.bf16 %v20506_v13, %v20505_v12 }
 0xbec   : > { %v33558_v62 = vsel %vm15312_vm7, 0.0, %v17208_v51  ;;  %v17232_v9 = vsel %vm15312_vm7, %v17208_v51, 0.0  ;;  %v33564_v42 = vsel %vm851_vm2, %v17262_v26, %v17263_v45  ;;  %v17518_v20 = vrot.slane %v33525_v14, 2 }
 0xbed   : > { %v17269_v19 = vrot.slane %v17232_v9, 1  ;;  %v17268_v58 = vrot.slane %v33558_v62, 1  ;;  %25081 = vmatmul.mubr.msk.f32.gmra.mrb[68].mxu1 %vm15371_vm8, %v33564_v42  ;;  %v17522_v35 = vrot.slane %v33522_v7, 2  ;;  %v33620_v18 = vsel %vm1520_vm3, %v17515_v39, %v17516_v6  ;;  %v20535_v6 = vld [vmem:[%s33905_s18 + $0x70] sm:$0xff]  ;;  %v20536_v39 = vld [vmem:[%s33905_s18 + $0x78] sm:$0xff] }
 0xbee   : > { %25083 = vmatprep.mubr.msk.f32.mxu1 %vm15371_vm8, %v33570_v52  ;;  %v17521_v4 = vrot.slane %v33515_v24, 2  ;;  %v17525_v10 = vrot.slane %v17230_v63, 2  ;;  %v17524_v60 = vrot.slane %v33543_v49, 2  ;;  %v17528_v7 = vrot.slane %v33540_v54, 2 }
 0xbef   : > { %v33575_v59 = vsel %vm851_vm2, %v17268_v58, %v17269_v19  ;;  %v17527_v51 = vrot.slane %v33537_v23, 2  ;;  %v17531_v26 = vrot.slane %v17232_v9, 2  ;;  %v17530_v1 = vrot.slane %v33558_v62, 2  ;;  %v20515_v9 = vld [vmem:[%s33905_s18 + $0x50] sm:$0xff]  ;;  %v20516_v19 = vld [vmem:[%s33905_s18 + $0x58] sm:$0xff] }
 0xbf0   : > { %v33633_v45 = vsel %vm1520_vm3, %v17521_v4, %v17522_v35  ;;  %v33639_v63 = vsel %vm1520_vm3, %v17524_v60, %v17525_v10  ;;  %v25310_v58 = vpack.c.bf16 %v20516_v19, %v20515_v9  ;;  %v17193_v43 = vmax.f32 %v33512_v22, 0.0  ;;  %v20526_v22 = vld [vmem:[%s33905_s18 + $0x68] sm:$0xff]  ;;  %v20545_v35 = vld [vmem:[%s33905_s18 + $0x80] sm:$0xff] }
 0xbf1   : > { %25084 = vmatmul.mubr.msk.f32.gmra.mrb[70].mxu1 %vm15371_vm8, %v33575_v59  ;;  %v33645_v54 = vsel %vm1520_vm3, %v17527_v51, %v17528_v7  ;;  %v33650_v21 = vsel %vm1520_vm3, %v17530_v1, %v17531_v26  ;;  %v20546_v4 = vld [vmem:[%s33905_s18 + $0x88] sm:$0xff] }
 0xbf2   : > { %25090 = vmatprep.mubr.msk.f32.mxu1 %vm15371_vm8, %v32995_v41  ;;  %v17209_v38 = vrot.slane %v17193_v43, 7  ;;  %v25322_v10 = vpack.c.bf16 %v20546_v4, %v20545_v35 }
 0xbf5   : > { %25091 = vmatmul.mubr.msk.f32.vlgmr.msra.gmra.mrb[64].mxu1 %vm15371_vm8, %v33490_v50 }
 0xbf6   : > { %25301 = vmatpush3.bf16.msra.mxu1 %v33495_v46  ;;  %25093 = vmatprep.mubr.msk.f32.mxu1 %vm15371_vm8, %v33498_v36  ;;  %v17513_v46 = vrot.slane %v33493_v29, 2  ;;  %v17519_v29 = vrot.slane %v33518_v57, 2 }
 0xbf7   : > { %25303 = vmatprep.subr.bf16.mxu1 %v25302_v28 }
 0xbf8   : > { %v17514_v15 = vsel %vm1520_vm3, %v17512_v56, %v17513_v46  ;;  %v33626_v57 = vsel %vm1520_vm3, %v17518_v20, %v17519_v29  ;;  %v17233_v46 = vsel %vm15312_vm7, %v17209_v38, 0.0 }
 0xbf9   : > { %25094 = vmatmul.mubr.msk.f32.gmra.mrb[66].mxu1 %vm15371_vm8, %v33525_v14  ;;  %v17784_v12 = vrot.slane %v17233_v46, 1  ;;  %v17905_v29 = vrot.slane %v17233_v46, 2 }
 0xbfa   : > { %25096 = vmatprep.mubr.msk.f32.mxu1 %vm15371_vm8, %v33515_v24 }
 0xbfd   : > { %25097 = vmatmul.mubr.msk.f32.gmra.mrb[68].mxu1 %vm15371_vm8, %v33543_v49 }
 0xbfe   : > { %25099 = vmatprep.mubr.msk.f32.mxu1 %vm15371_vm8, %v33537_v23 }
 0xc01   : > { %25100 = vmatmul.mubr.msk.f32.gmra.mrb[70].mxu1 %vm15371_vm8, %v33558_v62 }
 0xc02   : > { %25106 = vmatprep.mubr.msk.f32.mxu1 %vm15371_vm8, %v33190_v30 }
 0xc05   : > { %25107 = vmatmul.mubr.msk.f32.vlgmr.msra.gmra.mrb[64].mxu1 %vm15371_vm8, %v17514_v15 }
 0xc06   : > { %25305 = vmatpush3.bf16.msra.mxu1 %v25302_v28  ;;  %25109 = vmatprep.mubr.msk.f32.mxu1 %vm15371_vm8, %v33620_v18  ;;  %v20525_v28 = vld [vmem:[%s33905_s18 + $0x60] sm:$0xff] }
 0xc07   : > { %25307 = vmatprep.subr.bf16.mxu1 %v25306_v44  ;;  %v25314_v56 = vpack.c.bf16 %v20526_v22, %v20525_v28 }
 0xc09   : > { %25110 = vmatmul.mubr.msk.f32.gmra.mrb[66].mxu1 %vm15371_vm8, %v33626_v57 }
 0xc0a   : > { %25112 = vmatprep.mubr.msk.f32.mxu1 %vm15371_vm8, %v33633_v45 }
 0xc0d   : > { %25113 = vmatmul.mubr.msk.f32.gmra.mrb[68].mxu1 %vm15371_vm8, %v33639_v63 }
 0xc0e   : > { %25115 = vmatprep.mubr.msk.f32.mxu1 %vm15371_vm8, %v33645_v54 }
 0xc11   : > { %25116 = vmatmul.mubr.msk.f32.gmra.mrb[70].mxu1 %vm15371_vm8, %v33650_v21 }
 0xc12   : > { %25122 = vmatprep.mubr.msk.f32.mxu1 %vm15371_vm8, %v33490_v50  ;;  %v17225_v50 = vsel %vm15312_vm7, 0.0, %v17209_v38 }
 0xc13   : > { %v17783_v13 = vrot.slane %v17225_v50, 1  ;;  %v17904_v20 = vrot.slane %v17225_v50, 2 }
 0xc15   : > { %25123 = vmatmul.mubr.msk.f32.vlgmr.msra.gmra.mrb[64].mxu1 %vm15371_vm8, %v33498_v36 }
 0xc16   : > { %25309 = vmatpush3.bf16.msra.mxu1 %v25306_v44  ;;  %25125 = vmatprep.mubr.msk.f32.mxu1 %vm15371_vm8, %v33525_v14  ;;  %v25318_v44 = vpack.c.bf16 %v20536_v39, %v20535_v6  ;;  %v20566_v6 = vld [vmem:[%s33910_s23] ss:$0 sm:$0xff] }
 0xc17   : > { %25311 = vmatprep.subr.bf16.mxu1 %v25310_v58 }
 0xc19   : > { %25126 = vmatmul.mubr.msk.f32.gmra.mrb[66].mxu1 %vm15371_vm8, %v33515_v24 }
 0xc1a   : > { %25128 = vmatprep.mubr.msk.f32.mxu1 %vm15371_vm8, %v33543_v49 }
 0xc1d   : > { %25129 = vmatmul.mubr.msk.f32.gmra.mrb[68].mxu1 %vm15371_vm8, %v33537_v23 }
 0xc1e   : > { %25131 = vmatprep.mubr.msk.f32.mxu1 %vm15371_vm8, %v33558_v62 }
 0xc21   : > { %25132 = vmatmul.mubr.msk.f32.gmra.mrb[70].mxu1 %vm15371_vm8, %v17225_v50 }
 0xc22   : > { %25138 = vmatprep.mubr.msk.f32.mxu1 %vm15371_vm8, %v33506_v55  ;;  %v17785_v55 = vsel %vm851_vm2, %v17783_v13, %v17784_v12  ;;  %v20565_v13 = vld [vmem:[%s33909_s22] ss:$0 sm:$0xff] }
 0xc25   : > { %25139 = vmatmul.mubr.msk.f32.vlgmr.msra.gmra.mrb[64].mxu1 %vm15371_vm8, %v33528_v53 }
 0xc26   : > { %25313 = vmatpush3.bf16.msra.mxu1 %v25310_v58  ;;  %25141 = vmatprep.mubr.msk.f32.mxu1 %vm15371_vm8, %v33547_v34 }
 0xc27   : > { %25315 = vmatprep.subr.bf16.mxu1 %v25314_v56 }
 0xc29   : > { %25142 = vmatmul.mubr.msk.f32.gmra.mrb[66].mxu1 %vm15371_vm8, %v33554_v31 }
 0xc2a   : > { %25144 = vmatprep.mubr.msk.f32.mxu1 %vm15371_vm8, %v33564_v42 }
 0xc2d   : > { %25145 = vmatmul.mubr.msk.f32.gmra.mrb[68].mxu1 %vm15371_vm8, %v33570_v52 }
 0xc2e   : > { %25147 = vmatprep.mubr.msk.f32.mxu1 %vm15371_vm8, %v33575_v59 }
 0xc31   : > { %25148 = vmatmul.mubr.msk.f32.gmra.mrb[70].mxu1 %vm15371_vm8, %v17785_v55 }
 0xc32   : > { %25154 = vmatprep.mubr.msk.f32.mxu1 %vm15371_vm8, %v17514_v15  ;;  %v17906_v15 = vsel %vm1520_vm3, %v17904_v20, %v17905_v29 }
 0xc35   : > { %25155 = vmatmul.mubr.msk.f32.vlgmr.msra.gmra.mrb[64].mxu1 %vm15371_vm8, %v33620_v18 }
 0xc36   : > { %25317 = vmatpush3.bf16.msra.mxu1 %v25314_v56  ;;  %25157 = vmatprep.mubr.msk.f32.mxu1 %vm15371_vm8, %v33626_v57 }
 0xc37   : > { %25319 = vmatprep.subr.bf16.mxu1 %v25318_v44 }
 0xc39   : > { %25158 = vmatmul.mubr.msk.f32.gmra.mrb[66].mxu1 %vm15371_vm8, %v33633_v45 }
 0xc3a   : > { %25160 = vmatprep.mubr.msk.f32.mxu1 %vm15371_vm8, %v33639_v63 }
 0xc3d   : > { %25161 = vmatmul.mubr.msk.f32.gmra.mrb[68].mxu1 %vm15371_vm8, %v33645_v54 }
 0xc3e   : > { %25163 = vmatprep.mubr.msk.f32.mxu1 %vm15371_vm8, %v33650_v21 }
 0xc41   : > { %25164 = vmatmul.mubr.msk.f32.gmra.mrb[70].mxu1 %vm15371_vm8, %v17906_v15 }
 0xc42   : > { %25170 = vmatprep.mubr.msk.f32.mxu1 %vm15371_vm8, %v33498_v36  ;;  %v18411_v36 = vld [vmem:[%s33908_s21] sm:$0xff] }
 0xc45   : > { %25171 = vmatmul.mubr.msk.f32.vlgmr.msra.gmra.mrb[64].mxu1 %vm15371_vm8, %v33525_v14 }
 0xc46   : > { %25321 = vmatpush3.bf16.msra.mxu1 %v25318_v44  ;;  %25173 = vmatprep.mubr.msk.f32.mxu1 %vm15371_vm8, %v33515_v24  ;;  %v18412_v24 = vld [vmem:[%s33908_s21 + $0x8] sm:$0xff] }
 0xc47   : > { %25323 = vmatprep.subr.bf16.mxu1 %v25322_v10  ;;  %v25326_v14 = vpack.c.bf16 %v18412_v24, %v18411_v36 }
 0xc49   : > { %25174 = vmatmul.mubr.msk.f32.gmra.mrb[66].mxu1 %vm15371_vm8, %v33543_v49 }
 0xc4a   : > { %25176 = vmatprep.mubr.msk.f32.mxu1 %vm15371_vm8, %v33537_v23 }
 0xc4d   : > { %25177 = vmatmul.mubr.msk.f32.gmra.mrb[68].mxu1 %vm15371_vm8, %v33558_v62 }
 0xc4e   : > { %25179 = vmatprep.mubr.msk.f32.mxu1 %vm15371_vm8, %v17225_v50 }
 0xc51   : > { %25180 = vmatmul.mubr.msk.f32.gmra.mrb[70].mxu1 %vm15371_vm8, %v32995_v41  ;;  %v20555_v41 = vld [vmem:[%s33906_s19] ss:$0 sm:$0xff] }
 0xc52   : > { %25186 = vmatprep.mubr.msk.f32.mxu1 %vm15371_vm8, %v33528_v53  ;;  %v20556_v53 = vld [vmem:[%s33907_s20] ss:$0 sm:$0xff] }
 0xc55   : > { %25187 = vmatmul.mubr.msk.f32.vlgmr.msra.gmra.mrb[64].mxu1 %vm15371_vm8, %v33547_v34 }
 0xc56   : > { %25325 = vmatpush3.bf16.msra.mxu1 %v25322_v10  ;;  %25189 = vmatprep.mubr.msk.f32.mxu1 %vm15371_vm8, %v33554_v31 }
 0xc57   : > { %25327 = vmatprep.subr.bf16.mxu1 %v25326_v14 }
 0xc59   : > { %25190 = vmatmul.mubr.msk.f32.gmra.mrb[66].mxu1 %vm15371_vm8, %v33564_v42 }
 0xc5a   : > { %25192 = vmatprep.mubr.msk.f32.mxu1 %vm15371_vm8, %v33570_v52 }
 0xc5d   : > { %25193 = vmatmul.mubr.msk.f32.gmra.mrb[68].mxu1 %vm15371_vm8, %v33575_v59 }
 0xc5e   : > { %25195 = vmatprep.mubr.msk.f32.mxu1 %vm15371_vm8, %v17785_v55 }
 0xc61   : > { %25196 = vmatmul.mubr.msk.f32.gmra.mrb[70].mxu1 %vm15371_vm8, %v33003_v37 }
 0xc62   : > { %25202 = vmatprep.mubr.msk.f32.mxu1 %vm15371_vm8, %v33620_v18 }
 0xc65   : > { %25203 = vmatmul.mubr.msk.f32.vlgmr.msra.gmra.mrb[64].mxu1 %vm15371_vm8, %v33626_v57 }
 0xc66   : > { %25205 = vmatprep.mubr.msk.f32.mxu1 %vm15371_vm8, %v33633_v45  ;;  %25329 = vmatpush3.bf16.msra.mxu1 %v25326_v14 }
 0xc69   : > { %25206 = vmatmul.mubr.msk.f32.gmra.mrb[66].mxu1 %vm15371_vm8, %v33639_v63 }
 0xc6a   : > { %25208 = vmatprep.mubr.msk.f32.mxu1 %vm15371_vm8, %v33645_v54 }
 0xc6d   : > { %25209 = vmatmul.mubr.msk.f32.gmra.mrb[68].mxu1 %vm15371_vm8, %v33650_v21 }
 0xc6e   : > { %25211 = vmatprep.mubr.msk.f32.mxu1 %vm15371_vm8, %v17906_v15 }
 0xc71   : > { %25212 = vmatmul.mubr.msk.f32.gmra.mrb[70].mxu1 %vm15371_vm8, %v33190_v30 }
 0xd38   : > { %v25204_v37 = vpop.f32.mrb[64].mxu1 }
 0xd39   : > { %v18381_v23 = vmul.f32 %v25204_v37, %v20555_v41  ;;  %v18326_v49 = vpop.f32.mrb[65].mxu1 }
 0xd3a   : > { %v18380_v34 = vmul.f32 %v20555_v41, %v18326_v49 }
 0xd3b   : > { %v18396_v31 = vadd.f32 %v20556_v53, %v18381_v23 }
 0xd3c   : > { %v18395_v62 = vadd.f32 %v20556_v53, %v18380_v34  ;;  %v25207_v42 = vpop.f32.mrb[66].mxu1 }
 0xd3d   : > { %v18383_v52 = vmul.f32 %v25207_v42, %v20555_v41  ;;  %v18336_v59 = vpop.f32.mrb[67].mxu1  ;;  %v18404_v30 = vmax.f32 %v18396_v31, 0.0 }
 0xd3e   : > { %v18403_v18 = vmax.f32 %v18395_v62, 0.0  ;;  %v18382_v57 = vmul.f32 %v20555_v41, %v18336_v59 }
 0xd3f   : > { %v18398_v60 = vadd.f32 %v20556_v53, %v18383_v52 }
 0xd40   : > { %v18397_v7 = vadd.f32 %v20556_v53, %v18382_v57  ;;  %v25210_v45 = vpop.f32.mrb[68].mxu1  ;;  %25218 = vmatprep.mubr.msk.f32.mxu1 %vm15371_vm8, %v18403_v18 }
 0xd41   : > { %v18385_v51 = vmul.f32 %v25210_v45, %v20555_v41  ;;  %v18346_v26 = vpop.f32.mrb[69].mxu1  ;;  %25219 = vmatmul.mubr.msk.f32.vlgmr.msra.gmra.mrb[72].mxu1 %vm15371_vm8, %v18404_v30  ;;  %v18406_v54 = vmax.f32 %v18398_v60, 0.0 }
 0xd42   : > { %v18405_v63 = vmax.f32 %v18397_v7, 0.0  ;;  %v18384_v1 = vmul.f32 %v20555_v41, %v18346_v26 }
 0xd43   : > { %v18400_v21 = vadd.f32 %v20556_v53, %v18385_v51 }
 0xd44   : > { %v18399_v9 = vadd.f32 %v20556_v53, %v18384_v1  ;;  %v25213_v19 = vpop.f32.mrb[70].mxu1  ;;  %25221 = vmatprep.mubr.msk.f32.mxu1 %vm15371_vm8, %v18405_v63 }
 0xd45   : > { %v18387_v58 = vmul.f32 %v25213_v19, %v20555_v41  ;;  %v18356_v43 = vpop.f32.mrb[71].mxu1  ;;  %25222 = vmatmul.mubr.msk.f32.gmra.mrb[74].mxu1 %vm15371_vm8, %v18406_v54  ;;  %v18408_v28 = vmax.f32 %v18400_v21, 0.0 }
 0xd46   : > { %v18407_v38 = vmax.f32 %v18399_v9, 0.0  ;;  %v18386_v50 = vmul.f32 %v20555_v41, %v18356_v43 }
 0xd47   : > { %v18402_v22 = vadd.f32 %v20556_v53, %v18387_v58 }
 0xd48   : > { %v18401_v56 = vadd.f32 %v20556_v53, %v18386_v50  ;;  %25224 = vmatprep.mubr.msk.f32.mxu1 %vm15371_vm8, %v18407_v38 }
 0xd49   : > { %25225 = vmatmul.mubr.msk.f32.gmra.mrb[76].mxu1 %vm15371_vm8, %v18408_v28  ;;  %v18410_v12 = vmax.f32 %v18402_v22, 0.0 }
 0xd4a   : > { %v18409_v46 = vmax.f32 %v18401_v56, 0.0 }
 0xd4c   : > { %25227 = vmatprep.mubr.msk.f32.mxu1 %vm15371_vm8, %v18409_v46 }
 0xd4d   : > { %25228 = vmatmul.mubr.msk.f32.gmra.mrb[78].mxu1 %vm15371_vm8, %v18410_v12 }
 0xe14   : > { %v25220_v55 = vpop.f32.mrb[72].mxu1 }
 0xe15   : > { %v18550_v39 = vmul.f32 %v25220_v55, %v20565_v13  ;;  %v18503_v44 = vpop.f32.mrb[73].mxu1 }
 0xe16   : > { %v18549_v29 = vmul.f32 %v20565_v13, %v18503_v44 }
 0xe17   : > { %v18565_v20 = vadd.f32 %v20566_v6, %v18550_v39 }
 0xe18   : > { %v18564_v15 = vadd.f32 %v20566_v6, %v18549_v29  ;;  %v25223_v35 = vpop.f32.mrb[74].mxu1 }
 0xe19   : > { %v18573_v4 = vadd.f32 %v18565_v20, %v17011_v25  ;;  %v18552_v10 = vmul.f32 %v25223_v35, %v20565_v13  ;;  %v18513_v36 = vpop.f32.mrb[75].mxu1 }
 0xe1a   : > { %v18572_v24 = vadd.f32 %v18564_v15, %v17010_v11  ;;  %v18551_v14 = vmul.f32 %v20565_v13, %v18513_v36 }
 0xe1b   : > { %v18581_v41 = vmax.f32 %v18573_v4, 0.0  ;;  %v18567_v37 = vadd.f32 %v20566_v6, %v18552_v10 }
 0xe1c   : > { %v18580_v53 = vmax.f32 %v18572_v24, 0.0  ;;  %v18566_v23 = vadd.f32 %v20566_v6, %v18551_v14  ;;  %v25226_v49 = vpop.f32.mrb[76].mxu1 }
 0xe1d   : > { %18589 = vst.msk [vmem:[%s33805_s30 + $0x8] sm:$0xff] %vm17026_vm9, %v18581_v41  ;;  %v18575_v2 = vadd.f32 %v18567_v37, %v17013_v61  ;;  %v18554_v25 = vmul.f32 %v25226_v49, %v20565_v13  ;;  %v18523_v3 = vpop.f32.mrb[77].mxu1 }
 0xe1e   : > { %18588 = vst.msk [vmem:[%s33805_s30] sm:$0xff] %vm17026_vm9, %v18580_v53  ;;  %v18574_v11 = vadd.f32 %v18566_v23, %v17012_v8  ;;  %v18553_v34 = vmul.f32 %v20565_v13, %v18523_v3 }
 0xe1f   : > { %v18583_v31 = vmax.f32 %v18575_v2, 0.0  ;;  %v18569_v62 = vadd.f32 %v20566_v6, %v18554_v25 }
 0xe20   : > { %v18582_v42 = vmax.f32 %v18574_v11, 0.0  ;;  %v18568_v52 = vadd.f32 %v20566_v6, %v18553_v34  ;;  %v25229_v59 = vpop.f32.mrb[78].mxu1 }
 0xe21   : > { %18591 = vst.msk [vmem:[%s33805_s30 + $0x18] sm:$0xff] %vm17026_vm9, %v18583_v31  ;;  %v18577_v0 = vadd.f32 %v18569_v62, %v17015_v33  ;;  %v18556_v61 = vmul.f32 %v25229_v59, %v20565_v13  ;;  %v18533_v18 = vpop.f32.mrb[79].mxu1 }
 0xe22   : > { %18590 = vst.msk [vmem:[%s33805_s30 + $0x10] sm:$0xff] %vm17026_vm9, %v18582_v42  ;;  %v18576_v5 = vadd.f32 %v18568_v52, %v17014_v17  ;;  %v18555_v8 = vmul.f32 %v20565_v13, %v18533_v18 }
 0xe23   : > { %v18585_v57 = vmax.f32 %v18577_v0, 0.0  ;;  %v18571_v30 = vadd.f32 %v20566_v6, %v18556_v61 }
 0xe24   : > { %v18584_v60 = vmax.f32 %v18576_v5, 0.0  ;;  %v18570_v7 = vadd.f32 %v20566_v6, %v18555_v8 }
 0xe25   : > { %18593 = vst.msk [vmem:[%s33805_s30 + $0x28] sm:$0xff] %vm17026_vm9, %v18585_v57  ;;  %v18579_v47 = vadd.f32 %v18571_v30, %v17017_v27 }
 0xe26   : > { %18592 = vst.msk [vmem:[%s33805_s30 + $0x20] sm:$0xff] %vm17026_vm9, %v18584_v60  ;;  %v18578_v16 = vadd.f32 %v18570_v7, %v17016_v40 }
 0xe27   : > { %v18587_v17 = vmax.f32 %v18579_v47, 0.0 }
 0xe28   : > { %v18586_v33 = vmax.f32 %v18578_v16, 0.0 }
 0xe29   : > { %18595 = vst.msk [vmem:[%s33805_s30 + $0x38] sm:$0xff] %vm17026_vm9, %v18587_v17 }
 0xe2a   : > { %18594 = vst.msk [vmem:[%s33805_s30 + $0x30] sm:$0xff] %vm17026_vm9, %v18586_v33 }
 0xe2b   : > { %27188 = shalt.err (!%p27185_p3)
}
 0xe2c   : > { %s27189_s28 = scalar_lea.hbm %s33836_s8, 1024  ;;  %s27193_s27 = scalar_lea.hbm %s35764_s25, 2048 }
 0xe2d   : > { %p27190_p4 = scmp.ne.s32.totalorder %s33836_s8, %s27189_s28  ;;  %p27194_p9 = scmp.lt.u32.totalorder %s33836_s8, %s35764_s25 }
 0xe2e   : > { %p27195_p10 = scmp.lt.u32.totalorder %s27193_s27, %s27189_s28  ;;  %p27197_p12 = scmp.lt.u32.totalorder %s27189_s28, %s33836_s8 }
 0xe2f   : > { %p27191_p7 = pnand %p27190_p4, %p27408_p5 }
 0xe30   : > { %p27196_p11 = por %p27195_p10, %p27194_p9 }
 0xe31   : > { %p27192_p8 = pneg %p27191_p7 }
 0xe32   : > { %p27198_p13 = por %p27197_p12, %p27196_p11 }
 0xe34   : > { %p27199_p0 = pnand %p27198_p13, %p27192_p8 }
 0xe36   : > { %27202 = shalt.err (!%p27199_p0)
}
 0xe37   : > { %s27243_s24 = smov 128   ;;  %s27244_s4 = smov 8  }
 0xe38   : > { %26997 = dma.vmem_to_hbm [thread:$0]  (%p27408_p5), %s33838_s5, 1024, %s33836_s8, %s33846_s6, %s27243_s24, %s27243_s24, %s27244_s4  }
 0xe39 PF: > { %s35765_s2 = sld [smem:[#allocation7_spill]]  ;;  %s35766_s30 = sld [smem:[#allocation5_spill]] }
 0xe3f   : > { %p27003_p1 = scmp.ge.s32.totalorder %s35765_s2, 2  ;;  %s18625_s7 = sand.u32 1, %s35766_s30  }
 0xe40   : > { %s18626_s28 = scalar_lea.sflag [#allocation3], %s18625_s7 }
 0xe41   : > { %p27000_p2 = pnand %p27003_p1, %p27412_p6 }
 0xe43   : > { %27220 = dma.done.wait (!%p27000_p2), %s18626_s28, 1024  }
 0xe44   : > { %27222 = vsyncadd (!%p27000_p2), %s18626_s28, 4294966272  ;;  %s35768_s28 = sld [smem:[#allocation8_spill]]  ;;  %s35769_s27 = sld [smem:[#allocation6_spill]] }
 0xe45   : > { %s35770_s1 = sld [smem:[#allocation9_spill]]  ;;  %s35771_s5 = smov %s27229_s26 }
 0xe4a   : > { %p34_p3 = scmp.ge.s32.totalorder %s35768_s28, 4   ;;  %s35772_s26 = smov %s35769_s27 }
 0xe4b   : > { %s35773_s27 = smov %s35770_s1 }
 0xe4c   :  { %36 = sbr.rel (!%p34_p3) target bundleno = 14 (0xe), region = 215 }
 0xe53   :  { %18631 = vsyncpa [#allocation3], 1 }
 0xe54   :  { %18633 = vsyncpa [#allocation3 + $0x1], 1 }

</bundles_post_ra>
